<compile_context>
chip_gen: v7x
topology: tpu7x:2x2x1
jax: 0.10.0
libtpu: 0.0.40
codegen_flags: <defaults>
</compile_context>

<pallas_src>
import math

import jax
import jax.numpy as jnp
import numpy as np
from jax.experimental import pallas as pl
from jax.experimental.pallas import tpu as pltpu

# ---- model hyper-parameters (from Naive.__init__ defaults) -------------------
D = 8                    # flow_shape[0] (event dim of problem.param_shape)
L = 5                    # --marginal-layers default
SPLIT = D // 2           # pyro affine_coupling default split_dim
S2 = D - SPLIT           # transformed half
H = 10 * D               # pyro affine_coupling default hidden_dims = [10 * input_dim]
HP = L * H               # 400 fused hidden rows (all layers stacked)
HP1 = HP + 8             # + ones row (index HP) + zero padding to a sublane multiple
K1 = SPLIT + 1           # x1 rows + ones row (layer-1 bias fold)
NM = 2 * L * S2          # 40 fused layer-2 output rows: [all means | all log_scales]
TB = 512                 # batch tile (lanes) per grid step

_LOG_2PI = math.log(2.0 * math.pi)
_PREC = jax.lax.Precision.HIGHEST


def _naive_logprob_kernel(xt_ref, w1_ref, w2_ref, out_ref):
    """log_prob of one batch tile under the 5-layer affine-coupling flow.

    xt_ref : (D+1, TB)   rows [0:SPLIT]=x1, row SPLIT=ones, rows [SPLIT+1:]=x2
    w1_ref : (HP1, K1)   fused layer-1 weights (+bias col, +constant-1 row)
    w2_ref : (NM, HP1)   block-diag fused layer-2 weights (+bias col at HP)
    out_ref: (1, TB)     log_prob per lane
    """
    xt = xt_ref[...]
    x1a = xt[:K1, :]                                      # (5,  TB) [x1; ones]
    x1 = xt[:SPLIT, :]                                    # (4,  TB)
    x2 = xt[K1:, :]                                       # (4,  TB)

    # One fused layer-1 hypernet matmul for all L coupling layers.
    h_all = jnp.maximum(
        jnp.dot(w1_ref[...], x1a,
                preferred_element_type=jnp.float32, precision=_PREC),
        0.0)                                              # (HP1, TB); row HP == 1

    # One fused block-diagonal layer-2 matmul: rows [0:20]=means, [20:40]=log_scales.
    o_all = jnp.dot(w2_ref[...], h_all,
                    preferred_element_type=jnp.float32, precision=_PREC)  # (40, TB)

    means = o_all[:L * S2, :]                             # (20, TB)
    ls_all = jnp.clip(o_all[L * S2:, :], -5.0, 3.0)       # clamp_preserve_gradients fwd
    inv_scale = jnp.exp(-ls_all)                          # single EUP batch

    # TransformedDistribution.log_prob inverts the flows in reverse order.
    for l in range(L - 1, -1, -1):
        sl = slice(l * S2, (l + 1) * S2)
        x2 = (x2 - means[sl, :]) * inv_scale[sl, :]       # inverse of y2 = m + e^s * x2

    logdet = jnp.sum(ls_all, axis=0, keepdims=True)       # (1, TB)
    sq = (jnp.sum(x1 * x1, axis=0, keepdims=True)
          + jnp.sum(x2 * x2, axis=0, keepdims=True))      # ||inverted point||^2
    out_ref[...] = -0.5 * sq - 0.5 * D * _LOG_2PI - logdet


def _pack_weights(w1, b1, w2, b2):
    """Host-side (free) weight plumbing for the fused kernel."""
    w1 = w1.astype(jnp.float32); b1 = b1.astype(jnp.float32)
    w2 = w2.astype(jnp.float32); b2 = b2.astype(jnp.float32)

    # layer-1: stack all layers, fold bias as an extra K column, append a row
    # producing a constant 1 (so layer-2 biases can ride the second matmul).
    rows = jnp.concatenate(
        [jnp.transpose(w1, (0, 2, 1)).reshape(HP, SPLIT), b1.reshape(HP, 1)],
        axis=1)                                           # (HP, K1)
    w1_big = jnp.zeros((HP1, K1), jnp.float32)
    w1_big = w1_big.at[:HP].set(rows)
    w1_big = w1_big.at[HP, SPLIT].set(1.0)                # constant-1 hidden row

    # layer-2: block-diagonal, mean rows first, log_scale rows second;
    # column HP carries the biases (multiplied by the constant-1 hidden row).
    w2_big = np.zeros((NM, HP1), np.float32)
    w2_np = np.asarray(w2)
    for l in range(L):
        w2_big[l * S2:(l + 1) * S2, l * H:(l + 1) * H] = w2_np[l][:, :S2].T
        w2_big[L * S2 + l * S2:L * S2 + (l + 1) * S2, l * H:(l + 1) * H] = w2_np[l][:, S2:].T
    w2_big[:L * S2, HP] = np.asarray(b2)[:, :S2].reshape(L * S2)
    w2_big[L * S2:, HP] = np.asarray(b2)[:, S2:].reshape(L * S2)
    return w1_big, jnp.asarray(w2_big)


def naive_log_prob(d, w1, b1, w2, b2, *, tb=TB):
    """log_prob of the rows of d (shape (B, D)) under the flow.

    d : (B, D); w1: (L, SPLIT, H); b1: (L, H); w2: (L, H, 2*S2); b2: (L, 2*S2)
    """
    B = d.shape[0]
    n_blk = max(1, (B + tb - 1) // tb)
    Bp = n_blk * tb

    # ---- host-side layout plumbing: batch -> lane axis, [x1 | ones | x2] ----
    d32 = d.astype(jnp.float32)
    xt = jnp.concatenate(
        [d32[:, :SPLIT].T, jnp.ones((1, B), jnp.float32), d32[:, SPLIT:].T],
        axis=0)                                           # (D+1, B)
    if Bp != B:
        xt = jnp.pad(xt, ((0, 0), (0, Bp - B)))

    w1_big, w2_big = _pack_weights(w1, b1, w2, b2)

    out = pl.pallas_call(
        _naive_logprob_kernel,
        out_shape=jax.ShapeDtypeStruct((1, Bp), jnp.float32),
        grid=(n_blk,),
        in_specs=[
            pl.BlockSpec((D + 1, tb), lambda i: (0, i)),  # data tile (lane-dense)
            pl.BlockSpec((HP1, K1), lambda i: (0, 0)),    # resident fused layer-1 W
            pl.BlockSpec((NM, HP1), lambda i: (0, 0)),    # resident fused layer-2 W
        ],
        out_specs=pl.BlockSpec((1, tb), lambda i: (0, i)),
        compiler_params=pltpu.CompilerParams(
            dimension_semantics=("parallel",)),           # 2x on v7x megacore
    )(xt, w1_big, w2_big)
    return out[0, :B]


def naive_log_prob_ref(d, w1, b1, w2, b2):
    """Pure-JAX reference (same semantics as pyro TransformedDistribution.log_prob)."""
    x1 = d[:, :SPLIT]
    x2 = d[:, SPLIT:]
    logdet = jnp.zeros((d.shape[0],), jnp.float32)
    for l in range(L - 1, -1, -1):
        h = jax.nn.relu(x1 @ w1[l] + b1[l])
        o = h @ w2[l] + b2[l]
        mean, log_scale = o[:, :S2], jnp.clip(o[:, S2:], -5.0, 3.0)
        x2 = (x2 - mean) * jnp.exp(-log_scale)
        logdet = logdet + jnp.sum(log_scale, axis=-1)
    base_lp = -0.5 * (jnp.sum(x1 * x1, -1) + jnp.sum(x2 * x2, -1)) - 0.5 * D * _LOG_2PI
    return base_lp - logdet


if __name__ == "__main__":
    # full-f32 matmul passes everywhere so kernel and reference agree tightly
    jax.config.update("jax_default_matmul_precision", "highest")

    key = jax.random.PRNGKey(0)
    k_d, k_w1, k_b1, k_w2, k_b2 = jax.random.split(key, 5)

    B = 1024   # 2 lane-dense tiles of TB=512 -> even #blocks for v7x megacore

    # deterministic synthetic parameters (hypernet of each of the 5 coupling flows)
    w1 = 0.1 * jax.random.normal(k_w1, (L, SPLIT, H), dtype=jnp.float32)
    b1 = 0.1 * jax.random.normal(k_b1, (L, H), dtype=jnp.float32)
    w2 = 0.1 * jax.random.normal(k_w2, (L, H, 2 * S2), dtype=jnp.float32)
    b2 = 0.1 * jax.random.normal(k_b2, (L, 2 * S2), dtype=jnp.float32)

    # data to score: d ~ N(0, I), shape (batch, event_dim)
    d = jax.random.normal(k_d, (B, D), dtype=jnp.float32)

    out = jax.block_until_ready(naive_log_prob(d, w1, b1, w2, b2))
    ref = jax.block_until_ready(naive_log_prob_ref(d, w1, b1, w2, b2))

    np.testing.assert_allclose(np.asarray(out), np.asarray(ref), rtol=1e-4, atol=1e-4)
    assert out.shape == (B,)
    print("KERNEL_OK")
</pallas_src>

<mosaic_0001>
module attributes {stable_mosaic.version = 11 : i64} {
  func.func @_naive_logprob_kernel(%arg0: i32, %arg1: memref<9x512xf32, #tpu.memory_space<vmem>>, %arg2: memref<408x5xf32, #tpu.memory_space<vmem>>, %arg3: memref<40x408xf32, #tpu.memory_space<vmem>>, %arg4: memref<1x512xf32, #tpu.memory_space<vmem>>) attributes {dimension_semantics = [#tpu.dimension_semantics<parallel>], iteration_bounds = array<i64: 2>, scalar_prefetch = 0 : i64, scratch_operands = 0 : i64, tpu.core_type = #tpu.core_type<tc>, window_params = [{transform_indices = @transform_0, window_bounds = array<i64: 9, 512>}, {pipeline_mode = #tpu.pipeline_mode<synchronous>, transform_indices = @transform_1, window_bounds = array<i64: 408, 5>}, {pipeline_mode = #tpu.pipeline_mode<synchronous>, transform_indices = @transform_2, window_bounds = array<i64: 40, 408>}, {transform_indices = @transform_3, window_bounds = array<i64: 1, 512>}]} {
    %c0 = arith.constant 0 : index
    %c0_0 = arith.constant 0 : index
    %0 = vector.load %arg1[%c0, %c0_0] : memref<9x512xf32, #tpu.memory_space<vmem>>, vector<9x512xf32>
    %1 = vector.extract_strided_slice %0 {offsets = [0, 0], sizes = [5, 512], strides = [1, 1]} : vector<9x512xf32> to vector<5x512xf32>
    %2 = vector.extract_strided_slice %0 {offsets = [0, 0], sizes = [4, 512], strides = [1, 1]} : vector<9x512xf32> to vector<4x512xf32>
    %3 = vector.extract_strided_slice %0 {offsets = [5, 0], sizes = [4, 512], strides = [1, 1]} : vector<9x512xf32> to vector<4x512xf32>
    %c0_1 = arith.constant 0 : index
    %c0_2 = arith.constant 0 : index
    %4 = vector.load %arg2[%c0_1, %c0_2] : memref<408x5xf32, #tpu.memory_space<vmem>>, vector<408x5xf32>
    %cst = arith.constant dense<0.000000e+00> : vector<408x512xf32>
    %5 = tpu.matmul %4, %1, %cst {dimension_numbers = #tpu.dot_dimension_numbers<[1], [0], [0], [1], [0, 0, 1, 1], [], []>, precision = #tpu.contract_precision<fp32>} : vector<408x5xf32>, vector<5x512xf32>, vector<408x512xf32> -> vector<408x512xf32>
    %cst_3 = arith.constant 0.000000e+00 : f32
    %6 = vector.broadcast %cst_3 : f32 to vector<408x512xf32>
    %7 = arith.maximumf %5, %6 : vector<408x512xf32>
    %c0_4 = arith.constant 0 : index
    %c0_5 = arith.constant 0 : index
    %8 = vector.load %arg3[%c0_4, %c0_5] : memref<40x408xf32, #tpu.memory_space<vmem>>, vector<40x408xf32>
    %cst_6 = arith.constant dense<0.000000e+00> : vector<40x512xf32>
    %9 = tpu.matmul %8, %7, %cst_6 {dimension_numbers = #tpu.dot_dimension_numbers<[1], [0], [0], [1], [0, 0, 1, 1], [], []>, precision = #tpu.contract_precision<fp32>} : vector<40x408xf32>, vector<408x512xf32>, vector<40x512xf32> -> vector<40x512xf32>
    %10 = vector.extract_strided_slice %9 {offsets = [0, 0], sizes = [20, 512], strides = [1, 1]} : vector<40x512xf32> to vector<20x512xf32>
    %11 = vector.extract_strided_slice %9 {offsets = [20, 0], sizes = [20, 512], strides = [1, 1]} : vector<40x512xf32> to vector<20x512xf32>
    %cst_7 = arith.constant -5.000000e+00 : f32
    %cst_8 = arith.constant 3.000000e+00 : f32
    %12 = vector.broadcast %cst_7 : f32 to vector<20x512xf32>
    %13 = arith.maximumf %12, %11 : vector<20x512xf32>
    %14 = vector.broadcast %cst_8 : f32 to vector<20x512xf32>
    %15 = arith.minimumf %14, %13 : vector<20x512xf32>
    %cst_9 = arith.constant 0.000000e+00 : f32
    %16 = vector.broadcast %cst_9 : f32 to vector<20x512xf32>
    %17 = arith.subf %16, %15 : vector<20x512xf32>
    %18 = math.exp %17 : vector<20x512xf32>
    %19 = vector.extract_strided_slice %10 {offsets = [16, 0], sizes = [4, 512], strides = [1, 1]} : vector<20x512xf32> to vector<4x512xf32>
    %20 = arith.subf %3, %19 : vector<4x512xf32>
    %21 = vector.extract_strided_slice %18 {offsets = [16, 0], sizes = [4, 512], strides = [1, 1]} : vector<20x512xf32> to vector<4x512xf32>
    %22 = arith.mulf %20, %21 : vector<4x512xf32>
    %23 = vector.extract_strided_slice %10 {offsets = [12, 0], sizes = [4, 512], strides = [1, 1]} : vector<20x512xf32> to vector<4x512xf32>
    %24 = arith.subf %22, %23 : vector<4x512xf32>
    %25 = vector.extract_strided_slice %18 {offsets = [12, 0], sizes = [4, 512], strides = [1, 1]} : vector<20x512xf32> to vector<4x512xf32>
    %26 = arith.mulf %24, %25 : vector<4x512xf32>
    %27 = vector.extract_strided_slice %10 {offsets = [8, 0], sizes = [4, 512], strides = [1, 1]} : vector<20x512xf32> to vector<4x512xf32>
    %28 = arith.subf %26, %27 : vector<4x512xf32>
    %29 = vector.extract_strided_slice %18 {offsets = [8, 0], sizes = [4, 512], strides = [1, 1]} : vector<20x512xf32> to vector<4x512xf32>
    %30 = arith.mulf %28, %29 : vector<4x512xf32>
    %31 = vector.extract_strided_slice %10 {offsets = [4, 0], sizes = [4, 512], strides = [1, 1]} : vector<20x512xf32> to vector<4x512xf32>
    %32 = arith.subf %30, %31 : vector<4x512xf32>
    %33 = vector.extract_strided_slice %18 {offsets = [4, 0], sizes = [4, 512], strides = [1, 1]} : vector<20x512xf32> to vector<4x512xf32>
    %34 = arith.mulf %32, %33 : vector<4x512xf32>
    %35 = vector.extract_strided_slice %10 {offsets = [0, 0], sizes = [4, 512], strides = [1, 1]} : vector<20x512xf32> to vector<4x512xf32>
    %36 = arith.subf %34, %35 : vector<4x512xf32>
    %37 = vector.extract_strided_slice %18 {offsets = [0, 0], sizes = [4, 512], strides = [1, 1]} : vector<20x512xf32> to vector<4x512xf32>
    %38 = arith.mulf %36, %37 : vector<4x512xf32>
    %cst_10 = arith.constant dense<0.000000e+00> : vector<512xf32>
    %39 = vector.multi_reduction <add>, %15, %cst_10 [0] : vector<20x512xf32> to vector<512xf32>
    %40 = vector.shape_cast %39 : vector<512xf32> to vector<1x512xf32>
    %41 = arith.mulf %2, %2 : vector<4x512xf32>
    %cst_11 = arith.constant dense<0.000000e+00> : vector<512xf32>
    %42 = vector.multi_reduction <add>, %41, %cst_11 [0] : vector<4x512xf32> to vector<512xf32>
    %43 = vector.shape_cast %42 : vector<512xf32> to vector<1x512xf32>
    %44 = arith.mulf %38, %38 : vector<4x512xf32>
    %cst_12 = arith.constant dense<0.000000e+00> : vector<512xf32>
    %45 = vector.multi_reduction <add>, %44, %cst_12 [0] : vector<4x512xf32> to vector<512xf32>
    %46 = vector.shape_cast %45 : vector<512xf32> to vector<1x512xf32>
    %47 = arith.addf %43, %46 : vector<1x512xf32>
    %cst_13 = arith.constant -5.000000e-01 : f32
    %48 = vector.broadcast %cst_13 : f32 to vector<1x512xf32>
    %49 = arith.mulf %48, %47 : vector<1x512xf32>
    %cst_14 = arith.constant 7.35150814 : f32
    %50 = vector.broadcast %cst_14 : f32 to vector<1x512xf32>
    %51 = arith.subf %49, %50 : vector<1x512xf32>
    %52 = arith.subf %51, %40 : vector<1x512xf32>
    %c0_15 = arith.constant 0 : index
    %c0_16 = arith.constant 0 : index
    %53 = vector.load %arg4[%c0_15, %c0_16] : memref<1x512xf32, #tpu.memory_space<vmem>>, vector<1x512xf32>
    tpu.vector_store %arg4[%c0_15, %c0_16], %52 {strides = array<i32>} : memref<1x512xf32, #tpu.memory_space<vmem>>, vector<1x512xf32>,
    return
  }
  func.func @transform_0(%arg0: i32) -> (i32, i32) {
    %c0_i32 = arith.constant 0 : i32
    %c0_i32_0 = arith.constant 0 : i32
    return %c0_i32, %arg0 : i32, i32
  }
  func.func @transform_1(%arg0: i32) -> (i32, i32) {
    %c0_i32 = arith.constant 0 : i32
    %c0_i32_0 = arith.constant 0 : i32
    %c0_i32_1 = arith.constant 0 : i32
    return %c0_i32, %c0_i32_0 : i32, i32
  }
  func.func @transform_2(%arg0: i32) -> (i32, i32) {
    %c0_i32 = arith.constant 0 : i32
    %c0_i32_0 = arith.constant 0 : i32
    %c0_i32_1 = arith.constant 0 : i32
    return %c0_i32, %c0_i32_0 : i32, i32
  }
  func.func @transform_3(%arg0: i32) -> (i32, i32) {
    %c0_i32 = arith.constant 0 : i32
    %c0_i32_0 = arith.constant 0 : i32
    return %c0_i32, %arg0 : i32, i32
  }
}

</mosaic_0001>

<bundles_post_ra>
// kernel: tpu_custom_call.1
= control target key start
LH: loop header
LB: loop body
LE: loop exit
PB: predicated region body
PF: predicated region fallthrough
CT: control target
= control target key end

     0   :  { %8 = vsyncpa [#allocation4], 0  ;;  %s21871_s0 = inlined_call_operand.vmem [shape: f32[9,1024], index: 0, kind: input, shape index: {}]   ;;  %s21872_s1 = inlined_call_operand.vmem [shape: f32[408,5], index: 1, kind: input, shape index: {}]   ;;  %s21873_s2 = inlined_call_operand.vmem [shape: f32[40,408], index: 2, kind: input, shape index: {}]   ;;  %s21874_s3 = inlined_call_operand.hbm [shape: f32[1,1024], index: 3, kind: output, shape index: {}]  }
   0x1   :  { %10 = vsyncpa [#allocation4 + $0x1], 0  ;;  %s15117_s12 = smov 0   ;;  %s15119_s13 = smov 0  }
   0x2   :  { %s15121_s14 = smov 0   ;;  %s15123_s15 = smov 0  }
   0x3 LB: > { %s12500_s16 = sadd.s32 4294967295, %s15092_s15   ;;  %s12501_s17 = sadd.s32 4294967294, %s15092_s15   ;;  %s15092_s15 = sphi %s15123_s15, %s25333_s15   ;;  %s15088_s14 = sphi %s15121_s14, %s25332_s14   ;;  %s15084_s13 = sphi %s15119_s13, %s25331_s13   ;;  %s15080_s12 = sphi %s15117_s12, %s25330_s12  }
   0x4   : > { %s15140_s18 = sadd.s32 1, %s15092_s15   ;;  %s23_s19 = sadd.s32 1, %s15088_s14 }
   0x5   : > { %s20_s20 = ssub.s32 %s15092_s15, %s15140_s18  ;;  %p30_p0 = scmp.ne.s32.totalorder %s15088_s14, %s15084_s13 }
   0x6   : > { %p21_p1 = scmp.eq.s32.totalorder %s20_s20, 0  ;;  %p31_p2 = scmp.eq.s32.totalorder %s15092_s15, 0 }
   0x7   : > { %p102_p3 = scmp.eq.s32.totalorder %s12500_s16, 1  ;;  %p107_p4 = scmp.ne.s32.totalorder %s15084_s13, %s15080_s12 }
   0x8   : > { %s15153_s21 = scalar_select %p21_p1, %s15088_s14, %s23_s19  }
   0x9   : > { %p32_p5 = por %p31_p2, %p30_p0  ;;  %p15155_p6 = por %p102_p3, %p30_p0 }
   0xa   : > { %p108_p7 = scmp.eq.s32.totalorder %s12501_s17, 1  ;;  %p12503_p9 = scmp.ge.s32.totalorder %s15092_s15, 2 }
   0xc   : > { %p15159_p8 = por %p108_p7, %p107_p4  ;;  %130 = sbr.rel (%p12503_p9) target bundleno = 27 (0x1b), region = 24 }
  0x13   : > { %133 = sbr.rel (!%p32_p5) target bundleno = 27 (0x1b), region = 28  ;;  %s135_s24 = sand.u32 (%p32_p5), 1, %s15088_s14  }
  0x14   : > { %s12519_s25 = sshll.u32 (%p32_p5), %s15092_s15, 5  ;;  %s12504_s26 = sshll.u32 (%p32_p5), %s135_s24, 6 }
  0x15   : > { %s140_s29 = scalar_lea.vmem (%p32_p5), %s21871_s0, %s12519_s25  ;;  %s137_s30 = scalar_lea.vmem (%p32_p5), [#allocation2], %s12504_s26 }
  0x16   : > { %v153_v0 = vld [vmem:[%s140_s29] sm:$0xff] (%p32_p5)  ;;  %v155_v1 = vld [vmem:[%s140_s29 + $0x8] sm:$0xff] (%p32_p5)  ;;  %v157_v2 = vld [vmem:[%s140_s29 + $0x10] sm:$0xff] (%p32_p5) }
  0x17   : > { %154 = vst [vmem:[%s137_s30] sm:$0xff] (%p32_p5), %v153_v0  ;;  %156 = vst [vmem:[%s137_s30 + $0x8] sm:$0xff] (%p32_p5), %v155_v1  ;;  %v159_v3 = vld [vmem:[%s140_s29 + $0x18] sm:$0xff] (%p32_p5)  ;;  %v161_v4 = vld [vmem:[%s140_s29 + $0x40] sm:$0xff] (%p32_p5) }
  0x18   : > { %158 = vst [vmem:[%s137_s30 + $0x10] sm:$0xff] (%p32_p5), %v157_v2  ;;  %v163_v5 = vld [vmem:[%s140_s29 + $0x48] sm:$0xff] (%p32_p5)  ;;  %160 = vst [vmem:[%s137_s30 + $0x18] sm:$0xff] (%p32_p5), %v159_v3  ;;  %v165_v6 = vld [vmem:[%s140_s29 + $0x50] sm:$0xff] (%p32_p5) }
  0x19   : > { %162 = vst [vmem:[%s137_s30 + $0x20] sm:$0xff] (%p32_p5), %v161_v4  ;;  %164 = vst [vmem:[%s137_s30 + $0x28] sm:$0xff] (%p32_p5), %v163_v5  ;;  %v167_v7 = vld [vmem:[%s140_s29 + $0x58] sm:$0xff] (%p32_p5) }
  0x1a   : > { %166 = vst [vmem:[%s137_s30 + $0x30] sm:$0xff] %v165_v6  ;;  %168 = vst [vmem:[%s137_s30 + $0x38] sm:$0xff] %v167_v7 }
  0x1b PF: > { %p12507_p10 = scmp.ge.s32.totalorder %s15092_s15, 1  ;;  %p173_p11 = scmp.lt.s32.totalorder %s15092_s15, 3 }
  0x1d   : > { %p174_p12 = pnand %p12507_p10, %p173_p11 }
  0x1f   : > { %177 = sbr.rel (%p174_p12) target bundleno = 2530 (0x9e2), region = 51 }
  0x26   : > { %s15174_s4 = sand.u32 1, %s15084_s13   ;;  %v213_v8 = vld [vmem:[%s21872_s1] sm:$0xff]  ;;  %vm264_vm0 = vcmask 39936   ;;  %vm418_vm1 = vcmask 1044480   ;;  %v21885_v9 = vmov 0.0   ;;  %v214_v11 = vld [vmem:[%s21872_s1 + $0x8] sm:$0xff] }
  0x27   : > { %s12508_s7 = sshll.u32 %s15174_s4, 6  ;;  %497 = vmatprep.mubr.f32.mxu0 %v21885_v9  ;;  %3412 = vmatprep.mubr.f32.mxu1 %v21885_v9  ;;  %v266_v10 = vsel %vm264_vm0, %v213_v8, 0  ;;  %v215_v12 = vld [vmem:[%s21872_s1 + $0x10] sm:$0xff]  ;;  %v216_v13 = vld [vmem:[%s21872_s1 + $0x18] sm:$0xff]  ;;  %v269_v14 = vsel %vm264_vm0, %v214_v11, 0  ;;  %v217_v42 = vld [vmem:[%s21872_s1 + $0x20] sm:$0xff] }
  0x28   : > { %s15193_s20 = scalar_lea.vmem [#allocation2], %s12508_s7  ;;  %v272_v18 = vsel %vm264_vm0, %v215_v12, 0  ;;  %v15206_v22 = vand.u32 4294901760, %v266_v10  ;;  %v275_v23 = vsel %vm264_vm0, %v216_v13, 0  ;;  %v15218_v27 = vand.u32 4294901760, %v269_v14  ;;  %v218_v44 = vld [vmem:[%s21872_s1 + $0x28] sm:$0xff] }
  0x29   : > { %v206_v15 = vld [vmem:[%s15193_s20 + $0x8] sm:$0xff]  ;;  %v208_v16 = vld [vmem:[%s15193_s20 + $0x18] sm:$0xff]  ;;  %v205_v17 = vld [vmem:[%s15193_s20] sm:$0xff]  ;;  %v15226_v30 = vand.u32 4294901760, %v272_v18  ;;  %v15237_v33 = vand.u32 4294901760, %v275_v23  ;;  %v278_v49 = vsel %vm264_vm0, %v217_v42, 0 }
  0x2a   : > { %v15200_v19 = vsel %vm418_vm1, %v206_v15, 0  ;;  %v15203_v20 = vsel %vm418_vm1, %v208_v16, 0  ;;  %v207_v21 = vld [vmem:[%s15193_s20 + $0x10] sm:$0xff]  ;;  %v15216_v26 = vsel %vm418_vm1, %v205_v17, 0  ;;  %v15235_v32 = vsub.f32 %v266_v10, %v15206_v22  ;;  %v220_v53 = vld [vmem:[%s21872_s1 + $0x38] sm:$0xff]  ;;  %v221_v62 = vld [vmem:[%s21872_s1 + $0x40] sm:$0xff] }
  0x2b   : > { %v15210_v24 = vand.u32 4294901760, %v15200_v19  ;;  %v15213_v25 = vand.u32 4294901760, %v15203_v20  ;;  %v15221_v28 = vand.u32 4294901760, %v15216_v26  ;;  %v15224_v29 = vsel %vm418_vm1, %v207_v21, 0  ;;  %v219_v45 = vld [vmem:[%s21872_s1 + $0x30] sm:$0xff]  ;;  %v222_v5 = vld [vmem:[%s21872_s1 + $0x48] sm:$0xff] }
  0x2c   : > { %v15231_v31 = vand.u32 4294901760, %v15224_v29  ;;  %22972 = vst [vmem:[#allocation8_spill] sm:$0xff] %v15235_v32  ;;  %v15241_v34 = vsub.f32 %v269_v14, %v15218_v27  ;;  %v15244_v35 = vand.u32 4294901760, %v15235_v32  ;;  %v15247_v36 = vsub.f32 %v272_v18, %v15226_v30  ;;  %v223_v13 = vld [vmem:[%s21872_s1 + $0x50] sm:$0xff]  ;;  %s12520_s30 = sshll.u32 %s12500_s16, 6  ;;  %s12422_s10 = scalar_lea.sflag [#allocation4], %s15174_s4 }
  0x2d   : > { %22970 = vst [vmem:[#allocation6_spill] sm:$0xff] %v15221_v28  ;;  %432 = vmatprep.subr.mxu0 %v15210_v24  ;;  %3347 = vmatprep.subr.mxu1 %v15213_v25  ;;  %v15258_v40 = vsub.f32 %v275_v23, %v15237_v33  ;;  %v15279_v50 = vand.u32 4294901760, %v278_v49  ;;  %v281_v51 = vsel %vm264_vm0, %v218_v44, 0  ;;  %v284_v52 = vsel %vm264_vm0, %v219_v45, 0  ;;  %v224_v23 = vld [vmem:[%s21872_s1 + $0x58] sm:$0xff]  ;;  %s21827_s9 = scalar_lea.hbm %s21874_s3, %s12520_s30  ;;  %s15096_s16 = smov [#allocation3]  }
  0x2e   : > { %22971 = vst [vmem:[#allocation7_spill] sm:$0xff] %v15231_v31  ;;  %434 = vmatpush1.msra.mxu0 %v15221_v28  ;;  %3349 = vmatpush1.msra.mxu1 %v15231_v31  ;;  %22973 = vst [vmem:[#allocation9_spill] sm:$0xff] %v15241_v34  ;;  %v15250_v37 = vand.u32 4294901760, %v15241_v34  ;;  %v501_v38 = vsub.f32 %v15235_v32, %v15244_v35  ;;  %v15255_v39 = vand.u32 4294901760, %v15247_v36  ;;  %v15286_v54 = vand.u32 4294901760, %v281_v51  ;;  %v259_v32 = vld [vmem:[%s21872_s1 + $0x170] sm:$0xff] }
  0x2f   : > { %22974 = vst [vmem:[#allocation10_spill] sm:$0xff] %v15244_v35  ;;  %22975 = vst [vmem:[#allocation11_spill] sm:$0xff] %v15247_v36  ;;  %v15272_v46 = vand.u32 4294901760, %v15258_v40  ;;  %v15291_v56 = vsub.f32 %v278_v49, %v15279_v50  ;;  %v15296_v59 = vand.u32 4294901760, %v284_v52  ;;  %v287_v60 = vsel %vm264_vm0, %v220_v53, 0  ;;  %s15034_s17 = sshll.u32 %s15096_s16, 4  ;;  %s15035_s17 = int_to_ptr.vmem [resolvable:$false] %s15034_s17 }
  0x30   : > { %22976 = vst [vmem:[#allocation12_spill] sm:$0xff] %v15250_v37  ;;  %22977 = vst [vmem:[#allocation13_spill] sm:$0xff] %v15255_v39  ;;  %v512_v41 = vsub.f32 %v15241_v34, %v15250_v37  ;;  %v502_v43 = vand.u32 4294901760, %v501_v38  ;;  %v523_v48 = vsub.f32 %v15247_v36, %v15255_v39  ;;  %v15294_v58 = vsub.f32 %v281_v51, %v15286_v54  ;;  %v225_v51 = vld [vmem:[%s21872_s1 + $0x60] sm:$0xff]  ;;  %v236_v37 = vld [vmem:[%s21872_s1 + $0xb8] sm:$0xff]  ;;  %s15036_s19 = scalar_lea.vmem %s15035_s17, 128 }
  0x31   : > { %22978 = vst [vmem:[#allocation14_spill] sm:$0xff] %v15258_v40  ;;  %22979 = vst [vmem:[#allocation15_spill] sm:$0xff] %v15272_v46  ;;  %v534_v55 = vsub.f32 %v15258_v40, %v15272_v46  ;;  %v15302_v61 = vand.u32 4294901760, %v15291_v56  ;;  %v15307_v0 = vand.u32 4294901760, %v287_v60  ;;  %v15315_v3 = vsub.f32 %v284_v52, %v15296_v59 }
  0x32   : > { %503 = vmatmul.mubr.f32.vlgmr.msra.gmra.mrb[0].mxu0 %v502_v43  ;;  %3418 = vmatmul.mubr.f32.vlgmr.msra.gmra.mrb[0].mxu1 %v502_v43  ;;  %v513_v47 = vand.u32 4294901760, %v512_v41  ;;  %22980 = vst [vmem:[#allocation16_spill] sm:$0xff] %v15291_v56  ;;  %v524_v57 = vand.u32 4294901760, %v523_v48  ;;  %22981 = vst [vmem:[#allocation17_spill] sm:$0xff] %v15294_v58  ;;  %v15312_v2 = vand.u32 4294901760, %v15294_v58  ;;  %v290_v4 = vsel %vm264_vm0, %v221_v62, 0 }
  0x33   : > { %508 = vmatprep.mubr.f32.mxu0 %v21885_v9  ;;  %3423 = vmatprep.mubr.f32.mxu1 %v21885_v9  ;;  %22982 = vst [vmem:[#allocation18_spill] sm:$0xff] %v15302_v61  ;;  %v535_v63 = vand.u32 4294901760, %v534_v55  ;;  %v545_v1 = vsub.f32 %v15291_v56, %v15302_v61  ;;  %22984 = vst [vmem:[#allocation20_spill] sm:$0xff] %v15315_v3  ;;  %v15323_v6 = vand.u32 4294901760, %v290_v4  ;;  %v293_v7 = vsel %vm264_vm0, %v222_v5, 0 }
  0x34   : > { %22983 = vst [vmem:[#allocation19_spill] sm:$0xff] %v15312_v2  ;;  %v556_v10 = vsub.f32 %v15294_v58, %v15312_v2  ;;  %v15329_v11 = vand.u32 4294901760, %v15315_v3  ;;  %v15332_v12 = vsub.f32 %v287_v60, %v15307_v0  ;;  %v15342_v15 = vand.u32 4294901760, %v293_v7  ;;  %v234_v2 = vld [vmem:[%s21872_s1 + $0xa8] sm:$0xff] }
  0x35   : > { %v546_v8 = vand.u32 4294901760, %v545_v1  ;;  %v15340_v14 = vsub.f32 %v290_v4, %v15323_v6  ;;  %v296_v16 = vsel %vm264_vm0, %v223_v13, 0  ;;  %v299_v45 = vsel %vm264_vm0, %v224_v23, 0 }
  0x36   : > { %514 = vmatmul.mubr.f32.gmra.mrb[2].mxu0 %v513_v47  ;;  %3429 = vmatmul.mubr.f32.gmra.mrb[2].mxu1 %v513_v47  ;;  %22985 = vst [vmem:[#allocation21_spill] sm:$0xff] %v15329_v11  ;;  %22986 = vst [vmem:[#allocation22_spill] sm:$0xff] %v15332_v12  ;;  %v557_v17 = vand.u32 4294901760, %v556_v10  ;;  %v567_v18 = vsub.f32 %v15315_v3, %v15329_v11  ;;  %v15348_v21 = vand.u32 4294901760, %v15332_v12  ;;  %v15355_v38 = vand.u32 4294901760, %v296_v16 }
  0x37   : > { %519 = vmatprep.mubr.f32.mxu0 %v21885_v9  ;;  %3434 = vmatprep.mubr.f32.mxu1 %v21885_v9  ;;  %22987 = vst [vmem:[#allocation23_spill] sm:$0xff] %v15340_v14  ;;  %v15358_v41 = vand.u32 4294901760, %v15340_v14  ;;  %v15361_v42 = vsub.f32 %v293_v7, %v15342_v15  ;;  %v15370_v47 = vsub.f32 %v15216_v26, %v15221_v28  ;;  %v15391_v55 = vand.u32 4294901760, %v299_v45 }
  0x38   : > { %22988 = vst [vmem:[#allocation24_spill] sm:$0xff] %v15348_v21  ;;  %v568_v43 = vand.u32 4294901760, %v567_v18  ;;  %v578_v44 = vsub.f32 %v15332_v12, %v15348_v21  ;;  %v15374_v48 = vsub.f32 %v15224_v29, %v15231_v31  ;;  %v15377_v49 = vsub.f32 %v296_v16, %v15355_v38 }
  0x39   : > { %22989 = vst [vmem:[#allocation25_spill] sm:$0xff] %v15358_v41  ;;  %22990 = vst [vmem:[#allocation26_spill] sm:$0xff] %v15361_v42  ;;  %v15384_v52 = vsub.f32 %v15200_v19, %v15210_v24  ;;  %v589_v53 = vsub.f32 %v15340_v14, %v15358_v41  ;;  %v15389_v26 = vand.u32 4294901760, %v15361_v42  ;;  %v15395_v29 = vsub.f32 %v15203_v20, %v15213_v25  ;;  %v226_v20 = vld [vmem:[%s21872_s1 + $0x68] sm:$0xff] }
  0x3a   : > { %525 = vmatmul.mubr.f32.gmra.mrb[4].mxu0 %v524_v57  ;;  %3440 = vmatmul.mubr.f32.gmra.mrb[4].mxu1 %v524_v57  ;;  %22991 = vst [vmem:[#allocation27_spill] sm:$0xff] %v15377_v49  ;;  %v579_v57 = vand.u32 4294901760, %v578_v44  ;;  %v302_v19 = vsel %vm264_vm0, %v225_v51, 0  ;;  %v21876_v4 = vand.u32 4294901760, %v15370_v47  ;;  %v21875_v5 = vand.u32 4294901760, %v15374_v48  ;;  %v227_v44 = vld [vmem:[%s21872_s1 + $0x70] sm:$0xff] }
  0x3b   : > { %530 = vmatprep.mubr.f32.mxu0 %v21885_v9  ;;  %3445 = vmatprep.mubr.f32.mxu1 %v21885_v9  ;;  %22992 = vst [vmem:[#allocation28_spill] sm:$0xff] %v15384_v52  ;;  %22993 = vst [vmem:[#allocation29_spill] sm:$0xff] %v15389_v26  ;;  %v21878_v60 = vand.u32 4294901760, %v15384_v52  ;;  %v21877_v62 = vand.u32 4294901760, %v15395_v29  ;;  %v590_v7 = vand.u32 4294901760, %v589_v53  ;;  %v15416_v10 = vsub.f32 %v299_v45, %v15391_v55 }
  0x3c   : > { %22994 = vst [vmem:[#allocation30_spill] sm:$0xff] %v15395_v29  ;;  %v15421_v16 = vand.u32 4294901760, %v302_v19  ;;  %v1068_v18 = vsub.f32 %v15370_v47, %v21876_v4  ;;  %v3983_v23 = vsub.f32 %v15374_v48, %v21875_v5  ;;  %vm6485_vm2 = vcmask 195584  }
  0x3d   : > { %v1062_v1 = vsub.f32 %v15384_v52, %v21878_v60  ;;  %22996 = vst [vmem:[#allocation32_spill] sm:$0xff] %v15416_v10  ;;  %v3977_v13 = vsub.f32 %v15395_v29, %v21877_v62  ;;  %v15438_v5 = vand.u32 4294901760, %v15416_v10  ;;  %v230_v62 = vld [vmem:[%s21872_s1 + $0x88] sm:$0xff]  ;;  %vm12209_vm3 = vcmask 1043456  }
  0x3e   : > { %536 = vmatmul.mubr.f32.gmra.mrb[6].mxu0 %v535_v63  ;;  %3451 = vmatmul.mubr.f32.gmra.mrb[6].mxu1 %v535_v63  ;;  %v15403_v63 = vand.u32 4294901760, %v15377_v49  ;;  %v1069_v51 = vand.u32 4294901760, %v1068_v18  ;;  %v3984_v53 = vand.u32 4294901760, %v3983_v23  ;;  %vm12326_vm4 = vcmask 1042432  }
  0x3f   : > { %541 = vmatprep.mubr.f32.mxu0 %v21885_v9  ;;  %3456 = vmatprep.mubr.f32.mxu1 %v21885_v9  ;;  %v3978_v45 = vand.u32 4294901760, %v3977_v13  ;;  %22997 = vst [vmem:[#allocation33_spill] sm:$0xff] %v15438_v5  ;;  %v308_v13 = vsel %vm264_vm0, %v227_v44, 0 }
  0x40   : > { %22995 = vst [vmem:[#allocation31_spill] sm:$0xff] %v15403_v63 }
  0x41   : > { %3979 = vmatprep.subr.mxu1 %v3978_v45  ;;  %v229_v45 = vld [vmem:[%s21872_s1 + $0x80] sm:$0xff] }
  0x42   : > { %547 = vmatmul.mubr.f32.gmra.mrb[8].mxu0 %v546_v8  ;;  %3462 = vmatmul.mubr.f32.gmra.mrb[8].mxu1 %v546_v8  ;;  %v600_v8 = vsub.f32 %v15361_v42, %v15389_v26  ;;  %v246_v42 = vld [vmem:[%s21872_s1 + $0x108] sm:$0xff] }
  0x43   : > { %552 = vmatprep.mubr.f32.mxu0 %v21885_v9  ;;  %3467 = vmatprep.mubr.f32.mxu1 %v21885_v9 }
  0x44   : > { %3985 = vmatpush1.msra.mxu1 %v3984_v53  ;;  %v314_v53 = vsel %vm264_vm0, %v229_v45, 0 }
  0x45   : > { %4408 = vmatprep.subr.mxu1 %v15395_v29  ;;  %v15485_v45 = vand.u32 4294901760, %v314_v53 }
  0x46   : > { %558 = vmatmul.mubr.f32.gmra.mrb[10].mxu0 %v557_v17  ;;  %3473 = vmatmul.mubr.f32.gmra.mrb[10].mxu1 %v557_v17  ;;  %v1063_v17 = vand.u32 4294901760, %v1062_v1  ;;  %v611_v1 = vsub.f32 %v15377_v49, %v15403_v63  ;;  %v23007_v63 = vmov 0.0  }
  0x47   : > { %563 = vmatprep.mubr.f32.mxu0 %v21885_v9  ;;  %3478 = vmatprep.mubr.f32.mxu1 %v21885_v9 }
  0x48   : > { %1064 = vmatprep.subr.mxu0 %v1063_v17  ;;  %v15451_v17 = vand.u32 4294901760, %v308_v13 }
  0x49   : > { %1070 = vmatpush1.msra.mxu0 %v1069_v51 }
  0x4a   : > { %569 = vmatmul.mubr.f32.gmra.mrb[12].mxu0 %v568_v43  ;;  %3484 = vmatmul.mubr.f32.gmra.mrb[12].mxu1 %v568_v43  ;;  %v305_v43 = vsel %vm264_vm0, %v226_v20, 0  ;;  %v15441_v20 = vsub.f32 %v302_v19, %v15421_v16  ;;  %v622_v19 = vsub.f32 %v15416_v10, %v15438_v5 }
  0x4b   : > { %574 = vmatprep.mubr.f32.mxu0 %v21885_v9  ;;  %3489 = vmatprep.mubr.f32.mxu1 %v21885_v9  ;;  %v15443_v4 = vand.u32 4294901760, %v305_v43 }
  0x4c   : > { %22998 = vst [vmem:[#allocation34_spill] sm:$0xff] %v15441_v20  ;;  %1493 = vmatprep.subr.mxu0 %v15384_v52  ;;  %v15458_v18 = vand.u32 4294901760, %v15441_v20 }
  0x4d   : > { %v15461_v23 = vsub.f32 %v305_v43, %v15443_v4 }
  0x4e   : > { %580 = vmatmul.mubr.f32.gmra.mrb[14].mxu0 %v579_v57  ;;  %3495 = vmatmul.mubr.f32.gmra.mrb[14].mxu1 %v579_v57  ;;  %v601_v57 = vand.u32 4294901760, %v600_v8  ;;  %v228_v8 = vld [vmem:[%s21872_s1 + $0x78] sm:$0xff]  ;;  %22999 = vst [vmem:[#allocation35_spill] sm:$0xff] %v15458_v18  ;;  %v633_v43 = vsub.f32 %v15441_v20, %v15458_v18  ;;  %v243_v20 = vld [vmem:[%s21872_s1 + $0xf0] sm:$0xff] }
  0x4f   : > { %585 = vmatprep.mubr.f32.mxu0 %v21885_v9  ;;  %3500 = vmatprep.mubr.f32.mxu1 %v21885_v9  ;;  %23000 = vst [vmem:[#allocation36_spill] sm:$0xff] %v15461_v23  ;;  %v311_v44 = vsel %vm264_vm0, %v228_v8, 0  ;;  %v15478_v8 = vsub.f32 %v308_v13, %v15451_v17 }
  0x50   : > { %v15469_v51 = vand.u32 4294901760, %v311_v44 }
  0x51   : > { %23002 = vst [vmem:[#allocation38_spill] sm:$0xff] %v15478_v8  ;;  %v15491_v13 = vand.u32 4294901760, %v15478_v8 }
  0x52   : > { %591 = vmatmul.mubr.f32.gmra.mrb[16].mxu0 %v590_v7  ;;  %3506 = vmatmul.mubr.f32.gmra.mrb[16].mxu1 %v590_v7  ;;  %v612_v7 = vand.u32 4294901760, %v611_v1  ;;  %v15475_v1 = vand.u32 4294901760, %v15461_v23  ;;  %v15494_v18 = vsub.f32 %v311_v44, %v15469_v51 }
  0x53   : > { %596 = vmatprep.mubr.f32.mxu0 %v21885_v9  ;;  %3511 = vmatprep.mubr.f32.mxu1 %v21885_v9  ;;  %23003 = vst [vmem:[#allocation39_spill] sm:$0xff] %v15491_v13  ;;  %v655_v44 = vsub.f32 %v15478_v8, %v15491_v13 }
  0x54   : > { %23001 = vst [vmem:[#allocation37_spill] sm:$0xff] %v15475_v1  ;;  %v644_v60 = vsub.f32 %v15461_v23, %v15475_v1  ;;  %23004 = vst [vmem:[#allocation40_spill] sm:$0xff] %v15494_v18  ;;  %v15509_v5 = vand.u32 4294901760, %v15494_v18 }
  0x56   : > { %602 = vmatmul.mubr.f32.gmra.mrb[18].mxu0 %v601_v57  ;;  %3517 = vmatmul.mubr.f32.gmra.mrb[18].mxu1 %v601_v57  ;;  %v623_v57 = vand.u32 4294901760, %v622_v19  ;;  %v634_v19 = vand.u32 4294901760, %v633_v43  ;;  %v645_v1 = vand.u32 4294901760, %v644_v60  ;;  %23006 = vst [vmem:[#allocation42_spill] sm:$0xff] %v15509_v5  ;;  %v666_v13 = vsub.f32 %v15494_v18, %v15509_v5 }
  0x57   : > { %607 = vmatprep.mubr.f32.mxu0 %v21885_v9  ;;  %3522 = vmatprep.mubr.f32.mxu1 %v21885_v9 }
  0x5a   : > { %613 = vmatmul.mubr.f32.gmra.mrb[20].mxu0 %v612_v7  ;;  %3528 = vmatmul.mubr.f32.gmra.mrb[20].mxu1 %v612_v7  ;;  %v317_v7 = vsel %vm264_vm0, %v230_v62, 0  ;;  %v231_v62 = vld [vmem:[%s21872_s1 + $0x90] sm:$0xff] }
  0x5b   : > { %618 = vmatprep.mubr.f32.mxu0 %v21885_v9  ;;  %3533 = vmatprep.mubr.f32.mxu1 %v21885_v9  ;;  %v15504_v43 = vand.u32 4294901760, %v317_v7 }
  0x5d   : > { %v15518_v26 = vsub.f32 %v317_v7, %v15504_v43  ;;  %v233_v7 = vld [vmem:[%s21872_s1 + $0xa0] sm:$0xff] }
  0x5e   : > { %624 = vmatmul.mubr.f32.gmra.mrb[22].mxu0 %v623_v57  ;;  %3539 = vmatmul.mubr.f32.gmra.mrb[22].mxu1 %v623_v57  ;;  %v15502_v57 = vsub.f32 %v314_v53, %v15485_v45  ;;  %v232_v53 = vld [vmem:[%s21872_s1 + $0x98] sm:$0xff]  ;;  %v326_v11 = vsel %vm264_vm0, %v233_v7, 0 }
  0x5f   : > { %629 = vmatprep.mubr.f32.mxu0 %v21885_v9  ;;  %3544 = vmatprep.mubr.f32.mxu1 %v21885_v9  ;;  %v320_v9 = vsel %vm264_vm0, %v231_v62, 0  ;;  %23008 = vst [vmem:[#allocation43_spill] sm:$0xff] %v15518_v26  ;;  %v323_v41 = vsel %vm264_vm0, %v232_v53, 0  ;;  %v15534_v21 = vand.u32 4294901760, %v15518_v26 }
  0x60   : > { %23005 = vst [vmem:[#allocation41_spill] sm:$0xff] %v15502_v57  ;;  %v15520_v60 = vand.u32 4294901760, %v320_v9  ;;  %v15525_v62 = vand.u32 4294901760, %v15502_v57 }
  0x61   : > { %23010 = vst [vmem:[#allocation45_spill] sm:$0xff] %v15534_v21 }
  0x62   : > { %635 = vmatmul.mubr.f32.gmra.mrb[24].mxu0 %v634_v19  ;;  %3550 = vmatmul.mubr.f32.gmra.mrb[24].mxu1 %v634_v19  ;;  %v656_v19 = vand.u32 4294901760, %v655_v44  ;;  %23009 = vst [vmem:[#allocation44_spill] sm:$0xff] %v15525_v62  ;;  %v667_v44 = vand.u32 4294901760, %v666_v13  ;;  %v677_v5 = vsub.f32 %v15502_v57, %v15525_v62  ;;  %v15541_v53 = vsub.f32 %v320_v9, %v15520_v60  ;;  %v239_v57 = vld [vmem:[%s21872_s1 + $0xd0] sm:$0xff] }
  0x63   : > { %640 = vmatprep.mubr.f32.mxu0 %v23007_v63  ;;  %3555 = vmatprep.mubr.f32.mxu1 %v23007_v63  ;;  %v15552_v13 = vand.u32 4294901760, %v326_v11  ;;  %v688_v9 = vsub.f32 %v15518_v26, %v15534_v21  ;;  %v329_v62 = vsel %vm264_vm0, %v234_v2, 0  ;;  %v238_v26 = vld [vmem:[%s21872_s1 + $0xc8] sm:$0xff] }
  0x64   : > { %23011 = vst [vmem:[#allocation46_spill] sm:$0xff] %v15541_v53  ;;  %v15557_v7 = vand.u32 4294901760, %v15541_v53  ;;  %v15573_v39 = vand.u32 4294901760, %v329_v62 }
  0x66   : > { %646 = vmatmul.mubr.f32.gmra.mrb[26].mxu0 %v645_v1  ;;  %3561 = vmatmul.mubr.f32.gmra.mrb[26].mxu1 %v645_v1  ;;  %v15536_v1 = vand.u32 4294901760, %v323_v41  ;;  %23013 = vst [vmem:[#allocation48_spill] sm:$0xff] %v15557_v7  ;;  %v699_v21 = vsub.f32 %v15541_v53, %v15557_v7  ;;  %v15587_v7 = vsub.f32 %v329_v62, %v15573_v39 }
  0x67   : > { %651 = vmatprep.mubr.f32.mxu0 %v23007_v63  ;;  %3566 = vmatprep.mubr.f32.mxu1 %v23007_v63 }
  0x68   : > { %v15550_v61 = vsub.f32 %v323_v41, %v15536_v1  ;;  %v235_v41 = vld [vmem:[%s21872_s1 + $0xb0] sm:$0xff]  ;;  %23017 = vst [vmem:[#allocation52_spill] sm:$0xff] %v15587_v7 }
  0x69   : > { %v332_v2 = vsel %vm264_vm0, %v235_v41, 0  ;;  %v335_v41 = vsel %vm264_vm0, %v236_v37, 0 }
  0x6a   : > { %657 = vmatmul.mubr.f32.gmra.mrb[28].mxu0 %v656_v19  ;;  %3572 = vmatmul.mubr.f32.gmra.mrb[28].mxu1 %v656_v19  ;;  %23012 = vst [vmem:[#allocation47_spill] sm:$0xff] %v15550_v61  ;;  %v678_v19 = vand.u32 4294901760, %v677_v5  ;;  %v15566_v46 = vand.u32 4294901760, %v15550_v61  ;;  %v15569_v5 = vsub.f32 %v326_v11, %v15552_v13  ;;  %v15589_v35 = vand.u32 4294901760, %v332_v2 }
  0x6b   : > { %662 = vmatprep.mubr.f32.mxu0 %v23007_v63  ;;  %3577 = vmatprep.mubr.f32.mxu1 %v23007_v63  ;;  %v15605_v53 = vand.u32 4294901760, %v335_v41 }
  0x6c   : > { %23014 = vst [vmem:[#allocation49_spill] sm:$0xff] %v15566_v46  ;;  %23015 = vst [vmem:[#allocation50_spill] sm:$0xff] %v15569_v5  ;;  %v710_v11 = vsub.f32 %v15550_v61, %v15566_v46  ;;  %v237_v46 = vld [vmem:[%s21872_s1 + $0xc0] sm:$0xff]  ;;  %v15603_v62 = vsub.f32 %v332_v2, %v15589_v35 }
  0x6d   : > { %v338_v37 = vsel %vm264_vm0, %v237_v46, 0 }
  0x6e   : > { %668 = vmatmul.mubr.f32.gmra.mrb[30].mxu0 %v667_v44  ;;  %3583 = vmatmul.mubr.f32.gmra.mrb[30].mxu1 %v667_v44  ;;  %v689_v44 = vand.u32 4294901760, %v688_v9  ;;  %v700_v9 = vand.u32 4294901760, %v699_v21  ;;  %v711_v61 = vand.u32 4294901760, %v710_v11  ;;  %v15600_v21 = vand.u32 4294901760, %v15587_v7  ;;  %23019 = vst [vmem:[#allocation54_spill] sm:$0xff] %v15603_v62 }
  0x6f   : > { %673 = vmatprep.mubr.f32.mxu0 %v23007_v63  ;;  %3588 = vmatprep.mubr.f32.mxu1 %v23007_v63  ;;  %v15613_v11 = vand.u32 4294901760, %v338_v37  ;;  %v15619_v46 = vand.u32 4294901760, %v15603_v62 }
  0x70   : > { %23018 = vst [vmem:[#allocation53_spill] sm:$0xff] %v15600_v21 }
  0x71   : > { %23020 = vst [vmem:[#allocation55_spill] sm:$0xff] %v15619_v46 }
  0x72   : > { %679 = vmatmul.mubr.f32.gmra.mrb[32].mxu0 %v678_v19  ;;  %3594 = vmatmul.mubr.f32.gmra.mrb[32].mxu1 %v678_v19  ;;  %v15584_v19 = vand.u32 4294901760, %v15569_v5 }
  0x73   : > { %684 = vmatprep.mubr.f32.mxu0 %v23007_v63  ;;  %3599 = vmatprep.mubr.f32.mxu1 %v23007_v63 }
  0x74   : > { %23016 = vst [vmem:[#allocation51_spill] sm:$0xff] %v15584_v19 }
  0x76   : > { %690 = vmatmul.mubr.f32.gmra.mrb[34].mxu0 %v689_v44  ;;  %3605 = vmatmul.mubr.f32.gmra.mrb[34].mxu1 %v689_v44  ;;  %v721_v44 = vsub.f32 %v15569_v5, %v15584_v19  ;;  %v732_v19 = vsub.f32 %v15587_v7, %v15600_v21  ;;  %v15622_v5 = vsub.f32 %v335_v41, %v15605_v53 }
  0x77   : > { %695 = vmatprep.mubr.f32.mxu0 %v23007_v63  ;;  %3610 = vmatprep.mubr.f32.mxu1 %v23007_v63  ;;  %v743_v21 = vsub.f32 %v15603_v62, %v15619_v46  ;;  %v15638_v7 = vsub.f32 %v338_v37, %v15613_v11  ;;  %v241_v62 = vld [vmem:[%s21872_s1 + $0xe0] sm:$0xff] }
  0x78   : > { %v722_v2 = vand.u32 4294901760, %v721_v44  ;;  %23021 = vst [vmem:[#allocation56_spill] sm:$0xff] %v15622_v5  ;;  %v733_v44 = vand.u32 4294901760, %v732_v19  ;;  %v15635_v41 = vand.u32 4294901760, %v15622_v5 }
  0x79   : > { %23023 = vst [vmem:[#allocation58_spill] sm:$0xff] %v15638_v7  ;;  %v744_v19 = vand.u32 4294901760, %v743_v21  ;;  %v15650_v46 = vand.u32 4294901760, %v15638_v7 }
  0x7a   : > { %701 = vmatmul.mubr.f32.gmra.mrb[36].mxu0 %v700_v9  ;;  %3616 = vmatmul.mubr.f32.gmra.mrb[36].mxu1 %v700_v9  ;;  %v341_v9 = vsel %vm264_vm0, %v238_v26, 0  ;;  %23022 = vst [vmem:[#allocation57_spill] sm:$0xff] %v15635_v41 }
  0x7b   : > { %706 = vmatprep.mubr.f32.mxu0 %v23007_v63  ;;  %3621 = vmatprep.mubr.f32.mxu1 %v23007_v63  ;;  %v15629_v26 = vand.u32 4294901760, %v341_v9  ;;  %23024 = vst [vmem:[#allocation59_spill] sm:$0xff] %v15650_v46 }
  0x7d   : > { %v15653_v37 = vsub.f32 %v341_v9, %v15629_v26  ;;  %v765_v9 = vsub.f32 %v15638_v7, %v15650_v46 }
  0x7e   : > { %712 = vmatmul.mubr.f32.gmra.mrb[38].mxu0 %v711_v61  ;;  %3627 = vmatmul.mubr.f32.gmra.mrb[38].mxu1 %v711_v61  ;;  %v344_v61 = vsel %vm264_vm0, %v239_v57, 0  ;;  %v240_v57 = vld [vmem:[%s21872_s1 + $0xd8] sm:$0xff] }
  0x7f   : > { %717 = vmatprep.mubr.f32.mxu0 %v23007_v63  ;;  %3632 = vmatprep.mubr.f32.mxu1 %v23007_v63  ;;  %v15645_v18 = vand.u32 4294901760, %v344_v61  ;;  %23025 = vst [vmem:[#allocation60_spill] sm:$0xff] %v15653_v37  ;;  %v15668_v8 = vand.u32 4294901760, %v15653_v37 }
  0x81   : > { %v15662_v21 = vsub.f32 %v344_v61, %v15645_v18  ;;  %23027 = vst [vmem:[#allocation62_spill] sm:$0xff] %v15668_v8  ;;  %v242_v61 = vld [vmem:[%s21872_s1 + $0xe8] sm:$0xff] }
  0x82   : > { %723 = vmatmul.mubr.f32.gmra.mrb[40].mxu0 %v722_v2  ;;  %3638 = vmatmul.mubr.f32.gmra.mrb[40].mxu1 %v722_v2  ;;  %v754_v2 = vsub.f32 %v15622_v5, %v15635_v41  ;;  %v350_v41 = vsel %vm264_vm0, %v241_v62, 0  ;;  %v353_v7 = vsel %vm264_vm0, %v242_v61, 0  ;;  %v356_v61 = vsel %vm264_vm0, %v243_v20, 0 }
  0x83   : > { %728 = vmatprep.mubr.f32.mxu0 %v23007_v63  ;;  %3643 = vmatprep.mubr.f32.mxu1 %v23007_v63  ;;  %23026 = vst [vmem:[#allocation61_spill] sm:$0xff] %v15662_v21  ;;  %v15678_v62 = vand.u32 4294901760, %v15662_v21  ;;  %v15717_v10 = vand.u32 4294901760, %v356_v61 }
  0x84   : > { %v755_v5 = vand.u32 4294901760, %v754_v2  ;;  %v776_v2 = vsub.f32 %v15653_v37, %v15668_v8  ;;  %v15701_v37 = vand.u32 4294901760, %v353_v7 }
  0x85   : > { %23028 = vst [vmem:[#allocation63_spill] sm:$0xff] %v15678_v62 }
  0x86   : > { %734 = vmatmul.mubr.f32.gmra.mrb[42].mxu0 %v733_v44  ;;  %3649 = vmatmul.mubr.f32.gmra.mrb[42].mxu1 %v733_v44  ;;  %v347_v44 = vsel %vm264_vm0, %v240_v57, 0  ;;  %v15680_v57 = vand.u32 4294901760, %v350_v41 }
  0x87   : > { %739 = vmatprep.mubr.f32.mxu0 %v23007_v63  ;;  %3654 = vmatprep.mubr.f32.mxu1 %v23007_v63  ;;  %v15670_v23 = vand.u32 4294901760, %v347_v44 }
  0x89   : > { %v15685_v46 = vsub.f32 %v347_v44, %v15670_v23  ;;  %v777_v44 = vand.u32 4294901760, %v776_v2  ;;  %v15715_v2 = vsub.f32 %v353_v7, %v15701_v37 }
  0x8a   : > { %745 = vmatmul.mubr.f32.gmra.mrb[44].mxu0 %v744_v19  ;;  %3660 = vmatmul.mubr.f32.gmra.mrb[44].mxu1 %v744_v19  ;;  %v766_v19 = vand.u32 4294901760, %v765_v9  ;;  %v15696_v9 = vsub.f32 %v350_v41, %v15680_v57 }
  0x8b   : > { %750 = vmatprep.mubr.f32.mxu0 %v23007_v63  ;;  %3665 = vmatprep.mubr.f32.mxu1 %v23007_v63  ;;  %23029 = vst [vmem:[#allocation64_spill] sm:$0xff] %v15685_v46  ;;  %v15699_v8 = vand.u32 4294901760, %v15685_v46  ;;  %23033 = vst [vmem:[#allocation68_spill] sm:$0xff] %v15715_v2 }
  0x8c   : > { %23030 = vst [vmem:[#allocation65_spill] sm:$0xff] %v15696_v9 }
  0x8d   : > { %23031 = vst [vmem:[#allocation66_spill] sm:$0xff] %v15699_v8 }
  0x8e   : > { %756 = vmatmul.mubr.f32.gmra.mrb[46].mxu0 %v755_v5  ;;  %3671 = vmatmul.mubr.f32.gmra.mrb[46].mxu1 %v755_v5  ;;  %v787_v5 = vsub.f32 %v15662_v21, %v15678_v62  ;;  %v244_v62 = vld [vmem:[%s21872_s1 + $0xf8] sm:$0xff]  ;;  %v15710_v21 = vand.u32 4294901760, %v15696_v9 }
  0x8f   : > { %761 = vmatprep.mubr.f32.mxu0 %v23007_v63  ;;  %3676 = vmatprep.mubr.f32.mxu1 %v23007_v63  ;;  %v359_v20 = vsel %vm264_vm0, %v244_v62, 0  ;;  %v15733_v62 = vsub.f32 %v356_v61, %v15717_v10 }
  0x90   : > { %v788_v41 = vand.u32 4294901760, %v787_v5  ;;  %23032 = vst [vmem:[#allocation67_spill] sm:$0xff] %v15710_v21  ;;  %v245_v5 = vld [vmem:[%s21872_s1 + $0x100] sm:$0xff]  ;;  %v15727_v49 = vand.u32 4294901760, %v359_v20 }
  0x91   : > { %23035 = vst [vmem:[#allocation70_spill] sm:$0xff] %v15733_v62 }
  0x92   : > { %767 = vmatmul.mubr.f32.gmra.mrb[48].mxu0 %v766_v19  ;;  %3682 = vmatmul.mubr.f32.gmra.mrb[48].mxu1 %v766_v19  ;;  %v798_v19 = vsub.f32 %v15685_v46, %v15699_v8  ;;  %v15730_v8 = vand.u32 4294901760, %v15715_v2  ;;  %v362_v46 = vsel %vm264_vm0, %v245_v5, 0  ;;  %v15747_v5 = vand.u32 4294901760, %v15733_v62 }
  0x93   : > { %772 = vmatprep.mubr.f32.mxu0 %v23007_v63  ;;  %3687 = vmatprep.mubr.f32.mxu1 %v23007_v63 }
  0x94   : > { %v799_v7 = vand.u32 4294901760, %v798_v19  ;;  %23034 = vst [vmem:[#allocation69_spill] sm:$0xff] %v15730_v8  ;;  %v820_v61 = vsub.f32 %v15715_v2, %v15730_v8  ;;  %23036 = vst [vmem:[#allocation71_spill] sm:$0xff] %v15747_v5 }
  0x96   : > { %778 = vmatmul.mubr.f32.gmra.mrb[50].mxu0 %v777_v44  ;;  %3693 = vmatmul.mubr.f32.gmra.mrb[50].mxu1 %v777_v44  ;;  %v809_v44 = vsub.f32 %v15696_v9, %v15710_v21  ;;  %v15741_v21 = vand.u32 4294901760, %v362_v46  ;;  %v15750_v9 = vsub.f32 %v359_v20, %v15727_v49  ;;  %v821_v8 = vand.u32 4294901760, %v820_v61 }
  0x97   : > { %783 = vmatprep.mubr.f32.mxu0 %v23007_v63  ;;  %3698 = vmatprep.mubr.f32.mxu1 %v23007_v63  ;;  %v831_v20 = vsub.f32 %v15733_v62, %v15747_v5 }
  0x98   : > { %v810_v19 = vand.u32 4294901760, %v809_v44  ;;  %23037 = vst [vmem:[#allocation72_spill] sm:$0xff] %v15750_v9  ;;  %v15765_v2 = vand.u32 4294901760, %v15750_v9 }
  0x99   : > { %v832_v61 = vand.u32 4294901760, %v831_v20 }
  0x9a   : > { %789 = vmatmul.mubr.f32.gmra.mrb[52].mxu0 %v788_v41  ;;  %3704 = vmatmul.mubr.f32.gmra.mrb[52].mxu1 %v788_v41  ;;  %v365_v41 = vsel %vm264_vm0, %v246_v42, 0  ;;  %v247_v42 = vld [vmem:[%s21872_s1 + $0x110] sm:$0xff]  ;;  %23039 = vst [vmem:[#allocation74_spill] sm:$0xff] %v15765_v2  ;;  %v842_v5 = vsub.f32 %v15750_v9, %v15765_v2 }
  0x9b   : > { %794 = vmatprep.mubr.f32.mxu0 %v23007_v63  ;;  %3709 = vmatprep.mubr.f32.mxu1 %v23007_v63  ;;  %v15760_v44 = vand.u32 4294901760, %v365_v41  ;;  %v368_v14 = vsel %vm264_vm0, %v247_v42, 0 }
  0x9d   : > { %v15774_v12 = vsub.f32 %v365_v41, %v15760_v44  ;;  %v249_v41 = vld [vmem:[%s21872_s1 + $0x120] sm:$0xff] }
  0x9e   : > { %800 = vmatmul.mubr.f32.gmra.mrb[54].mxu0 %v799_v7  ;;  %3715 = vmatmul.mubr.f32.gmra.mrb[54].mxu1 %v799_v7  ;;  %v15758_v7 = vsub.f32 %v362_v46, %v15741_v21  ;;  %v248_v46 = vld [vmem:[%s21872_s1 + $0x118] sm:$0xff]  ;;  %v374_v9 = vsel %vm264_vm0, %v249_v41, 0 }
  0x9f   : > { %805 = vmatprep.mubr.f32.mxu0 %v23007_v63  ;;  %3720 = vmatprep.mubr.f32.mxu1 %v23007_v63  ;;  %23040 = vst [vmem:[#allocation75_spill] sm:$0xff] %v15774_v12  ;;  %v371_v62 = vsel %vm264_vm0, %v248_v46, 0  ;;  %v15794_v2 = vand.u32 4294901760, %v15774_v12  ;;  %v15813_v58 = vand.u32 4294901760, %v374_v9 }
  0xa0   : > { %23038 = vst [vmem:[#allocation73_spill] sm:$0xff] %v15758_v7  ;;  %v15781_v42 = vand.u32 4294901760, %v15758_v7  ;;  %v15789_v3 = vand.u32 4294901760, %v371_v62 }
  0xa1   : > { %23042 = vst [vmem:[#allocation77_spill] sm:$0xff] %v15794_v2 }
  0xa2   : > { %811 = vmatmul.mubr.f32.gmra.mrb[56].mxu0 %v810_v19  ;;  %3726 = vmatmul.mubr.f32.gmra.mrb[56].mxu1 %v810_v19  ;;  %v15776_v19 = vand.u32 4294901760, %v368_v14  ;;  %23041 = vst [vmem:[#allocation76_spill] sm:$0xff] %v15781_v42  ;;  %v853_v20 = vsub.f32 %v15758_v7, %v15781_v42 }
  0xa3   : > { %816 = vmatprep.mubr.f32.mxu0 %v23007_v63  ;;  %3731 = vmatprep.mubr.f32.mxu1 %v23007_v63 }
  0xa4   : > { %v15797_v46 = vsub.f32 %v368_v14, %v15776_v19  ;;  %v854_v42 = vand.u32 4294901760, %v853_v20  ;;  %v864_v14 = vsub.f32 %v15774_v12, %v15794_v2  ;;  %v15827_v12 = vsub.f32 %v374_v9, %v15813_v58 }
  0xa6   : > { %822 = vmatmul.mubr.f32.gmra.mrb[58].mxu0 %v821_v8  ;;  %3737 = vmatmul.mubr.f32.gmra.mrb[58].mxu1 %v821_v8  ;;  %v843_v8 = vand.u32 4294901760, %v842_v5  ;;  %23043 = vst [vmem:[#allocation78_spill] sm:$0xff] %v15797_v46  ;;  %v15806_v5 = vsub.f32 %v371_v62, %v15789_v3  ;;  %v15811_v7 = vand.u32 4294901760, %v15797_v46  ;;  %v251_v62 = vld [vmem:[%s21872_s1 + $0x130] sm:$0xff]  ;;  %v865_v20 = vand.u32 4294901760, %v864_v14  ;;  %23047 = vst [vmem:[#allocation82_spill] sm:$0xff] %v15827_v12 }
  0xa7   : > { %827 = vmatprep.mubr.f32.mxu0 %v23007_v63  ;;  %3742 = vmatprep.mubr.f32.mxu1 %v23007_v63  ;;  %v380_v40 = vsel %vm264_vm0, %v251_v62, 0  ;;  %v253_v62 = vld [vmem:[%s21872_s1 + $0x140] sm:$0xff] }
  0xa8   : > { %23044 = vst [vmem:[#allocation79_spill] sm:$0xff] %v15806_v5  ;;  %23045 = vst [vmem:[#allocation80_spill] sm:$0xff] %v15811_v7  ;;  %v875_v2 = vsub.f32 %v15797_v46, %v15811_v7  ;;  %v15841_v7 = vand.u32 4294901760, %v15827_v12  ;;  %v15846_v36 = vand.u32 4294901760, %v380_v40 }
  0xaa   : > { %833 = vmatmul.mubr.f32.gmra.mrb[60].mxu0 %v832_v61  ;;  %3748 = vmatmul.mubr.f32.gmra.mrb[60].mxu1 %v832_v61  ;;  %v250_v61 = vld [vmem:[%s21872_s1 + $0x128] sm:$0xff]  ;;  %v876_v9 = vand.u32 4294901760, %v875_v2  ;;  %23048 = vst [vmem:[#allocation83_spill] sm:$0xff] %v15841_v7 }
  0xab   : > { %838 = vmatprep.mubr.f32.mxu0 %v23007_v63  ;;  %3753 = vmatprep.mubr.f32.mxu1 %v23007_v63  ;;  %v377_v41 = vsel %vm264_vm0, %v250_v61, 0  ;;  %v252_v61 = vld [vmem:[%s21872_s1 + $0x138] sm:$0xff] }
  0xac   : > { %v15829_v56 = vand.u32 4294901760, %v377_v41  ;;  %v383_v14 = vsel %vm264_vm0, %v252_v61, 0 }
  0xad   : > { %v15853_v61 = vand.u32 4294901760, %v383_v14 }
  0xae   : > { %844 = vmatmul.mubr.f32.gmra.mrb[62].mxu0 %v843_v8  ;;  %3759 = vmatmul.mubr.f32.gmra.mrb[62].mxu1 %v843_v8  ;;  %v15822_v8 = vand.u32 4294901760, %v15806_v5  ;;  %v15844_v46 = vsub.f32 %v377_v41, %v15829_v56 }
  0xaf   : > { %849 = vmatprep.mubr.f32.mxu0 %v23007_v63  ;;  %3764 = vmatprep.mubr.f32.mxu1 %v23007_v63 }
  0xb0   : > { %23046 = vst [vmem:[#allocation81_spill] sm:$0xff] %v15822_v8  ;;  %23049 = vst [vmem:[#allocation84_spill] sm:$0xff] %v15844_v46  ;;  %v15858_v41 = vand.u32 4294901760, %v15844_v46 }
  0xb2   : > { %855 = vmatmul.mubr.f32.gmra.mrb[64].mxu0 %v854_v42  ;;  %3770 = vmatmul.mubr.f32.gmra.mrb[64].mxu1 %v854_v42  ;;  %v886_v42 = vsub.f32 %v15806_v5, %v15822_v8  ;;  %23050 = vst [vmem:[#allocation85_spill] sm:$0xff] %v15858_v41  ;;  %v15861_v8 = vsub.f32 %v380_v40, %v15846_v36  ;;  %v254_v5 = vld [vmem:[%s21872_s1 + $0x148] sm:$0xff] }
  0xb3   : > { %860 = vmatprep.mubr.f32.mxu0 %v23007_v63  ;;  %3775 = vmatprep.mubr.f32.mxu1 %v23007_v63  ;;  %v908_v40 = vsub.f32 %v15844_v46, %v15858_v41 }
  0xb4   : > { %v887_v2 = vand.u32 4294901760, %v886_v42  ;;  %23051 = vst [vmem:[#allocation86_spill] sm:$0xff] %v15861_v8  ;;  %v15870_v42 = vsub.f32 %v383_v14, %v15853_v61  ;;  %v15876_v34 = vand.u32 4294901760, %v15861_v8 }
  0xb6   : > { %866 = vmatmul.mubr.f32.gmra.mrb[66].mxu0 %v865_v20  ;;  %3781 = vmatmul.mubr.f32.gmra.mrb[66].mxu1 %v865_v20  ;;  %v897_v20 = vsub.f32 %v15827_v12, %v15841_v7  ;;  %23052 = vst [vmem:[#allocation87_spill] sm:$0xff] %v15870_v42  ;;  %v389_v7 = vsel %vm264_vm0, %v254_v5, 0  ;;  %23053 = vst [vmem:[#allocation88_spill] sm:$0xff] %v15876_v34  ;;  %v15891_v41 = vand.u32 4294901760, %v15870_v42 }
  0xb7   : > { %871 = vmatprep.mubr.f32.mxu0 %v23007_v63  ;;  %3786 = vmatprep.mubr.f32.mxu1 %v23007_v63  ;;  %v15885_v5 = vand.u32 4294901760, %v389_v7 }
  0xb8   : > { %v898_v12 = vand.u32 4294901760, %v897_v20  ;;  %v919_v20 = vsub.f32 %v15861_v8, %v15876_v34  ;;  %23054 = vst [vmem:[#allocation89_spill] sm:$0xff] %v15891_v41 }
  0xba   : > { %877 = vmatmul.mubr.f32.gmra.mrb[68].mxu0 %v876_v9  ;;  %3792 = vmatmul.mubr.f32.gmra.mrb[68].mxu1 %v876_v9  ;;  %v386_v9 = vsel %vm264_vm0, %v253_v62, 0  ;;  %v255_v62 = vld [vmem:[%s21872_s1 + $0x150] sm:$0xff] }
  0xbb   : > { %882 = vmatprep.mubr.f32.mxu0 %v23007_v63  ;;  %3797 = vmatprep.mubr.f32.mxu1 %v23007_v63  ;;  %v15878_v29 = vand.u32 4294901760, %v386_v9  ;;  %v392_v14 = vsel %vm264_vm0, %v255_v62, 0  ;;  %v256_v62 = vld [vmem:[%s21872_s1 + $0x158] sm:$0xff] }
  0xbc   : > { %v15901_v52 = vand.u32 4294901760, %v392_v14  ;;  %v395_v8 = vsel %vm264_vm0, %v256_v62, 0 }
  0xbd   : > { %v15894_v46 = vsub.f32 %v386_v9, %v15878_v29  ;;  %v15909_v9 = vsub.f32 %v389_v7, %v15885_v5  ;;  %v15925_v31 = vand.u32 4294901760, %v395_v8 }
  0xbe   : > { %888 = vmatmul.mubr.f32.gmra.mrb[70].mxu0 %v887_v2  ;;  %3803 = vmatmul.mubr.f32.gmra.mrb[70].mxu1 %v887_v2  ;;  %v909_v2 = vand.u32 4294901760, %v908_v40  ;;  %v930_v40 = vsub.f32 %v15870_v42, %v15891_v41 }
  0xbf   : > { %893 = vmatprep.mubr.f32.mxu0 %v23007_v63  ;;  %3808 = vmatprep.mubr.f32.mxu1 %v23007_v63  ;;  %23055 = vst [vmem:[#allocation90_spill] sm:$0xff] %v15894_v46  ;;  %v15906_v34 = vand.u32 4294901760, %v15894_v46  ;;  %23057 = vst [vmem:[#allocation92_spill] sm:$0xff] %v15909_v9  ;;  %v15923_v42 = vand.u32 4294901760, %v15909_v9 }
  0xc0   : > { %v931_v41 = vand.u32 4294901760, %v930_v40  ;;  %23060 = vst [vmem:[#allocation95_spill] sm:$0xff] %v15925_v31 }
  0xc1   : > { %23056 = vst [vmem:[#allocation91_spill] sm:$0xff] %v15906_v34  ;;  %v941_v7 = vsub.f32 %v15894_v46, %v15906_v34  ;;  %23059 = vst [vmem:[#allocation94_spill] sm:$0xff] %v15923_v42  ;;  %v952_v34 = vsub.f32 %v15909_v9, %v15923_v42  ;;  %v15939_v46 = vsub.f32 %v395_v8, %v15925_v31 }
  0xc2   : > { %899 = vmatmul.mubr.f32.gmra.mrb[72].mxu0 %v898_v12  ;;  %3814 = vmatmul.mubr.f32.gmra.mrb[72].mxu1 %v898_v12  ;;  %v920_v12 = vand.u32 4294901760, %v919_v20  ;;  %v15918_v20 = vsub.f32 %v392_v14, %v15901_v52  ;;  %v258_v14 = vld [vmem:[%s21872_s1 + $0x168] sm:$0xff] }
  0xc3   : > { %904 = vmatprep.mubr.f32.mxu0 %v23007_v63  ;;  %3819 = vmatprep.mubr.f32.mxu1 %v23007_v63  ;;  %v942_v40 = vand.u32 4294901760, %v941_v7  ;;  %23062 = vst [vmem:[#allocation97_spill] sm:$0xff] %v15939_v46  ;;  %v953_v7 = vand.u32 4294901760, %v952_v34  ;;  %v15952_v8 = vand.u32 4294901760, %v15939_v46 }
  0xc4   : > { %23058 = vst [vmem:[#allocation93_spill] sm:$0xff] %v15918_v20 }
  0xc5   : > { %23064 = vst [vmem:[#allocation99_spill] sm:$0xff] %v15952_v8 }
  0xc6   : > { %910 = vmatmul.mubr.f32.gmra.mrb[74].mxu0 %v909_v2  ;;  %3825 = vmatmul.mubr.f32.gmra.mrb[74].mxu1 %v909_v2  ;;  %v257_v2 = vld [vmem:[%s21872_s1 + $0x160] sm:$0xff] }
  0xc7   : > { %915 = vmatprep.mubr.f32.mxu0 %v23007_v63  ;;  %3830 = vmatprep.mubr.f32.mxu1 %v23007_v63  ;;  %v398_v62 = vsel %vm264_vm0, %v257_v2, 0  ;;  %v401_v2 = vsel %vm264_vm0, %v258_v14, 0  ;;  %v260_v14 = vld [vmem:[%s21872_s1 + $0x178] sm:$0xff] }
  0xc8   : > { %v15941_v28 = vand.u32 4294901760, %v398_v62  ;;  %v15957_v9 = vand.u32 4294901760, %v401_v2  ;;  %v407_v34 = vsel %vm264_vm0, %v260_v14, 0 }
  0xca   : > { %921 = vmatmul.mubr.f32.gmra.mrb[76].mxu0 %v920_v12  ;;  %3836 = vmatmul.mubr.f32.gmra.mrb[76].mxu1 %v920_v12  ;;  %v15934_v12 = vand.u32 4294901760, %v15918_v20  ;;  %23063 = vst [vmem:[#allocation98_spill] sm:$0xff] %v15941_v28  ;;  %v15955_v42 = vsub.f32 %v398_v62, %v15941_v28  ;;  %23066 = vst [vmem:[#allocation101_spill] sm:$0xff] %v15957_v9  ;;  %v974_v62 = vsub.f32 %v15939_v46, %v15952_v8 }
  0xcb   : > { %926 = vmatprep.mubr.f32.mxu0 %v23007_v63  ;;  %3841 = vmatprep.mubr.f32.mxu1 %v23007_v63  ;;  %v15972_v28 = vsub.f32 %v401_v2, %v15957_v9  ;;  %v262_v9 = vld [vmem:[%s21872_s1 + $0x188] sm:$0xff] }
  0xcc   : > { %23061 = vst [vmem:[#allocation96_spill] sm:$0xff] %v15934_v12  ;;  %23065 = vst [vmem:[#allocation100_spill] sm:$0xff] %v15955_v42  ;;  %v975_v14 = vand.u32 4294901760, %v974_v62 }
  0xcd   : > { %23068 = vst [vmem:[#allocation103_spill] sm:$0xff] %v15972_v28  ;;  %v15987_v8 = vand.u32 4294901760, %v15972_v28 }
  0xce   : > { %932 = vmatmul.mubr.f32.gmra.mrb[78].mxu0 %v931_v41  ;;  %3847 = vmatmul.mubr.f32.gmra.mrb[78].mxu1 %v931_v41  ;;  %v963_v41 = vsub.f32 %v15918_v20, %v15934_v12  ;;  %v404_v12 = vsel %vm264_vm0, %v259_v32, 0  ;;  %v15969_v20 = vand.u32 4294901760, %v15955_v42  ;;  %v261_v32 = vld [vmem:[%s21872_s1 + $0x180] sm:$0xff] }
  0xcf   : > { %937 = vmatprep.mubr.f32.mxu0 %v23007_v63  ;;  %3852 = vmatprep.mubr.f32.mxu1 %v23007_v63  ;;  %v15974_v31 = vand.u32 4294901760, %v404_v12  ;;  %23071 = vst [vmem:[#allocation106_spill] sm:$0xff] %v15987_v8 }
  0xd0   : > { %23067 = vst [vmem:[#allocation102_spill] sm:$0xff] %v15969_v20  ;;  %v985_v2 = vsub.f32 %v15955_v42, %v15969_v20  ;;  %v996_v20 = vsub.f32 %v15972_v28, %v15987_v8 }
  0xd1   : > { %23069 = vst [vmem:[#allocation104_spill] sm:$0xff] %v15974_v31  ;;  %v15990_v46 = vsub.f32 %v404_v12, %v15974_v31  ;;  %v263_v31 = vld [vmem:[%s21872_s1 + $0x190] sm:$0xff] }
  0xd2   : > { %943 = vmatmul.mubr.f32.gmra.mrb[80].mxu0 %v942_v40  ;;  %3858 = vmatmul.mubr.f32.gmra.mrb[80].mxu1 %v942_v40  ;;  %v964_v40 = vand.u32 4294901760, %v963_v41  ;;  %v15981_v41 = vand.u32 4294901760, %v407_v34  ;;  %v986_v62 = vand.u32 4294901760, %v985_v2  ;;  %v997_v2 = vand.u32 4294901760, %v996_v20 }
  0xd3   : > { %948 = vmatprep.mubr.f32.mxu0 %v23007_v63  ;;  %3863 = vmatprep.mubr.f32.mxu1 %v23007_v63  ;;  %v16003_v12 = vand.u32 4294901760, %v15990_v46 }
  0xd4   : > { %23070 = vst [vmem:[#allocation105_spill] sm:$0xff] %v15981_v41  ;;  %v16006_v42 = vsub.f32 %v407_v34, %v15981_v41 }
  0xd5   : > { %23073 = vst [vmem:[#allocation108_spill] sm:$0xff] %v16003_v12  ;;  %v1007_v8 = vsub.f32 %v15990_v46, %v16003_v12 }
  0xd6   : > { %954 = vmatmul.mubr.f32.gmra.mrb[82].mxu0 %v953_v7  ;;  %3869 = vmatmul.mubr.f32.gmra.mrb[82].mxu1 %v953_v7  ;;  %v410_v7 = vsel %vm264_vm0, %v261_v32, 0  ;;  %v16019_v34 = vand.u32 4294901760, %v16006_v42 }
  0xd7   : > { %959 = vmatprep.mubr.f32.mxu0 %v23007_v63  ;;  %3874 = vmatprep.mubr.f32.mxu1 %v23007_v63  ;;  %v15997_v32 = vand.u32 4294901760, %v410_v7 }
  0xd8   : > { %23075 = vst [vmem:[#allocation110_spill] sm:$0xff] %v16019_v34  ;;  %v1018_v20 = vsub.f32 %v16006_v42, %v16019_v34 }
  0xd9   : > { %23072 = vst [vmem:[#allocation107_spill] sm:$0xff] %v15997_v32  ;;  %v16022_v28 = vsub.f32 %v410_v7, %v15997_v32 }
  0xda   : > { %965 = vmatmul.mubr.f32.gmra.mrb[84].mxu0 %v964_v40  ;;  %3880 = vmatmul.mubr.f32.gmra.mrb[84].mxu1 %v964_v40  ;;  %v413_v40 = vsel %vm264_vm0, %v262_v9, 0  ;;  %v1019_v7 = vand.u32 4294901760, %v1018_v20 }
  0xdb   : > { %970 = vmatprep.mubr.f32.mxu0 %v23007_v63  ;;  %3885 = vmatprep.mubr.f32.mxu1 %v23007_v63  ;;  %v16013_v9 = vand.u32 4294901760, %v413_v40 }
  0xdd   : > { %23074 = vst [vmem:[#allocation109_spill] sm:$0xff] %v16013_v9  ;;  %v16034_v12 = vsub.f32 %v413_v40, %v16013_v9 }
  0xde   : > { %976 = vmatmul.mubr.f32.gmra.mrb[86].mxu0 %v975_v14  ;;  %3891 = vmatmul.mubr.f32.gmra.mrb[86].mxu1 %v975_v14  ;;  %v416_v14 = vsel %vm264_vm0, %v263_v31, 0  ;;  %v1008_v31 = vand.u32 4294901760, %v1007_v8 }
  0xdf   : > { %981 = vmatprep.mubr.f32.mxu0 %v23007_v63  ;;  %3896 = vmatprep.mubr.f32.mxu1 %v23007_v63  ;;  %v16026_v41 = vand.u32 4294901760, %v416_v14  ;;  %v16041_v8 = vand.u32 4294901760, %v16034_v12 }
  0xe1   : > { %23076 = vst [vmem:[#allocation111_spill] sm:$0xff] %v16026_v41  ;;  %v16044_v34 = vsub.f32 %v416_v14, %v16026_v41 }
  0xe2   : > { %987 = vmatmul.mubr.f32.gmra.mrb[88].mxu0 %v986_v62  ;;  %3902 = vmatmul.mubr.f32.gmra.mrb[88].mxu1 %v986_v62  ;;  %v16031_v62 = vand.u32 4294901760, %v16022_v28 }
  0xe3   : > { %992 = vmatprep.mubr.f32.mxu0 %v23007_v63  ;;  %3907 = vmatprep.mubr.f32.mxu1 %v23007_v63  ;;  %v16051_v20 = vand.u32 4294901760, %v16044_v34 }
  0xe4   : > { %23077 = vst [vmem:[#allocation112_spill] sm:$0xff] %v16031_v62 }
  0xe6   : > { %998 = vmatmul.mubr.f32.gmra.mrb[90].mxu0 %v997_v2  ;;  %3913 = vmatmul.mubr.f32.gmra.mrb[90].mxu1 %v997_v2  ;;  %v1029_v2 = vsub.f32 %v16022_v28, %v16031_v62  ;;  %v1051_v62 = vsub.f32 %v16044_v34, %v16051_v20 }
  0xe7   : > { %1003 = vmatprep.mubr.f32.mxu0 %v23007_v63  ;;  %3918 = vmatprep.mubr.f32.mxu1 %v23007_v63 }
  0xe8   : > { %v1030_v40 = vand.u32 4294901760, %v1029_v2  ;;  %v23079_v2 = vld [vmem:[#allocation98_spill] sm:$0xff] }
  0xea   : > { %1009 = vmatmul.mubr.f32.gmra.mrb[92].mxu0 %v1008_v31  ;;  %3924 = vmatmul.mubr.f32.gmra.mrb[92].mxu1 %v1008_v31  ;;  %v1040_v31 = vsub.f32 %v16034_v12, %v16041_v8 }
  0xeb   : > { %1014 = vmatprep.mubr.f32.mxu0 %v23007_v63  ;;  %3929 = vmatprep.mubr.f32.mxu1 %v23007_v63 }
  0xec   : > { %v1041_v14 = vand.u32 4294901760, %v1040_v31  ;;  %v23081_v31 = vld [vmem:[#allocation104_spill] sm:$0xff] }
  0xee   : > { %1020 = vmatmul.mubr.f32.gmra.mrb[94].mxu0 %v1019_v7  ;;  %3935 = vmatmul.mubr.f32.gmra.mrb[94].mxu1 %v1019_v7  ;;  %v1052_v7 = vand.u32 4294901760, %v1051_v62  ;;  %v23078_v62 = vld [vmem:[#allocation95_spill] sm:$0xff] }
  0xef   : > { %1025 = vmatprep.mubr.f32.mxu0 %v23007_v63  ;;  %3940 = vmatprep.mubr.f32.mxu1 %v23007_v63 }
  0xf2   : > { %1031 = vmatmul.mubr.f32.gmra.mrb[96].mxu0 %v1030_v40  ;;  %3946 = vmatmul.mubr.f32.gmra.mrb[96].mxu1 %v1030_v40  ;;  %v23080_v40 = vld [vmem:[#allocation101_spill] sm:$0xff] }
  0xf3   : > { %1036 = vmatprep.mubr.f32.mxu0 %v23007_v63  ;;  %3951 = vmatprep.mubr.f32.mxu1 %v23007_v63 }
  0xf6   : > { %1042 = vmatmul.mubr.f32.gmra.mrb[98].mxu0 %v1041_v14  ;;  %3957 = vmatmul.mubr.f32.gmra.mrb[98].mxu1 %v1041_v14  ;;  %v23082_v14 = vld [vmem:[#allocation105_spill] sm:$0xff] }
  0xf7   : > { %1047 = vmatprep.mubr.f32.mxu0 %v23007_v63  ;;  %3962 = vmatprep.mubr.f32.mxu1 %v23007_v63 }
  0xfa   : > { %1053 = vmatmul.mubr.f32.gmra.mrb[100].mxu0 %v1052_v7  ;;  %3968 = vmatmul.mubr.f32.gmra.mrb[100].mxu1 %v1052_v7  ;;  %v23083_v7 = vld [vmem:[#allocation8_spill] sm:$0xff] }
  0xfb   : > { %1133 = vmatprep.mubr.f32.mxu0 %v23007_v63  ;;  %4048 = vmatprep.mubr.f32.mxu1 %v23007_v63 }
  0xfe   : > { %1135 = vmatmul.mubr.f32.vlgmr.msra.gmra.mrb[0].mxu0 %v15206_v22  ;;  %4050 = vmatmul.mubr.f32.vlgmr.msra.gmra.mrb[0].mxu1 %v15206_v22 }
  0xff   : > { %1140 = vmatprep.mubr.f32.mxu0 %v23007_v63  ;;  %4055 = vmatprep.mubr.f32.mxu1 %v23007_v63 }
 0x100   : > { %1496 = vmatpush1.msra.mxu0 %v15370_v47  ;;  %4411 = vmatpush1.msra.mxu1 %v15374_v48 }
 0x101   : > { %1969 = vmatprep.subr.mxu0 %v15210_v24  ;;  %4884 = vmatprep.subr.mxu1 %v15213_v25 }
 0x102   : > { %1142 = vmatmul.mubr.f32.gmra.mrb[2].mxu0 %v15218_v27  ;;  %4057 = vmatmul.mubr.f32.gmra.mrb[2].mxu1 %v15218_v27 }
 0x103   : > { %1147 = vmatprep.mubr.f32.mxu0 %v23007_v63  ;;  %4062 = vmatprep.mubr.f32.mxu1 %v23007_v63 }
 0x106   : > { %1149 = vmatmul.mubr.f32.gmra.mrb[4].mxu0 %v15226_v30  ;;  %4064 = vmatmul.mubr.f32.gmra.mrb[4].mxu1 %v15226_v30 }
 0x107   : > { %1154 = vmatprep.mubr.f32.mxu0 %v23007_v63  ;;  %4069 = vmatprep.mubr.f32.mxu1 %v23007_v63 }
 0x10a   : > { %1156 = vmatmul.mubr.f32.gmra.mrb[6].mxu0 %v15237_v33  ;;  %4071 = vmatmul.mubr.f32.gmra.mrb[6].mxu1 %v15237_v33 }
 0x10b   : > { %1161 = vmatprep.mubr.f32.mxu0 %v23007_v63  ;;  %4076 = vmatprep.mubr.f32.mxu1 %v23007_v63 }
 0x10e   : > { %1163 = vmatmul.mubr.f32.gmra.mrb[8].mxu0 %v15279_v50  ;;  %4078 = vmatmul.mubr.f32.gmra.mrb[8].mxu1 %v15279_v50 }
 0x10f   : > { %1168 = vmatprep.mubr.f32.mxu0 %v23007_v63  ;;  %4083 = vmatprep.mubr.f32.mxu1 %v23007_v63 }
 0x112   : > { %1170 = vmatmul.mubr.f32.gmra.mrb[10].mxu0 %v15286_v54  ;;  %4085 = vmatmul.mubr.f32.gmra.mrb[10].mxu1 %v15286_v54 }
 0x113   : > { %1175 = vmatprep.mubr.f32.mxu0 %v23007_v63  ;;  %4090 = vmatprep.mubr.f32.mxu1 %v23007_v63 }
 0x116   : > { %1177 = vmatmul.mubr.f32.gmra.mrb[12].mxu0 %v15296_v59  ;;  %4092 = vmatmul.mubr.f32.gmra.mrb[12].mxu1 %v15296_v59 }
 0x117   : > { %1182 = vmatprep.mubr.f32.mxu0 %v23007_v63  ;;  %4097 = vmatprep.mubr.f32.mxu1 %v23007_v63 }
 0x11a   : > { %1184 = vmatmul.mubr.f32.gmra.mrb[14].mxu0 %v15307_v0  ;;  %4099 = vmatmul.mubr.f32.gmra.mrb[14].mxu1 %v15307_v0 }
 0x11b   : > { %1189 = vmatprep.mubr.f32.mxu0 %v23007_v63  ;;  %4104 = vmatprep.mubr.f32.mxu1 %v23007_v63 }
 0x11e   : > { %1191 = vmatmul.mubr.f32.gmra.mrb[16].mxu0 %v15323_v6  ;;  %4106 = vmatmul.mubr.f32.gmra.mrb[16].mxu1 %v15323_v6 }
 0x11f   : > { %1196 = vmatprep.mubr.f32.mxu0 %v23007_v63  ;;  %4111 = vmatprep.mubr.f32.mxu1 %v23007_v63 }
 0x122   : > { %1198 = vmatmul.mubr.f32.gmra.mrb[18].mxu0 %v15342_v15  ;;  %4113 = vmatmul.mubr.f32.gmra.mrb[18].mxu1 %v15342_v15 }
 0x123   : > { %1203 = vmatprep.mubr.f32.mxu0 %v23007_v63  ;;  %4118 = vmatprep.mubr.f32.mxu1 %v23007_v63 }
 0x126   : > { %1205 = vmatmul.mubr.f32.gmra.mrb[20].mxu0 %v15355_v38  ;;  %4120 = vmatmul.mubr.f32.gmra.mrb[20].mxu1 %v15355_v38 }
 0x127   : > { %1210 = vmatprep.mubr.f32.mxu0 %v23007_v63  ;;  %4125 = vmatprep.mubr.f32.mxu1 %v23007_v63 }
 0x12a   : > { %1212 = vmatmul.mubr.f32.gmra.mrb[22].mxu0 %v15391_v55  ;;  %4127 = vmatmul.mubr.f32.gmra.mrb[22].mxu1 %v15391_v55 }
 0x12b   : > { %1217 = vmatprep.mubr.f32.mxu0 %v23007_v63  ;;  %4132 = vmatprep.mubr.f32.mxu1 %v23007_v63 }
 0x12e   : > { %1219 = vmatmul.mubr.f32.gmra.mrb[24].mxu0 %v15421_v16  ;;  %4134 = vmatmul.mubr.f32.gmra.mrb[24].mxu1 %v15421_v16 }
 0x12f   : > { %1224 = vmatprep.mubr.f32.mxu0 %v23007_v63  ;;  %4139 = vmatprep.mubr.f32.mxu1 %v23007_v63 }
 0x132   : > { %1226 = vmatmul.mubr.f32.gmra.mrb[26].mxu0 %v15443_v4  ;;  %4141 = vmatmul.mubr.f32.gmra.mrb[26].mxu1 %v15443_v4 }
 0x133   : > { %1231 = vmatprep.mubr.f32.mxu0 %v23007_v63  ;;  %4146 = vmatprep.mubr.f32.mxu1 %v23007_v63 }
 0x136   : > { %1233 = vmatmul.mubr.f32.gmra.mrb[28].mxu0 %v15451_v17  ;;  %4148 = vmatmul.mubr.f32.gmra.mrb[28].mxu1 %v15451_v17 }
 0x137   : > { %1238 = vmatprep.mubr.f32.mxu0 %v23007_v63  ;;  %4153 = vmatprep.mubr.f32.mxu1 %v23007_v63 }
 0x13a   : > { %1240 = vmatmul.mubr.f32.gmra.mrb[30].mxu0 %v15469_v51  ;;  %4155 = vmatmul.mubr.f32.gmra.mrb[30].mxu1 %v15469_v51 }
 0x13b   : > { %1245 = vmatprep.mubr.f32.mxu0 %v23007_v63  ;;  %4160 = vmatprep.mubr.f32.mxu1 %v23007_v63 }
 0x13e   : > { %1247 = vmatmul.mubr.f32.gmra.mrb[32].mxu0 %v15485_v45  ;;  %4162 = vmatmul.mubr.f32.gmra.mrb[32].mxu1 %v15485_v45 }
 0x13f   : > { %1252 = vmatprep.mubr.f32.mxu0 %v23007_v63  ;;  %4167 = vmatprep.mubr.f32.mxu1 %v23007_v63 }
 0x142   : > { %1254 = vmatmul.mubr.f32.gmra.mrb[34].mxu0 %v15504_v43  ;;  %4169 = vmatmul.mubr.f32.gmra.mrb[34].mxu1 %v15504_v43 }
 0x143   : > { %1259 = vmatprep.mubr.f32.mxu0 %v23007_v63  ;;  %4174 = vmatprep.mubr.f32.mxu1 %v23007_v63 }
 0x146   : > { %1261 = vmatmul.mubr.f32.gmra.mrb[36].mxu0 %v15520_v60  ;;  %4176 = vmatmul.mubr.f32.gmra.mrb[36].mxu1 %v15520_v60 }
 0x147   : > { %1266 = vmatprep.mubr.f32.mxu0 %v23007_v63  ;;  %4181 = vmatprep.mubr.f32.mxu1 %v23007_v63 }
 0x14a   : > { %1268 = vmatmul.mubr.f32.gmra.mrb[38].mxu0 %v15536_v1  ;;  %4183 = vmatmul.mubr.f32.gmra.mrb[38].mxu1 %v15536_v1 }
 0x14b   : > { %1273 = vmatprep.mubr.f32.mxu0 %v23007_v63  ;;  %4188 = vmatprep.mubr.f32.mxu1 %v23007_v63 }
 0x14e   : > { %1275 = vmatmul.mubr.f32.gmra.mrb[40].mxu0 %v15552_v13  ;;  %4190 = vmatmul.mubr.f32.gmra.mrb[40].mxu1 %v15552_v13 }
 0x14f   : > { %1280 = vmatprep.mubr.f32.mxu0 %v23007_v63  ;;  %4195 = vmatprep.mubr.f32.mxu1 %v23007_v63 }
 0x152   : > { %1282 = vmatmul.mubr.f32.gmra.mrb[42].mxu0 %v15573_v39  ;;  %4197 = vmatmul.mubr.f32.gmra.mrb[42].mxu1 %v15573_v39 }
 0x153   : > { %1287 = vmatprep.mubr.f32.mxu0 %v23007_v63  ;;  %4202 = vmatprep.mubr.f32.mxu1 %v23007_v63 }
 0x156   : > { %1289 = vmatmul.mubr.f32.gmra.mrb[44].mxu0 %v15589_v35  ;;  %4204 = vmatmul.mubr.f32.gmra.mrb[44].mxu1 %v15589_v35 }
 0x157   : > { %1294 = vmatprep.mubr.f32.mxu0 %v23007_v63  ;;  %4209 = vmatprep.mubr.f32.mxu1 %v23007_v63 }
 0x15a   : > { %1296 = vmatmul.mubr.f32.gmra.mrb[46].mxu0 %v15605_v53  ;;  %4211 = vmatmul.mubr.f32.gmra.mrb[46].mxu1 %v15605_v53 }
 0x15b   : > { %1301 = vmatprep.mubr.f32.mxu0 %v23007_v63  ;;  %4216 = vmatprep.mubr.f32.mxu1 %v23007_v63 }
 0x15e   : > { %1303 = vmatmul.mubr.f32.gmra.mrb[48].mxu0 %v15613_v11  ;;  %4218 = vmatmul.mubr.f32.gmra.mrb[48].mxu1 %v15613_v11 }
 0x15f   : > { %1308 = vmatprep.mubr.f32.mxu0 %v23007_v63  ;;  %4223 = vmatprep.mubr.f32.mxu1 %v23007_v63 }
 0x162   : > { %1310 = vmatmul.mubr.f32.gmra.mrb[50].mxu0 %v15629_v26  ;;  %4225 = vmatmul.mubr.f32.gmra.mrb[50].mxu1 %v15629_v26 }
 0x163   : > { %1315 = vmatprep.mubr.f32.mxu0 %v23007_v63  ;;  %4230 = vmatprep.mubr.f32.mxu1 %v23007_v63 }
 0x166   : > { %1317 = vmatmul.mubr.f32.gmra.mrb[52].mxu0 %v15645_v18  ;;  %4232 = vmatmul.mubr.f32.gmra.mrb[52].mxu1 %v15645_v18 }
 0x167   : > { %1322 = vmatprep.mubr.f32.mxu0 %v23007_v63  ;;  %4237 = vmatprep.mubr.f32.mxu1 %v23007_v63 }
 0x16a   : > { %1324 = vmatmul.mubr.f32.gmra.mrb[54].mxu0 %v15670_v23  ;;  %4239 = vmatmul.mubr.f32.gmra.mrb[54].mxu1 %v15670_v23 }
 0x16b   : > { %1329 = vmatprep.mubr.f32.mxu0 %v23007_v63  ;;  %4244 = vmatprep.mubr.f32.mxu1 %v23007_v63 }
 0x16e   : > { %1331 = vmatmul.mubr.f32.gmra.mrb[56].mxu0 %v15680_v57  ;;  %4246 = vmatmul.mubr.f32.gmra.mrb[56].mxu1 %v15680_v57 }
 0x16f   : > { %1336 = vmatprep.mubr.f32.mxu0 %v23007_v63  ;;  %4251 = vmatprep.mubr.f32.mxu1 %v23007_v63 }
 0x172   : > { %1338 = vmatmul.mubr.f32.gmra.mrb[58].mxu0 %v15701_v37  ;;  %4253 = vmatmul.mubr.f32.gmra.mrb[58].mxu1 %v15701_v37 }
 0x173   : > { %1343 = vmatprep.mubr.f32.mxu0 %v23007_v63  ;;  %4258 = vmatprep.mubr.f32.mxu1 %v23007_v63 }
 0x176   : > { %1345 = vmatmul.mubr.f32.gmra.mrb[60].mxu0 %v15717_v10  ;;  %4260 = vmatmul.mubr.f32.gmra.mrb[60].mxu1 %v15717_v10 }
 0x177   : > { %1350 = vmatprep.mubr.f32.mxu0 %v23007_v63  ;;  %4265 = vmatprep.mubr.f32.mxu1 %v23007_v63 }
 0x17a   : > { %1352 = vmatmul.mubr.f32.gmra.mrb[62].mxu0 %v15727_v49  ;;  %4267 = vmatmul.mubr.f32.gmra.mrb[62].mxu1 %v15727_v49 }
 0x17b   : > { %1357 = vmatprep.mubr.f32.mxu0 %v23007_v63  ;;  %4272 = vmatprep.mubr.f32.mxu1 %v23007_v63 }
 0x17e   : > { %1359 = vmatmul.mubr.f32.gmra.mrb[64].mxu0 %v15741_v21  ;;  %4274 = vmatmul.mubr.f32.gmra.mrb[64].mxu1 %v15741_v21 }
 0x17f   : > { %1364 = vmatprep.mubr.f32.mxu0 %v23007_v63  ;;  %4279 = vmatprep.mubr.f32.mxu1 %v23007_v63 }
 0x182   : > { %1366 = vmatmul.mubr.f32.gmra.mrb[66].mxu0 %v15760_v44  ;;  %4281 = vmatmul.mubr.f32.gmra.mrb[66].mxu1 %v15760_v44 }
 0x183   : > { %1371 = vmatprep.mubr.f32.mxu0 %v23007_v63  ;;  %4286 = vmatprep.mubr.f32.mxu1 %v23007_v63 }
 0x186   : > { %1373 = vmatmul.mubr.f32.gmra.mrb[68].mxu0 %v15776_v19  ;;  %4288 = vmatmul.mubr.f32.gmra.mrb[68].mxu1 %v15776_v19 }
 0x187   : > { %1378 = vmatprep.mubr.f32.mxu0 %v23007_v63  ;;  %4293 = vmatprep.mubr.f32.mxu1 %v23007_v63 }
 0x18a   : > { %1380 = vmatmul.mubr.f32.gmra.mrb[70].mxu0 %v15789_v3  ;;  %4295 = vmatmul.mubr.f32.gmra.mrb[70].mxu1 %v15789_v3 }
 0x18b   : > { %1385 = vmatprep.mubr.f32.mxu0 %v23007_v63  ;;  %4300 = vmatprep.mubr.f32.mxu1 %v23007_v63 }
 0x18e   : > { %1387 = vmatmul.mubr.f32.gmra.mrb[72].mxu0 %v15813_v58  ;;  %4302 = vmatmul.mubr.f32.gmra.mrb[72].mxu1 %v15813_v58 }
 0x18f   : > { %1392 = vmatprep.mubr.f32.mxu0 %v23007_v63  ;;  %4307 = vmatprep.mubr.f32.mxu1 %v23007_v63 }
 0x192   : > { %1394 = vmatmul.mubr.f32.gmra.mrb[74].mxu0 %v15829_v56  ;;  %4309 = vmatmul.mubr.f32.gmra.mrb[74].mxu1 %v15829_v56 }
 0x193   : > { %1399 = vmatprep.mubr.f32.mxu0 %v23007_v63  ;;  %4314 = vmatprep.mubr.f32.mxu1 %v23007_v63 }
 0x196   : > { %1401 = vmatmul.mubr.f32.gmra.mrb[76].mxu0 %v15846_v36  ;;  %4316 = vmatmul.mubr.f32.gmra.mrb[76].mxu1 %v15846_v36 }
 0x197   : > { %1406 = vmatprep.mubr.f32.mxu0 %v23007_v63  ;;  %4321 = vmatprep.mubr.f32.mxu1 %v23007_v63 }
 0x19a   : > { %1408 = vmatmul.mubr.f32.gmra.mrb[78].mxu0 %v15853_v61  ;;  %4323 = vmatmul.mubr.f32.gmra.mrb[78].mxu1 %v15853_v61 }
 0x19b   : > { %1413 = vmatprep.mubr.f32.mxu0 %v23007_v63  ;;  %4328 = vmatprep.mubr.f32.mxu1 %v23007_v63 }
 0x19e   : > { %1415 = vmatmul.mubr.f32.gmra.mrb[80].mxu0 %v15878_v29  ;;  %4330 = vmatmul.mubr.f32.gmra.mrb[80].mxu1 %v15878_v29 }
 0x19f   : > { %1420 = vmatprep.mubr.f32.mxu0 %v23007_v63  ;;  %4335 = vmatprep.mubr.f32.mxu1 %v23007_v63 }
 0x1a2   : > { %1422 = vmatmul.mubr.f32.gmra.mrb[82].mxu0 %v15885_v5  ;;  %4337 = vmatmul.mubr.f32.gmra.mrb[82].mxu1 %v15885_v5 }
 0x1a3   : > { %1427 = vmatprep.mubr.f32.mxu0 %v23007_v63  ;;  %4342 = vmatprep.mubr.f32.mxu1 %v23007_v63 }
 0x1a6   : > { %1429 = vmatmul.mubr.f32.gmra.mrb[84].mxu0 %v15901_v52  ;;  %4344 = vmatmul.mubr.f32.gmra.mrb[84].mxu1 %v15901_v52 }
 0x1a7   : > { %1434 = vmatprep.mubr.f32.mxu0 %v23007_v63  ;;  %4349 = vmatprep.mubr.f32.mxu1 %v23007_v63 }
 0x1aa   : > { %1436 = vmatmul.mubr.f32.gmra.mrb[86].mxu0 %v23078_v62  ;;  %4351 = vmatmul.mubr.f32.gmra.mrb[86].mxu1 %v23078_v62 }
 0x1ab   : > { %1441 = vmatprep.mubr.f32.mxu0 %v23007_v63  ;;  %4356 = vmatprep.mubr.f32.mxu1 %v23007_v63 }
 0x1ae   : > { %1443 = vmatmul.mubr.f32.gmra.mrb[88].mxu0 %v23079_v2  ;;  %4358 = vmatmul.mubr.f32.gmra.mrb[88].mxu1 %v23079_v2  ;;  %v23090_v2 = vld [vmem:[#allocation9_spill] sm:$0xff] }
 0x1af   : > { %1448 = vmatprep.mubr.f32.mxu0 %v23007_v63  ;;  %4363 = vmatprep.mubr.f32.mxu1 %v23007_v63 }
 0x1b2   : > { %1450 = vmatmul.mubr.f32.gmra.mrb[90].mxu0 %v23080_v40  ;;  %4365 = vmatmul.mubr.f32.gmra.mrb[90].mxu1 %v23080_v40 }
 0x1b3   : > { %1455 = vmatprep.mubr.f32.mxu0 %v23007_v63  ;;  %4370 = vmatprep.mubr.f32.mxu1 %v23007_v63 }
 0x1b6   : > { %1457 = vmatmul.mubr.f32.gmra.mrb[92].mxu0 %v23081_v31  ;;  %4372 = vmatmul.mubr.f32.gmra.mrb[92].mxu1 %v23081_v31 }
 0x1b7   : > { %1462 = vmatprep.mubr.f32.mxu0 %v23007_v63  ;;  %4377 = vmatprep.mubr.f32.mxu1 %v23007_v63 }
 0x1ba   : > { %1464 = vmatmul.mubr.f32.gmra.mrb[94].mxu0 %v23082_v14  ;;  %4379 = vmatmul.mubr.f32.gmra.mrb[94].mxu1 %v23082_v14  ;;  %v23086_v14 = vld [vmem:[#allocation28_spill] sm:$0xff] }
 0x1bb   : > { %1469 = vmatprep.mubr.f32.mxu0 %v23007_v63  ;;  %4384 = vmatprep.mubr.f32.mxu1 %v23007_v63  ;;  %v23087_v31 = vand.u32 4294901760, %v23086_v14  ;;  %v23096_v14 = vld [vmem:[#allocation22_spill] sm:$0xff] }
 0x1be   : > { %1471 = vmatmul.mubr.f32.gmra.mrb[96].mxu0 %v15997_v32  ;;  %4386 = vmatmul.mubr.f32.gmra.mrb[96].mxu1 %v15997_v32  ;;  %v23085_v32 = vld [vmem:[#allocation7_spill] sm:$0xff] }
 0x1bf   : > { %1476 = vmatprep.mubr.f32.mxu0 %v23007_v63  ;;  %4391 = vmatprep.mubr.f32.mxu1 %v23007_v63 }
 0x1c2   : > { %1478 = vmatmul.mubr.f32.gmra.mrb[98].mxu0 %v16013_v9  ;;  %4393 = vmatmul.mubr.f32.gmra.mrb[98].mxu1 %v16013_v9  ;;  %v23084_v9 = vld [vmem:[#allocation6_spill] sm:$0xff] }
 0x1c3   : > { %1483 = vmatprep.mubr.f32.mxu0 %v23007_v63  ;;  %4398 = vmatprep.mubr.f32.mxu1 %v23007_v63 }
 0x1c6   : > { %1485 = vmatmul.mubr.f32.gmra.mrb[100].mxu0 %v16026_v41  ;;  %4400 = vmatmul.mubr.f32.gmra.mrb[100].mxu1 %v16026_v41  ;;  %v23088_v41 = vld [vmem:[#allocation30_spill] sm:$0xff] }
 0x1c7   : > { %1559 = vmatprep.mubr.f32.mxu0 %v23007_v63  ;;  %4474 = vmatprep.mubr.f32.mxu1 %v23007_v63  ;;  %v23089_v40 = vand.u32 4294901760, %v23088_v41  ;;  %v23093_v41 = vld [vmem:[#allocation16_spill] sm:$0xff] }
 0x1ca   : > { %1562 = vmatmul.mubr.f32.vlgmr.msra.gmra.mrb[0].mxu0 %v23083_v7  ;;  %4477 = vmatmul.mubr.f32.vlgmr.msra.gmra.mrb[0].mxu1 %v23083_v7  ;;  %v23091_v7 = vld [vmem:[#allocation11_spill] sm:$0xff] }
 0x1cb   : > { %1567 = vmatprep.mubr.f32.mxu0 %v23007_v63  ;;  %4482 = vmatprep.mubr.f32.mxu1 %v23007_v63 }
 0x1cc   : > { %1971 = vmatpush1.msra.mxu0 %v23084_v9  ;;  %4886 = vmatpush1.msra.mxu1 %v23085_v32 }
 0x1cd   : > { %2497 = vmatprep.subr.mxu0 %v23087_v31  ;;  %5412 = vmatprep.subr.mxu1 %v23089_v40  ;;  %v23092_v31 = vld [vmem:[#allocation14_spill] sm:$0xff]  ;;  %v23095_v40 = vld [vmem:[#allocation20_spill] sm:$0xff] }
 0x1ce   : > { %1570 = vmatmul.mubr.f32.gmra.mrb[2].mxu0 %v23090_v2  ;;  %4485 = vmatmul.mubr.f32.gmra.mrb[2].mxu1 %v23090_v2  ;;  %v23094_v2 = vld [vmem:[#allocation17_spill] sm:$0xff] }
 0x1cf   : > { %1575 = vmatprep.mubr.f32.mxu0 %v23007_v63  ;;  %4490 = vmatprep.mubr.f32.mxu1 %v23007_v63 }
 0x1d2   : > { %1578 = vmatmul.mubr.f32.gmra.mrb[4].mxu0 %v23091_v7  ;;  %4493 = vmatmul.mubr.f32.gmra.mrb[4].mxu1 %v23091_v7  ;;  %v23097_v7 = vld [vmem:[#allocation23_spill] sm:$0xff] }
 0x1d3   : > { %1583 = vmatprep.mubr.f32.mxu0 %v23007_v63  ;;  %4498 = vmatprep.mubr.f32.mxu1 %v23007_v63 }
 0x1d6   : > { %1586 = vmatmul.mubr.f32.gmra.mrb[6].mxu0 %v23092_v31  ;;  %4501 = vmatmul.mubr.f32.gmra.mrb[6].mxu1 %v23092_v31  ;;  %v23098_v31 = vld [vmem:[#allocation26_spill] sm:$0xff] }
 0x1d7   : > { %1591 = vmatprep.mubr.f32.mxu0 %v23007_v63  ;;  %4506 = vmatprep.mubr.f32.mxu1 %v23007_v63 }
 0x1da   : > { %1594 = vmatmul.mubr.f32.gmra.mrb[8].mxu0 %v23093_v41  ;;  %4509 = vmatmul.mubr.f32.gmra.mrb[8].mxu1 %v23093_v41  ;;  %v23099_v41 = vld [vmem:[#allocation27_spill] sm:$0xff] }
 0x1db   : > { %1599 = vmatprep.mubr.f32.mxu0 %v23007_v63  ;;  %4514 = vmatprep.mubr.f32.mxu1 %v23007_v63 }
 0x1de   : > { %1602 = vmatmul.mubr.f32.gmra.mrb[10].mxu0 %v23094_v2  ;;  %4517 = vmatmul.mubr.f32.gmra.mrb[10].mxu1 %v23094_v2  ;;  %v23100_v2 = vld [vmem:[#allocation32_spill] sm:$0xff] }
 0x1df   : > { %1607 = vmatprep.mubr.f32.mxu0 %v23007_v63  ;;  %4522 = vmatprep.mubr.f32.mxu1 %v23007_v63 }
 0x1e2   : > { %1610 = vmatmul.mubr.f32.gmra.mrb[12].mxu0 %v23095_v40  ;;  %4525 = vmatmul.mubr.f32.gmra.mrb[12].mxu1 %v23095_v40  ;;  %v23101_v40 = vld [vmem:[#allocation34_spill] sm:$0xff] }
 0x1e3   : > { %1615 = vmatprep.mubr.f32.mxu0 %v23007_v63  ;;  %4530 = vmatprep.mubr.f32.mxu1 %v23007_v63 }
 0x1e6   : > { %1618 = vmatmul.mubr.f32.gmra.mrb[14].mxu0 %v23096_v14  ;;  %4533 = vmatmul.mubr.f32.gmra.mrb[14].mxu1 %v23096_v14  ;;  %v23102_v14 = vld [vmem:[#allocation36_spill] sm:$0xff] }
 0x1e7   : > { %1623 = vmatprep.mubr.f32.mxu0 %v23007_v63  ;;  %4538 = vmatprep.mubr.f32.mxu1 %v23007_v63 }
 0x1ea   : > { %1626 = vmatmul.mubr.f32.gmra.mrb[16].mxu0 %v23097_v7  ;;  %4541 = vmatmul.mubr.f32.gmra.mrb[16].mxu1 %v23097_v7  ;;  %v23103_v7 = vld [vmem:[#allocation38_spill] sm:$0xff] }
 0x1eb   : > { %1631 = vmatprep.mubr.f32.mxu0 %v23007_v63  ;;  %4546 = vmatprep.mubr.f32.mxu1 %v23007_v63 }
 0x1ee   : > { %1634 = vmatmul.mubr.f32.gmra.mrb[18].mxu0 %v23098_v31  ;;  %4549 = vmatmul.mubr.f32.gmra.mrb[18].mxu1 %v23098_v31  ;;  %v23104_v31 = vld [vmem:[#allocation40_spill] sm:$0xff] }
 0x1ef   : > { %1639 = vmatprep.mubr.f32.mxu0 %v23007_v63  ;;  %4554 = vmatprep.mubr.f32.mxu1 %v23007_v63 }
 0x1f2   : > { %1642 = vmatmul.mubr.f32.gmra.mrb[20].mxu0 %v23099_v41  ;;  %4557 = vmatmul.mubr.f32.gmra.mrb[20].mxu1 %v23099_v41  ;;  %v23105_v41 = vld [vmem:[#allocation41_spill] sm:$0xff] }
 0x1f3   : > { %1647 = vmatprep.mubr.f32.mxu0 %v23007_v63  ;;  %4562 = vmatprep.mubr.f32.mxu1 %v23007_v63 }
 0x1f6   : > { %1650 = vmatmul.mubr.f32.gmra.mrb[22].mxu0 %v23100_v2  ;;  %4565 = vmatmul.mubr.f32.gmra.mrb[22].mxu1 %v23100_v2  ;;  %v23106_v2 = vld [vmem:[#allocation43_spill] sm:$0xff] }
 0x1f7   : > { %1655 = vmatprep.mubr.f32.mxu0 %v23007_v63  ;;  %4570 = vmatprep.mubr.f32.mxu1 %v23007_v63 }
 0x1fa   : > { %1658 = vmatmul.mubr.f32.gmra.mrb[24].mxu0 %v23101_v40  ;;  %4573 = vmatmul.mubr.f32.gmra.mrb[24].mxu1 %v23101_v40  ;;  %v23107_v40 = vld [vmem:[#allocation46_spill] sm:$0xff] }
 0x1fb   : > { %1663 = vmatprep.mubr.f32.mxu0 %v23007_v63  ;;  %4578 = vmatprep.mubr.f32.mxu1 %v23007_v63 }
 0x1fe   : > { %1666 = vmatmul.mubr.f32.gmra.mrb[26].mxu0 %v23102_v14  ;;  %4581 = vmatmul.mubr.f32.gmra.mrb[26].mxu1 %v23102_v14  ;;  %v23108_v14 = vld [vmem:[#allocation47_spill] sm:$0xff] }
 0x1ff   : > { %1671 = vmatprep.mubr.f32.mxu0 %v23007_v63  ;;  %4586 = vmatprep.mubr.f32.mxu1 %v23007_v63 }
 0x202   : > { %1674 = vmatmul.mubr.f32.gmra.mrb[28].mxu0 %v23103_v7  ;;  %4589 = vmatmul.mubr.f32.gmra.mrb[28].mxu1 %v23103_v7  ;;  %v23109_v7 = vld [vmem:[#allocation50_spill] sm:$0xff] }
 0x203   : > { %1679 = vmatprep.mubr.f32.mxu0 %v23007_v63  ;;  %4594 = vmatprep.mubr.f32.mxu1 %v23007_v63 }
 0x206   : > { %1682 = vmatmul.mubr.f32.gmra.mrb[30].mxu0 %v23104_v31  ;;  %4597 = vmatmul.mubr.f32.gmra.mrb[30].mxu1 %v23104_v31  ;;  %v23110_v31 = vld [vmem:[#allocation52_spill] sm:$0xff] }
 0x207   : > { %1687 = vmatprep.mubr.f32.mxu0 %v23007_v63  ;;  %4602 = vmatprep.mubr.f32.mxu1 %v23007_v63 }
 0x20a   : > { %1690 = vmatmul.mubr.f32.gmra.mrb[32].mxu0 %v23105_v41  ;;  %4605 = vmatmul.mubr.f32.gmra.mrb[32].mxu1 %v23105_v41  ;;  %v23111_v41 = vld [vmem:[#allocation54_spill] sm:$0xff] }
 0x20b   : > { %1695 = vmatprep.mubr.f32.mxu0 %v23007_v63  ;;  %4610 = vmatprep.mubr.f32.mxu1 %v23007_v63 }
 0x20e   : > { %1698 = vmatmul.mubr.f32.gmra.mrb[34].mxu0 %v23106_v2  ;;  %4613 = vmatmul.mubr.f32.gmra.mrb[34].mxu1 %v23106_v2  ;;  %v23112_v2 = vld [vmem:[#allocation56_spill] sm:$0xff] }
 0x20f   : > { %1703 = vmatprep.mubr.f32.mxu0 %v23007_v63  ;;  %4618 = vmatprep.mubr.f32.mxu1 %v23007_v63 }
 0x212   : > { %1706 = vmatmul.mubr.f32.gmra.mrb[36].mxu0 %v23107_v40  ;;  %4621 = vmatmul.mubr.f32.gmra.mrb[36].mxu1 %v23107_v40  ;;  %v23113_v40 = vld [vmem:[#allocation58_spill] sm:$0xff] }
 0x213   : > { %1711 = vmatprep.mubr.f32.mxu0 %v23007_v63  ;;  %4626 = vmatprep.mubr.f32.mxu1 %v23007_v63 }
 0x216   : > { %1714 = vmatmul.mubr.f32.gmra.mrb[38].mxu0 %v23108_v14  ;;  %4629 = vmatmul.mubr.f32.gmra.mrb[38].mxu1 %v23108_v14  ;;  %v23114_v14 = vld [vmem:[#allocation60_spill] sm:$0xff] }
 0x217   : > { %1719 = vmatprep.mubr.f32.mxu0 %v23007_v63  ;;  %4634 = vmatprep.mubr.f32.mxu1 %v23007_v63 }
 0x21a   : > { %1722 = vmatmul.mubr.f32.gmra.mrb[40].mxu0 %v23109_v7  ;;  %4637 = vmatmul.mubr.f32.gmra.mrb[40].mxu1 %v23109_v7  ;;  %v23115_v7 = vld [vmem:[#allocation61_spill] sm:$0xff] }
 0x21b   : > { %1727 = vmatprep.mubr.f32.mxu0 %v23007_v63  ;;  %4642 = vmatprep.mubr.f32.mxu1 %v23007_v63 }
 0x21e   : > { %1730 = vmatmul.mubr.f32.gmra.mrb[42].mxu0 %v23110_v31  ;;  %4645 = vmatmul.mubr.f32.gmra.mrb[42].mxu1 %v23110_v31  ;;  %v23116_v31 = vld [vmem:[#allocation64_spill] sm:$0xff] }
 0x21f   : > { %1735 = vmatprep.mubr.f32.mxu0 %v23007_v63  ;;  %4650 = vmatprep.mubr.f32.mxu1 %v23007_v63 }
 0x222   : > { %1738 = vmatmul.mubr.f32.gmra.mrb[44].mxu0 %v23111_v41  ;;  %4653 = vmatmul.mubr.f32.gmra.mrb[44].mxu1 %v23111_v41  ;;  %v23117_v41 = vld [vmem:[#allocation65_spill] sm:$0xff] }
 0x223   : > { %1743 = vmatprep.mubr.f32.mxu0 %v23007_v63  ;;  %4658 = vmatprep.mubr.f32.mxu1 %v23007_v63 }
 0x226   : > { %1746 = vmatmul.mubr.f32.gmra.mrb[46].mxu0 %v23112_v2  ;;  %4661 = vmatmul.mubr.f32.gmra.mrb[46].mxu1 %v23112_v2  ;;  %v23118_v2 = vld [vmem:[#allocation68_spill] sm:$0xff] }
 0x227   : > { %1751 = vmatprep.mubr.f32.mxu0 %v23007_v63  ;;  %4666 = vmatprep.mubr.f32.mxu1 %v23007_v63 }
 0x22a   : > { %1754 = vmatmul.mubr.f32.gmra.mrb[48].mxu0 %v23113_v40  ;;  %4669 = vmatmul.mubr.f32.gmra.mrb[48].mxu1 %v23113_v40  ;;  %v23119_v40 = vld [vmem:[#allocation70_spill] sm:$0xff] }
 0x22b   : > { %1759 = vmatprep.mubr.f32.mxu0 %v23007_v63  ;;  %4674 = vmatprep.mubr.f32.mxu1 %v23007_v63 }
 0x22e   : > { %1762 = vmatmul.mubr.f32.gmra.mrb[50].mxu0 %v23114_v14  ;;  %4677 = vmatmul.mubr.f32.gmra.mrb[50].mxu1 %v23114_v14  ;;  %v23120_v14 = vld [vmem:[#allocation72_spill] sm:$0xff] }
 0x22f   : > { %1767 = vmatprep.mubr.f32.mxu0 %v23007_v63  ;;  %4682 = vmatprep.mubr.f32.mxu1 %v23007_v63 }
 0x232   : > { %1770 = vmatmul.mubr.f32.gmra.mrb[52].mxu0 %v23115_v7  ;;  %4685 = vmatmul.mubr.f32.gmra.mrb[52].mxu1 %v23115_v7  ;;  %v23121_v7 = vld [vmem:[#allocation73_spill] sm:$0xff] }
 0x233   : > { %1775 = vmatprep.mubr.f32.mxu0 %v23007_v63  ;;  %4690 = vmatprep.mubr.f32.mxu1 %v23007_v63 }
 0x236   : > { %1778 = vmatmul.mubr.f32.gmra.mrb[54].mxu0 %v23116_v31  ;;  %4693 = vmatmul.mubr.f32.gmra.mrb[54].mxu1 %v23116_v31  ;;  %v23122_v31 = vld [vmem:[#allocation75_spill] sm:$0xff] }
 0x237   : > { %1783 = vmatprep.mubr.f32.mxu0 %v23007_v63  ;;  %4698 = vmatprep.mubr.f32.mxu1 %v23007_v63 }
 0x23a   : > { %1786 = vmatmul.mubr.f32.gmra.mrb[56].mxu0 %v23117_v41  ;;  %4701 = vmatmul.mubr.f32.gmra.mrb[56].mxu1 %v23117_v41  ;;  %v23123_v41 = vld [vmem:[#allocation78_spill] sm:$0xff] }
 0x23b   : > { %1791 = vmatprep.mubr.f32.mxu0 %v23007_v63  ;;  %4706 = vmatprep.mubr.f32.mxu1 %v23007_v63 }
 0x23e   : > { %1794 = vmatmul.mubr.f32.gmra.mrb[58].mxu0 %v23118_v2  ;;  %4709 = vmatmul.mubr.f32.gmra.mrb[58].mxu1 %v23118_v2  ;;  %v23124_v2 = vld [vmem:[#allocation79_spill] sm:$0xff] }
 0x23f   : > { %1799 = vmatprep.mubr.f32.mxu0 %v23007_v63  ;;  %4714 = vmatprep.mubr.f32.mxu1 %v23007_v63 }
 0x242   : > { %1802 = vmatmul.mubr.f32.gmra.mrb[60].mxu0 %v23119_v40  ;;  %4717 = vmatmul.mubr.f32.gmra.mrb[60].mxu1 %v23119_v40  ;;  %v23125_v40 = vld [vmem:[#allocation82_spill] sm:$0xff] }
 0x243   : > { %1807 = vmatprep.mubr.f32.mxu0 %v23007_v63  ;;  %4722 = vmatprep.mubr.f32.mxu1 %v23007_v63 }
 0x246   : > { %1810 = vmatmul.mubr.f32.gmra.mrb[62].mxu0 %v23120_v14  ;;  %4725 = vmatmul.mubr.f32.gmra.mrb[62].mxu1 %v23120_v14  ;;  %v23126_v14 = vld [vmem:[#allocation84_spill] sm:$0xff] }
 0x247   : > { %1815 = vmatprep.mubr.f32.mxu0 %v23007_v63  ;;  %4730 = vmatprep.mubr.f32.mxu1 %v23007_v63 }
 0x24a   : > { %1818 = vmatmul.mubr.f32.gmra.mrb[64].mxu0 %v23121_v7  ;;  %4733 = vmatmul.mubr.f32.gmra.mrb[64].mxu1 %v23121_v7  ;;  %v23127_v7 = vld [vmem:[#allocation86_spill] sm:$0xff] }
 0x24b   : > { %1823 = vmatprep.mubr.f32.mxu0 %v23007_v63  ;;  %4738 = vmatprep.mubr.f32.mxu1 %v23007_v63 }
 0x24e   : > { %1826 = vmatmul.mubr.f32.gmra.mrb[66].mxu0 %v23122_v31  ;;  %4741 = vmatmul.mubr.f32.gmra.mrb[66].mxu1 %v23122_v31  ;;  %v23128_v31 = vld [vmem:[#allocation87_spill] sm:$0xff] }
 0x24f   : > { %1831 = vmatprep.mubr.f32.mxu0 %v23007_v63  ;;  %4746 = vmatprep.mubr.f32.mxu1 %v23007_v63 }
 0x252   : > { %1834 = vmatmul.mubr.f32.gmra.mrb[68].mxu0 %v23123_v41  ;;  %4749 = vmatmul.mubr.f32.gmra.mrb[68].mxu1 %v23123_v41  ;;  %v23129_v41 = vld [vmem:[#allocation90_spill] sm:$0xff] }
 0x253   : > { %1839 = vmatprep.mubr.f32.mxu0 %v23007_v63  ;;  %4754 = vmatprep.mubr.f32.mxu1 %v23007_v63 }
 0x256   : > { %1842 = vmatmul.mubr.f32.gmra.mrb[70].mxu0 %v23124_v2  ;;  %4757 = vmatmul.mubr.f32.gmra.mrb[70].mxu1 %v23124_v2  ;;  %v23130_v2 = vld [vmem:[#allocation92_spill] sm:$0xff] }
 0x257   : > { %1847 = vmatprep.mubr.f32.mxu0 %v23007_v63  ;;  %4762 = vmatprep.mubr.f32.mxu1 %v23007_v63 }
 0x25a   : > { %1850 = vmatmul.mubr.f32.gmra.mrb[72].mxu0 %v23125_v40  ;;  %4765 = vmatmul.mubr.f32.gmra.mrb[72].mxu1 %v23125_v40  ;;  %v23131_v40 = vld [vmem:[#allocation93_spill] sm:$0xff] }
 0x25b   : > { %1855 = vmatprep.mubr.f32.mxu0 %v23007_v63  ;;  %4770 = vmatprep.mubr.f32.mxu1 %v23007_v63 }
 0x25e   : > { %1858 = vmatmul.mubr.f32.gmra.mrb[74].mxu0 %v23126_v14  ;;  %4773 = vmatmul.mubr.f32.gmra.mrb[74].mxu1 %v23126_v14  ;;  %v23132_v14 = vld [vmem:[#allocation97_spill] sm:$0xff] }
 0x25f   : > { %1863 = vmatprep.mubr.f32.mxu0 %v23007_v63  ;;  %4778 = vmatprep.mubr.f32.mxu1 %v23007_v63 }
 0x262   : > { %1866 = vmatmul.mubr.f32.gmra.mrb[76].mxu0 %v23127_v7  ;;  %4781 = vmatmul.mubr.f32.gmra.mrb[76].mxu1 %v23127_v7  ;;  %v23133_v7 = vld [vmem:[#allocation100_spill] sm:$0xff] }
 0x263   : > { %1871 = vmatprep.mubr.f32.mxu0 %v23007_v63  ;;  %4786 = vmatprep.mubr.f32.mxu1 %v23007_v63 }
 0x266   : > { %1874 = vmatmul.mubr.f32.gmra.mrb[78].mxu0 %v23128_v31  ;;  %4789 = vmatmul.mubr.f32.gmra.mrb[78].mxu1 %v23128_v31  ;;  %v23134_v31 = vld [vmem:[#allocation103_spill] sm:$0xff] }
 0x267   : > { %1879 = vmatprep.mubr.f32.mxu0 %v23007_v63  ;;  %4794 = vmatprep.mubr.f32.mxu1 %v23007_v63 }
 0x26a   : > { %1882 = vmatmul.mubr.f32.gmra.mrb[80].mxu0 %v23129_v41  ;;  %4797 = vmatmul.mubr.f32.gmra.mrb[80].mxu1 %v23129_v41  ;;  %v23144_v41 = vld [vmem:[#allocation24_spill] sm:$0xff] }
 0x26b   : > { %1887 = vmatprep.mubr.f32.mxu0 %v23007_v63  ;;  %4802 = vmatprep.mubr.f32.mxu1 %v23007_v63 }
 0x26e   : > { %1890 = vmatmul.mubr.f32.gmra.mrb[82].mxu0 %v23130_v2  ;;  %4805 = vmatmul.mubr.f32.gmra.mrb[82].mxu1 %v23130_v2  ;;  %v23145_v2 = vld [vmem:[#allocation25_spill] sm:$0xff] }
 0x26f   : > { %1895 = vmatprep.mubr.f32.mxu0 %v23007_v63  ;;  %4810 = vmatprep.mubr.f32.mxu1 %v23007_v63 }
 0x272   : > { %1898 = vmatmul.mubr.f32.gmra.mrb[84].mxu0 %v23131_v40  ;;  %4813 = vmatmul.mubr.f32.gmra.mrb[84].mxu1 %v23131_v40  ;;  %v23146_v40 = vld [vmem:[#allocation29_spill] sm:$0xff] }
 0x273   : > { %1903 = vmatprep.mubr.f32.mxu0 %v23007_v63  ;;  %4818 = vmatprep.mubr.f32.mxu1 %v23007_v63 }
 0x276   : > { %1906 = vmatmul.mubr.f32.gmra.mrb[86].mxu0 %v23132_v14  ;;  %4821 = vmatmul.mubr.f32.gmra.mrb[86].mxu1 %v23132_v14  ;;  %v23147_v14 = vld [vmem:[#allocation31_spill] sm:$0xff] }
 0x277   : > { %1911 = vmatprep.mubr.f32.mxu0 %v23007_v63  ;;  %4826 = vmatprep.mubr.f32.mxu1 %v23007_v63 }
 0x27a   : > { %1914 = vmatmul.mubr.f32.gmra.mrb[88].mxu0 %v23133_v7  ;;  %4829 = vmatmul.mubr.f32.gmra.mrb[88].mxu1 %v23133_v7  ;;  %v23148_v7 = vld [vmem:[#allocation33_spill] sm:$0xff] }
 0x27b   : > { %1919 = vmatprep.mubr.f32.mxu0 %v23007_v63  ;;  %4834 = vmatprep.mubr.f32.mxu1 %v23007_v63 }
 0x27e   : > { %1922 = vmatmul.mubr.f32.gmra.mrb[90].mxu0 %v23134_v31  ;;  %4837 = vmatmul.mubr.f32.gmra.mrb[90].mxu1 %v23134_v31  ;;  %v23149_v31 = vld [vmem:[#allocation35_spill] sm:$0xff] }
 0x27f   : > { %1927 = vmatprep.mubr.f32.mxu0 %v23007_v63  ;;  %4842 = vmatprep.mubr.f32.mxu1 %v23007_v63 }
 0x282   : > { %1930 = vmatmul.mubr.f32.gmra.mrb[92].mxu0 %v15990_v46  ;;  %4845 = vmatmul.mubr.f32.gmra.mrb[92].mxu1 %v15990_v46  ;;  %v23136_v46 = vand.u32 4294901760, %v15370_v47  ;;  %v23140_v47 = vld [vmem:[#allocation15_spill] sm:$0xff] }
 0x283   : > { %1935 = vmatprep.mubr.f32.mxu0 %v23007_v63  ;;  %4850 = vmatprep.mubr.f32.mxu1 %v23007_v63 }
 0x286   : > { %1938 = vmatmul.mubr.f32.gmra.mrb[94].mxu0 %v16006_v42  ;;  %4853 = vmatmul.mubr.f32.gmra.mrb[94].mxu1 %v16006_v42  ;;  %v23137_v42 = vand.u32 4294901760, %v15374_v48  ;;  %v23143_v48 = vld [vmem:[#allocation21_spill] sm:$0xff] }
 0x287   : > { %1943 = vmatprep.mubr.f32.mxu0 %v23007_v63  ;;  %4858 = vmatprep.mubr.f32.mxu1 %v23007_v63 }
 0x28a   : > { %1946 = vmatmul.mubr.f32.gmra.mrb[96].mxu0 %v16022_v28  ;;  %4861 = vmatmul.mubr.f32.gmra.mrb[96].mxu1 %v16022_v28  ;;  %v23135_v28 = vld [vmem:[#allocation10_spill] sm:$0xff] }
 0x28b   : > { %1951 = vmatprep.mubr.f32.mxu0 %v23007_v63  ;;  %4866 = vmatprep.mubr.f32.mxu1 %v23007_v63 }
 0x28e   : > { %1954 = vmatmul.mubr.f32.gmra.mrb[98].mxu0 %v16034_v12  ;;  %4869 = vmatmul.mubr.f32.gmra.mrb[98].mxu1 %v16034_v12  ;;  %v23138_v12 = vld [vmem:[#allocation12_spill] sm:$0xff] }
 0x28f   : > { %1959 = vmatprep.mubr.f32.mxu0 %v23007_v63  ;;  %4874 = vmatprep.mubr.f32.mxu1 %v23007_v63 }
 0x292   : > { %1962 = vmatmul.mubr.f32.gmra.mrb[100].mxu0 %v16044_v34  ;;  %4877 = vmatmul.mubr.f32.gmra.mrb[100].mxu1 %v16044_v34  ;;  %v23139_v34 = vld [vmem:[#allocation13_spill] sm:$0xff] }
 0x293   : > { %2034 = vmatprep.mubr.f32.mxu0 %v23007_v63  ;;  %4949 = vmatprep.mubr.f32.mxu1 %v23007_v63 }
 0x296   : > { %2038 = vmatmul.mubr.f32.vlgmr.msra.gmra.mrb[0].mxu0 %v23135_v28  ;;  %4953 = vmatmul.mubr.f32.vlgmr.msra.gmra.mrb[0].mxu1 %v23135_v28  ;;  %v23150_v28 = vld [vmem:[#allocation37_spill] sm:$0xff] }
 0x297   : > { %2043 = vmatprep.mubr.f32.mxu0 %v23007_v63  ;;  %4958 = vmatprep.mubr.f32.mxu1 %v23007_v63 }
 0x298   : > { %2501 = vmatpush1.msra.mxu0 %v23136_v46  ;;  %5416 = vmatpush1.msra.mxu1 %v23137_v42  ;;  %v23151_v46 = vld [vmem:[#allocation39_spill] sm:$0xff]  ;;  %v23152_v42 = vld [vmem:[#allocation42_spill] sm:$0xff] }
 0x299   : > { %2923 = vmatprep.subr.mxu0 %v15210_v24  ;;  %5838 = vmatprep.subr.mxu1 %v15213_v25  ;;  %v23141_v24 = vld [vmem:[#allocation18_spill] sm:$0xff]  ;;  %v23142_v25 = vld [vmem:[#allocation19_spill] sm:$0xff] }
 0x29a   : > { %2047 = vmatmul.mubr.f32.gmra.mrb[2].mxu0 %v23138_v12  ;;  %4962 = vmatmul.mubr.f32.gmra.mrb[2].mxu1 %v23138_v12  ;;  %v23153_v12 = vld [vmem:[#allocation44_spill] sm:$0xff] }
 0x29b   : > { %2052 = vmatprep.mubr.f32.mxu0 %v23007_v63  ;;  %4967 = vmatprep.mubr.f32.mxu1 %v23007_v63 }
 0x29e   : > { %2056 = vmatmul.mubr.f32.gmra.mrb[4].mxu0 %v23139_v34  ;;  %4971 = vmatmul.mubr.f32.gmra.mrb[4].mxu1 %v23139_v34  ;;  %v23154_v34 = vld [vmem:[#allocation45_spill] sm:$0xff] }
 0x29f   : > { %2061 = vmatprep.mubr.f32.mxu0 %v23007_v63  ;;  %4976 = vmatprep.mubr.f32.mxu1 %v23007_v63 }
 0x2a2   : > { %2065 = vmatmul.mubr.f32.gmra.mrb[6].mxu0 %v23140_v47  ;;  %4980 = vmatmul.mubr.f32.gmra.mrb[6].mxu1 %v23140_v47  ;;  %v23155_v47 = vld [vmem:[#allocation48_spill] sm:$0xff] }
 0x2a3   : > { %2070 = vmatprep.mubr.f32.mxu0 %v23007_v63  ;;  %4985 = vmatprep.mubr.f32.mxu1 %v23007_v63 }
 0x2a6   : > { %2074 = vmatmul.mubr.f32.gmra.mrb[8].mxu0 %v23141_v24  ;;  %4989 = vmatmul.mubr.f32.gmra.mrb[8].mxu1 %v23141_v24  ;;  %v23156_v24 = vld [vmem:[#allocation49_spill] sm:$0xff] }
 0x2a7   : > { %2079 = vmatprep.mubr.f32.mxu0 %v23007_v63  ;;  %4994 = vmatprep.mubr.f32.mxu1 %v23007_v63 }
 0x2aa   : > { %2083 = vmatmul.mubr.f32.gmra.mrb[10].mxu0 %v23142_v25  ;;  %4998 = vmatmul.mubr.f32.gmra.mrb[10].mxu1 %v23142_v25  ;;  %v23157_v25 = vld [vmem:[#allocation51_spill] sm:$0xff] }
 0x2ab   : > { %2088 = vmatprep.mubr.f32.mxu0 %v23007_v63  ;;  %5003 = vmatprep.mubr.f32.mxu1 %v23007_v63 }
 0x2ae   : > { %2092 = vmatmul.mubr.f32.gmra.mrb[12].mxu0 %v23143_v48  ;;  %5007 = vmatmul.mubr.f32.gmra.mrb[12].mxu1 %v23143_v48  ;;  %v23158_v48 = vld [vmem:[#allocation53_spill] sm:$0xff] }
 0x2af   : > { %2097 = vmatprep.mubr.f32.mxu0 %v23007_v63  ;;  %5012 = vmatprep.mubr.f32.mxu1 %v23007_v63 }
 0x2b2   : > { %2101 = vmatmul.mubr.f32.gmra.mrb[14].mxu0 %v23144_v41  ;;  %5016 = vmatmul.mubr.f32.gmra.mrb[14].mxu1 %v23144_v41  ;;  %v23159_v41 = vld [vmem:[#allocation55_spill] sm:$0xff] }
 0x2b3   : > { %2106 = vmatprep.mubr.f32.mxu0 %v23007_v63  ;;  %5021 = vmatprep.mubr.f32.mxu1 %v23007_v63 }
 0x2b6   : > { %2110 = vmatmul.mubr.f32.gmra.mrb[16].mxu0 %v23145_v2  ;;  %5025 = vmatmul.mubr.f32.gmra.mrb[16].mxu1 %v23145_v2  ;;  %v23160_v2 = vld [vmem:[#allocation57_spill] sm:$0xff] }
 0x2b7   : > { %2115 = vmatprep.mubr.f32.mxu0 %v23007_v63  ;;  %5030 = vmatprep.mubr.f32.mxu1 %v23007_v63 }
 0x2ba   : > { %2119 = vmatmul.mubr.f32.gmra.mrb[18].mxu0 %v23146_v40  ;;  %5034 = vmatmul.mubr.f32.gmra.mrb[18].mxu1 %v23146_v40  ;;  %v23161_v40 = vld [vmem:[#allocation59_spill] sm:$0xff] }
 0x2bb   : > { %2124 = vmatprep.mubr.f32.mxu0 %v23007_v63  ;;  %5039 = vmatprep.mubr.f32.mxu1 %v23007_v63 }
 0x2be   : > { %2128 = vmatmul.mubr.f32.gmra.mrb[20].mxu0 %v23147_v14  ;;  %5043 = vmatmul.mubr.f32.gmra.mrb[20].mxu1 %v23147_v14  ;;  %v23162_v14 = vld [vmem:[#allocation62_spill] sm:$0xff] }
 0x2bf   : > { %2133 = vmatprep.mubr.f32.mxu0 %v23007_v63  ;;  %5048 = vmatprep.mubr.f32.mxu1 %v23007_v63 }
 0x2c2   : > { %2137 = vmatmul.mubr.f32.gmra.mrb[22].mxu0 %v23148_v7  ;;  %5052 = vmatmul.mubr.f32.gmra.mrb[22].mxu1 %v23148_v7  ;;  %v23163_v7 = vld [vmem:[#allocation63_spill] sm:$0xff] }
 0x2c3   : > { %2142 = vmatprep.mubr.f32.mxu0 %v23007_v63  ;;  %5057 = vmatprep.mubr.f32.mxu1 %v23007_v63 }
 0x2c6   : > { %2146 = vmatmul.mubr.f32.gmra.mrb[24].mxu0 %v23149_v31  ;;  %5061 = vmatmul.mubr.f32.gmra.mrb[24].mxu1 %v23149_v31  ;;  %v23164_v31 = vld [vmem:[#allocation66_spill] sm:$0xff] }
 0x2c7   : > { %2151 = vmatprep.mubr.f32.mxu0 %v23007_v63  ;;  %5066 = vmatprep.mubr.f32.mxu1 %v23007_v63 }
 0x2ca   : > { %2155 = vmatmul.mubr.f32.gmra.mrb[26].mxu0 %v23150_v28  ;;  %5070 = vmatmul.mubr.f32.gmra.mrb[26].mxu1 %v23150_v28  ;;  %v23165_v28 = vld [vmem:[#allocation67_spill] sm:$0xff] }
 0x2cb   : > { %2160 = vmatprep.mubr.f32.mxu0 %v23007_v63  ;;  %5075 = vmatprep.mubr.f32.mxu1 %v23007_v63 }
 0x2ce   : > { %2164 = vmatmul.mubr.f32.gmra.mrb[28].mxu0 %v23151_v46  ;;  %5079 = vmatmul.mubr.f32.gmra.mrb[28].mxu1 %v23151_v46  ;;  %v23166_v46 = vld [vmem:[#allocation69_spill] sm:$0xff] }
 0x2cf   : > { %2169 = vmatprep.mubr.f32.mxu0 %v23007_v63  ;;  %5084 = vmatprep.mubr.f32.mxu1 %v23007_v63 }
 0x2d2   : > { %2173 = vmatmul.mubr.f32.gmra.mrb[30].mxu0 %v23152_v42  ;;  %5088 = vmatmul.mubr.f32.gmra.mrb[30].mxu1 %v23152_v42  ;;  %v23167_v42 = vld [vmem:[#allocation71_spill] sm:$0xff] }
 0x2d3   : > { %2178 = vmatprep.mubr.f32.mxu0 %v23007_v63  ;;  %5093 = vmatprep.mubr.f32.mxu1 %v23007_v63 }
 0x2d6   : > { %2182 = vmatmul.mubr.f32.gmra.mrb[32].mxu0 %v23153_v12  ;;  %5097 = vmatmul.mubr.f32.gmra.mrb[32].mxu1 %v23153_v12  ;;  %v23168_v12 = vld [vmem:[#allocation74_spill] sm:$0xff] }
 0x2d7   : > { %2187 = vmatprep.mubr.f32.mxu0 %v23007_v63  ;;  %5102 = vmatprep.mubr.f32.mxu1 %v23007_v63 }
 0x2da   : > { %2191 = vmatmul.mubr.f32.gmra.mrb[34].mxu0 %v23154_v34  ;;  %5106 = vmatmul.mubr.f32.gmra.mrb[34].mxu1 %v23154_v34  ;;  %v23169_v34 = vld [vmem:[#allocation76_spill] sm:$0xff] }
 0x2db   : > { %2196 = vmatprep.mubr.f32.mxu0 %v23007_v63  ;;  %5111 = vmatprep.mubr.f32.mxu1 %v23007_v63 }
 0x2de   : > { %2200 = vmatmul.mubr.f32.gmra.mrb[36].mxu0 %v23155_v47  ;;  %5115 = vmatmul.mubr.f32.gmra.mrb[36].mxu1 %v23155_v47  ;;  %v23170_v47 = vld [vmem:[#allocation77_spill] sm:$0xff] }
 0x2df   : > { %2205 = vmatprep.mubr.f32.mxu0 %v23007_v63  ;;  %5120 = vmatprep.mubr.f32.mxu1 %v23007_v63 }
 0x2e2   : > { %2209 = vmatmul.mubr.f32.gmra.mrb[38].mxu0 %v23156_v24  ;;  %5124 = vmatmul.mubr.f32.gmra.mrb[38].mxu1 %v23156_v24  ;;  %v23171_v24 = vld [vmem:[#allocation80_spill] sm:$0xff] }
 0x2e3   : > { %2214 = vmatprep.mubr.f32.mxu0 %v23007_v63  ;;  %5129 = vmatprep.mubr.f32.mxu1 %v23007_v63 }
 0x2e6   : > { %2218 = vmatmul.mubr.f32.gmra.mrb[40].mxu0 %v23157_v25  ;;  %5133 = vmatmul.mubr.f32.gmra.mrb[40].mxu1 %v23157_v25  ;;  %v23172_v25 = vld [vmem:[#allocation81_spill] sm:$0xff] }
 0x2e7   : > { %2223 = vmatprep.mubr.f32.mxu0 %v23007_v63  ;;  %5138 = vmatprep.mubr.f32.mxu1 %v23007_v63 }
 0x2ea   : > { %2227 = vmatmul.mubr.f32.gmra.mrb[42].mxu0 %v23158_v48  ;;  %5142 = vmatmul.mubr.f32.gmra.mrb[42].mxu1 %v23158_v48  ;;  %v23173_v48 = vld [vmem:[#allocation83_spill] sm:$0xff] }
 0x2eb   : > { %2232 = vmatprep.mubr.f32.mxu0 %v23007_v63  ;;  %5147 = vmatprep.mubr.f32.mxu1 %v23007_v63 }
 0x2ee   : > { %2236 = vmatmul.mubr.f32.gmra.mrb[44].mxu0 %v23159_v41  ;;  %5151 = vmatmul.mubr.f32.gmra.mrb[44].mxu1 %v23159_v41  ;;  %v23174_v41 = vld [vmem:[#allocation85_spill] sm:$0xff] }
 0x2ef   : > { %2241 = vmatprep.mubr.f32.mxu0 %v23007_v63  ;;  %5156 = vmatprep.mubr.f32.mxu1 %v23007_v63 }
 0x2f2   : > { %2245 = vmatmul.mubr.f32.gmra.mrb[46].mxu0 %v23160_v2  ;;  %5160 = vmatmul.mubr.f32.gmra.mrb[46].mxu1 %v23160_v2  ;;  %v23175_v2 = vld [vmem:[#allocation88_spill] sm:$0xff] }
 0x2f3   : > { %2250 = vmatprep.mubr.f32.mxu0 %v23007_v63  ;;  %5165 = vmatprep.mubr.f32.mxu1 %v23007_v63 }
 0x2f6   : > { %2254 = vmatmul.mubr.f32.gmra.mrb[48].mxu0 %v23161_v40  ;;  %5169 = vmatmul.mubr.f32.gmra.mrb[48].mxu1 %v23161_v40  ;;  %v23176_v40 = vld [vmem:[#allocation89_spill] sm:$0xff] }
 0x2f7   : > { %2259 = vmatprep.mubr.f32.mxu0 %v23007_v63  ;;  %5174 = vmatprep.mubr.f32.mxu1 %v23007_v63 }
 0x2fa   : > { %2263 = vmatmul.mubr.f32.gmra.mrb[50].mxu0 %v23162_v14  ;;  %5178 = vmatmul.mubr.f32.gmra.mrb[50].mxu1 %v23162_v14  ;;  %v23177_v14 = vld [vmem:[#allocation91_spill] sm:$0xff] }
 0x2fb   : > { %2268 = vmatprep.mubr.f32.mxu0 %v23007_v63  ;;  %5183 = vmatprep.mubr.f32.mxu1 %v23007_v63 }
 0x2fe   : > { %2272 = vmatmul.mubr.f32.gmra.mrb[52].mxu0 %v23163_v7  ;;  %5187 = vmatmul.mubr.f32.gmra.mrb[52].mxu1 %v23163_v7  ;;  %v23178_v7 = vld [vmem:[#allocation94_spill] sm:$0xff] }
 0x2ff   : > { %2277 = vmatprep.mubr.f32.mxu0 %v23007_v63  ;;  %5192 = vmatprep.mubr.f32.mxu1 %v23007_v63 }
 0x302   : > { %2281 = vmatmul.mubr.f32.gmra.mrb[54].mxu0 %v23164_v31  ;;  %5196 = vmatmul.mubr.f32.gmra.mrb[54].mxu1 %v23164_v31  ;;  %v23179_v31 = vld [vmem:[#allocation96_spill] sm:$0xff] }
 0x303   : > { %2286 = vmatprep.mubr.f32.mxu0 %v23007_v63  ;;  %5201 = vmatprep.mubr.f32.mxu1 %v23007_v63 }
 0x306   : > { %2290 = vmatmul.mubr.f32.gmra.mrb[56].mxu0 %v23165_v28  ;;  %5205 = vmatmul.mubr.f32.gmra.mrb[56].mxu1 %v23165_v28  ;;  %v23180_v28 = vld [vmem:[#allocation99_spill] sm:$0xff] }
 0x307   : > { %2295 = vmatprep.mubr.f32.mxu0 %v23007_v63  ;;  %5210 = vmatprep.mubr.f32.mxu1 %v23007_v63 }
 0x30a   : > { %2299 = vmatmul.mubr.f32.gmra.mrb[58].mxu0 %v23166_v46  ;;  %5214 = vmatmul.mubr.f32.gmra.mrb[58].mxu1 %v23166_v46  ;;  %v23181_v46 = vld [vmem:[#allocation102_spill] sm:$0xff] }
 0x30b   : > { %2304 = vmatprep.mubr.f32.mxu0 %v23007_v63  ;;  %5219 = vmatprep.mubr.f32.mxu1 %v23007_v63 }
 0x30e   : > { %2308 = vmatmul.mubr.f32.gmra.mrb[60].mxu0 %v23167_v42  ;;  %5223 = vmatmul.mubr.f32.gmra.mrb[60].mxu1 %v23167_v42  ;;  %v23182_v42 = vld [vmem:[#allocation106_spill] sm:$0xff] }
 0x30f   : > { %2313 = vmatprep.mubr.f32.mxu0 %v23007_v63  ;;  %5228 = vmatprep.mubr.f32.mxu1 %v23007_v63 }
 0x312   : > { %2317 = vmatmul.mubr.f32.gmra.mrb[62].mxu0 %v23168_v12  ;;  %5232 = vmatmul.mubr.f32.gmra.mrb[62].mxu1 %v23168_v12  ;;  %v23183_v12 = vld [vmem:[#allocation108_spill] sm:$0xff] }
 0x313   : > { %2322 = vmatprep.mubr.f32.mxu0 %v23007_v63  ;;  %5237 = vmatprep.mubr.f32.mxu1 %v23007_v63 }
 0x316   : > { %2326 = vmatmul.mubr.f32.gmra.mrb[64].mxu0 %v23169_v34  ;;  %5241 = vmatmul.mubr.f32.gmra.mrb[64].mxu1 %v23169_v34  ;;  %v23184_v34 = vld [vmem:[#allocation110_spill] sm:$0xff] }
 0x317   : > { %2331 = vmatprep.mubr.f32.mxu0 %v23007_v63  ;;  %5246 = vmatprep.mubr.f32.mxu1 %v23007_v63 }
 0x31a   : > { %2335 = vmatmul.mubr.f32.gmra.mrb[66].mxu0 %v23170_v47  ;;  %5250 = vmatmul.mubr.f32.gmra.mrb[66].mxu1 %v23170_v47  ;;  %v23185_v47 = vld [vmem:[#allocation112_spill] sm:$0xff] }
 0x31b   : > { %2340 = vmatprep.mubr.f32.mxu0 %v23007_v63  ;;  %5255 = vmatprep.mubr.f32.mxu1 %v23007_v63 }
 0x31e   : > { %2344 = vmatmul.mubr.f32.gmra.mrb[68].mxu0 %v23171_v24  ;;  %5259 = vmatmul.mubr.f32.gmra.mrb[68].mxu1 %v23171_v24  ;;  %v23190_v24 = vld [vmem:[#allocation107_spill] sm:$0xff] }
 0x31f   : > { %2349 = vmatprep.mubr.f32.mxu0 %v23007_v63  ;;  %5264 = vmatprep.mubr.f32.mxu1 %v23007_v63 }
 0x322   : > { %2353 = vmatmul.mubr.f32.gmra.mrb[70].mxu0 %v23172_v25  ;;  %5268 = vmatmul.mubr.f32.gmra.mrb[70].mxu1 %v23172_v25  ;;  %v23191_v25 = vld [vmem:[#allocation109_spill] sm:$0xff] }
 0x323   : > { %2358 = vmatprep.mubr.f32.mxu0 %v23007_v63  ;;  %5273 = vmatprep.mubr.f32.mxu1 %v23007_v63 }
 0x326   : > { %2362 = vmatmul.mubr.f32.gmra.mrb[72].mxu0 %v23173_v48  ;;  %5277 = vmatmul.mubr.f32.gmra.mrb[72].mxu1 %v23173_v48  ;;  %v23192_v48 = vld [vmem:[#allocation111_spill] sm:$0xff] }
 0x327   : > { %2367 = vmatprep.mubr.f32.mxu0 %v23007_v63  ;;  %5282 = vmatprep.mubr.f32.mxu1 %v23007_v63 }
 0x32a   : > { %2371 = vmatmul.mubr.f32.gmra.mrb[74].mxu0 %v23174_v41  ;;  %5286 = vmatmul.mubr.f32.gmra.mrb[74].mxu1 %v23174_v41 }
 0x32b   : > { %2376 = vmatprep.mubr.f32.mxu0 %v23007_v63  ;;  %5291 = vmatprep.mubr.f32.mxu1 %v23007_v63 }
 0x32e   : > { %2380 = vmatmul.mubr.f32.gmra.mrb[76].mxu0 %v23175_v2  ;;  %5295 = vmatmul.mubr.f32.gmra.mrb[76].mxu1 %v23175_v2 }
 0x32f   : > { %2385 = vmatprep.mubr.f32.mxu0 %v23007_v63  ;;  %5300 = vmatprep.mubr.f32.mxu1 %v23007_v63 }
 0x332   : > { %2389 = vmatmul.mubr.f32.gmra.mrb[78].mxu0 %v23176_v40  ;;  %5304 = vmatmul.mubr.f32.gmra.mrb[78].mxu1 %v23176_v40 }
 0x333   : > { %2394 = vmatprep.mubr.f32.mxu0 %v23007_v63  ;;  %5309 = vmatprep.mubr.f32.mxu1 %v23007_v63 }
 0x336   : > { %2398 = vmatmul.mubr.f32.gmra.mrb[80].mxu0 %v23177_v14  ;;  %5313 = vmatmul.mubr.f32.gmra.mrb[80].mxu1 %v23177_v14 }
 0x337   : > { %2403 = vmatprep.mubr.f32.mxu0 %v23007_v63  ;;  %5318 = vmatprep.mubr.f32.mxu1 %v23007_v63 }
 0x33a   : > { %2407 = vmatmul.mubr.f32.gmra.mrb[82].mxu0 %v23178_v7  ;;  %5322 = vmatmul.mubr.f32.gmra.mrb[82].mxu1 %v23178_v7 }
 0x33b   : > { %2412 = vmatprep.mubr.f32.mxu0 %v23007_v63  ;;  %5327 = vmatprep.mubr.f32.mxu1 %v23007_v63 }
 0x33e   : > { %2416 = vmatmul.mubr.f32.gmra.mrb[84].mxu0 %v23179_v31  ;;  %5331 = vmatmul.mubr.f32.gmra.mrb[84].mxu1 %v23179_v31 }
 0x33f   : > { %2421 = vmatprep.mubr.f32.mxu0 %v23007_v63  ;;  %5336 = vmatprep.mubr.f32.mxu1 %v23007_v63 }
 0x342   : > { %2425 = vmatmul.mubr.f32.gmra.mrb[86].mxu0 %v23180_v28  ;;  %5340 = vmatmul.mubr.f32.gmra.mrb[86].mxu1 %v23180_v28 }
 0x343   : > { %2430 = vmatprep.mubr.f32.mxu0 %v23007_v63  ;;  %5345 = vmatprep.mubr.f32.mxu1 %v23007_v63 }
 0x346   : > { %2434 = vmatmul.mubr.f32.gmra.mrb[88].mxu0 %v23181_v46  ;;  %5349 = vmatmul.mubr.f32.gmra.mrb[88].mxu1 %v23181_v46 }
 0x347   : > { %2439 = vmatprep.mubr.f32.mxu0 %v23007_v63  ;;  %5354 = vmatprep.mubr.f32.mxu1 %v23007_v63 }
 0x34a   : > { %2443 = vmatmul.mubr.f32.gmra.mrb[90].mxu0 %v23182_v42  ;;  %5358 = vmatmul.mubr.f32.gmra.mrb[90].mxu1 %v23182_v42 }
 0x34b   : > { %2448 = vmatprep.mubr.f32.mxu0 %v23007_v63  ;;  %5363 = vmatprep.mubr.f32.mxu1 %v23007_v63 }
 0x34e   : > { %2452 = vmatmul.mubr.f32.gmra.mrb[92].mxu0 %v23183_v12  ;;  %5367 = vmatmul.mubr.f32.gmra.mrb[92].mxu1 %v23183_v12 }
 0x34f   : > { %2457 = vmatprep.mubr.f32.mxu0 %v23007_v63  ;;  %5372 = vmatprep.mubr.f32.mxu1 %v23007_v63 }
 0x352   : > { %2461 = vmatmul.mubr.f32.gmra.mrb[94].mxu0 %v23184_v34  ;;  %5376 = vmatmul.mubr.f32.gmra.mrb[94].mxu1 %v23184_v34 }
 0x353   : > { %2466 = vmatprep.mubr.f32.mxu0 %v23007_v63  ;;  %5381 = vmatprep.mubr.f32.mxu1 %v23007_v63 }
 0x356   : > { %2470 = vmatmul.mubr.f32.gmra.mrb[96].mxu0 %v23185_v47  ;;  %5385 = vmatmul.mubr.f32.gmra.mrb[96].mxu1 %v23185_v47 }
 0x357   : > { %2475 = vmatprep.mubr.f32.mxu0 %v23007_v63  ;;  %5390 = vmatprep.mubr.f32.mxu1 %v23007_v63 }
 0x35a   : > { %2479 = vmatmul.mubr.f32.gmra.mrb[98].mxu0 %v16041_v8  ;;  %5394 = vmatmul.mubr.f32.gmra.mrb[98].mxu1 %v16041_v8  ;;  %v23188_v8 = vld [vmem:[#allocation104_spill] sm:$0xff] }
 0x35b   : > { %2484 = vmatprep.mubr.f32.mxu0 %v23007_v63  ;;  %5399 = vmatprep.mubr.f32.mxu1 %v23007_v63 }
 0x35e   : > { %2488 = vmatmul.mubr.f32.gmra.mrb[100].mxu0 %v16051_v20  ;;  %5403 = vmatmul.mubr.f32.gmra.mrb[100].mxu1 %v16051_v20  ;;  %v23189_v20 = vld [vmem:[#allocation105_spill] sm:$0xff] }
 0x35f   : > { %2564 = vmatprep.mubr.f32.mxu0 %v23007_v63  ;;  %5479 = vmatprep.mubr.f32.mxu1 %v23007_v63 }
 0x362   : > { %2566 = vmatmul.mubr.f32.vlgmr.msra.gmra.mrb[0].mxu0 %v15206_v22  ;;  %5481 = vmatmul.mubr.f32.vlgmr.msra.gmra.mrb[0].mxu1 %v15206_v22 }
 0x363   : > { %2571 = vmatprep.mubr.f32.mxu0 %v23007_v63  ;;  %5486 = vmatprep.mubr.f32.mxu1 %v23007_v63 }
 0x364   : > { %2925 = vmatpush1.msra.mxu0 %v23084_v9  ;;  %5840 = vmatpush1.msra.mxu1 %v23085_v32  ;;  %v23186_v32 = vld [vmem:[#allocation98_spill] sm:$0xff]  ;;  %v23187_v9 = vld [vmem:[#allocation101_spill] sm:$0xff] }
 0x366   : > { %2573 = vmatmul.mubr.f32.gmra.mrb[2].mxu0 %v15218_v27  ;;  %5488 = vmatmul.mubr.f32.gmra.mrb[2].mxu1 %v15218_v27 }
 0x367   : > { %2578 = vmatprep.mubr.f32.mxu0 %v23007_v63  ;;  %5493 = vmatprep.mubr.f32.mxu1 %v23007_v63 }
 0x36a   : > { %2580 = vmatmul.mubr.f32.gmra.mrb[4].mxu0 %v15226_v30  ;;  %5495 = vmatmul.mubr.f32.gmra.mrb[4].mxu1 %v15226_v30 }
 0x36b   : > { %2585 = vmatprep.mubr.f32.mxu0 %v23007_v63  ;;  %5500 = vmatprep.mubr.f32.mxu1 %v23007_v63 }
 0x36e   : > { %2587 = vmatmul.mubr.f32.gmra.mrb[6].mxu0 %v15237_v33  ;;  %5502 = vmatmul.mubr.f32.gmra.mrb[6].mxu1 %v15237_v33 }
 0x36f   : > { %2592 = vmatprep.mubr.f32.mxu0 %v23007_v63  ;;  %5507 = vmatprep.mubr.f32.mxu1 %v23007_v63 }
 0x372   : > { %2594 = vmatmul.mubr.f32.gmra.mrb[8].mxu0 %v15279_v50  ;;  %5509 = vmatmul.mubr.f32.gmra.mrb[8].mxu1 %v15279_v50 }
 0x373   : > { %2599 = vmatprep.mubr.f32.mxu0 %v23007_v63  ;;  %5514 = vmatprep.mubr.f32.mxu1 %v23007_v63 }
 0x376   : > { %2601 = vmatmul.mubr.f32.gmra.mrb[10].mxu0 %v15286_v54  ;;  %5516 = vmatmul.mubr.f32.gmra.mrb[10].mxu1 %v15286_v54 }
 0x377   : > { %2606 = vmatprep.mubr.f32.mxu0 %v23007_v63  ;;  %5521 = vmatprep.mubr.f32.mxu1 %v23007_v63 }
 0x37a   : > { %2608 = vmatmul.mubr.f32.gmra.mrb[12].mxu0 %v15296_v59  ;;  %5523 = vmatmul.mubr.f32.gmra.mrb[12].mxu1 %v15296_v59 }
 0x37b   : > { %2613 = vmatprep.mubr.f32.mxu0 %v23007_v63  ;;  %5528 = vmatprep.mubr.f32.mxu1 %v23007_v63 }
 0x37e   : > { %2615 = vmatmul.mubr.f32.gmra.mrb[14].mxu0 %v15307_v0  ;;  %5530 = vmatmul.mubr.f32.gmra.mrb[14].mxu1 %v15307_v0 }
 0x37f   : > { %2620 = vmatprep.mubr.f32.mxu0 %v23007_v63  ;;  %5535 = vmatprep.mubr.f32.mxu1 %v23007_v63 }
 0x382   : > { %2622 = vmatmul.mubr.f32.gmra.mrb[16].mxu0 %v15323_v6  ;;  %5537 = vmatmul.mubr.f32.gmra.mrb[16].mxu1 %v15323_v6 }
 0x383   : > { %2627 = vmatprep.mubr.f32.mxu0 %v23007_v63  ;;  %5542 = vmatprep.mubr.f32.mxu1 %v23007_v63 }
 0x386   : > { %2629 = vmatmul.mubr.f32.gmra.mrb[18].mxu0 %v15342_v15  ;;  %5544 = vmatmul.mubr.f32.gmra.mrb[18].mxu1 %v15342_v15 }
 0x387   : > { %2634 = vmatprep.mubr.f32.mxu0 %v23007_v63  ;;  %5549 = vmatprep.mubr.f32.mxu1 %v23007_v63 }
 0x38a   : > { %2636 = vmatmul.mubr.f32.gmra.mrb[20].mxu0 %v15355_v38  ;;  %5551 = vmatmul.mubr.f32.gmra.mrb[20].mxu1 %v15355_v38 }
 0x38b   : > { %2641 = vmatprep.mubr.f32.mxu0 %v23007_v63  ;;  %5556 = vmatprep.mubr.f32.mxu1 %v23007_v63 }
 0x38e   : > { %2643 = vmatmul.mubr.f32.gmra.mrb[22].mxu0 %v15391_v55  ;;  %5558 = vmatmul.mubr.f32.gmra.mrb[22].mxu1 %v15391_v55 }
 0x38f   : > { %2648 = vmatprep.mubr.f32.mxu0 %v23007_v63  ;;  %5563 = vmatprep.mubr.f32.mxu1 %v23007_v63 }
 0x392   : > { %2650 = vmatmul.mubr.f32.gmra.mrb[24].mxu0 %v15421_v16  ;;  %5565 = vmatmul.mubr.f32.gmra.mrb[24].mxu1 %v15421_v16 }
 0x393   : > { %2655 = vmatprep.mubr.f32.mxu0 %v23007_v63  ;;  %5570 = vmatprep.mubr.f32.mxu1 %v23007_v63 }
 0x396   : > { %2657 = vmatmul.mubr.f32.gmra.mrb[26].mxu0 %v15443_v4  ;;  %5572 = vmatmul.mubr.f32.gmra.mrb[26].mxu1 %v15443_v4 }
 0x397   : > { %2662 = vmatprep.mubr.f32.mxu0 %v23007_v63  ;;  %5577 = vmatprep.mubr.f32.mxu1 %v23007_v63 }
 0x39a   : > { %2664 = vmatmul.mubr.f32.gmra.mrb[28].mxu0 %v15451_v17  ;;  %5579 = vmatmul.mubr.f32.gmra.mrb[28].mxu1 %v15451_v17 }
 0x39b   : > { %2669 = vmatprep.mubr.f32.mxu0 %v23007_v63  ;;  %5584 = vmatprep.mubr.f32.mxu1 %v23007_v63 }
 0x39e   : > { %2671 = vmatmul.mubr.f32.gmra.mrb[30].mxu0 %v15469_v51  ;;  %5586 = vmatmul.mubr.f32.gmra.mrb[30].mxu1 %v15469_v51 }
 0x39f   : > { %2676 = vmatprep.mubr.f32.mxu0 %v23007_v63  ;;  %5591 = vmatprep.mubr.f32.mxu1 %v23007_v63 }
 0x3a2   : > { %2678 = vmatmul.mubr.f32.gmra.mrb[32].mxu0 %v15485_v45  ;;  %5593 = vmatmul.mubr.f32.gmra.mrb[32].mxu1 %v15485_v45 }
 0x3a3   : > { %2683 = vmatprep.mubr.f32.mxu0 %v23007_v63  ;;  %5598 = vmatprep.mubr.f32.mxu1 %v23007_v63 }
 0x3a6   : > { %2685 = vmatmul.mubr.f32.gmra.mrb[34].mxu0 %v15504_v43  ;;  %5600 = vmatmul.mubr.f32.gmra.mrb[34].mxu1 %v15504_v43 }
 0x3a7   : > { %2690 = vmatprep.mubr.f32.mxu0 %v23007_v63  ;;  %5605 = vmatprep.mubr.f32.mxu1 %v23007_v63 }
 0x3aa   : > { %2692 = vmatmul.mubr.f32.gmra.mrb[36].mxu0 %v15520_v60  ;;  %5607 = vmatmul.mubr.f32.gmra.mrb[36].mxu1 %v15520_v60 }
 0x3ab   : > { %2697 = vmatprep.mubr.f32.mxu0 %v23007_v63  ;;  %5612 = vmatprep.mubr.f32.mxu1 %v23007_v63 }
 0x3ae   : > { %2699 = vmatmul.mubr.f32.gmra.mrb[38].mxu0 %v15536_v1  ;;  %5614 = vmatmul.mubr.f32.gmra.mrb[38].mxu1 %v15536_v1 }
 0x3af   : > { %2704 = vmatprep.mubr.f32.mxu0 %v23007_v63  ;;  %5619 = vmatprep.mubr.f32.mxu1 %v23007_v63 }
 0x3b2   : > { %2706 = vmatmul.mubr.f32.gmra.mrb[40].mxu0 %v15552_v13  ;;  %5621 = vmatmul.mubr.f32.gmra.mrb[40].mxu1 %v15552_v13 }
 0x3b3   : > { %2711 = vmatprep.mubr.f32.mxu0 %v23007_v63  ;;  %5626 = vmatprep.mubr.f32.mxu1 %v23007_v63 }
 0x3b6   : > { %2713 = vmatmul.mubr.f32.gmra.mrb[42].mxu0 %v15573_v39  ;;  %5628 = vmatmul.mubr.f32.gmra.mrb[42].mxu1 %v15573_v39 }
 0x3b7   : > { %2718 = vmatprep.mubr.f32.mxu0 %v23007_v63  ;;  %5633 = vmatprep.mubr.f32.mxu1 %v23007_v63 }
 0x3ba   : > { %2720 = vmatmul.mubr.f32.gmra.mrb[44].mxu0 %v15589_v35  ;;  %5635 = vmatmul.mubr.f32.gmra.mrb[44].mxu1 %v15589_v35 }
 0x3bb   : > { %2725 = vmatprep.mubr.f32.mxu0 %v23007_v63  ;;  %5640 = vmatprep.mubr.f32.mxu1 %v23007_v63 }
 0x3be   : > { %2727 = vmatmul.mubr.f32.gmra.mrb[46].mxu0 %v15605_v53  ;;  %5642 = vmatmul.mubr.f32.gmra.mrb[46].mxu1 %v15605_v53 }
 0x3bf   : > { %2732 = vmatprep.mubr.f32.mxu0 %v23007_v63  ;;  %5647 = vmatprep.mubr.f32.mxu1 %v23007_v63 }
 0x3c2   : > { %2734 = vmatmul.mubr.f32.gmra.mrb[48].mxu0 %v15613_v11  ;;  %5649 = vmatmul.mubr.f32.gmra.mrb[48].mxu1 %v15613_v11 }
 0x3c3   : > { %2739 = vmatprep.mubr.f32.mxu0 %v23007_v63  ;;  %5654 = vmatprep.mubr.f32.mxu1 %v23007_v63 }
 0x3c6   : > { %2741 = vmatmul.mubr.f32.gmra.mrb[50].mxu0 %v15629_v26  ;;  %5656 = vmatmul.mubr.f32.gmra.mrb[50].mxu1 %v15629_v26 }
 0x3c7   : > { %2746 = vmatprep.mubr.f32.mxu0 %v23007_v63  ;;  %5661 = vmatprep.mubr.f32.mxu1 %v23007_v63 }
 0x3ca   : > { %2748 = vmatmul.mubr.f32.gmra.mrb[52].mxu0 %v15645_v18  ;;  %5663 = vmatmul.mubr.f32.gmra.mrb[52].mxu1 %v15645_v18 }
 0x3cb   : > { %2753 = vmatprep.mubr.f32.mxu0 %v23007_v63  ;;  %5668 = vmatprep.mubr.f32.mxu1 %v23007_v63 }
 0x3ce   : > { %2755 = vmatmul.mubr.f32.gmra.mrb[54].mxu0 %v15670_v23  ;;  %5670 = vmatmul.mubr.f32.gmra.mrb[54].mxu1 %v15670_v23 }
 0x3cf   : > { %2760 = vmatprep.mubr.f32.mxu0 %v23007_v63  ;;  %5675 = vmatprep.mubr.f32.mxu1 %v23007_v63 }
 0x3d2   : > { %2762 = vmatmul.mubr.f32.gmra.mrb[56].mxu0 %v15680_v57  ;;  %5677 = vmatmul.mubr.f32.gmra.mrb[56].mxu1 %v15680_v57 }
 0x3d3   : > { %2767 = vmatprep.mubr.f32.mxu0 %v23007_v63  ;;  %5682 = vmatprep.mubr.f32.mxu1 %v23007_v63 }
 0x3d6   : > { %2769 = vmatmul.mubr.f32.gmra.mrb[58].mxu0 %v15701_v37  ;;  %5684 = vmatmul.mubr.f32.gmra.mrb[58].mxu1 %v15701_v37 }
 0x3d7   : > { %2774 = vmatprep.mubr.f32.mxu0 %v23007_v63  ;;  %5689 = vmatprep.mubr.f32.mxu1 %v23007_v63 }
 0x3da   : > { %2776 = vmatmul.mubr.f32.gmra.mrb[60].mxu0 %v15717_v10  ;;  %5691 = vmatmul.mubr.f32.gmra.mrb[60].mxu1 %v15717_v10 }
 0x3db   : > { %2781 = vmatprep.mubr.f32.mxu0 %v23007_v63  ;;  %5696 = vmatprep.mubr.f32.mxu1 %v23007_v63 }
 0x3de   : > { %2783 = vmatmul.mubr.f32.gmra.mrb[62].mxu0 %v15727_v49  ;;  %5698 = vmatmul.mubr.f32.gmra.mrb[62].mxu1 %v15727_v49 }
 0x3df   : > { %2788 = vmatprep.mubr.f32.mxu0 %v23007_v63  ;;  %5703 = vmatprep.mubr.f32.mxu1 %v23007_v63 }
 0x3e2   : > { %2790 = vmatmul.mubr.f32.gmra.mrb[64].mxu0 %v15741_v21  ;;  %5705 = vmatmul.mubr.f32.gmra.mrb[64].mxu1 %v15741_v21 }
 0x3e3   : > { %2795 = vmatprep.mubr.f32.mxu0 %v23007_v63  ;;  %5710 = vmatprep.mubr.f32.mxu1 %v23007_v63 }
 0x3e6   : > { %2797 = vmatmul.mubr.f32.gmra.mrb[66].mxu0 %v15760_v44  ;;  %5712 = vmatmul.mubr.f32.gmra.mrb[66].mxu1 %v15760_v44 }
 0x3e7   : > { %2802 = vmatprep.mubr.f32.mxu0 %v23007_v63  ;;  %5717 = vmatprep.mubr.f32.mxu1 %v23007_v63 }
 0x3ea   : > { %2804 = vmatmul.mubr.f32.gmra.mrb[68].mxu0 %v15776_v19  ;;  %5719 = vmatmul.mubr.f32.gmra.mrb[68].mxu1 %v15776_v19 }
 0x3eb   : > { %2809 = vmatprep.mubr.f32.mxu0 %v23007_v63  ;;  %5724 = vmatprep.mubr.f32.mxu1 %v23007_v63 }
 0x3ee   : > { %2811 = vmatmul.mubr.f32.gmra.mrb[70].mxu0 %v15789_v3  ;;  %5726 = vmatmul.mubr.f32.gmra.mrb[70].mxu1 %v15789_v3 }
 0x3ef   : > { %2816 = vmatprep.mubr.f32.mxu0 %v23007_v63  ;;  %5731 = vmatprep.mubr.f32.mxu1 %v23007_v63 }
 0x3f2   : > { %2818 = vmatmul.mubr.f32.gmra.mrb[72].mxu0 %v15813_v58  ;;  %5733 = vmatmul.mubr.f32.gmra.mrb[72].mxu1 %v15813_v58 }
 0x3f3   : > { %2823 = vmatprep.mubr.f32.mxu0 %v23007_v63  ;;  %5738 = vmatprep.mubr.f32.mxu1 %v23007_v63 }
 0x3f6   : > { %2825 = vmatmul.mubr.f32.gmra.mrb[74].mxu0 %v15829_v56  ;;  %5740 = vmatmul.mubr.f32.gmra.mrb[74].mxu1 %v15829_v56 }
 0x3f7   : > { %2830 = vmatprep.mubr.f32.mxu0 %v23007_v63  ;;  %5745 = vmatprep.mubr.f32.mxu1 %v23007_v63 }
 0x3fa   : > { %2832 = vmatmul.mubr.f32.gmra.mrb[76].mxu0 %v15846_v36  ;;  %5747 = vmatmul.mubr.f32.gmra.mrb[76].mxu1 %v15846_v36 }
 0x3fb   : > { %2837 = vmatprep.mubr.f32.mxu0 %v23007_v63  ;;  %5752 = vmatprep.mubr.f32.mxu1 %v23007_v63 }
 0x3fe   : > { %2839 = vmatmul.mubr.f32.gmra.mrb[78].mxu0 %v15853_v61  ;;  %5754 = vmatmul.mubr.f32.gmra.mrb[78].mxu1 %v15853_v61 }
 0x3ff   : > { %2844 = vmatprep.mubr.f32.mxu0 %v23007_v63  ;;  %5759 = vmatprep.mubr.f32.mxu1 %v23007_v63 }
 0x402   : > { %2846 = vmatmul.mubr.f32.gmra.mrb[80].mxu0 %v15878_v29  ;;  %5761 = vmatmul.mubr.f32.gmra.mrb[80].mxu1 %v15878_v29 }
 0x403   : > { %2851 = vmatprep.mubr.f32.mxu0 %v23007_v63  ;;  %5766 = vmatprep.mubr.f32.mxu1 %v23007_v63 }
 0x406   : > { %2853 = vmatmul.mubr.f32.gmra.mrb[82].mxu0 %v15885_v5  ;;  %5768 = vmatmul.mubr.f32.gmra.mrb[82].mxu1 %v15885_v5 }
 0x407   : > { %2858 = vmatprep.mubr.f32.mxu0 %v23007_v63  ;;  %5773 = vmatprep.mubr.f32.mxu1 %v23007_v63 }
 0x40a   : > { %2860 = vmatmul.mubr.f32.gmra.mrb[84].mxu0 %v15901_v52  ;;  %5775 = vmatmul.mubr.f32.gmra.mrb[84].mxu1 %v15901_v52 }
 0x40b   : > { %2865 = vmatprep.mubr.f32.mxu0 %v23007_v63  ;;  %5780 = vmatprep.mubr.f32.mxu1 %v23007_v63 }
 0x40e   : > { %2867 = vmatmul.mubr.f32.gmra.mrb[86].mxu0 %v23078_v62  ;;  %5782 = vmatmul.mubr.f32.gmra.mrb[86].mxu1 %v23078_v62 }
 0x40f   : > { %2872 = vmatprep.mubr.f32.mxu0 %v23007_v63  ;;  %5787 = vmatprep.mubr.f32.mxu1 %v23007_v63 }
 0x412   : > { %2874 = vmatmul.mubr.f32.gmra.mrb[88].mxu0 %v23186_v32  ;;  %5789 = vmatmul.mubr.f32.gmra.mrb[88].mxu1 %v23186_v32 }
 0x413   : > { %2879 = vmatprep.mubr.f32.mxu0 %v23007_v63  ;;  %5794 = vmatprep.mubr.f32.mxu1 %v23007_v63 }
 0x416   : > { %2881 = vmatmul.mubr.f32.gmra.mrb[90].mxu0 %v23187_v9  ;;  %5796 = vmatmul.mubr.f32.gmra.mrb[90].mxu1 %v23187_v9 }
 0x417   : > { %2886 = vmatprep.mubr.f32.mxu0 %v23007_v63  ;;  %5801 = vmatprep.mubr.f32.mxu1 %v23007_v63 }
 0x41a   : > { %2888 = vmatmul.mubr.f32.gmra.mrb[92].mxu0 %v23188_v8  ;;  %5803 = vmatmul.mubr.f32.gmra.mrb[92].mxu1 %v23188_v8 }
 0x41b   : > { %2893 = vmatprep.mubr.f32.mxu0 %v23007_v63  ;;  %5808 = vmatprep.mubr.f32.mxu1 %v23007_v63 }
 0x41e   : > { %2895 = vmatmul.mubr.f32.gmra.mrb[94].mxu0 %v23189_v20  ;;  %5810 = vmatmul.mubr.f32.gmra.mrb[94].mxu1 %v23189_v20 }
 0x41f   : > { %2900 = vmatprep.mubr.f32.mxu0 %v23007_v63  ;;  %5815 = vmatprep.mubr.f32.mxu1 %v23007_v63 }
 0x422   : > { %2902 = vmatmul.mubr.f32.gmra.mrb[96].mxu0 %v23190_v24  ;;  %5817 = vmatmul.mubr.f32.gmra.mrb[96].mxu1 %v23190_v24 }
 0x423   : > { %2907 = vmatprep.mubr.f32.mxu0 %v23007_v63  ;;  %5822 = vmatprep.mubr.f32.mxu1 %v23007_v63 }
 0x426   : > { %2909 = vmatmul.mubr.f32.gmra.mrb[98].mxu0 %v23191_v25  ;;  %5824 = vmatmul.mubr.f32.gmra.mrb[98].mxu1 %v23191_v25 }
 0x427   : > { %2914 = vmatprep.mubr.f32.mxu0 %v23007_v63  ;;  %5829 = vmatprep.mubr.f32.mxu1 %v23007_v63 }
 0x42a   : > { %2916 = vmatmul.mubr.f32.gmra.mrb[100].mxu0 %v23192_v48  ;;  %5831 = vmatmul.mubr.f32.gmra.mrb[100].mxu1 %v23192_v48 }
 0x42b   : > { %2988 = vmatprep.mubr.f32.mxu0 %v23007_v63  ;;  %5903 = vmatprep.mubr.f32.mxu1 %v23007_v63 }
 0x42e   : > { %2990 = vmatmul.mubr.f32.vlgmr.msra.gmra.mrb[0].mxu0 %v15206_v22  ;;  %5905 = vmatmul.mubr.f32.vlgmr.msra.gmra.mrb[0].mxu1 %v15206_v22 }
 0x42f   : > { %2995 = vmatprep.mubr.f32.mxu0 %v23007_v63  ;;  %5910 = vmatprep.mubr.f32.mxu1 %v23007_v63 }
 0x432   : > { %2997 = vmatmul.mubr.f32.gmra.mrb[2].mxu0 %v15218_v27  ;;  %5912 = vmatmul.mubr.f32.gmra.mrb[2].mxu1 %v15218_v27 }
 0x433   : > { %3002 = vmatprep.mubr.f32.mxu0 %v23007_v63  ;;  %5917 = vmatprep.mubr.f32.mxu1 %v23007_v63 }
 0x436   : > { %3004 = vmatmul.mubr.f32.gmra.mrb[4].mxu0 %v15226_v30  ;;  %5919 = vmatmul.mubr.f32.gmra.mrb[4].mxu1 %v15226_v30 }
 0x437   : > { %3009 = vmatprep.mubr.f32.mxu0 %v23007_v63  ;;  %5924 = vmatprep.mubr.f32.mxu1 %v23007_v63 }
 0x43a   : > { %3011 = vmatmul.mubr.f32.gmra.mrb[6].mxu0 %v15237_v33  ;;  %5926 = vmatmul.mubr.f32.gmra.mrb[6].mxu1 %v15237_v33 }
 0x43b   : > { %3016 = vmatprep.mubr.f32.mxu0 %v23007_v63  ;;  %5931 = vmatprep.mubr.f32.mxu1 %v23007_v63 }
 0x43e   : > { %3018 = vmatmul.mubr.f32.gmra.mrb[8].mxu0 %v15279_v50  ;;  %5933 = vmatmul.mubr.f32.gmra.mrb[8].mxu1 %v15279_v50 }
 0x43f   : > { %3023 = vmatprep.mubr.f32.mxu0 %v23007_v63  ;;  %5938 = vmatprep.mubr.f32.mxu1 %v23007_v63 }
 0x442   : > { %3025 = vmatmul.mubr.f32.gmra.mrb[10].mxu0 %v15286_v54  ;;  %5940 = vmatmul.mubr.f32.gmra.mrb[10].mxu1 %v15286_v54 }
 0x443   : > { %3030 = vmatprep.mubr.f32.mxu0 %v23007_v63  ;;  %5945 = vmatprep.mubr.f32.mxu1 %v23007_v63 }
 0x446   : > { %3032 = vmatmul.mubr.f32.gmra.mrb[12].mxu0 %v15296_v59  ;;  %5947 = vmatmul.mubr.f32.gmra.mrb[12].mxu1 %v15296_v59 }
 0x447   : > { %3037 = vmatprep.mubr.f32.mxu0 %v23007_v63  ;;  %5952 = vmatprep.mubr.f32.mxu1 %v23007_v63 }
 0x44a   : > { %3039 = vmatmul.mubr.f32.gmra.mrb[14].mxu0 %v15307_v0  ;;  %5954 = vmatmul.mubr.f32.gmra.mrb[14].mxu1 %v15307_v0 }
 0x44b   : > { %3044 = vmatprep.mubr.f32.mxu0 %v23007_v63  ;;  %5959 = vmatprep.mubr.f32.mxu1 %v23007_v63 }
 0x44e   : > { %3046 = vmatmul.mubr.f32.gmra.mrb[16].mxu0 %v15323_v6  ;;  %5961 = vmatmul.mubr.f32.gmra.mrb[16].mxu1 %v15323_v6 }
 0x44f   : > { %3051 = vmatprep.mubr.f32.mxu0 %v23007_v63  ;;  %5966 = vmatprep.mubr.f32.mxu1 %v23007_v63 }
 0x452   : > { %3053 = vmatmul.mubr.f32.gmra.mrb[18].mxu0 %v15342_v15  ;;  %5968 = vmatmul.mubr.f32.gmra.mrb[18].mxu1 %v15342_v15 }
 0x453   : > { %3058 = vmatprep.mubr.f32.mxu0 %v23007_v63  ;;  %5973 = vmatprep.mubr.f32.mxu1 %v23007_v63 }
 0x456   : > { %3060 = vmatmul.mubr.f32.gmra.mrb[20].mxu0 %v15355_v38  ;;  %5975 = vmatmul.mubr.f32.gmra.mrb[20].mxu1 %v15355_v38 }
 0x457   : > { %3065 = vmatprep.mubr.f32.mxu0 %v23007_v63  ;;  %5980 = vmatprep.mubr.f32.mxu1 %v23007_v63 }
 0x45a   : > { %3067 = vmatmul.mubr.f32.gmra.mrb[22].mxu0 %v15391_v55  ;;  %5982 = vmatmul.mubr.f32.gmra.mrb[22].mxu1 %v15391_v55 }
 0x45b   : > { %3072 = vmatprep.mubr.f32.mxu0 %v23007_v63  ;;  %5987 = vmatprep.mubr.f32.mxu1 %v23007_v63 }
 0x45e   : > { %3074 = vmatmul.mubr.f32.gmra.mrb[24].mxu0 %v15421_v16  ;;  %5989 = vmatmul.mubr.f32.gmra.mrb[24].mxu1 %v15421_v16 }
 0x45f   : > { %3079 = vmatprep.mubr.f32.mxu0 %v23007_v63  ;;  %5994 = vmatprep.mubr.f32.mxu1 %v23007_v63 }
 0x462   : > { %3081 = vmatmul.mubr.f32.gmra.mrb[26].mxu0 %v15443_v4  ;;  %5996 = vmatmul.mubr.f32.gmra.mrb[26].mxu1 %v15443_v4 }
 0x463   : > { %3086 = vmatprep.mubr.f32.mxu0 %v23007_v63  ;;  %6001 = vmatprep.mubr.f32.mxu1 %v23007_v63 }
 0x466   : > { %3088 = vmatmul.mubr.f32.gmra.mrb[28].mxu0 %v15451_v17  ;;  %6003 = vmatmul.mubr.f32.gmra.mrb[28].mxu1 %v15451_v17 }
 0x467   : > { %3093 = vmatprep.mubr.f32.mxu0 %v23007_v63  ;;  %6008 = vmatprep.mubr.f32.mxu1 %v23007_v63 }
 0x46a   : > { %3095 = vmatmul.mubr.f32.gmra.mrb[30].mxu0 %v15469_v51  ;;  %6010 = vmatmul.mubr.f32.gmra.mrb[30].mxu1 %v15469_v51 }
 0x46b   : > { %3100 = vmatprep.mubr.f32.mxu0 %v23007_v63  ;;  %6015 = vmatprep.mubr.f32.mxu1 %v23007_v63 }
 0x46e   : > { %3102 = vmatmul.mubr.f32.gmra.mrb[32].mxu0 %v15485_v45  ;;  %6017 = vmatmul.mubr.f32.gmra.mrb[32].mxu1 %v15485_v45 }
 0x46f   : > { %3107 = vmatprep.mubr.f32.mxu0 %v23007_v63  ;;  %6022 = vmatprep.mubr.f32.mxu1 %v23007_v63 }
 0x472   : > { %3109 = vmatmul.mubr.f32.gmra.mrb[34].mxu0 %v15504_v43  ;;  %6024 = vmatmul.mubr.f32.gmra.mrb[34].mxu1 %v15504_v43 }
 0x473   : > { %3114 = vmatprep.mubr.f32.mxu0 %v23007_v63  ;;  %6029 = vmatprep.mubr.f32.mxu1 %v23007_v63 }
 0x476   : > { %3116 = vmatmul.mubr.f32.gmra.mrb[36].mxu0 %v15520_v60  ;;  %6031 = vmatmul.mubr.f32.gmra.mrb[36].mxu1 %v15520_v60 }
 0x477   : > { %3121 = vmatprep.mubr.f32.mxu0 %v23007_v63  ;;  %6036 = vmatprep.mubr.f32.mxu1 %v23007_v63 }
 0x47a   : > { %3123 = vmatmul.mubr.f32.gmra.mrb[38].mxu0 %v15536_v1  ;;  %6038 = vmatmul.mubr.f32.gmra.mrb[38].mxu1 %v15536_v1 }
 0x47b   : > { %3128 = vmatprep.mubr.f32.mxu0 %v23007_v63  ;;  %6043 = vmatprep.mubr.f32.mxu1 %v23007_v63 }
 0x47e   : > { %3130 = vmatmul.mubr.f32.gmra.mrb[40].mxu0 %v15552_v13  ;;  %6045 = vmatmul.mubr.f32.gmra.mrb[40].mxu1 %v15552_v13 }
 0x47f   : > { %3135 = vmatprep.mubr.f32.mxu0 %v23007_v63  ;;  %6050 = vmatprep.mubr.f32.mxu1 %v23007_v63 }
 0x482   : > { %3137 = vmatmul.mubr.f32.gmra.mrb[42].mxu0 %v15573_v39  ;;  %6052 = vmatmul.mubr.f32.gmra.mrb[42].mxu1 %v15573_v39 }
 0x483   : > { %3142 = vmatprep.mubr.f32.mxu0 %v23007_v63  ;;  %6057 = vmatprep.mubr.f32.mxu1 %v23007_v63 }
 0x486   : > { %3144 = vmatmul.mubr.f32.gmra.mrb[44].mxu0 %v15589_v35  ;;  %6059 = vmatmul.mubr.f32.gmra.mrb[44].mxu1 %v15589_v35 }
 0x487   : > { %3149 = vmatprep.mubr.f32.mxu0 %v23007_v63  ;;  %6064 = vmatprep.mubr.f32.mxu1 %v23007_v63 }
 0x48a   : > { %3151 = vmatmul.mubr.f32.gmra.mrb[46].mxu0 %v15605_v53  ;;  %6066 = vmatmul.mubr.f32.gmra.mrb[46].mxu1 %v15605_v53 }
 0x48b   : > { %3156 = vmatprep.mubr.f32.mxu0 %v23007_v63  ;;  %6071 = vmatprep.mubr.f32.mxu1 %v23007_v63 }
 0x48e   : > { %3158 = vmatmul.mubr.f32.gmra.mrb[48].mxu0 %v15613_v11  ;;  %6073 = vmatmul.mubr.f32.gmra.mrb[48].mxu1 %v15613_v11 }
 0x48f   : > { %3163 = vmatprep.mubr.f32.mxu0 %v23007_v63  ;;  %6078 = vmatprep.mubr.f32.mxu1 %v23007_v63 }
 0x492   : > { %3165 = vmatmul.mubr.f32.gmra.mrb[50].mxu0 %v15629_v26  ;;  %6080 = vmatmul.mubr.f32.gmra.mrb[50].mxu1 %v15629_v26 }
 0x493   : > { %3170 = vmatprep.mubr.f32.mxu0 %v23007_v63  ;;  %6085 = vmatprep.mubr.f32.mxu1 %v23007_v63 }
 0x496   : > { %3172 = vmatmul.mubr.f32.gmra.mrb[52].mxu0 %v15645_v18  ;;  %6087 = vmatmul.mubr.f32.gmra.mrb[52].mxu1 %v15645_v18 }
 0x497   : > { %3177 = vmatprep.mubr.f32.mxu0 %v23007_v63  ;;  %6092 = vmatprep.mubr.f32.mxu1 %v23007_v63 }
 0x49a   : > { %3179 = vmatmul.mubr.f32.gmra.mrb[54].mxu0 %v15670_v23  ;;  %6094 = vmatmul.mubr.f32.gmra.mrb[54].mxu1 %v15670_v23 }
 0x49b   : > { %3184 = vmatprep.mubr.f32.mxu0 %v23007_v63  ;;  %6099 = vmatprep.mubr.f32.mxu1 %v23007_v63 }
 0x49e   : > { %3186 = vmatmul.mubr.f32.gmra.mrb[56].mxu0 %v15680_v57  ;;  %6101 = vmatmul.mubr.f32.gmra.mrb[56].mxu1 %v15680_v57 }
 0x49f   : > { %3191 = vmatprep.mubr.f32.mxu0 %v23007_v63  ;;  %6106 = vmatprep.mubr.f32.mxu1 %v23007_v63 }
 0x4a2   : > { %3193 = vmatmul.mubr.f32.gmra.mrb[58].mxu0 %v15701_v37  ;;  %6108 = vmatmul.mubr.f32.gmra.mrb[58].mxu1 %v15701_v37 }
 0x4a3   : > { %3198 = vmatprep.mubr.f32.mxu0 %v23007_v63  ;;  %6113 = vmatprep.mubr.f32.mxu1 %v23007_v63 }
 0x4a6   : > { %3200 = vmatmul.mubr.f32.gmra.mrb[60].mxu0 %v15717_v10  ;;  %6115 = vmatmul.mubr.f32.gmra.mrb[60].mxu1 %v15717_v10 }
 0x4a7   : > { %3205 = vmatprep.mubr.f32.mxu0 %v23007_v63  ;;  %6120 = vmatprep.mubr.f32.mxu1 %v23007_v63 }
 0x4aa   : > { %3207 = vmatmul.mubr.f32.gmra.mrb[62].mxu0 %v15727_v49  ;;  %6122 = vmatmul.mubr.f32.gmra.mrb[62].mxu1 %v15727_v49 }
 0x4ab   : > { %3212 = vmatprep.mubr.f32.mxu0 %v23007_v63  ;;  %6127 = vmatprep.mubr.f32.mxu1 %v23007_v63 }
 0x4ae   : > { %3214 = vmatmul.mubr.f32.gmra.mrb[64].mxu0 %v15741_v21  ;;  %6129 = vmatmul.mubr.f32.gmra.mrb[64].mxu1 %v15741_v21 }
 0x4af   : > { %3219 = vmatprep.mubr.f32.mxu0 %v23007_v63  ;;  %6134 = vmatprep.mubr.f32.mxu1 %v23007_v63 }
 0x4b2   : > { %3221 = vmatmul.mubr.f32.gmra.mrb[66].mxu0 %v15760_v44  ;;  %6136 = vmatmul.mubr.f32.gmra.mrb[66].mxu1 %v15760_v44 }
 0x4b3   : > { %3226 = vmatprep.mubr.f32.mxu0 %v23007_v63  ;;  %6141 = vmatprep.mubr.f32.mxu1 %v23007_v63 }
 0x4b6   : > { %3228 = vmatmul.mubr.f32.gmra.mrb[68].mxu0 %v15776_v19  ;;  %6143 = vmatmul.mubr.f32.gmra.mrb[68].mxu1 %v15776_v19 }
 0x4b7   : > { %3233 = vmatprep.mubr.f32.mxu0 %v23007_v63  ;;  %6148 = vmatprep.mubr.f32.mxu1 %v23007_v63 }
 0x4ba   : > { %3235 = vmatmul.mubr.f32.gmra.mrb[70].mxu0 %v15789_v3  ;;  %6150 = vmatmul.mubr.f32.gmra.mrb[70].mxu1 %v15789_v3 }
 0x4bb   : > { %3240 = vmatprep.mubr.f32.mxu0 %v23007_v63  ;;  %6155 = vmatprep.mubr.f32.mxu1 %v23007_v63 }
 0x4be   : > { %3242 = vmatmul.mubr.f32.gmra.mrb[72].mxu0 %v15813_v58  ;;  %6157 = vmatmul.mubr.f32.gmra.mrb[72].mxu1 %v15813_v58 }
 0x4bf   : > { %3247 = vmatprep.mubr.f32.mxu0 %v23007_v63  ;;  %6162 = vmatprep.mubr.f32.mxu1 %v23007_v63 }
 0x4c2   : > { %3249 = vmatmul.mubr.f32.gmra.mrb[74].mxu0 %v15829_v56  ;;  %6164 = vmatmul.mubr.f32.gmra.mrb[74].mxu1 %v15829_v56 }
 0x4c3   : > { %3254 = vmatprep.mubr.f32.mxu0 %v23007_v63  ;;  %6169 = vmatprep.mubr.f32.mxu1 %v23007_v63 }
 0x4c6   : > { %3256 = vmatmul.mubr.f32.gmra.mrb[76].mxu0 %v15846_v36  ;;  %6171 = vmatmul.mubr.f32.gmra.mrb[76].mxu1 %v15846_v36 }
 0x4c7   : > { %3261 = vmatprep.mubr.f32.mxu0 %v23007_v63  ;;  %6176 = vmatprep.mubr.f32.mxu1 %v23007_v63 }
 0x4ca   : > { %3263 = vmatmul.mubr.f32.gmra.mrb[78].mxu0 %v15853_v61  ;;  %6178 = vmatmul.mubr.f32.gmra.mrb[78].mxu1 %v15853_v61 }
 0x4cb   : > { %3268 = vmatprep.mubr.f32.mxu0 %v23007_v63  ;;  %6183 = vmatprep.mubr.f32.mxu1 %v23007_v63 }
 0x4ce   : > { %3270 = vmatmul.mubr.f32.gmra.mrb[80].mxu0 %v15878_v29  ;;  %6185 = vmatmul.mubr.f32.gmra.mrb[80].mxu1 %v15878_v29 }
 0x4cf   : > { %3275 = vmatprep.mubr.f32.mxu0 %v23007_v63  ;;  %6190 = vmatprep.mubr.f32.mxu1 %v23007_v63 }
 0x4d2   : > { %3277 = vmatmul.mubr.f32.gmra.mrb[82].mxu0 %v15885_v5  ;;  %6192 = vmatmul.mubr.f32.gmra.mrb[82].mxu1 %v15885_v5 }
 0x4d3   : > { %3282 = vmatprep.mubr.f32.mxu0 %v23007_v63  ;;  %6197 = vmatprep.mubr.f32.mxu1 %v23007_v63 }
 0x4d6   : > { %3284 = vmatmul.mubr.f32.gmra.mrb[84].mxu0 %v15901_v52  ;;  %6199 = vmatmul.mubr.f32.gmra.mrb[84].mxu1 %v15901_v52 }
 0x4d7   : > { %3289 = vmatprep.mubr.f32.mxu0 %v23007_v63  ;;  %6204 = vmatprep.mubr.f32.mxu1 %v23007_v63 }
 0x4da   : > { %3291 = vmatmul.mubr.f32.gmra.mrb[86].mxu0 %v23078_v62  ;;  %6206 = vmatmul.mubr.f32.gmra.mrb[86].mxu1 %v23078_v62 }
 0x4db   : > { %3296 = vmatprep.mubr.f32.mxu0 %v23007_v63  ;;  %6211 = vmatprep.mubr.f32.mxu1 %v23007_v63 }
 0x4de   : > { %3298 = vmatmul.mubr.f32.gmra.mrb[88].mxu0 %v23186_v32  ;;  %6213 = vmatmul.mubr.f32.gmra.mrb[88].mxu1 %v23186_v32 }
 0x4df   : > { %3303 = vmatprep.mubr.f32.mxu0 %v23007_v63  ;;  %6218 = vmatprep.mubr.f32.mxu1 %v23007_v63 }
 0x4e2   : > { %3305 = vmatmul.mubr.f32.gmra.mrb[90].mxu0 %v23187_v9  ;;  %6220 = vmatmul.mubr.f32.gmra.mrb[90].mxu1 %v23187_v9 }
 0x4e3   : > { %3310 = vmatprep.mubr.f32.mxu0 %v23007_v63  ;;  %6225 = vmatprep.mubr.f32.mxu1 %v23007_v63 }
 0x4e6   : > { %3312 = vmatmul.mubr.f32.gmra.mrb[92].mxu0 %v23188_v8  ;;  %6227 = vmatmul.mubr.f32.gmra.mrb[92].mxu1 %v23188_v8 }
 0x4e7   : > { %3317 = vmatprep.mubr.f32.mxu0 %v23007_v63  ;;  %6232 = vmatprep.mubr.f32.mxu1 %v23007_v63 }
 0x4ea   : > { %3319 = vmatmul.mubr.f32.gmra.mrb[94].mxu0 %v23189_v20  ;;  %6234 = vmatmul.mubr.f32.gmra.mrb[94].mxu1 %v23189_v20 }
 0x4eb   : > { %3324 = vmatprep.mubr.f32.mxu0 %v23007_v63  ;;  %6239 = vmatprep.mubr.f32.mxu1 %v23007_v63 }
 0x4ee   : > { %3326 = vmatmul.mubr.f32.gmra.mrb[96].mxu0 %v23190_v24  ;;  %6241 = vmatmul.mubr.f32.gmra.mrb[96].mxu1 %v23190_v24 }
 0x4ef   : > { %3331 = vmatprep.mubr.f32.mxu0 %v23007_v63  ;;  %6246 = vmatprep.mubr.f32.mxu1 %v23007_v63 }
 0x4f2   : > { %3333 = vmatmul.mubr.f32.gmra.mrb[98].mxu0 %v23191_v25  ;;  %6248 = vmatmul.mubr.f32.gmra.mrb[98].mxu1 %v23191_v25 }
 0x4f3   : > { %3338 = vmatprep.mubr.f32.mxu0 %v23007_v63  ;;  %6253 = vmatprep.mubr.f32.mxu1 %v23007_v63 }
 0x4f6   : > { %3340 = vmatmul.mubr.f32.gmra.mrb[100].mxu0 %v23192_v48  ;;  %6255 = vmatmul.mubr.f32.gmra.mrb[100].mxu1 %v23192_v48 }
 0x501   : > { %v2991_v22 = vpop.f32.mrb[0].mxu0  ;;  %v5906_v27 = vpop.f32.mrb[0].mxu1 }
 0x502   : > { %v6261_v30 = vmax.f32 %v2991_v22, 0.0  ;;  %v6263_v33 = vmax.f32 %v5906_v27, 0.0  ;;  %v2993_v35 = vpop.f32.mrb[1].mxu0  ;;  %v5908_v36 = vpop.f32.mrb[1].mxu1 }
 0x503   : > { %v6262_v39 = vmax.f32 %v2993_v35, 0.0  ;;  %v6264_v50 = vmax.f32 %v5908_v36, 0.0 }
 0x504   : > { %v6503_v54 = vand.u32 4294901760, %v6261_v30  ;;  %v9229_v56 = vand.u32 4294901760, %v6263_v33 }
 0x505   : > { %v6501_v58 = vand.u32 4294901760, %v6262_v39  ;;  %v9227_v59 = vand.u32 4294901760, %v6264_v50  ;;  %v2998_v0 = vpop.f32.mrb[2].mxu0  ;;  %v5913_v3 = vpop.f32.mrb[2].mxu1 }
 0x506   : > { %v17099_v6 = vsub.f32 %v6261_v30, %v6503_v54  ;;  %v17101_v15 = vsub.f32 %v6263_v33, %v9229_v56  ;;  %v6265_v38 = vmax.f32 %v2998_v0, 0.0  ;;  %v6267_v49 = vmax.f32 %v5913_v3, 0.0  ;;  %v3000_v52 = vpop.f32.mrb[3].mxu0  ;;  %v5915_v55 = vpop.f32.mrb[3].mxu1 }
 0x507   : > { %v17103_v29 = vsub.f32 %v6262_v39, %v6501_v58  ;;  %v17105_v63 = vsub.f32 %v6264_v50, %v9227_v59  ;;  %v6266_v4 = vmax.f32 %v3000_v52, 0.0  ;;  %v6268_v10 = vmax.f32 %v5915_v55, 0.0 }
 0x508   : > { %23193 = vst [vmem:[#allocation95_spill] sm:$0xff] %v17099_v6  ;;  %23194 = vst [vmem:[#allocation8_spill] sm:$0xff] %v17101_v15  ;;  %v6507_v16 = vand.u32 4294901760, %v6265_v38  ;;  %v9233_v17 = vand.u32 4294901760, %v6267_v49 }
 0x509   : > { %23195 = vst [vmem:[#allocation6_spill] sm:$0xff] %v17103_v29  ;;  %23196 = vst [vmem:[#allocation7_spill] sm:$0xff] %v17105_v63  ;;  %v6505_v18 = vand.u32 4294901760, %v6266_v4  ;;  %v9231_v23 = vand.u32 4294901760, %v6268_v10  ;;  %v3005_v51 = vpop.f32.mrb[4].mxu0  ;;  %v5920_v45 = vpop.f32.mrb[4].mxu1 }
 0x50a   : > { %v17107_v43 = vpack.c.bf16 %v6507_v16, %v6503_v54  ;;  %v17109_v60 = vsub.f32 %v6265_v38, %v6507_v16  ;;  %v3007_v1 = vpop.f32.mrb[5].mxu0  ;;  %v5922_v53 = vpop.f32.mrb[5].mxu1  ;;  %v17111_v13 = vpack.c.bf16 %v9233_v17, %v9229_v56  ;;  %v17113_v11 = vsub.f32 %v6267_v49, %v9233_v17 }
 0x50b   : > { %v17115_v26 = vsub.f32 %v6266_v4, %v6505_v18  ;;  %v17117_v37 = vsub.f32 %v6268_v10, %v9231_v23  ;;  %v6269_v61 = vmax.f32 %v3005_v51, 0.0  ;;  %v6271_v5 = vmax.f32 %v5920_v45, 0.0 }
 0x50c   : > { %23197 = vst [vmem:[#allocation28_spill] sm:$0xff] %v17107_v43  ;;  %23198 = vst [vmem:[#allocation30_spill] sm:$0xff] %v17109_v60  ;;  %v6270_v62 = vmax.f32 %v3007_v1, 0.0  ;;  %v6272_v40 = vmax.f32 %v5922_v53, 0.0  ;;  %v17131_v24 = vpack.c.bf16 %v6505_v18, %v6501_v58  ;;  %v17147_v39 = vpack.c.bf16 %v9231_v23, %v9227_v59 }
 0x50d   : > { %23199 = vst [vmem:[#allocation9_spill] sm:$0xff] %v17111_v13  ;;  %23200 = vst [vmem:[#allocation11_spill] sm:$0xff] %v17113_v11  ;;  %v3012_v44 = vpop.f32.mrb[6].mxu0  ;;  %v5927_v19 = vpop.f32.mrb[6].mxu1  ;;  %v6511_v31 = vand.u32 4294901760, %v6269_v61  ;;  %v9237_v28 = vand.u32 4294901760, %v6271_v5 }
 0x50e   : > { %23201 = vst [vmem:[#allocation14_spill] sm:$0xff] %v17115_v26  ;;  %23202 = vst [vmem:[#allocation16_spill] sm:$0xff] %v17117_v37  ;;  %v3014_v41 = vpop.f32.mrb[7].mxu0  ;;  %v5929_v2 = vpop.f32.mrb[7].mxu1  ;;  %v6273_v14 = vmax.f32 %v3012_v44, 0.0  ;;  %v6275_v7 = vmax.f32 %v5927_v19, 0.0  ;;  %12522 = vmatprep.subr.bf16.mxu0 %v17131_v24  ;;  %13122 = vmatprep.subr.bf16.mxu1 %v17147_v39 }
 0x50f   : > { %v6509_v46 = vand.u32 4294901760, %v6270_v62  ;;  %v17123_v42 = vand.u32 4294901760, %v6272_v40  ;;  %v17125_v9 = vsub.f32 %v6269_v61, %v6511_v31  ;;  %v17127_v8 = vsub.f32 %v6271_v5, %v9237_v28  ;;  %23206 = vst [vmem:[#allocation23_spill] sm:$0xff] %v17131_v24  ;;  %23212 = vst [vmem:[#allocation38_spill] sm:$0xff] %v17147_v39  ;;  %12524 = vmatpush1.bf16.msra.mxu0 %v17107_v43 }
 0x510   : > { %v6515_v12 = vand.u32 4294901760, %v6273_v14  ;;  %v9241_v34 = vand.u32 4294901760, %v6275_v7  ;;  %v6274_v3 = vmax.f32 %v3014_v41, 0.0  ;;  %v6276_v38 = vmax.f32 %v5929_v2, 0.0  ;;  %13124 = vmatpush1.bf16.msra.mxu1 %v17111_v13 }
 0x511   : > { %v3019_v47 = vpop.f32.mrb[8].mxu0  ;;  %v5934_v32 = vpop.f32.mrb[8].mxu1  ;;  %23203 = vst [vmem:[#allocation17_spill] sm:$0xff] %v17125_v9  ;;  %23204 = vst [vmem:[#allocation20_spill] sm:$0xff] %v17127_v8  ;;  %v17129_v20 = vsub.f32 %v6270_v62, %v6509_v46  ;;  %v17134_v22 = vsub.f32 %v6272_v40, %v17123_v42 }
 0x512   : > { %v3021_v25 = vpop.f32.mrb[9].mxu0  ;;  %v5936_v48 = vpop.f32.mrb[9].mxu1  ;;  %v17136_v27 = vpack.c.bf16 %v6515_v12, %v6511_v31  ;;  %v17138_v30 = vsub.f32 %v6273_v14, %v6515_v12  ;;  %v17140_v33 = vpack.c.bf16 %v9241_v34, %v9237_v28  ;;  %v17142_v35 = vsub.f32 %v6275_v7, %v9241_v34 }
 0x513   : > { %23205 = vst [vmem:[#allocation22_spill] sm:$0xff] %v17129_v20  ;;  %23207 = vst [vmem:[#allocation26_spill] sm:$0xff] %v17134_v22  ;;  %v6277_v49 = vmax.f32 %v3019_v47, 0.0  ;;  %v6279_v52 = vmax.f32 %v5934_v32, 0.0  ;;  %v6513_v55 = vand.u32 4294901760, %v6274_v3  ;;  %v9239_v59 = vand.u32 4294901760, %v6276_v38 }
 0x514   : > { %23208 = vst [vmem:[#allocation27_spill] sm:$0xff] %v17136_v27  ;;  %23209 = vst [vmem:[#allocation32_spill] sm:$0xff] %v17138_v30  ;;  %v6278_v18 = vmax.f32 %v3021_v25, 0.0  ;;  %v6280_v23 = vmax.f32 %v5936_v48, 0.0 }
 0x515   : > { %23210 = vst [vmem:[#allocation34_spill] sm:$0xff] %v17140_v33  ;;  %23211 = vst [vmem:[#allocation36_spill] sm:$0xff] %v17142_v35  ;;  %v3026_v50 = vpop.f32.mrb[10].mxu0  ;;  %v5941_v54 = vpop.f32.mrb[10].mxu1  ;;  %v6519_v4 = vand.u32 4294901760, %v6277_v49  ;;  %v9245_v17 = vand.u32 4294901760, %v6279_v52  ;;  %v17154_v1 = vsub.f32 %v6274_v3, %v6513_v55  ;;  %v17156_v53 = vsub.f32 %v6276_v38, %v9239_v59 }
 0x516   : > { %v3028_v58 = vpop.f32.mrb[11].mxu0  ;;  %v5943_v0 = vpop.f32.mrb[11].mxu1  ;;  %v6281_v19 = vmax.f32 %v3026_v50, 0.0  ;;  %v6517_v5 = vand.u32 4294901760, %v6278_v18  ;;  %v9243_v62 = vand.u32 4294901760, %v6280_v23  ;;  %v6283_v41 = vmax.f32 %v5941_v54, 0.0 }
 0x517   : > { %23213 = vst [vmem:[#allocation40_spill] sm:$0xff] %v17154_v1  ;;  %23214 = vst [vmem:[#allocation41_spill] sm:$0xff] %v17156_v53  ;;  %v17158_v44 = vsub.f32 %v6277_v49, %v6519_v4  ;;  %v17160_v61 = vsub.f32 %v6279_v52, %v9245_v17  ;;  %v17176_v25 = vpack.c.bf16 %v6513_v55, %v6509_v46  ;;  %v6282_v52 = vmax.f32 %v3028_v58, 0.0 }
 0x518   : > { %v6523_v2 = vand.u32 4294901760, %v6281_v19  ;;  %v17164_v7 = vsub.f32 %v6278_v18, %v6517_v5  ;;  %v17166_v31 = vsub.f32 %v6280_v23, %v9243_v62  ;;  %v9249_v28 = vand.u32 4294901760, %v6283_v41 }
 0x519   : > { %v3033_v10 = vpop.f32.mrb[12].mxu0  ;;  %v5948_v16 = vpop.f32.mrb[12].mxu1  ;;  %23215 = vst [vmem:[#allocation43_spill] sm:$0xff] %v17158_v44  ;;  %23216 = vst [vmem:[#allocation46_spill] sm:$0xff] %v17160_v61  ;;  %12526 = vmatprep.subr.bf16.mxu0 %v17176_v25  ;;  %v17190_v49 = vpack.c.bf16 %v9239_v59, %v17123_v42  ;;  %v6521_v23 = vand.u32 4294901760, %v6282_v52 }
 0x51a   : > { %v3035_v51 = vpop.f32.mrb[13].mxu0  ;;  %v5950_v45 = vpop.f32.mrb[13].mxu1  ;;  %23217 = vst [vmem:[#allocation47_spill] sm:$0xff] %v17164_v7  ;;  %23218 = vst [vmem:[#allocation50_spill] sm:$0xff] %v17166_v31  ;;  %v17172_v47 = vpack.c.bf16 %v6523_v2, %v6519_v4  ;;  %v17174_v32 = vsub.f32 %v6281_v19, %v6523_v2  ;;  %v17178_v48 = vpack.c.bf16 %v9249_v28, %v9245_v17  ;;  %v6284_v4 = vmax.f32 %v5943_v0, 0.0 }
 0x51b   : > { %23221 = vst [vmem:[#allocation56_spill] sm:$0xff] %v17176_v25  ;;  %v17182_v54 = vsub.f32 %v6283_v41, %v9249_v28  ;;  %23224 = vst [vmem:[#allocation61_spill] sm:$0xff] %v17190_v49  ;;  %12528 = vmatpush1.bf16.msra.mxu0 %v17136_v27  ;;  %v6285_v18 = vmax.f32 %v3033_v10, 0.0  ;;  %13126 = vmatprep.subr.bf16.mxu1 %v17190_v49  ;;  %v6287_v41 = vmax.f32 %v5948_v16, 0.0  ;;  %v6286_v2 = vmax.f32 %v3035_v51, 0.0 }
 0x51c   : > { %23219 = vst [vmem:[#allocation52_spill] sm:$0xff] %v17172_v47  ;;  %23220 = vst [vmem:[#allocation54_spill] sm:$0xff] %v17174_v32  ;;  %v9247_v19 = vand.u32 4294901760, %v6284_v4  ;;  %13128 = vmatpush1.bf16.msra.mxu1 %v17140_v33  ;;  %v6288_v58 = vmax.f32 %v5950_v45, 0.0  ;;  %v17205_v28 = vsub.f32 %v6282_v52, %v6521_v23  ;;  %v17226_v25 = vpack.c.bf16 %v6521_v23, %v6517_v5 }
 0x51d   : > { %v3040_v40 = vpop.f32.mrb[14].mxu0  ;;  %v17162_v14 = vpop.f32.mrb[14].mxu1  ;;  %23222 = vst [vmem:[#allocation58_spill] sm:$0xff] %v17178_v48  ;;  %23223 = vst [vmem:[#allocation60_spill] sm:$0xff] %v17182_v54  ;;  %v6527_v42 = vand.u32 4294901760, %v6285_v18  ;;  %v9253_v17 = vand.u32 4294901760, %v6287_v41 }
 0x51e   : > { %v17168_v12 = vpop.f32.mrb[15].mxu0  ;;  %v17170_v34 = vpop.f32.mrb[15].mxu1  ;;  %23225 = vst [vmem:[#allocation64_spill] sm:$0xff] %v17205_v28  ;;  %v17207_v50 = vsub.f32 %v6284_v4, %v9247_v19  ;;  %v6525_v10 = vand.u32 4294901760, %v6286_v2  ;;  %v9251_v51 = vand.u32 4294901760, %v6288_v58  ;;  %v6289_v57 = vmax.f32 %v3040_v40, 0.0  ;;  %12530 = vmatprep.subr.bf16.mxu0 %v17226_v25 }
 0x51f   : > { %v17213_v16 = vsub.f32 %v6285_v18, %v6527_v42  ;;  %v17215_v21 = vsub.f32 %v6287_v41, %v9253_v17  ;;  %v6291_v4 = vmax.f32 %v17162_v14, 0.0  ;;  %23231 = vst [vmem:[#allocation75_spill] sm:$0xff] %v17226_v25  ;;  %v17228_v13 = vpack.c.bf16 %v9247_v19, %v9243_v62  ;;  %12532 = vmatpush1.bf16.msra.mxu0 %v17172_v47 }
 0x520   : > { %23226 = vst [vmem:[#allocation65_spill] sm:$0xff] %v17207_v50  ;;  %v17217_v45 = vsub.f32 %v6286_v2, %v6525_v10  ;;  %v17219_v33 = vsub.f32 %v6288_v58, %v9251_v51  ;;  %v6531_v52 = vand.u32 4294901760, %v6289_v57  ;;  %v6290_v14 = vmax.f32 %v17168_v12, 0.0 }
 0x521   : > { %v17185_v3 = vpop.f32.mrb[16].mxu0  ;;  %v17187_v38 = vpop.f32.mrb[16].mxu1  ;;  %23227 = vst [vmem:[#allocation68_spill] sm:$0xff] %v17213_v16  ;;  %23228 = vst [vmem:[#allocation70_spill] sm:$0xff] %v17215_v21  ;;  %v9257_v58 = vand.u32 4294901760, %v6291_v4  ;;  %13130 = vmatprep.subr.bf16.mxu1 %v17228_v13  ;;  %v6292_v5 = vmax.f32 %v17170_v34, 0.0 }
 0x522   : > { %v17193_v46 = vpop.f32.mrb[17].mxu0  ;;  %v17195_v55 = vpop.f32.mrb[17].mxu1  ;;  %23229 = vst [vmem:[#allocation72_spill] sm:$0xff] %v17217_v45  ;;  %23230 = vst [vmem:[#allocation73_spill] sm:$0xff] %v17219_v33  ;;  %v17234_v41 = vpack.c.bf16 %v6531_v52, %v6527_v42  ;;  %v17236_v2 = vsub.f32 %v6289_v57, %v6531_v52  ;;  %13132 = vmatpush1.bf16.msra.mxu1 %v17178_v48  ;;  %v6293_v23 = vmax.f32 %v17185_v3, 0.0  ;;  %v6529_v12 = vand.u32 4294901760, %v6290_v14 }
 0x523   : > { %23232 = vst [vmem:[#allocation78_spill] sm:$0xff] %v17228_v13  ;;  %v17251_v42 = vpack.c.bf16 %v9257_v58, %v9253_v17  ;;  %v17253_v52 = vsub.f32 %v6291_v4, %v9257_v58  ;;  %v9255_v62 = vand.u32 4294901760, %v6292_v5  ;;  %v6295_v47 = vmax.f32 %v17187_v38, 0.0 }
 0x524   : > { %23233 = vst [vmem:[#allocation79_spill] sm:$0xff] %v17234_v41  ;;  %23234 = vst [vmem:[#allocation82_spill] sm:$0xff] %v17236_v2  ;;  %v6535_v25 = vand.u32 4294901760, %v6293_v23  ;;  %v17262_v48 = vsub.f32 %v6290_v14, %v6529_v12  ;;  %v6294_v43 = vmax.f32 %v17193_v46, 0.0  ;;  %v6296_v45 = vmax.f32 %v17195_v55, 0.0 }
 0x525   : > { %v17201_v0 = vpop.f32.mrb[18].mxu0  ;;  %v17203_v59 = vpop.f32.mrb[18].mxu1  ;;  %23235 = vst [vmem:[#allocation84_spill] sm:$0xff] %v17251_v42  ;;  %23236 = vst [vmem:[#allocation86_spill] sm:$0xff] %v17253_v52  ;;  %v17265_v17 = vsub.f32 %v6292_v5, %v9255_v62  ;;  %v9261_v58 = vand.u32 4294901760, %v6295_v47  ;;  %v17292_v28 = vpack.c.bf16 %v9255_v62, %v9251_v51 }
 0x526   : > { %v17209_v56 = vpop.f32.mrb[19].mxu0  ;;  %v17211_v36 = vpop.f32.mrb[19].mxu1  ;;  %23237 = vst [vmem:[#allocation87_spill] sm:$0xff] %v17262_v48  ;;  %v17267_v4 = vsub.f32 %v6293_v23, %v6535_v25  ;;  %v6533_v33 = vand.u32 4294901760, %v6294_v43  ;;  %v6297_v46 = vmax.f32 %v17201_v0, 0.0  ;;  %v9259_v23 = vand.u32 4294901760, %v6296_v45 }
 0x527   : > { %23238 = vst [vmem:[#allocation90_spill] sm:$0xff] %v17265_v17  ;;  %v17278_v14 = vsub.f32 %v6295_v47, %v9261_v58  ;;  %v6299_v3 = vmax.f32 %v17203_v59, 0.0  ;;  %v17284_v48 = vpack.c.bf16 %v6529_v12, %v6525_v10  ;;  %23244 = vst [vmem:[#allocation10_spill] sm:$0xff] %v17292_v28  ;;  %13134 = vmatprep.subr.bf16.mxu1 %v17292_v28 }
 0x528   : > { %23239 = vst [vmem:[#allocation92_spill] sm:$0xff] %v17267_v4  ;;  %v17281_v5 = vsub.f32 %v6294_v43, %v6533_v33  ;;  %v6539_v17 = vand.u32 4294901760, %v6297_v46  ;;  %v17290_v55 = vsub.f32 %v6296_v45, %v9259_v23  ;;  %v6298_v45 = vmax.f32 %v17209_v56, 0.0  ;;  %13136 = vmatpush1.bf16.msra.mxu1 %v17251_v42 }
 0x529   : > { %v17222_v27 = vpop.f32.mrb[20].mxu0  ;;  %v17224_v49 = vpop.f32.mrb[20].mxu1  ;;  %23240 = vst [vmem:[#allocation93_spill] sm:$0xff] %v17278_v14  ;;  %23242 = vst [vmem:[#allocation100_spill] sm:$0xff] %v17284_v48  ;;  %v9265_v50 = vand.u32 4294901760, %v6299_v3  ;;  %12534 = vmatprep.subr.bf16.mxu0 %v17284_v48 }
 0x52a   : > { %v17230_v18 = vpop.f32.mrb[21].mxu0  ;;  %v17232_v40 = vpop.f32.mrb[21].mxu1  ;;  %23241 = vst [vmem:[#allocation97_spill] sm:$0xff] %v17281_v5  ;;  %23243 = vst [vmem:[#allocation103_spill] sm:$0xff] %v17290_v55  ;;  %v17298_v43 = vpack.c.bf16 %v6539_v17, %v6535_v25  ;;  %v17300_v5 = vsub.f32 %v6297_v46, %v6539_v17  ;;  %12536 = vmatpush1.bf16.msra.mxu0 %v17234_v41  ;;  %v6300_v25 = vmax.f32 %v17211_v36, 0.0  ;;  %v6301_v17 = vmax.f32 %v17222_v27, 0.0 }
 0x52b   : > { %v17303_v59 = vpack.c.bf16 %v9265_v50, %v9261_v58  ;;  %v17305_v10 = vsub.f32 %v6299_v3, %v9265_v50  ;;  %v6537_v3 = vand.u32 4294901760, %v6298_v45  ;;  %v6303_v51 = vmax.f32 %v17224_v49, 0.0 }
 0x52c   : > { %23245 = vst [vmem:[#allocation12_spill] sm:$0xff] %v17298_v43  ;;  %23246 = vst [vmem:[#allocation13_spill] sm:$0xff] %v17300_v5  ;;  %v9263_v46 = vand.u32 4294901760, %v6300_v25  ;;  %v6302_v36 = vmax.f32 %v17230_v18, 0.0  ;;  %v6543_v41 = vand.u32 4294901760, %v6301_v17  ;;  %v6304_v28 = vmax.f32 %v17232_v40, 0.0 }
 0x52d   : > { %v17247_v57 = vpop.f32.mrb[22].mxu0  ;;  %v17249_v19 = vpop.f32.mrb[22].mxu1  ;;  %23247 = vst [vmem:[#allocation15_spill] sm:$0xff] %v17303_v59  ;;  %23248 = vst [vmem:[#allocation18_spill] sm:$0xff] %v17305_v10  ;;  %v17327_v42 = vsub.f32 %v6298_v45, %v6537_v3  ;;  %v9269_v50 = vand.u32 4294901760, %v6303_v51 }
 0x52e   : > { %v17255_v13 = vpop.f32.mrb[23].mxu0  ;;  %v17257_v34 = vpop.f32.mrb[23].mxu1  ;;  %v17330_v48 = vsub.f32 %v6300_v25, %v9263_v46  ;;  %v6541_v55 = vand.u32 4294901760, %v6302_v36  ;;  %v17336_v5 = vsub.f32 %v6301_v17, %v6543_v41  ;;  %v9267_v14 = vand.u32 4294901760, %v6304_v28 }
 0x52f   : > { %23249 = vst [vmem:[#allocation19_spill] sm:$0xff] %v17327_v42  ;;  %v17342_v18 = vsub.f32 %v6303_v51, %v9269_v50  ;;  %v6305_v40 = vmax.f32 %v17247_v57, 0.0  ;;  %v17350_v42 = vpack.c.bf16 %v6537_v3, %v6533_v33  ;;  %v17352_v17 = vpack.c.bf16 %v9263_v46, %v9259_v23 }
 0x530   : > { %23250 = vst [vmem:[#allocation21_spill] sm:$0xff] %v17330_v48  ;;  %23251 = vst [vmem:[#allocation24_spill] sm:$0xff] %v17336_v5  ;;  %v17344_v45 = vsub.f32 %v6302_v36, %v6541_v55  ;;  %v17347_v25 = vsub.f32 %v6304_v28, %v9267_v14  ;;  %v6307_v48 = vmax.f32 %v17249_v19, 0.0  ;;  %v6306_v51 = vmax.f32 %v17255_v13, 0.0 }
 0x531   : > { %v17269_v39 = vpop.f32.mrb[24].mxu0  ;;  %v17271_v24 = vpop.f32.mrb[24].mxu1  ;;  %23252 = vst [vmem:[#allocation25_spill] sm:$0xff] %v17342_v18  ;;  %23255 = vst [vmem:[#allocation33_spill] sm:$0xff] %v17350_v42  ;;  %v6547_v16 = vand.u32 4294901760, %v6305_v40  ;;  %12538 = vmatprep.subr.bf16.mxu0 %v17350_v42  ;;  %13138 = vmatprep.subr.bf16.mxu1 %v17352_v17  ;;  %v6308_v19 = vmax.f32 %v17257_v34, 0.0 }
 0x532   : > { %v17274_v38 = vpop.f32.mrb[25].mxu0  ;;  %v17276_v2 = vpop.f32.mrb[25].mxu1  ;;  %23253 = vst [vmem:[#allocation29_spill] sm:$0xff] %v17344_v45  ;;  %23254 = vst [vmem:[#allocation31_spill] sm:$0xff] %v17347_v25  ;;  %v9273_v53 = vand.u32 4294901760, %v6307_v48  ;;  %12540 = vmatpush1.bf16.msra.mxu0 %v17298_v43  ;;  %v6545_v46 = vand.u32 4294901760, %v6306_v51  ;;  %13140 = vmatpush1.bf16.msra.mxu1 %v17303_v59 }
 0x533   : > { %23256 = vst [vmem:[#allocation35_spill] sm:$0xff] %v17352_v17  ;;  %v17364_v57 = vpack.c.bf16 %v6547_v16, %v6543_v41  ;;  %v17366_v33 = vsub.f32 %v6305_v40, %v6547_v16  ;;  %v9271_v41 = vand.u32 4294901760, %v6308_v19  ;;  %v6311_v13 = vmax.f32 %v17271_v24, 0.0 }
 0x534   : > { %v17371_v23 = vpack.c.bf16 %v9273_v53, %v9269_v50  ;;  %v17373_v3 = vsub.f32 %v6307_v48, %v9273_v53  ;;  %v17384_v40 = vsub.f32 %v6306_v51, %v6545_v46  ;;  %v6309_v50 = vmax.f32 %v17269_v39, 0.0 }
 0x535   : > { %v17286_v52 = vpop.f32.mrb[26].mxu0  ;;  %v17288_v21 = vpop.f32.mrb[26].mxu1  ;;  %23257 = vst [vmem:[#allocation37_spill] sm:$0xff] %v17364_v57  ;;  %23258 = vst [vmem:[#allocation39_spill] sm:$0xff] %v17366_v33  ;;  %v17391_v59 = vsub.f32 %v6308_v19, %v9271_v41  ;;  %v6310_v43 = vmax.f32 %v17274_v38, 0.0  ;;  %v6312_v25 = vmax.f32 %v17276_v2, 0.0  ;;  %v17412_v18 = vpack.c.bf16 %v6545_v46, %v6541_v55 }
 0x536   : > { %v17294_v47 = vpop.f32.mrb[27].mxu0  ;;  %v17296_v0 = vpop.f32.mrb[27].mxu1  ;;  %23259 = vst [vmem:[#allocation42_spill] sm:$0xff] %v17371_v23  ;;  %23260 = vst [vmem:[#allocation44_spill] sm:$0xff] %v17373_v3  ;;  %v6551_v17 = vand.u32 4294901760, %v6309_v50  ;;  %v9277_v33 = vand.u32 4294901760, %v6311_v13 }
 0x537   : > { %23261 = vst [vmem:[#allocation45_spill] sm:$0xff] %v17384_v40  ;;  %23262 = vst [vmem:[#allocation48_spill] sm:$0xff] %v17391_v59  ;;  %v6549_v45 = vand.u32 4294901760, %v6310_v43  ;;  %v9275_v40 = vand.u32 4294901760, %v6312_v25  ;;  %v6313_v3 = vmax.f32 %v17286_v52, 0.0  ;;  %v6315_v2 = vmax.f32 %v17288_v21, 0.0  ;;  %12542 = vmatprep.subr.bf16.mxu0 %v17412_v18 }
 0x538   : > { %v17400_v39 = vsub.f32 %v6309_v50, %v6551_v17  ;;  %v17407_v24 = vsub.f32 %v6311_v13, %v9277_v33  ;;  %23266 = vst [vmem:[#allocation55_spill] sm:$0xff] %v17412_v18  ;;  %v17416_v50 = vpack.c.bf16 %v9271_v41, %v9267_v14  ;;  %v6314_v52 = vmax.f32 %v17294_v47, 0.0  ;;  %12544 = vmatpush1.bf16.msra.mxu0 %v17364_v57 }
 0x539   : > { %v17314_v62 = vpop.f32.mrb[28].mxu0  ;;  %v17316_v12 = vpop.f32.mrb[28].mxu1  ;;  %v17409_v38 = vsub.f32 %v6310_v43, %v6549_v45  ;;  %v17414_v5 = vsub.f32 %v6312_v25, %v9275_v40  ;;  %v6555_v54 = vand.u32 4294901760, %v6313_v3  ;;  %v9281_v1 = vand.u32 4294901760, %v6315_v2 }
 0x53a   : > { %v17321_v56 = vpop.f32.mrb[29].mxu0  ;;  %v17323_v58 = vpop.f32.mrb[29].mxu1  ;;  %23263 = vst [vmem:[#allocation49_spill] sm:$0xff] %v17400_v39  ;;  %23264 = vst [vmem:[#allocation51_spill] sm:$0xff] %v17407_v24  ;;  %13142 = vmatprep.subr.bf16.mxu1 %v17416_v50  ;;  %v6553_v47 = vand.u32 4294901760, %v6314_v52 }
 0x53b   : > { %23265 = vst [vmem:[#allocation53_spill] sm:$0xff] %v17409_v38  ;;  %23267 = vst [vmem:[#allocation57_spill] sm:$0xff] %v17414_v5  ;;  %v17424_v43 = vpack.c.bf16 %v6555_v54, %v6551_v17  ;;  %v17426_v38 = vsub.f32 %v6313_v3, %v6555_v54  ;;  %v17434_v55 = vpack.c.bf16 %v9281_v1, %v9277_v33  ;;  %13144 = vmatpush1.bf16.msra.mxu1 %v17371_v23 }
 0x53c   : > { %23268 = vst [vmem:[#allocation59_spill] sm:$0xff] %v17416_v50  ;;  %v17436_v25 = vsub.f32 %v6315_v2, %v9281_v1  ;;  %v6316_v54 = vmax.f32 %v17296_v0, 0.0  ;;  %v17444_v46 = vsub.f32 %v6314_v52, %v6553_v47  ;;  %v6317_v1 = vmax.f32 %v17314_v62, 0.0 }
 0x53d   : > { %v17332_v10 = vpop.f32.mrb[30].mxu0  ;;  %v17334_v27 = vpop.f32.mrb[30].mxu1  ;;  %23269 = vst [vmem:[#allocation62_spill] sm:$0xff] %v17424_v43  ;;  %23270 = vst [vmem:[#allocation63_spill] sm:$0xff] %v17426_v38  ;;  %v6319_v2 = vmax.f32 %v17316_v12, 0.0  ;;  %v6318_v0 = vmax.f32 %v17321_v56, 0.0 }
 0x53e   : > { %v17338_v4 = vpop.f32.mrb[31].mxu0  ;;  %v17340_v49 = vpop.f32.mrb[31].mxu1  ;;  %23271 = vst [vmem:[#allocation66_spill] sm:$0xff] %v17434_v55  ;;  %23272 = vst [vmem:[#allocation67_spill] sm:$0xff] %v17436_v25  ;;  %v9279_v33 = vand.u32 4294901760, %v6316_v54  ;;  %v6320_v17 = vmax.f32 %v17323_v58, 0.0 }
 0x53f   : > { %23273 = vst [vmem:[#allocation69_spill] sm:$0xff] %v17444_v46  ;;  %v6559_v52 = vand.u32 4294901760, %v6317_v1  ;;  %v9285_v18 = vand.u32 4294901760, %v6319_v2  ;;  %v6557_v46 = vand.u32 4294901760, %v6318_v0  ;;  %v6321_v5 = vmax.f32 %v17332_v10, 0.0 }
 0x540   : > { %v17458_v3 = vsub.f32 %v6316_v54, %v9279_v33  ;;  %v9283_v25 = vand.u32 4294901760, %v6320_v17  ;;  %v6323_v56 = vmax.f32 %v17334_v27, 0.0  ;;  %v17478_v10 = vpack.c.bf16 %v6553_v47, %v6549_v45 }
 0x541   : > { %v17354_v31 = vpop.f32.mrb[32].mxu0  ;;  %v17356_v7 = vpop.f32.mrb[32].mxu1  ;;  %v17465_v12 = vsub.f32 %v6317_v1, %v6559_v52  ;;  %v17467_v24 = vsub.f32 %v6319_v2, %v9285_v18  ;;  %v17474_v54 = vsub.f32 %v6318_v0, %v6557_v46  ;;  %v6563_v61 = vand.u32 4294901760, %v6321_v5 }
 0x542   : > { %v17360_v36 = vpop.f32.mrb[33].mxu0  ;;  %v17362_v28 = vpop.f32.mrb[33].mxu1  ;;  %23274 = vst [vmem:[#allocation71_spill] sm:$0xff] %v17458_v3  ;;  %v17476_v3 = vsub.f32 %v6320_v17, %v9283_v25  ;;  %23281 = vst [vmem:[#allocation85_spill] sm:$0xff] %v17478_v10  ;;  %v17480_v44 = vpack.c.bf16 %v9279_v33, %v9275_v40  ;;  %12546 = vmatprep.subr.bf16.mxu0 %v17478_v10  ;;  %v6324_v47 = vmax.f32 %v17340_v49, 0.0 }
 0x543   : > { %23276 = vst [vmem:[#allocation76_spill] sm:$0xff] %v17465_v12  ;;  %23277 = vst [vmem:[#allocation77_spill] sm:$0xff] %v17467_v24  ;;  %v17482_v1 = vpack.c.bf16 %v6563_v61, %v6559_v52  ;;  %v17484_v2 = vsub.f32 %v6321_v5, %v6563_v61  ;;  %v6322_v5 = vmax.f32 %v17338_v4, 0.0  ;;  %12548 = vmatpush1.bf16.msra.mxu0 %v17424_v43  ;;  %v6325_v52 = vmax.f32 %v17354_v31, 0.0 }
 0x544   : > { %23279 = vst [vmem:[#allocation81_spill] sm:$0xff] %v17474_v54  ;;  %23280 = vst [vmem:[#allocation83_spill] sm:$0xff] %v17476_v3  ;;  %13146 = vmatprep.subr.bf16.mxu1 %v17480_v44  ;;  %v9287_v33 = vand.u32 4294901760, %v6324_v47  ;;  %v6327_v61 = vmax.f32 %v17356_v7, 0.0  ;;  %v6326_v4 = vmax.f32 %v17360_v36, 0.0  ;;  %v6328_v49 = vmax.f32 %v17362_v28, 0.0 }
 0x545   : > { %v17378_v42 = vpop.f32.mrb[34].mxu0  ;;  %v17380_v16 = vpop.f32.mrb[34].mxu1  ;;  %23282 = vst [vmem:[#allocation88_spill] sm:$0xff] %v17480_v44  ;;  %23283 = vst [vmem:[#allocation89_spill] sm:$0xff] %v17482_v1  ;;  %13148 = vmatpush1.bf16.msra.mxu1 %v17434_v55  ;;  %v6567_v3 = vand.u32 4294901760, %v6325_v52 }
 0x546   : > { %v17387_v53 = vpop.f32.mrb[35].mxu0  ;;  %v17389_v48 = vpop.f32.mrb[35].mxu1  ;;  %23284 = vst [vmem:[#allocation91_spill] sm:$0xff] %v17484_v2  ;;  %v9293_v54 = vand.u32 4294901760, %v6327_v61  ;;  %v17527_v2 = vand.u32 4294901760, %v6328_v49  ;;  %v6329_v28 = vmax.f32 %v17378_v42, 0.0 }
 0x547   : > { %v17530_v36 = vsub.f32 %v6325_v52, %v6567_v3 }
 0x548   : > { %v17543_v31 = vsub.f32 %v6328_v49, %v17527_v2  ;;  %v6571_v7 = vand.u32 4294901760, %v6329_v28  ;;  %v23299_v49 = vand.u32 4294901760, %v17101_v15 }
 0x549   : > { %v17396_v34 = vpop.f32.mrb[36].mxu0  ;;  %v17398_v51 = vpop.f32.mrb[36].mxu1  ;;  %23289 = vst [vmem:[#allocation106_spill] sm:$0xff] %v17530_v36 }
 0x54a   : > { %v17403_v19 = vpop.f32.mrb[37].mxu0  ;;  %v17405_v59 = vpop.f32.mrb[37].mxu1  ;;  %23294 = vst [vmem:[#allocation101_spill] sm:$0xff] %v17543_v31  ;;  %v17562_v31 = vsub.f32 %v17101_v15, %v23299_v49  ;;  %v6332_v49 = vmax.f32 %v17389_v48, 0.0 }
 0x54b   : > { %v6336_v48 = vmax.f32 %v17405_v59, 0.0 }
 0x54c   : > { %23300 = vst [vmem:[#allocation109_spill] sm:$0xff] %v17562_v31 }
 0x54d   : > { %v17420_v32 = vpop.f32.mrb[38].mxu0  ;;  %v17422_v13 = vpop.f32.mrb[38].mxu1 }
 0x54e   : > { %v17430_v21 = vpop.f32.mrb[39].mxu0  ;;  %v17432_v14 = vpop.f32.mrb[39].mxu1 }
 0x551   : > { %v17446_v41 = vpop.f32.mrb[40].mxu0  ;;  %v17448_v57 = vpop.f32.mrb[40].mxu1 }
 0x552   : > { %v17452_v23 = vpop.f32.mrb[41].mxu0  ;;  %v17454_v50 = vpop.f32.mrb[41].mxu1 }
 0x553   : > { %v6344_v37 = vmax.f32 %v17454_v50, 0.0 }
 0x555   : > { %v17461_v38 = vpop.f32.mrb[42].mxu0  ;;  %v17463_v62 = vpop.f32.mrb[42].mxu1 }
 0x556   : > { %23275 = vst [vmem:[#allocation74_spill] sm:$0xff] %v17461_v38  ;;  %v17470_v39 = vpop.f32.mrb[43].mxu0  ;;  %v17472_v58 = vpop.f32.mrb[43].mxu1  ;;  %v9289_v38 = vand.u32 4294901760, %v6323_v56  ;;  %v6347_v50 = vmax.f32 %v17463_v62, 0.0 }
 0x557   : > { %23278 = vst [vmem:[#allocation80_spill] sm:$0xff] %v17470_v39 }
 0x558   : > { %v17491_v0 = vpack.c.bf16 %v9289_v38, %v9285_v18  ;;  %v17493_v17 = vsub.f32 %v6323_v56, %v9289_v38  ;;  %v6561_v38 = vand.u32 4294901760, %v6322_v5  ;;  %v17522_v18 = vsub.f32 %v6324_v47, %v9287_v33 }
 0x559   : > { %v17487_v27 = vpop.f32.mrb[44].mxu0  ;;  %v17489_v39 = vpop.f32.mrb[44].mxu1  ;;  %v17537_v47 = vsub.f32 %v6327_v61, %v9293_v54  ;;  %v23297_v61 = vand.u32 4294901760, %v17099_v6 }
 0x55a   : > { %23285 = vst [vmem:[#allocation94_spill] sm:$0xff] %v17491_v0  ;;  %23286 = vst [vmem:[#allocation96_spill] sm:$0xff] %v17493_v17  ;;  %v17496_v45 = vpop.f32.mrb[45].mxu0  ;;  %v17498_v40 = vpop.f32.mrb[45].mxu1  ;;  %v17520_v10 = vsub.f32 %v6322_v5, %v6561_v38  ;;  %v17525_v17 = vand.u32 4294901760, %v6326_v4  ;;  %v17550_v42 = vpack.c.bf16 %v6561_v38, %v6557_v46  ;;  %v6351_v36 = vmax.f32 %v17489_v39, 0.0 }
 0x55b   : > { %23288 = vst [vmem:[#allocation102_spill] sm:$0xff] %v17522_v18  ;;  %23292 = vst [vmem:[#allocation112_spill] sm:$0xff] %v17537_v47 }
 0x55c   : > { %23287 = vst [vmem:[#allocation99_spill] sm:$0xff] %v17520_v10  ;;  %v17540_v18 = vsub.f32 %v6326_v4, %v17525_v17  ;;  %v6331_v10 = vmax.f32 %v17380_v16, 0.0  ;;  %23295 = vst [vmem:[#allocation104_spill] sm:$0xff] %v17550_v42  ;;  %v17564_v16 = vpack.c.bf16 %v6571_v7, %v6567_v3  ;;  %12550 = vmatprep.subr.bf16.mxu0 %v17550_v42  ;;  %v6333_v42 = vmax.f32 %v17396_v34, 0.0 }
 0x55d   : > { %v17509_v56 = vpop.f32.mrb[46].mxu0  ;;  %v17511_v44 = vpop.f32.mrb[46].mxu1  ;;  %12552 = vmatpush1.bf16.msra.mxu0 %v17482_v1  ;;  %v6339_v34 = vmax.f32 %v17422_v13, 0.0  ;;  %v23313_v13 = vand.u32 4294901760, %v17109_v60 }
 0x55e   : > { %v17516_v43 = vpop.f32.mrb[47].mxu0  ;;  %v17518_v55 = vpop.f32.mrb[47].mxu1  ;;  %23293 = vst [vmem:[#allocation98_spill] sm:$0xff] %v17540_v18  ;;  %v9297_v4 = vand.u32 4294901760, %v6331_v10  ;;  %23301 = vst [vmem:[#allocation111_spill] sm:$0xff] %v17564_v16  ;;  %v17566_v18 = vsub.f32 %v6329_v28, %v6571_v7 }
 0x560   : > { %23302 = vst [vmem:[#allocation113_spill] sm:$0xff] %v17566_v18 }
 0x561   : > { %v17533_v24 = vpop.f32.mrb[48].mxu0  ;;  %v17535_v5 = vpop.f32.mrb[48].mxu1 }
 0x562   : > { %23290 = vst [vmem:[#allocation108_spill] sm:$0xff] %v17533_v24  ;;  %23291 = vst [vmem:[#allocation110_spill] sm:$0xff] %v17535_v5  ;;  %v17546_v12 = vpop.f32.mrb[49].mxu0  ;;  %v17548_v52 = vpop.f32.mrb[49].mxu1  ;;  %v17552_v24 = vpack.c.bf16 %v9287_v33, %v9283_v25  ;;  %v17557_v5 = vsub.f32 %v17099_v6, %v23297_v61  ;;  %v6330_v25 = vmax.f32 %v17387_v53, 0.0  ;;  %v17575_v33 = vpack.c.bf16 %v9297_v4, %v9293_v54 }
 0x563   : > { %v17577_v61 = vsub.f32 %v6331_v10, %v9297_v4  ;;  %v9295_v4 = vand.u32 4294901760, %v6332_v49  ;;  %v6335_v53 = vmax.f32 %v17398_v51, 0.0  ;;  %v6334_v10 = vmax.f32 %v17403_v19, 0.0 }
 0x564   : > { %23296 = vst [vmem:[#allocation105_spill] sm:$0xff] %v17552_v24  ;;  %23298 = vst [vmem:[#allocation107_spill] sm:$0xff] %v17557_v5  ;;  %13150 = vmatprep.subr.bf16.mxu1 %v17552_v24  ;;  %v6569_v24 = vand.u32 4294901760, %v6330_v25 }
 0x565   : > { %v17571_v46 = vpop.f32.mrb[50].mxu0  ;;  %v17573_v38 = vpop.f32.mrb[50].mxu1  ;;  %23303 = vst [vmem:[#allocation114_spill] sm:$0xff] %v17575_v33  ;;  %23304 = vst [vmem:[#allocation115_spill] sm:$0xff] %v17577_v61  ;;  %13152 = vmatpush1.bf16.msra.mxu1 %v17491_v0  ;;  %v17603_v6 = vsub.f32 %v6332_v49, %v9295_v4  ;;  %v6575_v0 = vand.u32 4294901760, %v6333_v42  ;;  %v9301_v31 = vand.u32 4294901760, %v6335_v53  ;;  %v17648_v61 = vsub.f32 %v17109_v60, %v23313_v13 }
 0x566   : > { %v17582_v3 = vpop.f32.mrb[51].mxu0  ;;  %v17584_v7 = vpop.f32.mrb[51].mxu1  ;;  %v17594_v1 = vsub.f32 %v6330_v25, %v6569_v24  ;;  %v17615_v49 = vand.u32 4294901760, %v6334_v10  ;;  %v17636_v26 = vpack.c.bf16 %v6569_v24, %v17525_v17  ;;  %v9305_v24 = vand.u32 4294901760, %v6339_v34 }
 0x567   : > { %23306 = vst [vmem:[#allocation117_spill] sm:$0xff] %v17603_v6  ;;  %v17617_v6 = vand.u32 4294901760, %v6336_v48  ;;  %v17619_v19 = vsub.f32 %v6333_v42, %v6575_v0  ;;  %v17621_v59 = vsub.f32 %v6335_v53, %v9301_v31  ;;  %v17639_v42 = vpack.c.bf16 %v9295_v4, %v17527_v2  ;;  %23314 = vst [vmem:[#allocation124_spill] sm:$0xff] %v17648_v61 }
 0x568   : > { %23305 = vst [vmem:[#allocation116_spill] sm:$0xff] %v17594_v1  ;;  %v6337_v1 = vmax.f32 %v17420_v32, 0.0  ;;  %v17630_v63 = vsub.f32 %v6334_v10, %v17615_v49  ;;  %23311 = vst [vmem:[#allocation122_spill] sm:$0xff] %v17636_v26  ;;  %v23315_v10 = vand.u32 4294901760, %v17113_v11  ;;  %12554 = vmatprep.subr.bf16.mxu0 %v17636_v26  ;;  %v6338_v4 = vmax.f32 %v17430_v21, 0.0 }
 0x569   : > { %v17598_v15 = vpop.f32.mrb[52].mxu0  ;;  %v17600_v28 = vpop.f32.mrb[52].mxu1  ;;  %23307 = vst [vmem:[#allocation118_spill] sm:$0xff] %v17619_v19  ;;  %23308 = vst [vmem:[#allocation119_spill] sm:$0xff] %v17621_v59  ;;  %v17633_v54 = vsub.f32 %v6336_v48, %v17617_v6  ;;  %13154 = vmatprep.subr.bf16.mxu1 %v17639_v42  ;;  %v6340_v13 = vmax.f32 %v17432_v14, 0.0  ;;  %v23317_v60 = vand.u32 4294901760, %v17125_v9  ;;  %12556 = vmatpush1.bf16.msra.mxu0 %v17564_v16 }
 0x56a   : > { %v17607_v5 = vpop.f32.mrb[53].mxu0  ;;  %v17609_v25 = vpop.f32.mrb[53].mxu1  ;;  %23309 = vst [vmem:[#allocation120_spill] sm:$0xff] %v17630_v63  ;;  %23312 = vst [vmem:[#allocation123_spill] sm:$0xff] %v17639_v42  ;;  %v17653_v48 = vsub.f32 %v17113_v11, %v23315_v10  ;;  %v23319_v10 = vand.u32 4294901760, %v17127_v8  ;;  %v17680_v14 = vpack.c.bf16 %v9305_v24, %v9301_v31  ;;  %v17682_v26 = vsub.f32 %v6339_v34, %v9305_v24  ;;  %v23331_v24 = vld [vmem:[#allocation43_spill] sm:$0xff] }
 0x56b   : > { %23310 = vst [vmem:[#allocation121_spill] sm:$0xff] %v17633_v54  ;;  %v6579_v54 = vand.u32 4294901760, %v6337_v1  ;;  %v17664_v63 = vsub.f32 %v17125_v9, %v23317_v60  ;;  %v6577_v60 = vand.u32 4294901760, %v6338_v4  ;;  %v9303_v9 = vand.u32 4294901760, %v6340_v13  ;;  %13156 = vmatpush1.bf16.msra.mxu1 %v17575_v33  ;;  %v23340_v19 = vld [vmem:[#allocation80_spill] sm:$0xff] }
 0x56c   : > { %23316 = vst [vmem:[#allocation125_spill] sm:$0xff] %v17653_v48  ;;  %v17669_v11 = vsub.f32 %v17127_v8, %v23319_v10  ;;  %23323 = vst [vmem:[#allocation130_spill] sm:$0xff] %v17680_v14  ;;  %v6342_v16 = vmax.f32 %v17452_v23, 0.0  ;;  %v23329_v23 = vand.u32 4294901760, %v17142_v35  ;;  %v17729_v61 = vand.u32 4294901760, %v6344_v37 }
 0x56d   : > { %v17625_v29 = vpop.f32.mrb[54].mxu0  ;;  %v17627_v51 = vpop.f32.mrb[54].mxu1  ;;  %23318 = vst [vmem:[#allocation126_spill] sm:$0xff] %v17664_v63  ;;  %v17671_v17 = vpack.c.bf16 %v6579_v54, %v6575_v0  ;;  %v17673_v2 = vsub.f32 %v6337_v1, %v6579_v54  ;;  %23324 = vst [vmem:[#allocation131_spill] sm:$0xff] %v17682_v26  ;;  %v17697_v8 = vsub.f32 %v6338_v4, %v6577_v60  ;;  %v6341_v1 = vmax.f32 %v17446_v41, 0.0 }
 0x56e   : > { %v17641_v53 = vpop.f32.mrb[55].mxu0  ;;  %v17643_v32 = vpop.f32.mrb[55].mxu1  ;;  %23320 = vst [vmem:[#allocation127_spill] sm:$0xff] %v17669_v11  ;;  %v17699_v33 = vsub.f32 %v6340_v13, %v9303_v9  ;;  %v6343_v54 = vmax.f32 %v17448_v57, 0.0  ;;  %v23327_v4 = vand.u32 4294901760, %v17138_v30  ;;  %v17724_v22 = vsub.f32 %v17142_v35, %v23329_v23 }
 0x56f   : > { %23321 = vst [vmem:[#allocation128_spill] sm:$0xff] %v17671_v17  ;;  %23322 = vst [vmem:[#allocation129_spill] sm:$0xff] %v17673_v2  ;;  %v6583_v20 = vand.u32 4294901760, %v6341_v1  ;;  %v17726_v63 = vand.u32 4294901760, %v6342_v16  ;;  %v17741_v23 = vpack.c.bf16 %v6577_v60, %v17615_v49  ;;  %v17748_v11 = vsub.f32 %v6344_v37, %v17729_v61  ;;  %v23339_v60 = vld [vmem:[#allocation46_spill] sm:$0xff] }
 0x570   : > { %23325 = vst [vmem:[#allocation132_spill] sm:$0xff] %v17697_v8  ;;  %23326 = vst [vmem:[#allocation133_spill] sm:$0xff] %v17699_v33  ;;  %v17714_v13 = vsub.f32 %v17138_v30, %v23327_v4  ;;  %v9309_v34 = vand.u32 4294901760, %v6343_v54  ;;  %v23332_v4 = vld [vmem:[#allocation74_spill] sm:$0xff]  ;;  %v9313_v59 = vand.u32 4294901760, %v6347_v50  ;;  %v17751_v62 = vpack.c.bf16 %v9303_v9, %v17617_v6 }
 0x571   : > { %v17676_v42 = vpop.f32.mrb[56].mxu0  ;;  %v17678_v21 = vpop.f32.mrb[56].mxu1  ;;  %23330 = vst [vmem:[#allocation135_spill] sm:$0xff] %v17724_v22  ;;  %v6345_v30 = vmax.f32 %v23332_v4, 0.0  ;;  %v17733_v33 = vsub.f32 %v6341_v1, %v6583_v20  ;;  %v17738_v26 = vsub.f32 %v6342_v16, %v17726_v63  ;;  %23336 = vst [vmem:[#allocation138_spill] sm:$0xff] %v17741_v23  ;;  %12558 = vmatprep.subr.bf16.mxu0 %v17741_v23  ;;  %v6346_v37 = vmax.f32 %v23340_v19, 0.0 }
 0x572   : > { %v17685_v10 = vpop.f32.mrb[57].mxu0  ;;  %v17687_v0 = vpop.f32.mrb[57].mxu1  ;;  %23328 = vst [vmem:[#allocation134_spill] sm:$0xff] %v17714_v13  ;;  %v17735_v8 = vsub.f32 %v6343_v54, %v9309_v34  ;;  %23337 = vst [vmem:[#allocation139_spill] sm:$0xff] %v17748_v11  ;;  %v23341_v11 = vld [vmem:[#allocation54_spill] sm:$0xff]  ;;  %v17767_v9 = vpack.c.bf16 %v9313_v59, %v9309_v34  ;;  %13158 = vmatprep.subr.bf16.mxu1 %v17751_v62  ;;  %12560 = vmatpush1.bf16.msra.mxu0 %v17671_v17  ;;  %v23349_v34 = vld [vmem:[#allocation60_spill] sm:$0xff] }
 0x573   : > { %23333 = vst [vmem:[#allocation74_spill] sm:$0xff] %v17733_v33  ;;  %23335 = vst [vmem:[#allocation137_spill] sm:$0xff] %v17738_v26  ;;  %v6587_v4 = vand.u32 4294901760, %v6345_v30  ;;  %v23346_v26 = vand.u32 4294901760, %v23331_v24  ;;  %v17777_v19 = vsub.f32 %v6347_v50, %v9313_v59  ;;  %v6585_v18 = vand.u32 4294901760, %v6346_v37  ;;  %13160 = vmatpush1.bf16.msra.mxu1 %v17680_v14 }
 0x574   : > { %23334 = vst [vmem:[#allocation136_spill] sm:$0xff] %v17735_v8  ;;  %23338 = vst [vmem:[#allocation140_spill] sm:$0xff] %v17751_v62  ;;  %v6348_v49 = vmax.f32 %v17472_v58, 0.0  ;;  %v6349_v62 = vmax.f32 %v17487_v27, 0.0  ;;  %v23351_v14 = vand.u32 4294901760, %v23339_v60  ;;  %v23354_v58 = vand.u32 4294901760, %v23341_v11 }
 0x575   : > { %v17705_v48 = vpop.f32.mrb[58].mxu0  ;;  %v17707_v31 = vpop.f32.mrb[58].mxu1  ;;  %v17763_v47 = vpack.c.bf16 %v6587_v4, %v6583_v20  ;;  %v17765_v6 = vsub.f32 %v6345_v30, %v6587_v4  ;;  %23344 = vst [vmem:[#allocation142_spill] sm:$0xff] %v17767_v9  ;;  %v17775_v23 = vsub.f32 %v23331_v24, %v23346_v26  ;;  %23348 = vst [vmem:[#allocation144_spill] sm:$0xff] %v17777_v19  ;;  %v6352_v4 = vmax.f32 %v17498_v40, 0.0 }
 0x576   : > { %v17717_v41 = vpop.f32.mrb[59].mxu0  ;;  %v17719_v57 = vpop.f32.mrb[59].mxu1  ;;  %v17797_v22 = vsub.f32 %v23339_v60, %v23351_v14  ;;  %v17805_v27 = vsub.f32 %v23341_v11, %v23354_v58  ;;  %v17807_v16 = vsub.f32 %v6346_v37, %v6585_v18  ;;  %v6591_v33 = vand.u32 4294901760, %v6349_v62 }
 0x577   : > { %23342 = vst [vmem:[#allocation80_spill] sm:$0xff] %v17763_v47  ;;  %23343 = vst [vmem:[#allocation141_spill] sm:$0xff] %v17765_v6  ;;  %v9311_v6 = vand.u32 4294901760, %v6348_v49  ;;  %v6350_v14 = vmax.f32 %v17496_v45, 0.0  ;;  %v23358_v58 = vand.u32 4294901760, %v23349_v34  ;;  %v17834_v19 = vand.u32 4294901760, %v6352_v4 }
 0x578   : > { %23347 = vst [vmem:[#allocation143_spill] sm:$0xff] %v17775_v23  ;;  %23352 = vst [vmem:[#allocation145_spill] sm:$0xff] %v17797_v22  ;;  %v17825_v50 = vsub.f32 %v6349_v62, %v6591_v33  ;;  %v23364_v23 = vld [vmem:[#allocation68_spill] sm:$0xff]  ;;  %v6355_v62 = vmax.f32 %v17511_v44, 0.0  ;;  %v6354_v8 = vmax.f32 %v17516_v43, 0.0 }
 0x579   : > { %v17743_v35 = vpop.f32.mrb[60].mxu0  ;;  %v17745_v2 = vpop.f32.mrb[60].mxu1  ;;  %23355 = vst [vmem:[#allocation146_spill] sm:$0xff] %v17805_v27  ;;  %23356 = vst [vmem:[#allocation147_spill] sm:$0xff] %v17807_v16  ;;  %v17821_v37 = vsub.f32 %v23349_v34, %v23358_v58  ;;  %v17823_v11 = vsub.f32 %v6348_v49, %v9311_v6  ;;  %v9317_v16 = vand.u32 4294901760, %v6351_v36  ;;  %v17832_v24 = vand.u32 4294901760, %v6350_v14 }
 0x57a   : > { %v17753_v1 = vpop.f32.mrb[61].mxu0  ;;  %v17755_v54 = vpop.f32.mrb[61].mxu1  ;;  %23361 = vst [vmem:[#allocation150_spill] sm:$0xff] %v17825_v50  ;;  %v6353_v49 = vmax.f32 %v17509_v56, 0.0  ;;  %v17846_v40 = vsub.f32 %v6352_v4, %v17834_v19  ;;  %v9321_v27 = vand.u32 4294901760, %v6355_v62  ;;  %v17857_v44 = vpack.c.bf16 %v9311_v6, %v17729_v61  ;;  %v23376_v58 = vld [vmem:[#allocation82_spill] sm:$0xff] }
 0x57b   : > { %23359 = vst [vmem:[#allocation148_spill] sm:$0xff] %v17821_v37  ;;  %23360 = vst [vmem:[#allocation149_spill] sm:$0xff] %v17823_v11  ;;  %v17840_v34 = vsub.f32 %v6351_v36, %v9317_v16  ;;  %v6593_v43 = vand.u32 4294901760, %v6354_v8  ;;  %v6356_v37 = vmax.f32 %v17518_v55, 0.0 }
 0x57c   : > { %23367 = vst [vmem:[#allocation155_spill] sm:$0xff] %v17846_v40  ;;  %v6595_v56 = vand.u32 4294901760, %v6353_v49  ;;  %23370 = vst [vmem:[#allocation158_spill] sm:$0xff] %v17857_v44  ;;  %v17873_v6 = vpack.c.bf16 %v9321_v27, %v9317_v16  ;;  %13162 = vmatprep.subr.bf16.mxu1 %v17857_v44  ;;  %v17882_v11 = vsub.f32 %v6355_v62, %v9321_v27  ;;  %v23384_v44 = vld [vmem:[#allocation108_spill] sm:$0xff] }
 0x57d   : > { %v17780_v20 = vpop.f32.mrb[62].mxu0  ;;  %v17782_v30 = vpop.f32.mrb[62].mxu1  ;;  %23365 = vst [vmem:[#allocation153_spill] sm:$0xff] %v17840_v34  ;;  %13164 = vmatpush1.bf16.msra.mxu1 %v17767_v9  ;;  %v17954_v4 = vpack.c.bf16 %v6593_v43, %v17832_v24 }
 0x57e   : > { %v17789_v26 = vpop.f32.mrb[63].mxu0  ;;  %v17791_v59 = vpop.f32.mrb[63].mxu1  ;;  %v17871_v61 = vsub.f32 %v6353_v49, %v6595_v56  ;;  %23379 = vst [vmem:[#allocation163_spill] sm:$0xff] %v17873_v6  ;;  %23382 = vst [vmem:[#allocation165_spill] sm:$0xff] %v17882_v11  ;;  %v17907_v49 = vsub.f32 %v6354_v8, %v6593_v43  ;;  %v23414_v43 = vld [vmem:[#allocation93_spill] sm:$0xff] }
 0x57f   : > { %23407 = vst [vmem:[#allocation178_spill] sm:$0xff] %v17954_v4 }
 0x580   : > { %23378 = vst [vmem:[#allocation162_spill] sm:$0xff] %v17871_v61  ;;  %23391 = vst [vmem:[#allocation167_spill] sm:$0xff] %v17907_v49  ;;  %v6367_v49 = vmax.f32 %v17600_v28, 0.0 }
 0x581   : > { %v17813_v60 = vpop.f32.mrb[64].mxu0  ;;  %v17815_v17 = vpop.f32.mrb[64].mxu1 }
 0x582   : > { %v17827_v39 = vpop.f32.mrb[65].mxu0  ;;  %v17829_v45 = vpop.f32.mrb[65].mxu1  ;;  %v9333_v28 = vand.u32 4294901760, %v6367_v49 }
 0x583   : > { %23362 = vst [vmem:[#allocation151_spill] sm:$0xff] %v17827_v39  ;;  %23363 = vst [vmem:[#allocation152_spill] sm:$0xff] %v17829_v45  ;;  %v17843_v39 = vsub.f32 %v6350_v14, %v17832_v24  ;;  %v17849_v45 = vpack.c.bf16 %v6585_v18, %v17726_v63  ;;  %v23375_v18 = vld [vmem:[#allocation70_spill] sm:$0xff]  ;;  %v23380_v63 = vand.u32 4294901760, %v23364_v23 }
 0x584   : > { %v23388_v55 = vand.u32 4294901760, %v23375_v18  ;;  %v23421_v24 = vld [vmem:[#allocation18_spill] sm:$0xff] }
 0x585   : > { %23366 = vst [vmem:[#allocation154_spill] sm:$0xff] %v17843_v39  ;;  %23368 = vst [vmem:[#allocation156_spill] sm:$0xff] %v17849_v45  ;;  %v17851_v22 = vpop.f32.mrb[66].mxu0  ;;  %v17853_v13 = vpop.f32.mrb[66].mxu1  ;;  %12562 = vmatprep.subr.bf16.mxu0 %v17849_v45  ;;  %v17880_v40 = vsub.f32 %v23364_v23, %v23380_v63  ;;  %v6357_v45 = vmax.f32 %v23384_v44, 0.0  ;;  %v23385_v63 = vld [vmem:[#allocation110_spill] sm:$0xff] }
 0x586   : > { %23369 = vst [vmem:[#allocation157_spill] sm:$0xff] %v17853_v13  ;;  %v17859_v36 = vpop.f32.mrb[67].mxu0  ;;  %v17861_v14 = vpop.f32.mrb[67].mxu1  ;;  %v17869_v13 = vpack.c.bf16 %v6595_v56, %v6591_v33  ;;  %12564 = vmatpush1.bf16.msra.mxu0 %v17763_v47  ;;  %v6359_v23 = vmax.f32 %v23385_v63, 0.0  ;;  %v17902_v9 = vsub.f32 %v23375_v18, %v23388_v55  ;;  %v23392_v44 = vand.u32 4294901760, %v23376_v58  ;;  %v23396_v56 = vld [vmem:[#allocation92_spill] sm:$0xff] }
 0x587   : > { %23371 = vst [vmem:[#allocation159_spill] sm:$0xff] %v17859_v36  ;;  %23372 = vst [vmem:[#allocation160_spill] sm:$0xff] %v17861_v14  ;;  %v23390_v14 = vld [vmem:[#allocation86_spill] sm:$0xff]  ;;  %v9319_v47 = vand.u32 4294901760, %v6356_v37  ;;  %v6358_v18 = vmax.f32 %v17546_v12, 0.0  ;;  %v6360_v36 = vmax.f32 %v17548_v52, 0.0  ;;  %12566 = vmatprep.subr.bf16.mxu0 %v17954_v4 }
 0x588   : > { %23377 = vst [vmem:[#allocation161_spill] sm:$0xff] %v17869_v13  ;;  %23381 = vst [vmem:[#allocation164_spill] sm:$0xff] %v17880_v40  ;;  %v17912_v63 = vsub.f32 %v23376_v58, %v23392_v44  ;;  %v23402_v12 = vand.u32 4294901760, %v23390_v14 }
 0x589   : > { %v17886_v33 = vpop.f32.mrb[68].mxu0  ;;  %v17888_v16 = vpop.f32.mrb[68].mxu1  ;;  %23389 = vst [vmem:[#allocation166_spill] sm:$0xff] %v17902_v9  ;;  %v17923_v11 = vsub.f32 %v6356_v37, %v9319_v47  ;;  %v17938_v55 = vand.u32 4294901760, %v6358_v18  ;;  %v17940_v40 = vand.u32 4294901760, %v6360_v36  ;;  %v6361_v37 = vmax.f32 %v17571_v46, 0.0 }
 0x58a   : > { %v17895_v27 = vpop.f32.mrb[69].mxu0  ;;  %v17897_v62 = vpop.f32.mrb[69].mxu1  ;;  %23393 = vst [vmem:[#allocation168_spill] sm:$0xff] %v17912_v63  ;;  %v17936_v52 = vsub.f32 %v23390_v14, %v23402_v12  ;;  %12568 = vmatpush1.bf16.msra.mxu0 %v17869_v13  ;;  %v6365_v9 = vmax.f32 %v17598_v15, 0.0 }
 0x58b   : > { %23386 = vst [vmem:[#allocation108_spill] sm:$0xff] %v17895_v27  ;;  %23387 = vst [vmem:[#allocation110_spill] sm:$0xff] %v17897_v62  ;;  %v6599_v27 = vand.u32 4294901760, %v6357_v45  ;;  %v9325_v62 = vand.u32 4294901760, %v6359_v23  ;;  %v17951_v12 = vsub.f32 %v6360_v36, %v17940_v40  ;;  %v6603_v14 = vand.u32 4294901760, %v6361_v37 }
 0x58c   : > { %23397 = vst [vmem:[#allocation170_spill] sm:$0xff] %v17923_v11  ;;  %23403 = vst [vmem:[#allocation175_spill] sm:$0xff] %v17936_v52  ;;  %v23409_v11 = vand.u32 4294901760, %v23396_v56  ;;  %v6607_v15 = vand.u32 4294901760, %v6365_v9 }
 0x58d   : > { %v17918_v61 = vpop.f32.mrb[70].mxu0  ;;  %v17920_v8 = vpop.f32.mrb[70].mxu1  ;;  %v17925_v44 = vsub.f32 %v6357_v45, %v6599_v27  ;;  %v17927_v58 = vsub.f32 %v6359_v23, %v9325_v62  ;;  %23406 = vst [vmem:[#allocation177_spill] sm:$0xff] %v17951_v12  ;;  %v17975_v63 = vpack.c.bf16 %v6603_v14, %v6599_v27  ;;  %v17977_v23 = vsub.f32 %v6361_v37, %v6603_v14  ;;  %v23418_v45 = vld [vmem:[#allocation13_spill] sm:$0xff] }
 0x58e   : > { %23395 = vst [vmem:[#allocation169_spill] sm:$0xff] %v17920_v8  ;;  %v17929_v34 = vpop.f32.mrb[71].mxu0  ;;  %v17931_v39 = vpop.f32.mrb[71].mxu1  ;;  %v6362_v27 = vmax.f32 %v17582_v3, 0.0  ;;  %v6364_v37 = vmax.f32 %v17584_v7, 0.0  ;;  %v23425_v7 = vand.u32 4294901760, %v23414_v43 }
 0x58f   : > { %23398 = vst [vmem:[#allocation171_spill] sm:$0xff] %v17925_v44  ;;  %23399 = vst [vmem:[#allocation172_spill] sm:$0xff] %v17927_v58  ;;  %v23427_v4 = vand.u32 4294901760, %v23418_v45 }
 0x590   : > { %23400 = vst [vmem:[#allocation173_spill] sm:$0xff] %v17929_v34  ;;  %23401 = vst [vmem:[#allocation174_spill] sm:$0xff] %v17931_v39  ;;  %v6363_v34 = vmax.f32 %v17573_v38, 0.0  ;;  %v17948_v39 = vsub.f32 %v6358_v18, %v17938_v55  ;;  %v17964_v38 = vsub.f32 %v23396_v56, %v23409_v11  ;;  %v6601_v13 = vand.u32 4294901760, %v6362_v27 }
 0x591   : > { %v17956_v8 = vpop.f32.mrb[72].mxu0  ;;  %v17958_v46 = vpop.f32.mrb[72].mxu1  ;;  %23415 = vst [vmem:[#allocation183_spill] sm:$0xff] %v17975_v63  ;;  %23416 = vst [vmem:[#allocation184_spill] sm:$0xff] %v17977_v23  ;;  %v18035_v11 = vsub.f32 %v6365_v9, %v6607_v15  ;;  %v23448_v9 = vld [vmem:[#allocation19_spill] sm:$0xff] }
 0x592   : > { %23405 = vst [vmem:[#allocation176_spill] sm:$0xff] %v17948_v39  ;;  %23410 = vst [vmem:[#allocation179_spill] sm:$0xff] %v17964_v38  ;;  %v9329_v18 = vand.u32 4294901760, %v6363_v34  ;;  %v17967_v39 = vpack.c.bf16 %v9319_v47, %v17834_v19  ;;  %v17969_v36 = vpop.f32.mrb[73].mxu0  ;;  %v17971_v12 = vpop.f32.mrb[73].mxu1 }
 0x593   : > { %23412 = vst [vmem:[#allocation181_spill] sm:$0xff] %v17969_v36  ;;  %23413 = vst [vmem:[#allocation182_spill] sm:$0xff] %v17971_v12 }
 0x594   : > { %23411 = vst [vmem:[#allocation180_spill] sm:$0xff] %v17967_v39  ;;  %v17982_v47 = vpack.c.bf16 %v9329_v18, %v9325_v62  ;;  %v17984_v19 = vsub.f32 %v6363_v34, %v9329_v18  ;;  %13166 = vmatprep.subr.bf16.mxu1 %v17967_v39  ;;  %v9327_v39 = vand.u32 4294901760, %v6364_v37  ;;  %v6366_v34 = vmax.f32 %v17607_v5, 0.0  ;;  %23436 = vst [vmem:[#allocation197_spill] sm:$0xff] %v18035_v11 }
 0x595   : > { %13168 = vmatpush1.bf16.msra.mxu1 %v17873_v6  ;;  %v17994_v56 = vpop.f32.mrb[74].mxu0  ;;  %v17996_v62 = vpop.f32.mrb[74].mxu1  ;;  %v18010_v6 = vsub.f32 %v23414_v43, %v23425_v7  ;;  %v18016_v18 = vsub.f32 %v23418_v45, %v23427_v4  ;;  %v18024_v7 = vsub.f32 %v6362_v27, %v6601_v13  ;;  %v23435_v4 = vld [vmem:[#allocation24_spill] sm:$0xff]  ;;  %v23442_v45 = vld [vmem:[#allocation25_spill] sm:$0xff] }
 0x596   : > { %23419 = vst [vmem:[#allocation185_spill] sm:$0xff] %v17982_v47  ;;  %23420 = vst [vmem:[#allocation186_spill] sm:$0xff] %v17984_v19  ;;  %v18003_v14 = vpop.f32.mrb[75].mxu0  ;;  %v18005_v3 = vpop.f32.mrb[75].mxu1  ;;  %v18026_v43 = vsub.f32 %v6364_v37, %v9327_v39  ;;  %v18028_v36 = vand.u32 4294901760, %v6366_v34  ;;  %v18059_v37 = vpack.c.bf16 %v6601_v13, %v17938_v55  ;;  %v6370_v55 = vmax.f32 %v17641_v53, 0.0 }
 0x597   : > { %23422 = vst [vmem:[#allocation187_spill] sm:$0xff] %v17996_v62  ;;  %23423 = vst [vmem:[#allocation188_spill] sm:$0xff] %v18003_v14  ;;  %v6368_v14 = vmax.f32 %v17609_v25, 0.0  ;;  %v18037_v25 = vsub.f32 %v6367_v49, %v9333_v28  ;;  %v23471_v53 = vld [vmem:[#allocation49_spill] sm:$0xff] }
 0x598   : > { %23424 = vst [vmem:[#allocation189_spill] sm:$0xff] %v18005_v3  ;;  %23426 = vst [vmem:[#allocation190_spill] sm:$0xff] %v18010_v6  ;;  %v23429_v3 = vand.u32 4294901760, %v23421_v24  ;;  %v23449_v6 = vld [vmem:[#allocation21_spill] sm:$0xff]  ;;  %12570 = vmatprep.subr.bf16.mxu0 %v18059_v37 }
 0x599   : > { %23428 = vst [vmem:[#allocation191_spill] sm:$0xff] %v18016_v18  ;;  %23431 = vst [vmem:[#allocation193_spill] sm:$0xff] %v18024_v7  ;;  %v18030_v5 = vpop.f32.mrb[76].mxu0  ;;  %v18032_v38 = vpop.f32.mrb[76].mxu1  ;;  %v18039_v52 = vand.u32 4294901760, %v6368_v14  ;;  %v23450_v18 = vand.u32 4294901760, %v23435_v4  ;;  %12572 = vmatpush1.bf16.msra.mxu0 %v17975_v63 }
 0x59a   : > { %v18022_v12 = vsub.f32 %v23421_v24, %v23429_v3  ;;  %23432 = vst [vmem:[#allocation194_spill] sm:$0xff] %v18026_v43  ;;  %23433 = vst [vmem:[#allocation195_spill] sm:$0xff] %v18030_v5  ;;  %v18041_v3 = vpop.f32.mrb[77].mxu0  ;;  %v18043_v27 = vpop.f32.mrb[77].mxu1  ;;  %v23440_v24 = vld [vmem:[#allocation103_spill] sm:$0xff]  ;;  %v18048_v5 = vsub.f32 %v6366_v34, %v18028_v36  ;;  %v18062_v34 = vpack.c.bf16 %v9327_v39, %v17940_v40 }
 0x59b   : > { %23434 = vst [vmem:[#allocation196_spill] sm:$0xff] %v18032_v38  ;;  %23437 = vst [vmem:[#allocation198_spill] sm:$0xff] %v18037_v25  ;;  %v6369_v38 = vmax.f32 %v17625_v29, 0.0  ;;  %v18054_v7 = vsub.f32 %v6368_v14, %v18039_v52  ;;  %v6372_v14 = vmax.f32 %v17643_v32, 0.0  ;;  %v6609_v32 = vand.u32 4294901760, %v6370_v55 }
 0x59c   : > { %23430 = vst [vmem:[#allocation192_spill] sm:$0xff] %v18022_v12  ;;  %23438 = vst [vmem:[#allocation199_spill] sm:$0xff] %v18041_v3  ;;  %v6371_v3 = vmax.f32 %v17627_v51, 0.0  ;;  %v18073_v51 = vsub.f32 %v23435_v4, %v23450_v18  ;;  %13170 = vmatprep.subr.bf16.mxu1 %v18062_v34  ;;  %v23456_v18 = vand.u32 4294901760, %v23442_v45  ;;  %v23458_v4 = vld [vmem:[#allocation29_spill] sm:$0xff] }
 0x59d   : > { %23439 = vst [vmem:[#allocation200_spill] sm:$0xff] %v18043_v27  ;;  %23441 = vst [vmem:[#allocation201_spill] sm:$0xff] %v18048_v5  ;;  %v6611_v62 = vand.u32 4294901760, %v6369_v38  ;;  %v18064_v43 = vpop.f32.mrb[78].mxu0  ;;  %v18066_v29 = vpop.f32.mrb[78].mxu1  ;;  %13172 = vmatpush1.bf16.msra.mxu1 %v17982_v47  ;;  %v6375_v47 = vmax.f32 %v17678_v21, 0.0 }
 0x59e   : > { %23443 = vst [vmem:[#allocation202_spill] sm:$0xff] %v18054_v7  ;;  %23444 = vst [vmem:[#allocation203_spill] sm:$0xff] %v18059_v37  ;;  %v9337_v27 = vand.u32 4294901760, %v6371_v3  ;;  %v18075_v12 = vpop.f32.mrb[79].mxu0  ;;  %v18077_v13 = vpop.f32.mrb[79].mxu1  ;;  %v18090_v49 = vsub.f32 %v23442_v45, %v23456_v18  ;;  %v18116_v45 = vsub.f32 %v6370_v55, %v6609_v32 }
 0x59f   : > { %23445 = vst [vmem:[#allocation204_spill] sm:$0xff] %v18062_v34  ;;  %23446 = vst [vmem:[#allocation205_spill] sm:$0xff] %v18064_v43  ;;  %v18079_v39 = vpack.c.bf16 %v6611_v62, %v6607_v15  ;;  %v18081_v40 = vsub.f32 %v6369_v38, %v6611_v62  ;;  %v23461_v38 = vld [vmem:[#allocation39_spill] sm:$0xff]  ;;  %v9335_v34 = vand.u32 4294901760, %v6372_v14 }
 0x5a0   : > { %23447 = vst [vmem:[#allocation206_spill] sm:$0xff] %v18066_v29  ;;  %23451 = vst [vmem:[#allocation207_spill] sm:$0xff] %v18073_v51  ;;  %v18095_v15 = vsub.f32 %v6371_v3, %v9337_v27  ;;  %v9341_v3 = vand.u32 4294901760, %v6375_v47  ;;  %v23474_v29 = vld [vmem:[#allocation51_spill] sm:$0xff] }
 0x5a1   : > { %23452 = vst [vmem:[#allocation208_spill] sm:$0xff] %v18075_v12  ;;  %23453 = vst [vmem:[#allocation209_spill] sm:$0xff] %v18077_v13  ;;  %v18093_v13 = vpack.c.bf16 %v9337_v27, %v9333_v28  ;;  %v18102_v37 = vpop.f32.mrb[80].mxu0  ;;  %v18104_v18 = vpop.f32.mrb[80].mxu1  ;;  %v6373_v27 = vmax.f32 %v17676_v42, 0.0  ;;  %v23469_v28 = vld [vmem:[#allocation44_spill] sm:$0xff] }
 0x5a2   : > { %23454 = vst [vmem:[#allocation210_spill] sm:$0xff] %v18079_v39  ;;  %23455 = vst [vmem:[#allocation211_spill] sm:$0xff] %v18081_v40  ;;  %v18111_v63 = vpop.f32.mrb[81].mxu0  ;;  %v18113_v62 = vpop.f32.mrb[81].mxu1  ;;  %v6376_v42 = vmax.f32 %v17687_v0, 0.0  ;;  %v18139_v0 = vsub.f32 %v6375_v47, %v9341_v3 }
 0x5a3   : > { %23457 = vst [vmem:[#allocation212_spill] sm:$0xff] %v18090_v49  ;;  %23459 = vst [vmem:[#allocation213_spill] sm:$0xff] %v18093_v13  ;;  %v6615_v43 = vand.u32 4294901760, %v6373_v27 }
 0x5a4   : > { %23460 = vst [vmem:[#allocation214_spill] sm:$0xff] %v18095_v15  ;;  %23462 = vst [vmem:[#allocation215_spill] sm:$0xff] %v18102_v37  ;;  %v18118_v37 = vsub.f32 %v6372_v14, %v9335_v34  ;;  %v18141_v21 = vand.u32 4294901760, %v6376_v42 }
 0x5a5   : > { %23463 = vst [vmem:[#allocation216_spill] sm:$0xff] %v18104_v18  ;;  %23465 = vst [vmem:[#allocation217_spill] sm:$0xff] %v18111_v63  ;;  %v6374_v18 = vmax.f32 %v17685_v10, 0.0  ;;  %v23470_v63 = vand.u32 4294901760, %v23461_v38  ;;  %v18132_v14 = vpop.f32.mrb[82].mxu0  ;;  %v18134_v10 = vpop.f32.mrb[82].mxu1  ;;  %v18137_v51 = vsub.f32 %v6373_v27, %v6615_v43 }
 0x5a6   : > { %23466 = vst [vmem:[#allocation218_spill] sm:$0xff] %v18113_v62  ;;  %23467 = vst [vmem:[#allocation219_spill] sm:$0xff] %v18116_v45  ;;  %v18143_v49 = vpop.f32.mrb[83].mxu0  ;;  %v23481_v27 = vand.u32 4294901760, %v23469_v28 }
 0x5a7   : > { %23468 = vst [vmem:[#allocation220_spill] sm:$0xff] %v18118_v37  ;;  %v18127_v62 = vsub.f32 %v23461_v38, %v23470_v63  ;;  %v18130_v45 = vand.u32 4294901760, %v6374_v18  ;;  %23472 = vst [vmem:[#allocation221_spill] sm:$0xff] %v18132_v14  ;;  %v18145_v63 = vpop.f32.mrb[83].mxu1  ;;  %v6377_v38 = vmax.f32 %v17705_v48, 0.0  ;;  %v6379_v14 = vmax.f32 %v17707_v31, 0.0 }
 0x5a8   : > { %23473 = vst [vmem:[#allocation222_spill] sm:$0xff] %v18134_v10  ;;  %23475 = vst [vmem:[#allocation223_spill] sm:$0xff] %v18137_v51  ;;  %v18153_v10 = vpack.c.bf16 %v6609_v32, %v18028_v36  ;;  %v18158_v47 = vsub.f32 %v23469_v28, %v23481_v27  ;;  %v23483_v37 = vld [vmem:[#allocation45_spill] sm:$0xff]  ;;  %v6378_v36 = vmax.f32 %v17717_v41, 0.0  ;;  %v23488_v28 = vld [vmem:[#allocation48_spill] sm:$0xff]  ;;  %v6380_v41 = vmax.f32 %v17719_v57, 0.0 }
 0x5a9   : > { %23476 = vst [vmem:[#allocation224_spill] sm:$0xff] %v18139_v0  ;;  %23477 = vst [vmem:[#allocation225_spill] sm:$0xff] %v18143_v49  ;;  %v18148_v55 = vsub.f32 %v6374_v18, %v18130_v45  ;;  %v18162_v49 = vsub.f32 %v6376_v42, %v18141_v21  ;;  %v18165_v18 = vpack.c.bf16 %v9335_v34, %v18039_v52  ;;  %v9345_v31 = vand.u32 4294901760, %v6379_v14  ;;  %v18170_v32 = vpop.f32.mrb[84].mxu0  ;;  %v18172_v27 = vpop.f32.mrb[84].mxu1 }
 0x5aa   : > { %23478 = vst [vmem:[#allocation226_spill] sm:$0xff] %v18145_v63  ;;  %23480 = vst [vmem:[#allocation228_spill] sm:$0xff] %v18153_v10  ;;  %v6619_v63 = vand.u32 4294901760, %v6377_v38  ;;  %12574 = vmatprep.subr.bf16.mxu0 %v18153_v10  ;;  %v23489_v42 = vand.u32 4294901760, %v23471_v53  ;;  %v23491_v52 = vand.u32 4294901760, %v23474_v29  ;;  %v18188_v48 = vpop.f32.mrb[85].mxu0 }
 0x5ab   : > { %23479 = vst [vmem:[#allocation227_spill] sm:$0xff] %v18148_v55  ;;  %23482 = vst [vmem:[#allocation229_spill] sm:$0xff] %v18158_v47  ;;  %13174 = vmatprep.subr.bf16.mxu1 %v18165_v18  ;;  %12576 = vmatpush1.bf16.msra.mxu0 %v18079_v39  ;;  %v18190_v10 = vpop.f32.mrb[85].mxu1  ;;  %v9343_v39 = vand.u32 4294901760, %v6380_v41  ;;  %v23526_v47 = vld [vmem:[#allocation96_spill] sm:$0xff] }
 0x5ac   : > { %23484 = vst [vmem:[#allocation230_spill] sm:$0xff] %v18162_v49  ;;  %23485 = vst [vmem:[#allocation231_spill] sm:$0xff] %v18165_v18  ;;  %v18178_v49 = vsub.f32 %v23471_v53, %v23489_v42  ;;  %v18183_v34 = vsub.f32 %v23474_v29, %v23491_v52  ;;  %v18192_v12 = vpack.c.bf16 %v6619_v63, %v6615_v43  ;;  %13176 = vmatpush1.bf16.msra.mxu1 %v18093_v13  ;;  %v23499_v18 = vld [vmem:[#allocation63_spill] sm:$0xff] }
 0x5ad   : > { %23486 = vst [vmem:[#allocation232_spill] sm:$0xff] %v18170_v32  ;;  %23487 = vst [vmem:[#allocation233_spill] sm:$0xff] %v18172_v27  ;;  %v18194_v27 = vsub.f32 %v6377_v38, %v6619_v63  ;;  %v18196_v42 = vpack.c.bf16 %v9345_v31, %v9341_v3  ;;  %v18198_v53 = vsub.f32 %v6379_v14, %v9345_v31  ;;  %v6617_v29 = vand.u32 4294901760, %v6378_v36  ;;  %v18209_v3 = vpop.f32.mrb[86].mxu0  ;;  %v18211_v14 = vpop.f32.mrb[86].mxu1 }
 0x5ae   : > { %23490 = vst [vmem:[#allocation234_spill] sm:$0xff] %v18178_v49  ;;  %23492 = vst [vmem:[#allocation235_spill] sm:$0xff] %v18183_v34  ;;  %v18215_v31 = vsub.f32 %v6380_v41, %v9343_v39  ;;  %v6381_v52 = vmax.f32 %v17743_v35, 0.0  ;;  %v18219_v57 = vpop.f32.mrb[87].mxu0  ;;  %v6382_v13 = vmax.f32 %v17753_v1, 0.0  ;;  %v23509_v35 = vld [vmem:[#allocation67_spill] sm:$0xff] }
 0x5af   : > { %23493 = vst [vmem:[#allocation236_spill] sm:$0xff] %v18188_v48  ;;  %23494 = vst [vmem:[#allocation237_spill] sm:$0xff] %v18190_v10  ;;  %v18213_v63 = vsub.f32 %v6378_v36, %v6617_v29  ;;  %v6383_v48 = vmax.f32 %v17745_v2, 0.0  ;;  %v18221_v10 = vpop.f32.mrb[87].mxu1  ;;  %v23508_v36 = vand.u32 4294901760, %v23499_v18 }
 0x5b0   : > { %23495 = vst [vmem:[#allocation238_spill] sm:$0xff] %v18192_v12  ;;  %23496 = vst [vmem:[#allocation239_spill] sm:$0xff] %v18194_v27  ;;  %v6623_v2 = vand.u32 4294901760, %v6381_v52  ;;  %v18235_v43 = vand.u32 4294901760, %v6382_v13 }
 0x5b1   : > { %23497 = vst [vmem:[#allocation240_spill] sm:$0xff] %v18196_v42  ;;  %23498 = vst [vmem:[#allocation241_spill] sm:$0xff] %v18198_v53  ;;  %v18230_v41 = vsub.f32 %v23499_v18, %v23508_v36  ;;  %v18239_v1 = vpop.f32.mrb[88].mxu0  ;;  %v6387_v18 = vmax.f32 %v17782_v30, 0.0 }
 0x5b2   : > { %23502 = vst [vmem:[#allocation242_spill] sm:$0xff] %v18209_v3  ;;  %23503 = vst [vmem:[#allocation243_spill] sm:$0xff] %v18211_v14  ;;  %v6384_v14 = vmax.f32 %v17755_v54, 0.0  ;;  %v18241_v54 = vpop.f32.mrb[88].mxu1  ;;  %v18243_v34 = vsub.f32 %v6381_v52, %v6623_v2  ;;  %v6385_v3 = vmax.f32 %v17780_v20, 0.0  ;;  %v18249_v49 = vpop.f32.mrb[89].mxu0  ;;  %v18254_v55 = vsub.f32 %v6382_v13, %v18235_v43 }
 0x5b3   : > { %23504 = vst [vmem:[#allocation244_spill] sm:$0xff] %v18213_v63  ;;  %23505 = vst [vmem:[#allocation245_spill] sm:$0xff] %v18215_v31  ;;  %v9349_v31 = vand.u32 4294901760, %v6383_v48  ;;  %v18251_v63 = vpop.f32.mrb[89].mxu1  ;;  %v23522_v20 = vand.u32 4294901760, %v23509_v35  ;;  %v23524_v52 = vld [vmem:[#allocation91_spill] sm:$0xff] }
 0x5b4   : > { %23506 = vst [vmem:[#allocation246_spill] sm:$0xff] %v18219_v57  ;;  %23507 = vst [vmem:[#allocation247_spill] sm:$0xff] %v18221_v10  ;;  %v23510_v57 = vld [vmem:[#allocation76_spill] sm:$0xff]  ;;  %v23511_v10 = vld [vmem:[#allocation77_spill] sm:$0xff]  ;;  %v18237_v38 = vand.u32 4294901760, %v6384_v14 }
 0x5b5   : > { %23512 = vst [vmem:[#allocation248_spill] sm:$0xff] %v18239_v1  ;;  %23513 = vst [vmem:[#allocation249_spill] sm:$0xff] %v18241_v54  ;;  %v18245_v36 = vsub.f32 %v6383_v48, %v9349_v31  ;;  %v18260_v54 = vpack.c.bf16 %v6617_v29, %v18130_v45  ;;  %v18263_v48 = vpack.c.bf16 %v9343_v39, %v18141_v21  ;;  %v9353_v1 = vand.u32 4294901760, %v6387_v18  ;;  %v23525_v13 = vld [vmem:[#allocation69_spill] sm:$0xff]  ;;  %v18277_v39 = vpop.f32.mrb[90].mxu0  ;;  %v18279_v21 = vpop.f32.mrb[90].mxu1 }
 0x5b6   : > { %23514 = vst [vmem:[#allocation250_spill] sm:$0xff] %v18243_v34  ;;  %23516 = vst [vmem:[#allocation252_spill] sm:$0xff] %v18249_v49  ;;  %v18257_v32 = vsub.f32 %v6384_v14, %v18237_v38  ;;  %v18268_v30 = vsub.f32 %v23509_v35, %v23522_v20  ;;  %v6386_v45 = vmax.f32 %v17789_v26, 0.0  ;;  %v6388_v29 = vmax.f32 %v17791_v59, 0.0  ;;  %v18296_v26 = vpop.f32.mrb[91].mxu0  ;;  %v18298_v59 = vpop.f32.mrb[91].mxu1 }
 0x5b7   : > { %23515 = vst [vmem:[#allocation251_spill] sm:$0xff] %v18245_v36  ;;  %23517 = vst [vmem:[#allocation253_spill] sm:$0xff] %v18251_v63  ;;  %v6627_v63 = vand.u32 4294901760, %v6385_v3  ;;  %12578 = vmatprep.subr.bf16.mxu0 %v18260_v54  ;;  %13178 = vmatprep.subr.bf16.mxu1 %v18263_v48  ;;  %v23529_v20 = vand.u32 4294901760, %v23510_v57  ;;  %v18300_v35 = vpack.c.bf16 %v9353_v1, %v9349_v31  ;;  %v23541_v31 = vand.u32 4294901760, %v23526_v47 }
 0x5b8   : > { %23518 = vst [vmem:[#allocation254_spill] sm:$0xff] %v18254_v55  ;;  %23519 = vst [vmem:[#allocation255_spill] sm:$0xff] %v18257_v32  ;;  %v23531_v55 = vand.u32 4294901760, %v23511_v10  ;;  %12580 = vmatpush1.bf16.msra.mxu0 %v18192_v12  ;;  %13180 = vmatpush1.bf16.msra.mxu1 %v18196_v42  ;;  %v6389_v12 = vmax.f32 %v17813_v60, 0.0 }
 0x5b9   : > { %23520 = vst [vmem:[#allocation256_spill] sm:$0xff] %v18260_v54  ;;  %23521 = vst [vmem:[#allocation257_spill] sm:$0xff] %v18263_v48  ;;  %v18284_v49 = vsub.f32 %v23510_v57, %v23529_v20  ;;  %v18291_v54 = vpack.c.bf16 %v6627_v63, %v6623_v2  ;;  %v18293_v48 = vsub.f32 %v6385_v3, %v6627_v63  ;;  %v6625_v20 = vand.u32 4294901760, %v6386_v45  ;;  %v18325_v2 = vpop.f32.mrb[92].mxu0 }
 0x5ba   : > { %23523 = vst [vmem:[#allocation258_spill] sm:$0xff] %v18268_v30  ;;  %23527 = vst [vmem:[#allocation259_spill] sm:$0xff] %v18277_v39  ;;  %v18289_v14 = vsub.f32 %v23511_v10, %v23531_v55  ;;  %v9351_v57 = vand.u32 4294901760, %v6388_v29  ;;  %v23539_v3 = vand.u32 4294901760, %v23524_v52  ;;  %v23546_v10 = vld [vmem:[#allocation71_spill] sm:$0xff]  ;;  %v18331_v39 = vpop.f32.mrb[92].mxu1 }
 0x5bb   : > { %23528 = vst [vmem:[#allocation260_spill] sm:$0xff] %v18279_v21  ;;  %23530 = vst [vmem:[#allocation261_spill] sm:$0xff] %v18284_v49  ;;  %v18302_v21 = vsub.f32 %v6387_v18, %v9353_v1  ;;  %v18317_v18 = vsub.f32 %v23526_v47, %v23541_v31  ;;  %v18321_v42 = vsub.f32 %v6386_v45, %v6625_v20  ;;  %v18340_v60 = vpop.f32.mrb[93].mxu0  ;;  %v6393_v1 = vmax.f32 %v17851_v22, 0.0  ;;  %v23556_v47 = vld [vmem:[#allocation157_spill] sm:$0xff]  ;;  %v23647_v22 = vld [vmem:[#allocation134_spill] sm:$0xff] }
 0x5bc   : > { %23532 = vst [vmem:[#allocation262_spill] sm:$0xff] %v18289_v14  ;;  %23533 = vst [vmem:[#allocation263_spill] sm:$0xff] %v18291_v54  ;;  %v18310_v63 = vsub.f32 %v23524_v52, %v23539_v3  ;;  %v18323_v55 = vsub.f32 %v6388_v29, %v9351_v57  ;;  %v23547_v52 = vld [vmem:[#allocation106_spill] sm:$0xff]  ;;  %v6395_v14 = vmax.f32 %v23556_v47, 0.0  ;;  %v23559_v3 = vld [vmem:[#allocation115_spill] sm:$0xff]  ;;  %v18359_v49 = vpack.c.bf16 %v9351_v57, %v18237_v38 }
 0x5bd   : > { %23534 = vst [vmem:[#allocation264_spill] sm:$0xff] %v18293_v48  ;;  %23535 = vst [vmem:[#allocation265_spill] sm:$0xff] %v18296_v26  ;;  %v6391_v26 = vmax.f32 %v17815_v17, 0.0  ;;  %v8035_v48 = vand.u32 4294901760, %v6389_v12  ;;  %v18342_v17 = vpop.f32.mrb[93].mxu1  ;;  %v23649_v45 = vld [vmem:[#allocation127_spill] sm:$0xff] }
 0x5be   : > { %23536 = vst [vmem:[#allocation266_spill] sm:$0xff] %v18298_v59  ;;  %23537 = vst [vmem:[#allocation267_spill] sm:$0xff] %v18300_v35  ;;  %13182 = vmatprep.subr.bf16.mxu1 %v18359_v49 }
 0x5bf   : > { %23538 = vst [vmem:[#allocation268_spill] sm:$0xff] %v18302_v21  ;;  %23540 = vst [vmem:[#allocation269_spill] sm:$0xff] %v18310_v63  ;;  %v23552_v21 = vld [vmem:[#allocation113_spill] sm:$0xff]  ;;  %v10761_v63 = vand.u32 4294901760, %v6391_v26  ;;  %13184 = vmatpush1.bf16.msra.mxu1 %v18300_v35 }
 0x5c0   : > { %23542 = vst [vmem:[#allocation270_spill] sm:$0xff] %v18317_v18  ;;  %23543 = vst [vmem:[#allocation271_spill] sm:$0xff] %v18321_v42  ;;  %v23551_v42 = vld [vmem:[#allocation112_spill] sm:$0xff]  ;;  %v10765_v18 = vand.u32 4294901760, %v6395_v14  ;;  %v23566_v59 = vand.u32 4294901760, %v23552_v21 }
 0x5c1   : > { %23544 = vst [vmem:[#allocation272_spill] sm:$0xff] %v18323_v55  ;;  %23545 = vst [vmem:[#allocation273_spill] sm:$0xff] %v18325_v2  ;;  %v23557_v55 = vand.u32 4294901760, %v23547_v52  ;;  %v23564_v31 = vand.u32 4294901760, %v23551_v42  ;;  %v18392_v29 = vsub.f32 %v6391_v26, %v10761_v63 }
 0x5c2   : > { %23548 = vst [vmem:[#allocation274_spill] sm:$0xff] %v18331_v39  ;;  %23553 = vst [vmem:[#allocation275_spill] sm:$0xff] %v18340_v60  ;;  %v18355_v60 = vpack.c.bf16 %v6625_v20, %v18235_v43  ;;  %v8039_v39 = vand.u32 4294901760, %v6393_v1  ;;  %v18372_v43 = vsub.f32 %v6389_v12, %v8035_v48  ;;  %v23569_v20 = vld [vmem:[#allocation119_spill] sm:$0xff]  ;;  %v18380_v47 = vpack.c.bf16 %v10765_v18, %v10761_v63  ;;  %v23582_v63 = vld [vmem:[#allocation6_spill] sm:$0xff] }
 0x5c3   : > { %23554 = vst [vmem:[#allocation276_spill] sm:$0xff] %v18342_v17  ;;  %v18351_v2 = vsub.f32 %v23547_v52, %v23557_v55  ;;  %v23561_v17 = vld [vmem:[#allocation118_spill] sm:$0xff]  ;;  %23562 = vst [vmem:[#allocation278_spill] sm:$0xff] %v18359_v49  ;;  %v18365_v55 = vsub.f32 %v23551_v42, %v23564_v31  ;;  %v18370_v52 = vsub.f32 %v23552_v21, %v23566_v59  ;;  %v18384_v31 = vpop.f32.mrb[94].mxu0  ;;  %v23575_v12 = vand.u32 4294901760, %v23559_v3  ;;  %v18421_v21 = vpop.f32.mrb[94].mxu1 }
 0x5c4   : > { %23560 = vst [vmem:[#allocation277_spill] sm:$0xff] %v18355_v60  ;;  %23568 = vst [vmem:[#allocation281_spill] sm:$0xff] %v18372_v43  ;;  %12582 = vmatprep.subr.bf16.mxu0 %v18355_v60  ;;  %v18376_v57 = vpack.c.bf16 %v8039_v39, %v8035_v48  ;;  %v18378_v38 = vsub.f32 %v6393_v1, %v8039_v39  ;;  %v18394_v48 = vsub.f32 %v6395_v14, %v10765_v18  ;;  %v23590_v14 = vld [vmem:[#allocation14_spill] sm:$0xff]  ;;  %v18436_v42 = vpop.f32.mrb[95].mxu0  ;;  %v23622_v59 = vld [vmem:[#allocation144_spill] sm:$0xff] }
 0x5c5   : > { %23558 = vst [vmem:[#allocation157_spill] sm:$0xff] %v18351_v2  ;;  %23565 = vst [vmem:[#allocation279_spill] sm:$0xff] %v18365_v55  ;;  %12584 = vmatpush1.bf16.msra.mxu0 %v18291_v54  ;;  %v18390_v60 = vsub.f32 %v23559_v3, %v23575_v12  ;;  %v23583_v18 = vand.u32 4294901760, %v23582_v63  ;;  %v23585_v49 = vand.u32 4294901760, %v23569_v20  ;;  %v23588_v3 = vld [vmem:[#allocation131_spill] sm:$0xff]  ;;  %v23594_v55 = vld [vmem:[#allocation16_spill] sm:$0xff] }
 0x5c6   : > { %23567 = vst [vmem:[#allocation280_spill] sm:$0xff] %v18370_v52  ;;  %23570 = vst [vmem:[#allocation282_spill] sm:$0xff] %v18376_v57  ;;  %v23580_v57 = vand.u32 4294901760, %v23561_v17  ;;  %v6466_v12 = vld [vmem:[%s21873_s2 + $0x8] sm:$0xff] }
 0x5c7   : > { %23571 = vst [vmem:[#allocation283_spill] sm:$0xff] %v18378_v38  ;;  %23572 = vst [vmem:[#allocation284_spill] sm:$0xff] %v18380_v47  ;;  %v6713_v39 = vsub.f32 %v23582_v63, %v23583_v18  ;;  %v23592_v18 = vld [vmem:[#allocation7_spill] sm:$0xff]  ;;  %v23595_v38 = vand.u32 4294901760, %v23594_v55  ;;  %v18469_v47 = vpop.f32.mrb[96].mxu0 }
 0x5c8   : > { %23573 = vst [vmem:[#allocation285_spill] sm:$0xff] %v18384_v31  ;;  %23576 = vst [vmem:[#allocation286_spill] sm:$0xff] %v18390_v60  ;;  %v18402_v54 = vsub.f32 %v23561_v17, %v23580_v57  ;;  %v18417_v57 = vsub.f32 %v23569_v20, %v23585_v49  ;;  %v23587_v17 = vld [vmem:[#allocation129_spill] sm:$0xff]  ;;  %v23591_v31 = vand.u32 4294901760, %v23590_v14  ;;  %v23593_v63 = vand.u32 4294901760, %v23592_v18  ;;  %v18438_v20 = vpop.f32.mrb[95].mxu1 }
 0x5c9   : > { %23577 = vst [vmem:[#allocation287_spill] sm:$0xff] %v18392_v29  ;;  %23578 = vst [vmem:[#allocation288_spill] sm:$0xff] %v18394_v48  ;;  %v9451_v49 = vsub.f32 %v23594_v55, %v23595_v38  ;;  %v6465_v55 = vld [vmem:[%s21873_s2] sm:$0xff]  ;;  %v18536_v29 = vpop.f32.mrb[97].mxu0 }
 0x5ca   : > { %23581 = vst [vmem:[#allocation289_spill] sm:$0xff] %v18402_v54  ;;  %23586 = vst [vmem:[#allocation290_spill] sm:$0xff] %v18417_v57  ;;  %v6725_v48 = vsub.f32 %v23590_v14, %v23591_v31  ;;  %v9439_v35 = vsub.f32 %v23592_v18, %v23593_v63  ;;  %v6714_v18 = vand.u32 4294901760, %v6713_v39  ;;  %v23603_v31 = vand.u32 4294901760, %v23588_v3  ;;  %v23608_v14 = vld [vmem:[#allocation74_spill] sm:$0xff]  ;;  %v23609_v57 = vld [vmem:[#allocation136_spill] sm:$0xff] }
 0x5cb   : > { %23589 = vst [vmem:[#allocation291_spill] sm:$0xff] %v18421_v21  ;;  %23596 = vst [vmem:[#allocation292_spill] sm:$0xff] %v18436_v42  ;;  %v9452_v38 = vand.u32 4294901760, %v9451_v49  ;;  %v18458_v39 = vand.u32 4294901760, %v6466_v12  ;;  %v23614_v63 = vld [vmem:[#allocation107_spill] sm:$0xff]  ;;  %v23618_v42 = vld [vmem:[#allocation109_spill] sm:$0xff] }
 0x5cc   : > { %23597 = vst [vmem:[#allocation293_spill] sm:$0xff] %v18438_v20  ;;  %v6726_v2 = vand.u32 4294901760, %v6725_v48  ;;  %v9440_v1 = vand.u32 4294901760, %v9439_v35  ;;  %v23601_v20 = vand.u32 4294901760, %v23587_v17  ;;  %v18456_v60 = vsub.f32 %v23588_v3, %v23603_v31  ;;  %23612 = vst [vmem:[#allocation299_spill] sm:$0xff] %v18469_v47  ;;  %v23613_v31 = vld [vmem:[#allocation141_spill] sm:$0xff] }
 0x5cd   : > { %23605 = vst [vmem:[#allocation296_spill] sm:$0xff] %v18458_v39  ;;  %v6397_v48 = vmax.f32 %v17886_v33, 0.0  ;;  %v23619_v26 = vand.u32 4294901760, %v23618_v42  ;;  %v23620_v49 = vld [vmem:[#allocation125_spill] sm:$0xff]  ;;  %v23627_v42 = vld [vmem:[#allocation40_spill] sm:$0xff]  ;;  %23641 = vst [vmem:[#allocation300_spill] sm:$0xff] %v18536_v29 }
 0x5ce   : > { %v18451_v21 = vsub.f32 %v23587_v17, %v23601_v20  ;;  %23604 = vst [vmem:[#allocation295_spill] sm:$0xff] %v18456_v60  ;;  %v12585_v54 = vpack.c.bf16 %v6726_v2, %v6714_v18  ;;  %v13185_v52 = vpack.c.bf16 %v9452_v38, %v9440_v1  ;;  %v18465_v20 = vsub.f32 %v6466_v12, %v18458_v39  ;;  %v23616_v1 = vld [vmem:[#allocation124_spill] sm:$0xff] }
 0x5cf   : > { %v18467_v17 = vand.u32 4294901760, %v6465_v55  ;;  %v23615_v2 = vand.u32 4294901760, %v23614_v63  ;;  %v23617_v18 = vand.u32 4294901760, %v23616_v1  ;;  %v23621_v12 = vand.u32 4294901760, %v23620_v49 }
 0x5d0   : > { %23602 = vst [vmem:[#allocation294_spill] sm:$0xff] %v18451_v21  ;;  %23610 = vst [vmem:[#allocation297_spill] sm:$0xff] %v18465_v20  ;;  %12586 = vmatprep.subr.bf16.mxu0 %v12585_v54  ;;  %13186 = vmatprep.subr.bf16.mxu1 %v13185_v52  ;;  %v18484_v3 = vand.u32 4294901760, %v18465_v20  ;;  %v6399_v49 = vmax.f32 %v17888_v16, 0.0  ;;  %v23632_v63 = vand.u32 4294901760, %v23608_v14  ;;  %v23634_v16 = vand.u32 4294901760, %v23613_v31 }
 0x5d1   : > { %23611 = vst [vmem:[#allocation298_spill] sm:$0xff] %v18467_v17  ;;  %v12587_v38 = vpack.c.bf16 %v23617_v18, %v23615_v2  ;;  %v13187_v39 = vpack.c.bf16 %v23621_v12, %v23619_v26  ;;  %v18487_v54 = vsub.f32 %v6465_v55, %v18467_v17  ;;  %v23628_v18 = vand.u32 4294901760, %v23627_v42  ;;  %v23630_v55 = vld [vmem:[#allocation22_spill] sm:$0xff] }
 0x5d2   : > { %23623 = vst [vmem:[#allocation107_spill] sm:$0xff] %v18484_v3  ;;  %v6632_v12 = vsub.f32 %v18465_v20, %v18484_v3  ;;  %v23631_v47 = vand.u32 4294901760, %v23630_v55  ;;  %v18507_v1 = vsub.f32 %v23608_v14, %v23632_v63  ;;  %v23633_v17 = vand.u32 4294901760, %v23609_v57 }
 0x5d3   : > { %23624 = vst [vmem:[#allocation124_spill] sm:$0xff] %v18487_v54  ;;  %v6749_v26 = vsub.f32 %v23627_v42, %v23628_v18  ;;  %v18499_v35 = vand.u32 4294901760, %v18487_v54  ;;  %v18517_v3 = vsub.f32 %v23613_v31, %v23634_v16  ;;  %v8043_v20 = vand.u32 4294901760, %v6397_v48  ;;  %v18519_v42 = vpop.f32.mrb[96].mxu1  ;;  %v23639_v31 = vld [vmem:[#allocation41_spill] sm:$0xff] }
 0x5d4   : > { %v6737_v33 = vsub.f32 %v23630_v55, %v23631_v47  ;;  %v18512_v18 = vsub.f32 %v23609_v57, %v23633_v17  ;;  %23635 = vst [vmem:[#allocation125_spill] sm:$0xff] %v18519_v42  ;;  %v23636_v47 = vand.u32 4294901760, %v23622_v59  ;;  %v6633_v63 = vand.u32 4294901760, %v6632_v12  ;;  %v23637_v57 = vld [vmem:[#allocation26_spill] sm:$0xff]  ;;  %v23643_v17 = vld [vmem:[#allocation169_spill] sm:$0xff] }
 0x5d5   : > { %23629 = vst [vmem:[#allocation109_spill] sm:$0xff] %v18499_v35  ;;  %v6638_v14 = vsub.f32 %v18487_v54, %v18499_v35  ;;  %v6750_v2 = vand.u32 4294901760, %v6749_v26  ;;  %v23638_v52 = vand.u32 4294901760, %v23637_v57  ;;  %v23640_v60 = vand.u32 4294901760, %v23639_v31 }
 0x5d6   : > { %v18524_v55 = vsub.f32 %v23622_v59, %v23636_v47  ;;  %v6401_v21 = vmax.f32 %v17918_v61, 0.0  ;;  %v18538_v47 = vpop.f32.mrb[97].mxu1  ;;  %v10769_v12 = vand.u32 4294901760, %v6399_v49  ;;  %6634 = vmatprep.mubr.f32.mxu0 %v6633_v63  ;;  %9360 = vmatprep.mubr.f32.mxu1 %v6633_v63  ;;  %v6738_v35 = vand.u32 4294901760, %v6737_v33 }
 0x5d7   : > { %v9463_v16 = vsub.f32 %v23637_v57, %v23638_v52  ;;  %v9475_v42 = vsub.f32 %v23639_v31, %v23640_v60  ;;  %23642 = vst [vmem:[#allocation301_spill] sm:$0xff] %v18538_v47  ;;  %v6639_v26 = vand.u32 4294901760, %v6638_v14  ;;  %v6403_v54 = vmax.f32 %v23643_v17, 0.0  ;;  %v23645_v31 = vld [vmem:[#allocation126_spill] sm:$0xff]  ;;  %v23651_v14 = vld [vmem:[#allocation135_spill] sm:$0xff]  ;;  %v23653_v17 = vld [vmem:[#allocation153_spill] sm:$0xff] }
 0x5d8   : > { %v18541_v59 = vsub.f32 %v6397_v48, %v8043_v20  ;;  %v8047_v43 = vand.u32 4294901760, %v6401_v21  ;;  %v12589_v60 = vpack.c.bf16 %v6750_v2, %v6738_v35  ;;  %v23646_v29 = vand.u32 4294901760, %v23645_v31  ;;  %v18556_v35 = vpop.f32.mrb[98].mxu0 }
 0x5d9   : > { %v9464_v52 = vand.u32 4294901760, %v9463_v16  ;;  %v9476_v57 = vand.u32 4294901760, %v9475_v42  ;;  %6640 = vmatmul.mubr.f32.vlgmr.msra.gmra.mrb[102].mxu0 %v6639_v26  ;;  %9366 = vmatmul.mubr.f32.vlgmr.msra.gmra.mrb[102].mxu1 %v6639_v26  ;;  %v10773_v61 = vand.u32 4294901760, %v6403_v54  ;;  %v23648_v47 = vand.u32 4294901760, %v23647_v22  ;;  %23656 = vst [vmem:[#allocation127_spill] sm:$0xff] %v18556_v35  ;;  %v23660_v22 = vld [vmem:[#allocation47_spill] sm:$0xff] }
 0x5da   : > { %23644 = vst [vmem:[#allocation169_spill] sm:$0xff] %v18541_v59  ;;  %v23650_v63 = vand.u32 4294901760, %v23649_v45  ;;  %v23652_v33 = vand.u32 4294901760, %v23651_v14  ;;  %v22499_v48 = vand.u32 4294901760, %v23653_v17  ;;  %12588 = vmatpush1.bf16.msra.mxu0 %v12587_v38  ;;  %13188 = vmatpush1.bf16.msra.mxu1 %v13187_v39  ;;  %v18552_v16 = vpack.c.bf16 %v8047_v43, %v8043_v20  ;;  %v23676_v20 = vld [vmem:[#allocation154_spill] sm:$0xff] }
 0x5db   : > { %v12591_v32 = vpack.c.bf16 %v23648_v47, %v23646_v29  ;;  %v13189_v42 = vpack.c.bf16 %v9476_v57, %v9464_v52  ;;  %v18554_v26 = vsub.f32 %v6401_v21, %v8047_v43  ;;  %v18558_v31 = vsub.f32 %v6399_v49, %v10769_v12  ;;  %12590 = vmatprep.subr.bf16.mxu0 %v12589_v60  ;;  %v23662_v57 = vld [vmem:[#allocation162_spill] sm:$0xff]  ;;  %v23663_v43 = vld [vmem:[#allocation64_spill] sm:$0xff]  ;;  %v23665_v52 = vld [vmem:[#allocation165_spill] sm:$0xff] }
 0x5dc   : > { %v13191_v30 = vpack.c.bf16 %v23652_v33, %v23650_v63  ;;  %23654 = vst [vmem:[#allocation126_spill] sm:$0xff] %v18552_v16  ;;  %v18560_v29 = vpack.c.bf16 %v10773_v61, %v10769_v12  ;;  %v18562_v45 = vsub.f32 %v6403_v54, %v10773_v61  ;;  %v23661_v2 = vand.u32 4294901760, %v23660_v22  ;;  %v23670_v54 = vld [vmem:[#allocation147_spill] sm:$0xff]  ;;  %v23672_v60 = vld [vmem:[#allocation65_spill] sm:$0xff]  ;;  %v18606_v16 = vpop.f32.mrb[99].mxu0 }
 0x5dd   : > { %23655 = vst [vmem:[#allocation134_spill] sm:$0xff] %v18554_v26  ;;  %23657 = vst [vmem:[#allocation135_spill] sm:$0xff] %v18558_v31  ;;  %13190 = vmatprep.subr.bf16.mxu1 %v13189_v42  ;;  %v23664_v38 = vand.u32 4294901760, %v23663_v43  ;;  %v23666_v63 = vand.u32 4294901760, %v17825_v50  ;;  %v18592_v61 = vsub.f32 %v23653_v17, %v22499_v48  ;;  %v23681_v17 = vld [vmem:[#allocation155_spill] sm:$0xff] }
 0x5de   : > { %23658 = vst [vmem:[#allocation302_spill] sm:$0xff] %v18560_v29  ;;  %23659 = vst [vmem:[#allocation303_spill] sm:$0xff] %v18562_v45  ;;  %v6761_v47 = vsub.f32 %v23660_v22, %v23661_v2  ;;  %12592 = vmatpush1.bf16.msra.mxu0 %v12591_v32  ;;  %13192 = vmatpush1.bf16.msra.mxu1 %v13191_v30  ;;  %v23668_v2 = vld [vmem:[#allocation50_spill] sm:$0xff]  ;;  %v18597_v30 = vpop.f32.mrb[98].mxu1  ;;  %v18626_v45 = vpop.f32.mrb[100].mxu0 }
 0x5df   : > { %v6773_v49 = vsub.f32 %v23663_v43, %v23664_v38  ;;  %v18582_v14 = vsub.f32 %v17825_v50, %v23666_v63  ;;  %v23669_v38 = vand.u32 4294901760, %v23668_v2  ;;  %23671 = vst [vmem:[#allocation305_spill] sm:$0xff] %v18592_v61  ;;  %v23673_v63 = vand.u32 4294901760, %v23672_v60  ;;  %23674 = vst [vmem:[#allocation306_spill] sm:$0xff] %v18597_v30  ;;  %v18608_v48 = vpop.f32.mrb[99].mxu1  ;;  %v23690_v50 = vld [vmem:[#allocation148_spill] sm:$0xff] }
 0x5e0   : > { %v6762_v33 = vand.u32 4294901760, %v6761_v47  ;;  %v23675_v47 = vld [vmem:[#allocation149_spill] sm:$0xff]  ;;  %23679 = vst [vmem:[#allocation307_spill] sm:$0xff] %v18606_v16  ;;  %23680 = vst [vmem:[#allocation308_spill] sm:$0xff] %v18608_v48  ;;  %v23691_v30 = vand.u32 4294901760, %v23690_v50 }
 0x5e1   : > { %23667 = vst [vmem:[#allocation304_spill] sm:$0xff] %v18582_v14  ;;  %v6774_v42 = vand.u32 4294901760, %v6773_v49  ;;  %v9487_v21 = vsub.f32 %v23668_v2, %v23669_v38  ;;  %v9499_v32 = vsub.f32 %v23672_v60, %v23673_v63  ;;  %v23677_v38 = vand.u32 4294901760, %v23662_v57  ;;  %v23688_v48 = vld [vmem:[#allocation145_spill] sm:$0xff] }
 0x5e2   : > { %v23682_v63 = vand.u32 4294901760, %v23665_v52  ;;  %v23689_v22 = vand.u32 4294901760, %v23688_v48  ;;  %v23696_v48 = vld [vmem:[#allocation87_spill] sm:$0xff]  ;;  %v23723_v14 = vand.u32 4294901760, %v17984_v19 }
 0x5e3   : > { %v18604_v12 = vsub.f32 %v23662_v57, %v23677_v38  ;;  %v12593_v39 = vpack.c.bf16 %v6774_v42, %v6762_v33  ;;  %v9488_v49 = vand.u32 4294901760, %v9487_v21  ;;  %v9500_v2 = vand.u32 4294901760, %v9499_v32  ;;  %v23684_v57 = vld [vmem:[#allocation143_spill] sm:$0xff]  ;;  %v23686_v42 = vld [vmem:[#allocation146_spill] sm:$0xff] }
 0x5e4   : > { %v18614_v60 = vsub.f32 %v23665_v52, %v23682_v63  ;;  %v6405_v38 = vmax.f32 %v17956_v8, 0.0  ;;  %v23685_v33 = vand.u32 4294901760, %v23684_v57  ;;  %v23687_v16 = vand.u32 4294901760, %v23686_v42  ;;  %23692 = vst [vmem:[#allocation143_spill] sm:$0xff] %v18626_v45  ;;  %v23693_v32 = vld [vmem:[#allocation167_spill] sm:$0xff] }
 0x5e5   : > { %23678 = vst [vmem:[#allocation154_spill] sm:$0xff] %v18604_v12  ;;  %12594 = vmatprep.subr.bf16.mxu0 %v12593_v39  ;;  %v13195_v35 = vpack.c.bf16 %v23691_v30, %v23689_v22  ;;  %v13193_v29 = vpack.c.bf16 %v9500_v2, %v9488_v49  ;;  %v23694_v39 = vld [vmem:[#allocation72_spill] sm:$0xff]  ;;  %v23698_v22 = vld [vmem:[#allocation73_spill] sm:$0xff]  ;;  %v6409_v21 = vmax.f32 %v17994_v56, 0.0  ;;  %v18650_v2 = vpop.f32.mrb[100].mxu1  ;;  %v18652_v49 = vpop.f32.mrb[101].mxu0 }
 0x5e6   : > { %23683 = vst [vmem:[#allocation309_spill] sm:$0xff] %v18614_v60  ;;  %v12595_v43 = vpack.c.bf16 %v23687_v16, %v23685_v33  ;;  %v23695_v52 = vand.u32 4294901760, %v23694_v39  ;;  %v6407_v16 = vmax.f32 %v17958_v46, 0.0  ;;  %v23697_v33 = vand.u32 4294901760, %v23696_v48  ;;  %23703 = vst [vmem:[#allocation146_spill] sm:$0xff] %v18650_v2  ;;  %v18656_v61 = vpop.f32.mrb[101].mxu1 }
 0x5e7   : > { %v23699_v30 = vand.u32 4294901760, %v23698_v22  ;;  %13194 = vmatprep.subr.bf16.mxu1 %v13193_v29  ;;  %v8051_v63 = vand.u32 4294901760, %v6405_v38  ;;  %23704 = vst [vmem:[#allocation145_spill] sm:$0xff] %v18652_v49  ;;  %23706 = vst [vmem:[#allocation148_spill] sm:$0xff] %v18656_v61  ;;  %v23711_v29 = vld [vmem:[#allocation164_spill] sm:$0xff] }
 0x5e8   : > { %v6785_v8 = vsub.f32 %v23694_v39, %v23695_v52  ;;  %12596 = vmatpush1.bf16.msra.mxu0 %v12595_v43  ;;  %v6797_v50 = vsub.f32 %v23696_v48, %v23697_v33  ;;  %v23700_v52 = vld [vmem:[#allocation90_spill] sm:$0xff]  ;;  %13196 = vmatpush1.bf16.msra.mxu1 %v13195_v35  ;;  %v10777_v60 = vand.u32 4294901760, %v6407_v16  ;;  %v23707_v35 = vand.u32 4294901760, %v17925_v44 }
 0x5e9   : > { %v9511_v42 = vsub.f32 %v23698_v22, %v23699_v30  ;;  %v23701_v57 = vand.u32 4294901760, %v23700_v52  ;;  %v23702_v48 = vld [vmem:[#allocation170_spill] sm:$0xff]  ;;  %v23709_v39 = vand.u32 4294901760, %v17977_v23  ;;  %v23712_v2 = vand.u32 4294901760, %v23711_v29 }
 0x5ea   : > { %v6786_v33 = vand.u32 4294901760, %v6785_v8  ;;  %v6798_v45 = vand.u32 4294901760, %v6797_v50  ;;  %v18661_v8 = vsub.f32 %v17925_v44, %v23707_v35  ;;  %v23708_v50 = vand.u32 4294901760, %v17927_v58  ;;  %v23713_v35 = vld [vmem:[#allocation168_spill] sm:$0xff] }
 0x5eb   : > { %v9523_v46 = vsub.f32 %v23700_v52, %v23701_v57  ;;  %v9512_v30 = vand.u32 4294901760, %v9511_v42  ;;  %v23705_v52 = vld [vmem:[#allocation187_spill] sm:$0xff]  ;;  %v23714_v61 = vand.u32 4294901760, %v23713_v35  ;;  %v18693_v29 = vsub.f32 %v17984_v19, %v23723_v14 }
 0x5ec   : > { %v12597_v57 = vpack.c.bf16 %v6798_v45, %v6786_v33  ;;  %v6411_v43 = vmax.f32 %v23705_v52, 0.0  ;;  %v18666_v56 = vsub.f32 %v17927_v58, %v23708_v50  ;;  %v18671_v45 = vsub.f32 %v17977_v23, %v23709_v39  ;;  %v23719_v58 = vld [vmem:[#allocation175_spill] sm:$0xff]  ;;  %v23721_v23 = vld [vmem:[#allocation97_spill] sm:$0xff] }
 0x5ed   : > { %v9524_v22 = vand.u32 4294901760, %v9523_v46  ;;  %v8055_v46 = vand.u32 4294901760, %v6409_v21  ;;  %v18673_v52 = vsub.f32 %v6405_v38, %v8051_v63  ;;  %v12599_v49 = vpack.c.bf16 %v23714_v61, %v23712_v2  ;;  %v23727_v2 = vld [vmem:[#allocation176_spill] sm:$0xff] }
 0x5ee   : > { %12598 = vmatprep.subr.bf16.mxu0 %v12597_v57  ;;  %v10781_v33 = vand.u32 4294901760, %v6411_v43  ;;  %v23720_v12 = vand.u32 4294901760, %v23719_v58  ;;  %v23722_v38 = vand.u32 4294901760, %v23721_v23  ;;  %v18695_v61 = vsub.f32 %v6407_v16, %v10777_v60  ;;  %v23728_v58 = vld [vmem:[#allocation177_spill] sm:$0xff] }
 0x5ef   : > { %v13197_v42 = vpack.c.bf16 %v9524_v22, %v9512_v30  ;;  %23710 = vst [vmem:[#allocation187_spill] sm:$0xff] %v18673_v52  ;;  %v18679_v44 = vpack.c.bf16 %v8055_v46, %v8051_v63  ;;  %v18681_v50 = vsub.f32 %v6409_v21, %v8055_v46  ;;  %v23717_v22 = vld [vmem:[#allocation166_spill] sm:$0xff]  ;;  %12600 = vmatpush1.bf16.msra.mxu0 %v12599_v49  ;;  %v23729_v35 = vand.u32 4294901760, %v23448_v9 }
 0x5f0   : > { %v23718_v30 = vand.u32 4294901760, %v23717_v22  ;;  %v6809_v57 = vsub.f32 %v23721_v23, %v23722_v38  ;;  %23724 = vst [vmem:[#allocation166_spill] sm:$0xff] %v18695_v61  ;;  %v18697_v63 = vpack.c.bf16 %v10781_v33, %v10777_v60  ;;  %v18699_v21 = vsub.f32 %v6411_v43, %v10781_v33  ;;  %v23733_v60 = vld [vmem:[#allocation194_spill] sm:$0xff] }
 0x5f1   : > { %13198 = vmatprep.subr.bf16.mxu1 %v13197_v42  ;;  %23715 = vst [vmem:[#allocation164_spill] sm:$0xff] %v18679_v44  ;;  %23716 = vst [vmem:[#allocation168_spill] sm:$0xff] %v18681_v50  ;;  %v6821_v14 = vsub.f32 %v23448_v9, %v23729_v35  ;;  %v23732_v42 = vld [vmem:[#allocation193_spill] sm:$0xff]  ;;  %v23734_v44 = vand.u32 4294901760, %v18035_v11  ;;  %v22545_v16 = vand.u32 4294901760, %v18095_v15  ;;  %v23747_v43 = vand.u32 4294901760, %v23458_v4 }
 0x5f2   : > { %v13199_v39 = vpack.c.bf16 %v23720_v12, %v23718_v30  ;;  %23725 = vst [vmem:[#allocation175_spill] sm:$0xff] %v18697_v63  ;;  %23726 = vst [vmem:[#allocation310_spill] sm:$0xff] %v18699_v21  ;;  %v6810_v33 = vand.u32 4294901760, %v6809_v57  ;;  %v23730_v30 = vand.u32 4294901760, %v23440_v24  ;;  %v23737_v12 = vld [vmem:[#allocation195_spill] sm:$0xff] }
 0x5f3   : > { %v6822_v22 = vand.u32 4294901760, %v6821_v14  ;;  %v6413_v19 = vmax.f32 %v23737_v12, 0.0 }
 0x5f4   : > { %13200 = vmatpush1.bf16.msra.mxu1 %v13199_v39  ;;  %v9535_v38 = vsub.f32 %v23440_v24, %v23730_v30  ;;  %v23731_v39 = vand.u32 4294901760, %v23449_v6  ;;  %v18727_v30 = vsub.f32 %v18035_v11, %v23734_v44  ;;  %v23742_v44 = vld [vmem:[#allocation190_spill] sm:$0xff]  ;;  %v23744_v24 = vld [vmem:[#allocation192_spill] sm:$0xff] }
 0x5f5   : > { %v12601_v57 = vpack.c.bf16 %v6822_v22, %v6810_v33  ;;  %v23738_v22 = vld [vmem:[#allocation179_spill] sm:$0xff]  ;;  %v23743_v11 = vand.u32 4294901760, %v23742_v44  ;;  %v23745_v9 = vand.u32 4294901760, %v23744_v24 }
 0x5f6   : > { %v9547_v46 = vsub.f32 %v23449_v6, %v23731_v39  ;;  %v9536_v14 = vand.u32 4294901760, %v9535_v38  ;;  %v23735_v39 = vand.u32 4294901760, %v18037_v25  ;;  %v23740_v38 = vld [vmem:[#allocation191_spill] sm:$0xff] }
 0x5f7   : > { %12602 = vmatprep.subr.bf16.mxu0 %v12601_v57  ;;  %v23741_v49 = vand.u32 4294901760, %v23740_v38  ;;  %v13203_v23 = vpack.c.bf16 %v23745_v9, %v23743_v11  ;;  %v23749_v24 = vld [vmem:[#allocation31_spill] sm:$0xff]  ;;  %v23754_v38 = vand.u32 4294901760, %v18137_v51 }
 0x5f8   : > { %v9548_v63 = vand.u32 4294901760, %v9547_v46  ;;  %v18732_v35 = vsub.f32 %v18037_v25, %v23735_v39  ;;  %v23739_v46 = vand.u32 4294901760, %v23738_v22  ;;  %v22542_v39 = vand.u32 4294901760, %v18081_v40  ;;  %v23746_v25 = vld [vmem:[#allocation196_spill] sm:$0xff] }
 0x5f9   : > { %v6415_v12 = vmax.f32 %v23746_v25, 0.0  ;;  %v23750_v11 = vand.u32 4294901760, %v23749_v24  ;;  %v23751_v22 = vand.u32 4294901760, %v23488_v28 }
 0x5fa   : > { %23736 = vst [vmem:[#allocation176_spill] sm:$0xff] %v18732_v35  ;;  %v13201_v33 = vpack.c.bf16 %v9548_v63, %v9536_v14  ;;  %v12603_v6 = vpack.c.bf16 %v23741_v49, %v23739_v46  ;;  %v6833_v63 = vsub.f32 %v23458_v4, %v23747_v43  ;;  %v23748_v49 = vand.u32 4294901760, %v23483_v37  ;;  %v23753_v43 = vld [vmem:[#allocation205_spill] sm:$0xff] }
 0x5fb   : > { %v9559_v9 = vsub.f32 %v23749_v24, %v23750_v11  ;;  %v9571_v25 = vsub.f32 %v23488_v28, %v23751_v22  ;;  %v18767_v11 = vsub.f32 %v18081_v40, %v22542_v39  ;;  %v18772_v22 = vsub.f32 %v18095_v15, %v22545_v16 }
 0x5fc   : > { %13202 = vmatprep.subr.bf16.mxu1 %v13201_v33  ;;  %12604 = vmatpush1.bf16.msra.mxu0 %v12603_v6  ;;  %v6845_v14 = vsub.f32 %v23483_v37, %v23748_v49  ;;  %v8059_v33 = vand.u32 4294901760, %v6413_v19  ;;  %v6834_v6 = vand.u32 4294901760, %v6833_v63  ;;  %v10785_v46 = vand.u32 4294901760, %v6415_v12  ;;  %v23765_v37 = vld [vmem:[#allocation229_spill] sm:$0xff] }
 0x5fd   : > { %13204 = vmatpush1.bf16.msra.mxu1 %v13203_v23  ;;  %v9560_v57 = vand.u32 4294901760, %v9559_v9  ;;  %v9572_v49 = vand.u32 4294901760, %v9571_v25  ;;  %23752 = vst [vmem:[#allocation193_spill] sm:$0xff] %v18772_v22  ;;  %v6417_v28 = vmax.f32 %v23753_v43, 0.0  ;;  %v18778_v23 = vsub.f32 %v18137_v51, %v23754_v38  ;;  %v23756_v9 = vld [vmem:[#allocation206_spill] sm:$0xff]  ;;  %v23760_v51 = vld [vmem:[#allocation207_spill] sm:$0xff] }
 0x5fe   : > { %v6846_v44 = vand.u32 4294901760, %v6845_v14  ;;  %v6419_v25 = vmax.f32 %v23756_v9, 0.0  ;;  %v23757_v39 = vand.u32 4294901760, %v18139_v0  ;;  %v18788_v43 = vsub.f32 %v6413_v19, %v8059_v33  ;;  %v23770_v19 = vld [vmem:[#allocation53_spill] sm:$0xff] }
 0x5ff   : > { %23755 = vst [vmem:[#allocation195_spill] sm:$0xff] %v18778_v23  ;;  %v13205_v14 = vpack.c.bf16 %v9572_v49, %v9560_v57  ;;  %v8063_v24 = vand.u32 4294901760, %v6417_v28  ;;  %v23762_v57 = vand.u32 4294901760, %v18127_v62  ;;  %v23763_v49 = vld [vmem:[#allocation212_spill] sm:$0xff]  ;;  %v18798_v4 = vsub.f32 %v6415_v12, %v10785_v46  ;;  %v23904_v22 = vld [vmem:[#allocation137_spill] sm:$0xff] }
 0x600   : > { %v12605_v63 = vpack.c.bf16 %v6846_v44, %v6834_v6  ;;  %v18784_v40 = vsub.f32 %v18139_v0, %v23757_v39  ;;  %23759 = vst [vmem:[#allocation191_spill] sm:$0xff] %v18788_v43  ;;  %v10789_v38 = vand.u32 4294901760, %v6419_v25  ;;  %v23761_v6 = vand.u32 4294901760, %v23760_v51 }
 0x601   : > { %13206 = vmatprep.subr.bf16.mxu1 %v13205_v14  ;;  %v23764_v9 = vand.u32 4294901760, %v23763_v49  ;;  %v23766_v39 = vand.u32 4294901760, %v23765_v37  ;;  %23767 = vst [vmem:[#allocation190_spill] sm:$0xff] %v18798_v4  ;;  %v18800_v16 = vpack.c.bf16 %v8063_v24, %v8059_v33  ;;  %v18802_v15 = vsub.f32 %v6417_v28, %v8063_v24  ;;  %v23775_v28 = vld [vmem:[#allocation219_spill] sm:$0xff]  ;;  %v23782_v33 = vld [vmem:[#allocation57_spill] sm:$0xff] }
 0x602   : > { %23758 = vst [vmem:[#allocation179_spill] sm:$0xff] %v18784_v40  ;;  %12606 = vmatprep.subr.bf16.mxu0 %v12605_v63  ;;  %v12607_v44 = vpack.c.bf16 %v23762_v57, %v23761_v6  ;;  %v23771_v63 = vand.u32 4294901760, %v23770_v19  ;;  %v18808_v35 = vpack.c.bf16 %v10789_v38, %v10785_v46  ;;  %v18810_v62 = vsub.f32 %v6419_v25, %v10789_v38  ;;  %v23776_v6 = vld [vmem:[#allocation220_spill] sm:$0xff] }
 0x603   : > { %v13207_v0 = vpack.c.bf16 %v23766_v39, %v23764_v9  ;;  %23768 = vst [vmem:[#allocation192_spill] sm:$0xff] %v18800_v16  ;;  %23769 = vst [vmem:[#allocation196_spill] sm:$0xff] %v18802_v15  ;;  %v23774_v37 = vand.u32 4294901760, %v23525_v13  ;;  %v23777_v46 = vand.u32 4294901760, %v18194_v27  ;;  %v23783_v51 = vand.u32 4294901760, %v23782_v33  ;;  %v23815_v40 = vld [vmem:[#allocation268_spill] sm:$0xff] }
 0x604   : > { %v6857_v14 = vsub.f32 %v23770_v19, %v23771_v63  ;;  %23772 = vst [vmem:[#allocation205_spill] sm:$0xff] %v18808_v35  ;;  %23773 = vst [vmem:[#allocation206_spill] sm:$0xff] %v18810_v62  ;;  %12608 = vmatpush1.bf16.msra.mxu0 %v12607_v44  ;;  %v23780_v63 = vand.u32 4294901760, %v18198_v53  ;;  %v23784_v57 = vand.u32 4294901760, %v23546_v10  ;;  %v23905_v4 = vand.u32 4294901760, %v23904_v22 }
 0x605   : > { %13208 = vmatpush1.bf16.msra.mxu1 %v13207_v0  ;;  %v6869_v12 = vsub.f32 %v23525_v13, %v23774_v37  ;;  %v18823_v25 = vsub.f32 %v18194_v27, %v23777_v46  ;;  %v9583_v49 = vsub.f32 %v23782_v33, %v23783_v51  ;;  %v23789_v0 = vld [vmem:[#allocation234_spill] sm:$0xff]  ;;  %v23917_v9 = vand.u32 4294901760, %v18558_v31 }
 0x606   : > { %v6858_v38 = vand.u32 4294901760, %v6857_v14  ;;  %v18831_v37 = vsub.f32 %v18198_v53, %v23780_v63  ;;  %v9595_v46 = vsub.f32 %v23546_v10, %v23784_v57  ;;  %v23788_v57 = vld [vmem:[#allocation215_spill] sm:$0xff] }
 0x607   : > { %23778 = vst [vmem:[#allocation207_spill] sm:$0xff] %v18823_v25  ;;  %v6870_v44 = vand.u32 4294901760, %v6869_v12  ;;  %v9584_v53 = vand.u32 4294901760, %v9583_v49  ;;  %v6421_v24 = vmax.f32 %v23788_v57, 0.0  ;;  %v23792_v63 = vld [vmem:[#allocation235_spill] sm:$0xff]  ;;  %v23799_v57 = vld [vmem:[#allocation81_spill] sm:$0xff] }
 0x608   : > { %23781 = vst [vmem:[#allocation212_spill] sm:$0xff] %v18831_v37  ;;  %v9596_v13 = vand.u32 4294901760, %v9595_v46  ;;  %v23793_v49 = vand.u32 4294901760, %v23792_v63  ;;  %v23794_v46 = vld [vmem:[#allocation258_spill] sm:$0xff]  ;;  %v23797_v25 = vld [vmem:[#allocation151_spill] sm:$0xff]  ;;  %v23800_v15 = vand.u32 4294901760, %v23799_v57 }
 0x609   : > { %v12609_v39 = vpack.c.bf16 %v6870_v44, %v6858_v38  ;;  %v23790_v38 = vand.u32 4294901760, %v23789_v0  ;;  %v23791_v44 = vand.u32 4294901760, %v18230_v41  ;;  %v23795_v62 = vand.u32 4294901760, %v23794_v46  ;;  %v23802_v41 = vld [vmem:[#allocation99_spill] sm:$0xff]  ;;  %v23806_v46 = vld [vmem:[#allocation221_spill] sm:$0xff]  ;;  %v23817_v0 = vld [vmem:[#allocation222_spill] sm:$0xff] }
 0x60a   : > { %v13209_v10 = vpack.c.bf16 %v9596_v13, %v9584_v53  ;;  %v6390_v33 = vmax.f32 %v23797_v25, 0.0  ;;  %v6881_v53 = vsub.f32 %v23799_v57, %v23800_v15  ;;  %v6425_v25 = vmax.f32 %v23806_v46, 0.0 }
 0x60b   : > { %12610 = vmatprep.subr.bf16.mxu0 %v12609_v39  ;;  %v12611_v16 = vpack.c.bf16 %v23791_v44, %v23790_v38  ;;  %v13211_v19 = vpack.c.bf16 %v23795_v62, %v23793_v49  ;;  %v23798_v39 = vld [vmem:[#allocation216_spill] sm:$0xff]  ;;  %v23803_v38 = vand.u32 4294901760, %v23802_v41  ;;  %v23804_v44 = vld [vmem:[#allocation83_spill] sm:$0xff]  ;;  %v23809_v15 = vand.u32 4294901760, %v18245_v36 }
 0x60c   : > { %v6423_v23 = vmax.f32 %v23798_v39, 0.0  ;;  %13210 = vmatprep.subr.bf16.mxu1 %v13209_v10  ;;  %v23805_v62 = vand.u32 4294901760, %v23804_v44  ;;  %v23807_v39 = vand.u32 4294901760, %v18243_v34  ;;  %v8067_v14 = vand.u32 4294901760, %v6421_v24 }
 0x60d   : > { %12612 = vmatpush1.bf16.msra.mxu0 %v12611_v16  ;;  %v6893_v63 = vsub.f32 %v23802_v41, %v23803_v38  ;;  %v18879_v10 = vsub.f32 %v18245_v36, %v23809_v15  ;;  %v23811_v16 = vld [vmem:[#allocation264_spill] sm:$0xff]  ;;  %13212 = vmatpush1.bf16.msra.mxu1 %v13211_v19  ;;  %v6882_v57 = vand.u32 4294901760, %v6881_v53  ;;  %v8071_v27 = vand.u32 4294901760, %v6425_v25 }
 0x60e   : > { %v9607_v49 = vsub.f32 %v23804_v44, %v23805_v62  ;;  %v18874_v51 = vsub.f32 %v18243_v34, %v23807_v39  ;;  %v23812_v38 = vld [vmem:[#allocation152_spill] sm:$0xff]  ;;  %v23813_v44 = vld [vmem:[#allocation102_spill] sm:$0xff]  ;;  %v18887_v34 = vand.u32 4294901760, %v6390_v33  ;;  %v10793_v37 = vand.u32 4294901760, %v6423_v23 }
 0x60f   : > { %23810 = vst [vmem:[#allocation215_spill] sm:$0xff] %v18879_v10  ;;  %v6392_v41 = vmax.f32 %v23812_v38, 0.0  ;;  %v6894_v62 = vand.u32 4294901760, %v6893_v63  ;;  %v23814_v46 = vand.u32 4294901760, %v23813_v44  ;;  %v6427_v35 = vmax.f32 %v23817_v0, 0.0  ;;  %v23862_v10 = vld [vmem:[#allocation232_spill] sm:$0xff] }
 0x610   : > { %23808 = vst [vmem:[#allocation229_spill] sm:$0xff] %v18874_v51  ;;  %23816 = vst [vmem:[#allocation234_spill] sm:$0xff] %v18887_v34  ;;  %v9608_v36 = vand.u32 4294901760, %v9607_v49  ;;  %v18891_v38 = vsub.f32 %v6421_v24, %v8067_v14  ;;  %v18893_v53 = vpack.c.bf16 %v8071_v27, %v8067_v14  ;;  %v18895_v63 = vsub.f32 %v6425_v25, %v8071_v27  ;;  %v23827_v14 = vld [vmem:[#allocation261_spill] sm:$0xff]  ;;  %v23839_v27 = vld [vmem:[#allocation287_spill] sm:$0xff] }
 0x611   : > { %v9619_v13 = vsub.f32 %v23813_v44, %v23814_v46  ;;  %v12613_v15 = vpack.c.bf16 %v6894_v62, %v6882_v57  ;;  %v23821_v46 = vand.u32 4294901760, %v23811_v16  ;;  %v18902_v44 = vand.u32 4294901760, %v6392_v41  ;;  %v23829_v62 = vld [vmem:[#allocation269_spill] sm:$0xff] }
 0x612   : > { %23818 = vst [vmem:[#allocation235_spill] sm:$0xff] %v18891_v38  ;;  %23819 = vst [vmem:[#allocation258_spill] sm:$0xff] %v18893_v53  ;;  %v23824_v0 = vand.u32 4294901760, %v23815_v40  ;;  %v18910_v24 = vsub.f32 %v6390_v33, %v18887_v34  ;;  %v23828_v25 = vand.u32 4294901760, %v23827_v14  ;;  %v18918_v53 = vsub.f32 %v6423_v23, %v10793_v37  ;;  %v23838_v34 = vld [vmem:[#allocation281_spill] sm:$0xff]  ;;  %v23840_v14 = vld [vmem:[#allocation98_spill] sm:$0xff] }
 0x613   : > { %v9620_v12 = vand.u32 4294901760, %v9619_v13  ;;  %23820 = vst [vmem:[#allocation151_spill] sm:$0xff] %v18895_v63  ;;  %v18900_v39 = vsub.f32 %v23811_v16, %v23821_v46  ;;  %23823 = vst [vmem:[#allocation221_spill] sm:$0xff] %v18902_v44  ;;  %12614 = vmatprep.subr.bf16.mxu0 %v12613_v15  ;;  %v10797_v13 = vand.u32 4294901760, %v6427_v35  ;;  %v23830_v46 = vand.u32 4294901760, %v23829_v62  ;;  %v23834_v15 = vld [vmem:[#allocation262_spill] sm:$0xff] }
 0x614   : > { %v18907_v49 = vsub.f32 %v23815_v40, %v23824_v0  ;;  %23826 = vst [vmem:[#allocation222_spill] sm:$0xff] %v18910_v24  ;;  %23831 = vst [vmem:[#allocation261_spill] sm:$0xff] %v18918_v53  ;;  %v23835_v0 = vand.u32 4294901760, %v23834_v15  ;;  %v23836_v40 = vld [vmem:[#allocation270_spill] sm:$0xff]  ;;  %v23841_v62 = vand.u32 4294901760, %v23840_v14 }
 0x615   : > { %23822 = vst [vmem:[#allocation216_spill] sm:$0xff] %v18900_v39  ;;  %v13213_v57 = vpack.c.bf16 %v9620_v12, %v9608_v36  ;;  %v12615_v19 = vpack.c.bf16 %v23830_v46, %v23828_v25  ;;  %v18920_v36 = vpack.c.bf16 %v10797_v13, %v10793_v37  ;;  %v18922_v12 = vsub.f32 %v6427_v35, %v10797_v13  ;;  %v23842_v25 = vld [vmem:[#allocation116_spill] sm:$0xff]  ;;  %v23845_v46 = vld [vmem:[#allocation101_spill] sm:$0xff] }
 0x616   : > { %23825 = vst [vmem:[#allocation152_spill] sm:$0xff] %v18907_v49  ;;  %v23837_v33 = vand.u32 4294901760, %v23836_v40  ;;  %v6905_v23 = vsub.f32 %v23840_v14, %v23841_v62  ;;  %v18938_v13 = vsub.f32 %v6392_v41, %v18902_v44  ;;  %v23846_v15 = vand.u32 4294901760, %v23845_v46  ;;  %v23848_v62 = vld [vmem:[#allocation159_spill] sm:$0xff]  ;;  %v23867_v35 = vld [vmem:[#allocation160_spill] sm:$0xff] }
 0x617   : > { %13214 = vmatprep.subr.bf16.mxu1 %v13213_v57  ;;  %23832 = vst [vmem:[#allocation269_spill] sm:$0xff] %v18920_v36  ;;  %23833 = vst [vmem:[#allocation311_spill] sm:$0xff] %v18922_v12  ;;  %12616 = vmatpush1.bf16.msra.mxu0 %v12615_v19  ;;  %v23843_v57 = vand.u32 4294901760, %v23842_v25  ;;  %v6394_v63 = vmax.f32 %v23848_v62, 0.0  ;;  %v23852_v40 = vand.u32 4294901760, %v23838_v34  ;;  %v23860_v49 = vld [vmem:[#allocation283_spill] sm:$0xff] }
 0x618   : > { %v13215_v16 = vpack.c.bf16 %v23837_v33, %v23835_v0  ;;  %23844 = vst [vmem:[#allocation262_spill] sm:$0xff] %v18938_v13  ;;  %v9631_v19 = vsub.f32 %v23845_v46, %v23846_v15  ;;  %v6906_v51 = vand.u32 4294901760, %v6905_v23  ;;  %v23854_v33 = vand.u32 4294901760, %v23839_v27  ;;  %v23856_v46 = vld [vmem:[#allocation157_spill] sm:$0xff]  ;;  %v23885_v41 = vld [vmem:[#allocation243_spill] sm:$0xff] }
 0x619   : > { %v6917_v37 = vsub.f32 %v23842_v25, %v23843_v57  ;;  %v23850_v25 = vld [vmem:[#allocation117_spill] sm:$0xff]  ;;  %v18956_v15 = vsub.f32 %v23838_v34, %v23852_v40  ;;  %v23857_v12 = vand.u32 4294901760, %v23856_v46  ;;  %v18970_v34 = vand.u32 4294901760, %v6394_v63  ;;  %v23868_v46 = vld [vmem:[#allocation120_spill] sm:$0xff] }
 0x61a   : > { %13216 = vmatpush1.bf16.msra.mxu1 %v13215_v16  ;;  %v23851_v14 = vand.u32 4294901760, %v23850_v25  ;;  %v18961_v23 = vsub.f32 %v23839_v27, %v23854_v33  ;;  %v9632_v57 = vand.u32 4294901760, %v9631_v19  ;;  %v6429_v33 = vmax.f32 %v23862_v10, 0.0  ;;  %v23863_v27 = vld [vmem:[#allocation279_spill] sm:$0xff]  ;;  %v23880_v10 = vld [vmem:[#allocation288_spill] sm:$0xff]  ;;  %v23887_v0 = vld [vmem:[#allocation289_spill] sm:$0xff] }
 0x61b   : > { %v6918_v36 = vand.u32 4294901760, %v6917_v37  ;;  %23853 = vst [vmem:[#allocation270_spill] sm:$0xff] %v18956_v15  ;;  %23861 = vst [vmem:[#allocation157_spill] sm:$0xff] %v18970_v34  ;;  %v23864_v38 = vand.u32 4294901760, %v23863_v27  ;;  %v23865_v37 = vld [vmem:[#allocation286_spill] sm:$0xff]  ;;  %v6396_v19 = vmax.f32 %v23867_v35, 0.0 }
 0x61c   : > { %v9643_v16 = vsub.f32 %v23850_v25, %v23851_v14  ;;  %23855 = vst [vmem:[#allocation159_spill] sm:$0xff] %v18961_v23  ;;  %v23858_v14 = vld [vmem:[#allocation280_spill] sm:$0xff]  ;;  %v23869_v13 = vand.u32 4294901760, %v23868_v46  ;;  %v23872_v27 = vld [vmem:[#allocation233_spill] sm:$0xff]  ;;  %v23881_v23 = vld [vmem:[#allocation110_spill] sm:$0xff] }
 0x61d   : > { %v12617_v62 = vpack.c.bf16 %v6918_v36, %v6906_v51  ;;  %v23859_v25 = vand.u32 4294901760, %v23858_v14  ;;  %v23866_v51 = vand.u32 4294901760, %v23865_v37  ;;  %v6431_v24 = vmax.f32 %v23872_v27, 0.0  ;;  %v23873_v37 = vld [vmem:[#allocation121_spill] sm:$0xff] }
 0x61e   : > { %v9644_v44 = vand.u32 4294901760, %v9643_v16  ;;  %v6400_v15 = vmax.f32 %v23881_v23, 0.0 }
 0x61f   : > { %v12619_v53 = vpack.c.bf16 %v23859_v25, %v23857_v12  ;;  %12618 = vmatprep.subr.bf16.mxu0 %v12617_v62  ;;  %v13219_v36 = vpack.c.bf16 %v23866_v51, %v23864_v38  ;;  %v6929_v12 = vsub.f32 %v23868_v46, %v23869_v13  ;;  %v23870_v25 = vld [vmem:[#allocation132_spill] sm:$0xff]  ;;  %v23874_v38 = vand.u32 4294901760, %v23873_v37  ;;  %v23876_v13 = vld [vmem:[#allocation133_spill] sm:$0xff] }
 0x620   : > { %v13217_v16 = vpack.c.bf16 %v9644_v44, %v9632_v57  ;;  %v23871_v14 = vand.u32 4294901760, %v23870_v25  ;;  %v23875_v44 = vld [vmem:[#allocation108_spill] sm:$0xff]  ;;  %v23877_v46 = vand.u32 4294901760, %v23876_v13 }
 0x621   : > { %12620 = vmatpush1.bf16.msra.mxu0 %v12619_v53  ;;  %v9655_v35 = vsub.f32 %v23873_v37, %v23874_v38  ;;  %v6398_v53 = vmax.f32 %v23875_v44, 0.0  ;;  %v6930_v57 = vand.u32 4294901760, %v6929_v12  ;;  %v23882_v12 = vld [vmem:[#allocation242_spill] sm:$0xff]  ;;  %v19003_v37 = vsub.f32 %v6394_v63, %v18970_v34 }
 0x622   : > { %v6941_v40 = vsub.f32 %v23870_v25, %v23871_v14  ;;  %13218 = vmatprep.subr.bf16.mxu1 %v13217_v16  ;;  %v9667_v39 = vsub.f32 %v23876_v13, %v23877_v46  ;;  %v23878_v14 = vand.u32 4294901760, %v23860_v49  ;;  %v8075_v25 = vand.u32 4294901760, %v6429_v33 }
 0x623   : > { %13220 = vmatpush1.bf16.msra.mxu1 %v13219_v36  ;;  %v9656_v44 = vand.u32 4294901760, %v9655_v35  ;;  %23883 = vst [vmem:[#allocation232_spill] sm:$0xff] %v19003_v37  ;;  %v19005_v46 = vand.u32 4294901760, %v6396_v19  ;;  %v10801_v13 = vand.u32 4294901760, %v6431_v24  ;;  %v23888_v36 = vand.u32 4294901760, %v23887_v0  ;;  %v23897_v0 = vld [vmem:[#allocation290_spill] sm:$0xff] }
 0x624   : > { %v6942_v51 = vand.u32 4294901760, %v6941_v40  ;;  %v18997_v62 = vsub.f32 %v23860_v49, %v23878_v14  ;;  %v9668_v16 = vand.u32 4294901760, %v9667_v39  ;;  %v6433_v40 = vmax.f32 %v23882_v12, 0.0 }
 0x625   : > { %23884 = vst [vmem:[#allocation279_spill] sm:$0xff] %v19005_v46  ;;  %v6435_v14 = vmax.f32 %v23885_v41, 0.0  ;;  %v19008_v49 = vand.u32 4294901760, %v6398_v53  ;;  %v19019_v12 = vand.u32 4294901760, %v6400_v15  ;;  %v19021_v34 = vsub.f32 %v6429_v33, %v8075_v25 }
 0x626   : > { %23879 = vst [vmem:[#allocation280_spill] sm:$0xff] %v18997_v62  ;;  %v12621_v38 = vpack.c.bf16 %v6942_v51, %v6930_v57  ;;  %v13221_v27 = vpack.c.bf16 %v9668_v16, %v9656_v44  ;;  %v8079_v23 = vand.u32 4294901760, %v6433_v40  ;;  %v23889_v57 = vld [vmem:[#allocation294_spill] sm:$0xff]  ;;  %v23891_v51 = vand.u32 4294901760, %v23880_v10 }
 0x627   : > { %23886 = vst [vmem:[#allocation286_spill] sm:$0xff] %v19008_v49  ;;  %v23890_v35 = vand.u32 4294901760, %v23889_v57  ;;  %23893 = vst [vmem:[#allocation233_spill] sm:$0xff] %v19019_v12  ;;  %v10805_v41 = vand.u32 4294901760, %v6435_v14  ;;  %v23898_v16 = vand.u32 4294901760, %v23897_v0  ;;  %v23910_v0 = vld [vmem:[#allocation174_spill] sm:$0xff] }
 0x628   : > { %12622 = vmatprep.subr.bf16.mxu0 %v12621_v38  ;;  %v19017_v63 = vsub.f32 %v23880_v10, %v23891_v51  ;;  %23894 = vst [vmem:[#allocation108_spill] sm:$0xff] %v19021_v34  ;;  %13222 = vmatprep.subr.bf16.mxu1 %v13221_v27  ;;  %v19024_v38 = vpack.c.bf16 %v8079_v23, %v8075_v25 }
 0x629   : > { %v12623_v39 = vpack.c.bf16 %v23890_v35, %v23888_v36  ;;  %v19026_v44 = vsub.f32 %v6433_v40, %v8079_v23  ;;  %v23899_v36 = vld [vmem:[#allocation295_spill] sm:$0xff]  ;;  %v19032_v51 = vsub.f32 %v6431_v24, %v10801_v13  ;;  %v19034_v10 = vpack.c.bf16 %v10805_v41, %v10801_v13 }
 0x62a   : > { %23892 = vst [vmem:[#allocation160_spill] sm:$0xff] %v19017_v63  ;;  %23895 = vst [vmem:[#allocation110_spill] sm:$0xff] %v19024_v38  ;;  %v23900_v57 = vand.u32 4294901760, %v23899_v36  ;;  %v19036_v33 = vsub.f32 %v6435_v14, %v10805_v41  ;;  %v6953_v27 = vsub.f32 %v23904_v22, %v23905_v4  ;;  %v19042_v25 = vsub.f32 %v6396_v19, %v19005_v46  ;;  %v23909_v41 = vld [vmem:[#allocation173_spill] sm:$0xff] }
 0x62b   : > { %23896 = vst [vmem:[#allocation242_spill] sm:$0xff] %v19026_v44  ;;  %12624 = vmatpush1.bf16.msra.mxu0 %v12623_v39  ;;  %23901 = vst [vmem:[#allocation243_spill] sm:$0xff] %v19032_v51  ;;  %v19045_v40 = vsub.f32 %v6398_v53, %v19008_v49  ;;  %v23908_v24 = vand.u32 4294901760, %v23670_v54  ;;  %v6402_v4 = vmax.f32 %v23909_v41, 0.0  ;;  %v6404_v53 = vmax.f32 %v23910_v0, 0.0 }
 0x62c   : > { %v13223_v35 = vpack.c.bf16 %v23900_v57, %v23898_v16  ;;  %23902 = vst [vmem:[#allocation289_spill] sm:$0xff] %v19034_v10  ;;  %23903 = vst [vmem:[#allocation294_spill] sm:$0xff] %v19036_v33  ;;  %v6954_v16 = vand.u32 4294901760, %v6953_v27  ;;  %v23911_v57 = vld [vmem:[#allocation139_spill] sm:$0xff]  ;;  %v19068_v41 = vsub.f32 %v6400_v15, %v19019_v12  ;;  %v23916_v19 = vand.u32 4294901760, %v23675_v47 }
 0x62d   : > { %23906 = vst [vmem:[#allocation290_spill] sm:$0xff] %v19042_v25  ;;  %23907 = vst [vmem:[#allocation295_spill] sm:$0xff] %v19045_v40  ;;  %v6965_v13 = vsub.f32 %v23670_v54, %v23908_v24  ;;  %v23912_v23 = vand.u32 4294901760, %v23911_v57  ;;  %v23913_v24 = vand.u32 4294901760, %v18541_v59  ;;  %v19079_v10 = vsub.f32 %v18558_v31, %v23917_v9 }
 0x62e   : > { %13224 = vmatpush1.bf16.msra.mxu1 %v13223_v35  ;;  %23915 = vst [vmem:[#allocation174_spill] sm:$0xff] %v19068_v41  ;;  %v9691_v0 = vsub.f32 %v23675_v47, %v23916_v19  ;;  %v19083_v38 = vand.u32 4294901760, %v6404_v53  ;;  %v23921_v19 = vld [vmem:[#allocation248_spill] sm:$0xff]  ;;  %v23922_v27 = vand.u32 4294901760, %v18507_v1  ;;  %v23926_v40 = vand.u32 4294901760, %v23676_v20  ;;  %v23927_v1 = vld [vmem:[#allocation249_spill] sm:$0xff] }
 0x62f   : > { %v6966_v36 = vand.u32 4294901760, %v6965_v13  ;;  %v9679_v35 = vsub.f32 %v23911_v57, %v23912_v23  ;;  %v19065_v14 = vsub.f32 %v18541_v59, %v23913_v24  ;;  %23918 = vst [vmem:[#allocation312_spill] sm:$0xff] %v19079_v10  ;;  %v19081_v24 = vand.u32 4294901760, %v6402_v4  ;;  %v23938_v41 = vld [vmem:[#allocation260_spill] sm:$0xff] }
 0x630   : > { %v9692_v59 = vand.u32 4294901760, %v9691_v0  ;;  %23920 = vst [vmem:[#allocation314_spill] sm:$0xff] %v19083_v38  ;;  %v6437_v62 = vmax.f32 %v23921_v19, 0.0  ;;  %v23923_v13 = vand.u32 4294901760, %v18517_v3  ;;  %v6439_v63 = vmax.f32 %v23927_v1, 0.0 }
 0x631   : > { %23914 = vst [vmem:[#allocation173_spill] sm:$0xff] %v19065_v14  ;;  %v12625_v39 = vpack.c.bf16 %v6966_v36, %v6954_v16  ;;  %23919 = vst [vmem:[#allocation313_spill] sm:$0xff] %v19081_v24  ;;  %v9680_v15 = vand.u32 4294901760, %v9679_v35  ;;  %v23924_v16 = vand.u32 4294901760, %v18512_v18  ;;  %v23925_v36 = vand.u32 4294901760, %v18524_v55  ;;  %v23941_v35 = vld [vmem:[#allocation188_spill] sm:$0xff] }
 0x632   : > { %v12627_v23 = vpack.c.bf16 %v23923_v13, %v23922_v27  ;;  %v23928_v3 = vand.u32 4294901760, %v23693_v32  ;;  %v23929_v55 = vand.u32 4294901760, %v23681_v17  ;;  %v8083_v1 = vand.u32 4294901760, %v6437_v62 }
 0x633   : > { %12626 = vmatprep.subr.bf16.mxu0 %v12625_v39  ;;  %v13227_v9 = vpack.c.bf16 %v23925_v36, %v23924_v16  ;;  %v13225_v0 = vpack.c.bf16 %v9692_v59, %v9680_v15  ;;  %v6977_v39 = vsub.f32 %v23676_v20, %v23926_v40  ;;  %v19109_v59 = vsub.f32 %v6402_v4, %v19081_v24  ;;  %v23931_v15 = vld [vmem:[#allocation181_spill] sm:$0xff]  ;;  %v23935_v4 = vld [vmem:[#allocation259_spill] sm:$0xff] }
 0x634   : > { %12628 = vmatpush1.bf16.msra.mxu0 %v12627_v23  ;;  %v6989_v18 = vsub.f32 %v23693_v32, %v23928_v3  ;;  %v9703_v27 = vsub.f32 %v23681_v17, %v23929_v55  ;;  %v6406_v40 = vmax.f32 %v23931_v15, 0.0  ;;  %v23932_v16 = vand.u32 4294901760, %v23702_v48  ;;  %v23934_v55 = vld [vmem:[#allocation303_spill] sm:$0xff] }
 0x635   : > { %23930 = vst [vmem:[#allocation248_spill] sm:$0xff] %v19109_v59  ;;  %13226 = vmatprep.subr.bf16.mxu1 %v13225_v0  ;;  %v19116_v36 = vsub.f32 %v6404_v53, %v19083_v38  ;;  %v6978_v3 = vand.u32 4294901760, %v6977_v39  ;;  %v6441_v10 = vmax.f32 %v23935_v4, 0.0  ;;  %v23936_v15 = vand.u32 4294901760, %v18554_v26  ;;  %v23943_v38 = vld [vmem:[#allocation304_spill] sm:$0xff] }
 0x636   : > { %v9715_v23 = vsub.f32 %v23702_v48, %v23932_v16  ;;  %13228 = vmatpush1.bf16.msra.mxu1 %v13227_v9  ;;  %v6990_v31 = vand.u32 4294901760, %v6989_v18  ;;  %v9704_v13 = vand.u32 4294901760, %v9703_v27  ;;  %v10809_v14 = vand.u32 4294901760, %v6439_v63  ;;  %v23940_v9 = vld [vmem:[#allocation182_spill] sm:$0xff] }
 0x637   : > { %23933 = vst [vmem:[#allocation249_spill] sm:$0xff] %v19116_v36  ;;  %v19123_v0 = vsub.f32 %v18554_v26, %v23936_v15  ;;  %v6443_v53 = vmax.f32 %v23938_v41, 0.0  ;;  %v19126_v25 = vand.u32 4294901760, %v6406_v40  ;;  %v6408_v39 = vmax.f32 %v23940_v9, 0.0  ;;  %v23945_v15 = vld [vmem:[#allocation154_spill] sm:$0xff] }
 0x638   : > { %v9716_v19 = vand.u32 4294901760, %v9715_v23  ;;  %v12629_v16 = vpack.c.bf16 %v6990_v31, %v6978_v3  ;;  %v8087_v37 = vand.u32 4294901760, %v6441_v10  ;;  %v6410_v27 = vmax.f32 %v23941_v35, 0.0  ;;  %v23949_v3 = vld [vmem:[#allocation305_spill] sm:$0xff] }
 0x639   : > { %23937 = vst [vmem:[#allocation181_spill] sm:$0xff] %v19123_v0  ;;  %23939 = vst [vmem:[#allocation259_spill] sm:$0xff] %v19126_v25  ;;  %v19130_v23 = vsub.f32 %v6437_v62, %v8083_v1  ;;  %v10813_v4 = vand.u32 4294901760, %v6443_v53  ;;  %v23944_v12 = vand.u32 4294901760, %v23943_v38  ;;  %v23946_v26 = vand.u32 4294901760, %v23945_v15 }
 0x63a   : > { %v13229_v18 = vpack.c.bf16 %v9716_v19, %v9704_v13  ;;  %12630 = vmatprep.subr.bf16.mxu0 %v12629_v16  ;;  %v19136_v31 = vpack.c.bf16 %v8087_v37, %v8083_v1  ;;  %v19138_v41 = vsub.f32 %v6441_v10, %v8087_v37  ;;  %v23950_v9 = vand.u32 4294901760, %v23949_v3  ;;  %v23951_v19 = vld [vmem:[#allocation309_spill] sm:$0xff] }
 0x63b   : > { %23942 = vst [vmem:[#allocation260_spill] sm:$0xff] %v19130_v23  ;;  %v12631_v24 = vpack.c.bf16 %v23946_v26, %v23944_v12  ;;  %v23952_v13 = vand.u32 4294901760, %v23951_v19  ;;  %v23953_v62 = vand.u32 4294901760, %v23727_v2  ;;  %v23954_v16 = vand.u32 4294901760, %v23934_v55 }
 0x63c   : > { %13230 = vmatprep.subr.bf16.mxu1 %v13229_v18  ;;  %23947 = vst [vmem:[#allocation182_spill] sm:$0xff] %v19136_v31  ;;  %23948 = vst [vmem:[#allocation188_spill] sm:$0xff] %v19138_v41  ;;  %v19152_v26 = vsub.f32 %v6439_v63, %v10809_v14  ;;  %v19154_v12 = vpack.c.bf16 %v10813_v4, %v10809_v14  ;;  %v19156_v10 = vsub.f32 %v6443_v53, %v10813_v4 }
 0x63d   : > { %v13231_v49 = vpack.c.bf16 %v23952_v13, %v23950_v9  ;;  %v7001_v35 = vsub.f32 %v23727_v2, %v23953_v62  ;;  %v19150_v38 = vsub.f32 %v23934_v55, %v23954_v16  ;;  %12632 = vmatpush1.bf16.msra.mxu0 %v12631_v24  ;;  %v19159_v37 = vsub.f32 %v6406_v40, %v19126_v25  ;;  %v6470_v62 = vld [vmem:[%s21873_s2 + $0x28] sm:$0xff] }
 0x63e   : > { %23956 = vst [vmem:[#allocation154_spill] sm:$0xff] %v19152_v26  ;;  %23957 = vst [vmem:[#allocation305_spill] sm:$0xff] %v19154_v12  ;;  %v19161_v1 = vand.u32 4294901760, %v6408_v39  ;;  %v23961_v15 = vand.u32 4294901760, %v23732_v42  ;;  %v19170_v53 = vand.u32 4294901760, %v6410_v27  ;;  %v23963_v9 = vand.u32 4294901760, %v23728_v58 }
 0x63f   : > { %23955 = vst [vmem:[#allocation304_spill] sm:$0xff] %v19150_v38  ;;  %23958 = vst [vmem:[#allocation309_spill] sm:$0xff] %v19156_v10  ;;  %13232 = vmatpush1.bf16.msra.mxu1 %v13231_v49  ;;  %v7002_v40 = vand.u32 4294901760, %v7001_v35  ;;  %v23964_v49 = vand.u32 4294901760, %v23733_v60  ;;  %v23965_v35 = vld [vmem:[#allocation189_spill] sm:$0xff]  ;;  %v23967_v16 = vand.u32 4294901760, %v18673_v52 }
 0x640   : > { %23959 = vst [vmem:[#allocation315_spill] sm:$0xff] %v19159_v37  ;;  %23960 = vst [vmem:[#allocation316_spill] sm:$0xff] %v19161_v1  ;;  %v7013_v3 = vsub.f32 %v23732_v42, %v23961_v15  ;;  %v9727_v19 = vsub.f32 %v23728_v58, %v23963_v9  ;;  %v6469_v9 = vld [vmem:[%s21873_s2 + $0x20] sm:$0xff]  ;;  %v19191_v18 = vsub.f32 %v6408_v39, %v19161_v1  ;;  %v23969_v24 = vand.u32 4294901760, %v18695_v61 }
 0x641   : > { %23962 = vst [vmem:[#allocation317_spill] sm:$0xff] %v19170_v53  ;;  %v9739_v13 = vsub.f32 %v23733_v60, %v23964_v49  ;;  %v19197_v15 = vsub.f32 %v18673_v52, %v23967_v16  ;;  %v19204_v12 = vand.u32 4294901760, %v6470_v62  ;;  %v24069_v60 = vld [vmem:[#allocation306_spill] sm:$0xff] }
 0x642   : > { %v7014_v4 = vand.u32 4294901760, %v7013_v3  ;;  %v6412_v3 = vmax.f32 %v23965_v35, 0.0  ;;  %23966 = vst [vmem:[#allocation189_spill] sm:$0xff] %v19191_v18  ;;  %v9728_v14 = vand.u32 4294901760, %v9727_v19  ;;  %v19202_v35 = vsub.f32 %v18695_v61, %v23969_v24 }
 0x643   : > { %v9740_v63 = vand.u32 4294901760, %v9739_v13  ;;  %23968 = vst [vmem:[#allocation318_spill] sm:$0xff] %v19197_v15  ;;  %23971 = vst [vmem:[#allocation320_spill] sm:$0xff] %v19204_v12  ;;  %v19210_v19 = vand.u32 4294901760, %v6469_v9  ;;  %v19216_v55 = vsub.f32 %v6470_v62, %v19204_v12  ;;  %v23976_v24 = vand.u32 4294901760, %v18661_v8 }
 0x644   : > { %v12633_v49 = vpack.c.bf16 %v7014_v4, %v7002_v40  ;;  %23970 = vst [vmem:[#allocation319_spill] sm:$0xff] %v19202_v35  ;;  %v19208_v40 = vsub.f32 %v6410_v27, %v19170_v53  ;;  %v19213_v16 = vand.u32 4294901760, %v6412_v3  ;;  %v23977_v61 = vand.u32 4294901760, %v18671_v45 }
 0x645   : > { %v13233_v4 = vpack.c.bf16 %v9740_v63, %v9728_v14  ;;  %23973 = vst [vmem:[#allocation322_spill] sm:$0xff] %v19210_v19  ;;  %23975 = vst [vmem:[#allocation324_spill] sm:$0xff] %v19216_v55  ;;  %v22661_v27 = vand.u32 4294901760, %v18699_v21  ;;  %v19225_v63 = vsub.f32 %v6469_v9, %v19210_v19  ;;  %v23979_v14 = vand.u32 4294901760, %v18666_v56  ;;  %v23991_v9 = vld [vmem:[#allocation199_spill] sm:$0xff] }
 0x646   : > { %23972 = vst [vmem:[#allocation321_spill] sm:$0xff] %v19208_v40  ;;  %12634 = vmatprep.subr.bf16.mxu0 %v12633_v49  ;;  %23974 = vst [vmem:[#allocation323_spill] sm:$0xff] %v19213_v16  ;;  %v12635_v52 = vpack.c.bf16 %v23977_v61, %v23976_v24  ;;  %v23980_v49 = vand.u32 4294901760, %v18693_v29  ;;  %v19234_v45 = vand.u32 4294901760, %v19216_v55  ;;  %v23982_v61 = vand.u32 4294901760, %v18048_v5  ;;  %v23983_v24 = vld [vmem:[#allocation273_spill] sm:$0xff] }
 0x647   : > { %13234 = vmatprep.subr.bf16.mxu1 %v13233_v4  ;;  %23978 = vst [vmem:[#allocation325_spill] sm:$0xff] %v19225_v63  ;;  %v6445_v39 = vmax.f32 %v23983_v24, 0.0  ;;  %v19242_v56 = vand.u32 4294901760, %v19225_v63  ;;  %v23985_v29 = vand.u32 4294901760, %v23775_v28  ;;  %v19253_v8 = vsub.f32 %v6412_v3, %v19213_v16  ;;  %v6474_v3 = vld [vmem:[%s21873_s2 + $0x48] sm:$0xff] }
 0x648   : > { %v13235_v13 = vpack.c.bf16 %v23980_v49, %v23979_v14  ;;  %23981 = vst [vmem:[#allocation326_spill] sm:$0xff] %v19234_v45  ;;  %12636 = vmatpush1.bf16.msra.mxu0 %v12635_v52  ;;  %v7025_v4 = vsub.f32 %v18048_v5, %v23982_v61  ;;  %v23986_v49 = vand.u32 4294901760, %v18681_v50  ;;  %v23989_v61 = vld [vmem:[#allocation274_spill] sm:$0xff]  ;;  %v6648_v24 = vsub.f32 %v19216_v55, %v19234_v45  ;;  %v24066_v5 = vld [vmem:[#allocation272_spill] sm:$0xff] }
 0x649   : > { %23984 = vst [vmem:[#allocation273_spill] sm:$0xff] %v19242_v56  ;;  %v7037_v14 = vsub.f32 %v23775_v28, %v23985_v29  ;;  %23988 = vst [vmem:[#allocation328_spill] sm:$0xff] %v19253_v8  ;;  %v6447_v62 = vmax.f32 %v23989_v61, 0.0  ;;  %v6414_v29 = vmax.f32 %v23991_v9, 0.0  ;;  %v6654_v31 = vsub.f32 %v19225_v63, %v19242_v56  ;;  %v6473_v9 = vld [vmem:[%s21873_s2 + $0x40] sm:$0xff] }
 0x64a   : > { %13236 = vmatpush1.bf16.msra.mxu1 %v13235_v13  ;;  %v19250_v52 = vsub.f32 %v18681_v50, %v23986_v49  ;;  %v19261_v13 = vsub.f32 %v18699_v21, %v22661_v27  ;;  %v23992_v50 = vld [vmem:[#allocation200_spill] sm:$0xff]  ;;  %v6649_v35 = vand.u32 4294901760, %v6648_v24  ;;  %v7026_v15 = vand.u32 4294901760, %v7025_v4  ;;  %v23995_v63 = vld [vmem:[#allocation285_spill] sm:$0xff]  ;;  %v23996_v4 = vld [vmem:[#allocation291_spill] sm:$0xff] }
 0x64b   : > { %v7038_v49 = vand.u32 4294901760, %v7037_v14  ;;  %v6416_v61 = vmax.f32 %v23992_v50, 0.0  ;;  %v23993_v45 = vand.u32 4294901760, %v18054_v7  ;;  %v8091_v27 = vand.u32 4294901760, %v6445_v39 }
 0x64c   : > { %23987 = vst [vmem:[#allocation327_spill] sm:$0xff] %v19250_v52  ;;  %23990 = vst [vmem:[#allocation274_spill] sm:$0xff] %v19261_v13  ;;  %v6655_v21 = vand.u32 4294901760, %v6654_v31  ;;  %v23994_v14 = vand.u32 4294901760, %v23776_v6  ;;  %v6449_v18 = vmax.f32 %v23995_v63, 0.0  ;;  %v10817_v40 = vand.u32 4294901760, %v6447_v62  ;;  %6650 = vmatprep.mubr.f32.mxu0 %v6649_v35  ;;  %9376 = vmatprep.mubr.f32.mxu1 %v6649_v35 }
 0x64d   : > { %v9751_v55 = vsub.f32 %v18054_v7, %v23993_v45  ;;  %v12637_v50 = vpack.c.bf16 %v7038_v49, %v7026_v15  ;;  %v6451_v24 = vmax.f32 %v23996_v4, 0.0  ;;  %v19281_v37 = vand.u32 4294901760, %v6474_v3  ;;  %v24031_v52 = vld [vmem:[#allocation209_spill] sm:$0xff] }
 0x64e   : > { %v9763_v56 = vsub.f32 %v23776_v6, %v23994_v14  ;;  %6656 = vmatmul.mubr.f32.gmra.mrb[104].mxu0 %v6655_v21  ;;  %9382 = vmatmul.mubr.f32.gmra.mrb[104].mxu1 %v6655_v21  ;;  %v8095_v0 = vand.u32 4294901760, %v6449_v18  ;;  %v19283_v31 = vand.u32 4294901760, %v6473_v9  ;;  %v19285_v36 = vand.u32 4294901760, %v6414_v29 }
 0x64f   : > { %23997 = vst [vmem:[#allocation199_spill] sm:$0xff] %v19281_v37  ;;  %v9752_v45 = vand.u32 4294901760, %v9751_v55  ;;  %12638 = vmatprep.subr.bf16.mxu0 %v12637_v50  ;;  %v10821_v14 = vand.u32 4294901760, %v6451_v24  ;;  %v19288_v63 = vsub.f32 %v6474_v3, %v19281_v37  ;;  %v24001_v15 = vand.u32 4294901760, %v18727_v30 }
 0x650   : > { %v9764_v38 = vand.u32 4294901760, %v9763_v56  ;;  %23998 = vst [vmem:[#allocation200_spill] sm:$0xff] %v19283_v31  ;;  %23999 = vst [vmem:[#allocation285_spill] sm:$0xff] %v19285_v36  ;;  %v24002_v35 = vand.u32 4294901760, %v18767_v11  ;;  %v19294_v4 = vsub.f32 %v6445_v39, %v8091_v27  ;;  %v19296_v55 = vpack.c.bf16 %v8095_v0, %v8091_v27 }
 0x651   : > { %24000 = vst [vmem:[#allocation291_spill] sm:$0xff] %v19288_v63  ;;  %v19298_v56 = vsub.f32 %v6449_v18, %v8095_v0  ;;  %v19300_v59 = vsub.f32 %v6447_v62, %v10817_v40  ;;  %v19302_v16 = vpack.c.bf16 %v10821_v14, %v10817_v40  ;;  %v19304_v50 = vsub.f32 %v6451_v24, %v10821_v14  ;;  %v24012_v62 = vld [vmem:[#allocation190_spill] sm:$0xff]  ;;  %v24020_v40 = vld [vmem:[#allocation227_spill] sm:$0xff] }
 0x652   : > { %v12639_v49 = vpack.c.bf16 %v24002_v35, %v24001_v15  ;;  %24003 = vst [vmem:[#allocation329_spill] sm:$0xff] %v19294_v4  ;;  %v13237_v21 = vpack.c.bf16 %v9764_v38, %v9752_v45  ;;  %24004 = vst [vmem:[#allocation330_spill] sm:$0xff] %v19296_v55  ;;  %v19307_v3 = vand.u32 4294901760, %v19288_v63  ;;  %v19310_v11 = vand.u32 4294901760, %v6416_v61  ;;  %v24017_v35 = vld [vmem:[#allocation193_spill] sm:$0xff]  ;;  %v24019_v38 = vld [vmem:[#allocation208_spill] sm:$0xff] }
 0x653   : > { %24005 = vst [vmem:[#allocation331_spill] sm:$0xff] %v19298_v56  ;;  %24006 = vst [vmem:[#allocation332_spill] sm:$0xff] %v19300_v59  ;;  %v19315_v0 = vsub.f32 %v6473_v9, %v19283_v31  ;;  %v19325_v45 = vsub.f32 %v6414_v29, %v19285_v36  ;;  %v24015_v9 = vld [vmem:[#allocation176_spill] sm:$0xff]  ;;  %v6418_v18 = vmax.f32 %v24019_v38, 0.0  ;;  %v24021_v39 = vand.u32 4294901760, %v24020_v40 }
 0x654   : > { %24007 = vst [vmem:[#allocation333_spill] sm:$0xff] %v19302_v16  ;;  %24008 = vst [vmem:[#allocation334_spill] sm:$0xff] %v19304_v50  ;;  %12640 = vmatpush1.bf16.msra.mxu0 %v12639_v49  ;;  %13238 = vmatprep.subr.bf16.mxu1 %v13237_v21  ;;  %v6664_v27 = vsub.f32 %v19288_v63, %v19307_v3  ;;  %v24016_v15 = vand.u32 4294901760, %v24015_v9  ;;  %v24018_v49 = vand.u32 4294901760, %v24017_v35  ;;  %v24022_v55 = vld [vmem:[#allocation244_spill] sm:$0xff]  ;;  %v24025_v35 = vld [vmem:[#allocation230_spill] sm:$0xff] }
 0x655   : > { %24009 = vst [vmem:[#allocation335_spill] sm:$0xff] %v19307_v3  ;;  %24010 = vst [vmem:[#allocation336_spill] sm:$0xff] %v19310_v11  ;;  %v19328_v14 = vand.u32 4294901760, %v19315_v0  ;;  %v7049_v16 = vsub.f32 %v24020_v40, %v24021_v39  ;;  %v24023_v24 = vand.u32 4294901760, %v24022_v55  ;;  %v19342_v3 = vsub.f32 %v6416_v61, %v19310_v11  ;;  %v6478_v39 = vld [vmem:[%s21873_s2 + $0x68] sm:$0xff] }
 0x656   : > { %24011 = vst [vmem:[#allocation337_spill] sm:$0xff] %v19315_v0  ;;  %24013 = vst [vmem:[#allocation338_spill] sm:$0xff] %v19325_v45  ;;  %v13239_v21 = vpack.c.bf16 %v24018_v49, %v24016_v15  ;;  %v6665_v30 = vand.u32 4294901760, %v6664_v27  ;;  %v24026_v15 = vand.u32 4294901760, %v24025_v35  ;;  %v24027_v27 = vld [vmem:[#allocation245_spill] sm:$0xff]  ;;  %v6459_v58 = vmax.f32 %v24069_v60, 0.0 }
 0x657   : > { %24014 = vst [vmem:[#allocation339_spill] sm:$0xff] %v19328_v14  ;;  %v7061_v29 = vsub.f32 %v24022_v55, %v24023_v24  ;;  %24024 = vst [vmem:[#allocation176_spill] sm:$0xff] %v19342_v3  ;;  %v6670_v9 = vsub.f32 %v19315_v0, %v19328_v14  ;;  %v24028_v49 = vand.u32 4294901760, %v24027_v27  ;;  %v24029_v24 = vand.u32 4294901760, %v18788_v43  ;;  %v24047_v3 = vld [vmem:[#allocation212_spill] sm:$0xff] }
 0x658   : > { %13240 = vmatpush1.bf16.msra.mxu1 %v13239_v21  ;;  %v9775_v38 = vsub.f32 %v24025_v35, %v24026_v15  ;;  %v6420_v14 = vmax.f32 %v24031_v52, 0.0  ;;  %6666 = vmatprep.mubr.f32.mxu0 %v6665_v30  ;;  %v7050_v21 = vand.u32 4294901760, %v7049_v16  ;;  %v6477_v15 = vld [vmem:[%s21873_s2 + $0x60] sm:$0xff]  ;;  %v24075_v60 = vld [vmem:[#allocation216_spill] sm:$0xff] }
 0x659   : > { %v9787_v63 = vsub.f32 %v24027_v27, %v24028_v49  ;;  %v19358_v61 = vsub.f32 %v18788_v43, %v24029_v24  ;;  %9392 = vmatprep.mubr.f32.mxu1 %v6665_v30  ;;  %v7062_v0 = vand.u32 4294901760, %v7061_v29  ;;  %v24032_v49 = vand.u32 4294901760, %v24012_v62  ;;  %v24042_v24 = vld [vmem:[#allocation207_spill] sm:$0xff]  ;;  %v24055_v29 = vld [vmem:[#allocation125_spill] sm:$0xff] }
 0x65a   : > { %v6671_v11 = vand.u32 4294901760, %v6670_v9  ;;  %v9776_v36 = vand.u32 4294901760, %v9775_v38  ;;  %v19370_v43 = vand.u32 4294901760, %v6418_v18  ;;  %v19372_v30 = vand.u32 4294901760, %v6478_v39 }
 0x65b   : > { %24030 = vst [vmem:[#allocation193_spill] sm:$0xff] %v19358_v61  ;;  %v19367_v8 = vsub.f32 %v24012_v62, %v24032_v49  ;;  %v9788_v1 = vand.u32 4294901760, %v9787_v63  ;;  %v12641_v52 = vpack.c.bf16 %v7062_v0, %v7050_v21  ;;  %v19376_v25 = vand.u32 4294901760, %v6477_v15  ;;  %v24037_v49 = vld [vmem:[#allocation196_spill] sm:$0xff]  ;;  %v24040_v0 = vld [vmem:[#allocation195_spill] sm:$0xff]  ;;  %v24063_v61 = vld [vmem:[#allocation218_spill] sm:$0xff] }
 0x65c   : > { %24034 = vst [vmem:[#allocation209_spill] sm:$0xff] %v19370_v43  ;;  %24035 = vst [vmem:[#allocation340_spill] sm:$0xff] %v19372_v30  ;;  %6672 = vmatmul.mubr.f32.gmra.mrb[106].mxu0 %v6671_v11  ;;  %9398 = vmatmul.mubr.f32.gmra.mrb[106].mxu1 %v6671_v11  ;;  %v19379_v38 = vand.u32 4294901760, %v6420_v14  ;;  %v19382_v63 = vsub.f32 %v6478_v39, %v19372_v30  ;;  %v24041_v21 = vand.u32 4294901760, %v24040_v0  ;;  %v24043_v62 = vand.u32 4294901760, %v24042_v24  ;;  %v24050_v0 = vld [vmem:[#allocation299_spill] sm:$0xff] }
 0x65d   : > { %24033 = vst [vmem:[#allocation208_spill] sm:$0xff] %v19367_v8  ;;  %v13241_v53 = vpack.c.bf16 %v9788_v1, %v9776_v36  ;;  %24036 = vst [vmem:[#allocation341_spill] sm:$0xff] %v19376_v25  ;;  %12642 = vmatprep.subr.bf16.mxu0 %v12641_v52  ;;  %v19391_v36 = vsub.f32 %v6477_v15, %v19376_v25  ;;  %v24045_v1 = vld [vmem:[#allocation179_spill] sm:$0xff]  ;;  %v24048_v52 = vand.u32 4294901760, %v24047_v3  ;;  %v6453_v13 = vmax.f32 %v24050_v0, 0.0  ;;  %v24052_v24 = vld [vmem:[#allocation254_spill] sm:$0xff] }
 0x65e   : > { %24038 = vst [vmem:[#allocation342_spill] sm:$0xff] %v19379_v38  ;;  %24039 = vst [vmem:[#allocation343_spill] sm:$0xff] %v19382_v63  ;;  %v12643_v16 = vpack.c.bf16 %v24043_v62, %v24041_v21  ;;  %v24046_v9 = vand.u32 4294901760, %v24045_v1  ;;  %v19398_v39 = vsub.f32 %v6418_v18, %v19370_v43  ;;  %v19402_v62 = vand.u32 4294901760, %v19382_v63  ;;  %v24054_v15 = vld [vmem:[#allocation206_spill] sm:$0xff]  ;;  %v24057_v18 = vld [vmem:[#allocation271_spill] sm:$0xff] }
 0x65f   : > { %13242 = vmatprep.subr.bf16.mxu1 %v13241_v53  ;;  %24044 = vst [vmem:[#allocation195_spill] sm:$0xff] %v19391_v36  ;;  %v24053_v21 = vand.u32 4294901760, %v24052_v24  ;;  %v6455_v1 = vmax.f32 %v24055_v29, 0.0  ;;  %v19410_v3 = vand.u32 4294901760, %v19391_v36  ;;  %v24059_v0 = vand.u32 4294901760, %v24037_v49 }
 0x660   : > { %v13243_v45 = vpack.c.bf16 %v24048_v52, %v24046_v9  ;;  %24049 = vst [vmem:[#allocation207_spill] sm:$0xff] %v19398_v39  ;;  %24051 = vst [vmem:[#allocation179_spill] sm:$0xff] %v19402_v62  ;;  %12644 = vmatpush1.bf16.msra.mxu0 %v12643_v16  ;;  %v24058_v9 = vand.u32 4294901760, %v24057_v18  ;;  %v19421_v8 = vsub.f32 %v6420_v14, %v19379_v38  ;;  %v6424_v43 = vmax.f32 %v24063_v61, 0.0  ;;  %v24064_v14 = vld [vmem:[#allocation255_spill] sm:$0xff]  ;;  %v6481_v61 = vld [vmem:[%s21873_s2 + $0x80] sm:$0xff] }
 0x661   : > { %v7073_v53 = vsub.f32 %v24052_v24, %v24053_v21  ;;  %24056 = vst [vmem:[#allocation212_spill] sm:$0xff] %v19410_v3  ;;  %v19418_v16 = vsub.f32 %v24037_v49, %v24059_v0  ;;  %v24062_v21 = vld [vmem:[#allocation217_spill] sm:$0xff]  ;;  %v6680_v29 = vsub.f32 %v19382_v63, %v19402_v62  ;;  %v6482_v0 = vld [vmem:[%s21873_s2 + $0x88] sm:$0xff]  ;;  %v8099_v49 = vand.u32 4294901760, %v6453_v13 }
 0x662   : > { %13244 = vmatpush1.bf16.msra.mxu1 %v13243_v45  ;;  %v7085_v52 = vsub.f32 %v24057_v18, %v24058_v9  ;;  %24061 = vst [vmem:[#allocation125_spill] sm:$0xff] %v19421_v8  ;;  %v6422_v11 = vmax.f32 %v24062_v21, 0.0  ;;  %v6686_v45 = vsub.f32 %v19391_v36, %v19410_v3  ;;  %v24065_v38 = vand.u32 4294901760, %v24064_v14  ;;  %v24068_v36 = vld [vmem:[#allocation127_spill] sm:$0xff] }
 0x663   : > { %24060 = vst [vmem:[#allocation299_spill] sm:$0xff] %v19418_v16  ;;  %v7074_v46 = vand.u32 4294901760, %v7073_v53  ;;  %v6681_v28 = vand.u32 4294901760, %v6680_v29  ;;  %v24067_v18 = vand.u32 4294901760, %v24066_v5  ;;  %v10825_v53 = vand.u32 4294901760, %v6455_v1 }
 0x664   : > { %v7086_v9 = vand.u32 4294901760, %v7085_v52  ;;  %v9799_v21 = vsub.f32 %v24064_v14, %v24065_v38  ;;  %v6687_v52 = vand.u32 4294901760, %v6686_v45  ;;  %v6457_v63 = vmax.f32 %v24068_v36, 0.0 }
 0x665   : > { %v9811_v62 = vsub.f32 %v24066_v5, %v24067_v18  ;;  %6682 = vmatprep.mubr.f32.mxu0 %v6681_v28  ;;  %9408 = vmatprep.mubr.f32.mxu1 %v6681_v28  ;;  %v19443_v38 = vand.u32 4294901760, %v6482_v0  ;;  %v19445_v14 = vand.u32 4294901760, %v6422_v11  ;;  %v19447_v18 = vand.u32 4294901760, %v6424_v43 }
 0x666   : > { %v12645_v3 = vpack.c.bf16 %v7086_v9, %v7074_v46  ;;  %v9800_v29 = vand.u32 4294901760, %v9799_v21  ;;  %6688 = vmatmul.mubr.f32.gmra.mrb[108].mxu0 %v6687_v52  ;;  %9414 = vmatmul.mubr.f32.gmra.mrb[108].mxu1 %v6687_v52  ;;  %v8103_v5 = vand.u32 4294901760, %v6457_v63  ;;  %v19449_v27 = vand.u32 4294901760, %v6481_v61 }
 0x667   : > { %v9812_v24 = vand.u32 4294901760, %v9811_v62  ;;  %24070 = vst [vmem:[#allocation217_spill] sm:$0xff] %v19443_v38  ;;  %v10829_v36 = vand.u32 4294901760, %v6459_v58  ;;  %v19452_v28 = vsub.f32 %v6482_v0, %v19443_v38  ;;  %v24073_v62 = vld [vmem:[#allocation229_spill] sm:$0xff]  ;;  %v24076_v9 = vand.u32 4294901760, %v24075_v60 }
 0x668   : > { %24071 = vst [vmem:[#allocation218_spill] sm:$0xff] %v19449_v27  ;;  %12646 = vmatprep.subr.bf16.mxu0 %v12645_v3  ;;  %v24074_v45 = vand.u32 4294901760, %v24073_v62  ;;  %v19458_v35 = vsub.f32 %v6453_v13, %v8099_v49  ;;  %v19460_v55 = vsub.f32 %v6455_v1, %v10825_v53  ;;  %v19462_v40 = vpack.c.bf16 %v8103_v5, %v8099_v49  ;;  %v24089_v62 = vld [vmem:[#allocation235_spill] sm:$0xff]  ;;  %v24094_v49 = vld [vmem:[#allocation152_spill] sm:$0xff] }
 0x669   : > { %v13245_v46 = vpack.c.bf16 %v9812_v24, %v9800_v29  ;;  %24072 = vst [vmem:[#allocation127_spill] sm:$0xff] %v19452_v28  ;;  %v19464_v52 = vsub.f32 %v6457_v63, %v8103_v5  ;;  %v19466_v3 = vpack.c.bf16 %v10829_v36, %v10825_v53  ;;  %v19468_v24 = vsub.f32 %v6459_v58, %v10829_v36  ;;  %v24087_v63 = vld [vmem:[#allocation225_spill] sm:$0xff] }
 0x66a   : > { %v12647_v21 = vpack.c.bf16 %v24076_v9, %v24074_v45  ;;  %24077 = vst [vmem:[#allocation306_spill] sm:$0xff] %v19458_v35  ;;  %24078 = vst [vmem:[#allocation229_spill] sm:$0xff] %v19460_v55  ;;  %v19471_v0 = vand.u32 4294901760, %v19452_v28  ;;  %v19474_v29 = vsub.f32 %v6481_v61, %v19449_v27  ;;  %v24085_v13 = vand.u32 4294901760, %v24054_v15  ;;  %v24091_v9 = vld [vmem:[#allocation226_spill] sm:$0xff]  ;;  %v24098_v45 = vld [vmem:[#allocation236_spill] sm:$0xff] }
 0x66b   : > { %24079 = vst [vmem:[#allocation216_spill] sm:$0xff] %v19462_v40  ;;  %24080 = vst [vmem:[#allocation344_spill] sm:$0xff] %v19464_v52  ;;  %13246 = vmatprep.subr.bf16.mxu1 %v13245_v46  ;;  %v6426_v53 = vmax.f32 %v24087_v63, 0.0  ;;  %v19495_v60 = vsub.f32 %v6422_v11, %v19445_v14  ;;  %v24095_v63 = vand.u32 4294901760, %v24094_v49  ;;  %v24099_v11 = vld [vmem:[#allocation237_spill] sm:$0xff]  ;;  %v24101_v52 = vld [vmem:[#allocation14_spill] sm:$0xff] }
 0x66c   : > { %24081 = vst [vmem:[#allocation345_spill] sm:$0xff] %v19466_v3  ;;  %24082 = vst [vmem:[#allocation346_spill] sm:$0xff] %v19468_v24  ;;  %12648 = vmatpush1.bf16.msra.mxu0 %v12647_v21  ;;  %v19479_v1 = vsub.f32 %v24054_v15, %v24085_v13  ;;  %v6696_v61 = vsub.f32 %v19452_v28, %v19471_v0  ;;  %v19491_v36 = vand.u32 4294901760, %v19474_v29  ;;  %v6428_v21 = vmax.f32 %v24091_v9, 0.0  ;;  %v24092_v13 = vld [vmem:[#allocation215_spill] sm:$0xff]  ;;  %v24096_v15 = vld [vmem:[#allocation261_spill] sm:$0xff] }
 0x66d   : > { %24083 = vst [vmem:[#allocation347_spill] sm:$0xff] %v19471_v0  ;;  %24084 = vst [vmem:[#allocation348_spill] sm:$0xff] %v19474_v29  ;;  %v24093_v58 = vand.u32 4294901760, %v24092_v13  ;;  %v19504_v3 = vsub.f32 %v6424_v43, %v19447_v18  ;;  %v6430_v28 = vmax.f32 %v24098_v45, 0.0  ;;  %v6432_v24 = vmax.f32 %v24099_v11, 0.0  ;;  %v24100_v9 = vld [vmem:[#allocation6_spill] sm:$0xff] }
 0x66e   : > { %24086 = vst [vmem:[#allocation349_spill] sm:$0xff] %v19479_v1  ;;  %24088 = vst [vmem:[#allocation225_spill] sm:$0xff] %v19491_v36  ;;  %v6697_v40 = vand.u32 4294901760, %v6696_v61  ;;  %v6702_v0 = vsub.f32 %v19474_v29, %v19491_v36  ;;  %v12649_v13 = vpack.c.bf16 %v24101_v52, %v24100_v9  ;;  %v24102_v55 = vld [vmem:[#allocation7_spill] sm:$0xff]  ;;  %v24103_v49 = vld [vmem:[#allocation16_spill] sm:$0xff]  ;;  %v19515_v35 = vand.u32 4294901760, %v6426_v53 }
 0x66f   : > { %24090 = vst [vmem:[#allocation350_spill] sm:$0xff] %v19495_v60  ;;  %v13247_v5 = vpack.c.bf16 %v24095_v63, %v24093_v58  ;;  %24097 = vst [vmem:[#allocation226_spill] sm:$0xff] %v19504_v3  ;;  %v13249_v58 = vpack.c.bf16 %v24103_v49, %v24102_v55  ;;  %v24104_v63 = vld [vmem:[#allocation151_spill] sm:$0xff]  ;;  %v24105_v43 = vld [vmem:[#allocation246_spill] sm:$0xff]  ;;  %v24106_v45 = vand.u32 4294901760, %v24089_v62  ;;  %v19524_v52 = vand.u32 4294901760, %v6428_v21 }
 0x670   : > { %v6434_v61 = vmax.f32 %v24105_v43, 0.0  ;;  %6698 = vmatprep.mubr.f32.mxu0 %v6697_v40  ;;  %9424 = vmatprep.mubr.f32.mxu1 %v6697_v40  ;;  %v6703_v36 = vand.u32 4294901760, %v6702_v0  ;;  %v24109_v9 = vld [vmem:[#allocation247_spill] sm:$0xff]  ;;  %v24110_v40 = vand.u32 4294901760, %v24096_v15  ;;  %v24113_v43 = vand.u32 4294901760, %v24104_v63  ;;  %v24121_v46 = vld [vmem:[#allocation40_spill] sm:$0xff] }
 0x671   : > { %13248 = vmatpush1.bf16.msra.mxu1 %v13247_v5  ;;  %v19521_v11 = vsub.f32 %v24089_v62, %v24106_v45  ;;  %v24108_v5 = vld [vmem:[#allocation311_spill] sm:$0xff]  ;;  %v6436_v49 = vmax.f32 %v24109_v9, 0.0  ;;  %12650 = vmatprep.subr.bf16.mxu0 %v12649_v13  ;;  %v19537_v9 = vand.u32 4294901760, %v6430_v28  ;;  %v19539_v13 = vand.u32 4294901760, %v6432_v24  ;;  %v24122_v3 = vld [vmem:[#allocation26_spill] sm:$0xff]  ;;  %v24123_v60 = vld [vmem:[#allocation41_spill] sm:$0xff] }
 0x672   : > { %13250 = vmatprep.subr.bf16.mxu1 %v13249_v58  ;;  %v19532_v0 = vsub.f32 %v24096_v15, %v24110_v40  ;;  %6704 = vmatmul.mubr.f32.gmra.mrb[110].mxu0 %v6703_v36  ;;  %v24112_v58 = vld [vmem:[#allocation296_spill] sm:$0xff]  ;;  %v19546_v40 = vsub.f32 %v24104_v63, %v24113_v43  ;;  %v19549_v45 = vsub.f32 %v6426_v53, %v19515_v35  ;;  %v19552_v29 = vand.u32 4294901760, %v6434_v61  ;;  %v24119_v63 = vld [vmem:[#allocation298_spill] sm:$0xff] }
 0x673   : > { %24107 = vst [vmem:[#allocation215_spill] sm:$0xff] %v19521_v11  ;;  %9430 = vmatmul.mubr.f32.gmra.mrb[110].mxu1 %v6703_v36  ;;  %7095 = vmatprep.mubr.f32.mxu0 %v24112_v58  ;;  %v24115_v62 = vand.u32 4294901760, %v24108_v5  ;;  %v19563_v55 = vand.u32 4294901760, %v6436_v49  ;;  %v24120_v36 = vld [vmem:[#allocation22_spill] sm:$0xff]  ;;  %v19579_v1 = vsub.f32 %v6430_v28, %v19537_v9  ;;  %v19582_v43 = vsub.f32 %v6432_v24, %v19539_v13 }
 0x674   : > { %24111 = vst [vmem:[#allocation152_spill] sm:$0xff] %v19532_v0  ;;  %9821 = vmatprep.mubr.f32.mxu1 %v24112_v58  ;;  %24114 = vst [vmem:[#allocation236_spill] sm:$0xff] %v19549_v45  ;;  %v19561_v58 = vsub.f32 %v6428_v21, %v19524_v52  ;;  %v12653_v11 = vpack.c.bf16 %v24121_v46, %v24120_v36  ;;  %v24129_v0 = vld [vmem:[#allocation95_spill] sm:$0xff]  ;;  %v24132_v36 = vld [vmem:[#allocation8_spill] sm:$0xff]  ;;  %v24134_v28 = vand.u32 4294901760, %v19032_v51 }
 0x675   : > { %v19558_v15 = vsub.f32 %v24108_v5, %v24115_v62  ;;  %24118 = vst [vmem:[#allocation247_spill] sm:$0xff] %v19563_v55  ;;  %v13253_v62 = vpack.c.bf16 %v24123_v60, %v24122_v3  ;;  %v24124_v5 = vand.u32 4294901760, %v19021_v34  ;;  %24126 = vst [vmem:[#allocation352_spill] sm:$0xff] %v19579_v1  ;;  %v24131_v46 = vld [vmem:[#allocation11_spill] sm:$0xff]  ;;  %v19599_v24 = vsub.f32 %v6434_v61, %v19552_v29  ;;  %v24138_v3 = vld [vmem:[#allocation252_spill] sm:$0xff] }
 0x676   : > { %24117 = vst [vmem:[#allocation246_spill] sm:$0xff] %v19561_v58  ;;  %7097 = vmatmul.mubr.f32.vlgmr.msra.gmra.mrb[102].mxu0 %v24119_v63  ;;  %24127 = vst [vmem:[#allocation353_spill] sm:$0xff] %v19582_v43  ;;  %v24133_v60 = vpack.c.bf16 %v24131_v46, %v24132_v36  ;;  %v6438_v46 = vmax.f32 %v24138_v3, 0.0  ;;  %v24141_v61 = vld [vmem:[#allocation253_spill] sm:$0xff] }
 0x677   : > { %24116 = vst [vmem:[#allocation237_spill] sm:$0xff] %v19558_v15  ;;  %9823 = vmatmul.mubr.f32.vlgmr.msra.gmra.mrb[102].mxu1 %v24119_v63  ;;  %v19576_v21 = vsub.f32 %v19021_v34, %v24124_v5  ;;  %v24128_v63 = vld [vmem:[#allocation30_spill] sm:$0xff]  ;;  %v19596_v34 = vsub.f32 %v19032_v51, %v24134_v28  ;;  %24136 = vst [vmem:[#allocation355_spill] sm:$0xff] %v19599_v24  ;;  %7103 = vmatprep.mubr.f32.mxu0 %v19204_v12  ;;  %v24139_v5 = vand.u32 4294901760, %v19026_v44  ;;  %v24154_v3 = vld [vmem:[#allocation265_spill] sm:$0xff] }
 0x678   : > { %v24130_v16 = vpack.c.bf16 %v24128_v63, %v24129_v0  ;;  %13252 = vmatpush1.bf16.msra.mxu1 %v24133_v60  ;;  %v19604_v60 = vsub.f32 %v6436_v49, %v19563_v55  ;;  %v6440_v51 = vmax.f32 %v24141_v61, 0.0  ;;  %v24145_v63 = vld [vmem:[#allocation65_spill] sm:$0xff]  ;;  %9829 = vmatprep.mubr.f32.mxu1 %v19204_v12  ;;  %v24146_v15 = vand.u32 4294901760, %v19036_v33  ;;  %v24148_v61 = vld [vmem:[#allocation32_spill] sm:$0xff]  ;;  %v24155_v0 = vld [vmem:[#allocation266_spill] sm:$0xff] }
 0x679   : > { %24125 = vst [vmem:[#allocation351_spill] sm:$0xff] %v19576_v21  ;;  %24135 = vst [vmem:[#allocation354_spill] sm:$0xff] %v19596_v34  ;;  %13254 = vmatprep.subr.bf16.mxu1 %v13253_v62  ;;  %v19611_v28 = vsub.f32 %v19026_v44, %v24139_v5  ;;  %v24143_v62 = vld [vmem:[#allocation64_spill] sm:$0xff]  ;;  %v24149_v44 = vld [vmem:[#allocation17_spill] sm:$0xff]  ;;  %v6444_v21 = vmax.f32 %v24155_v0, 0.0 }
 0x67a   : > { %12652 = vmatpush1.bf16.msra.mxu0 %v24130_v16  ;;  %24137 = vst [vmem:[#allocation356_spill] sm:$0xff] %v19604_v60  ;;  %v24144_v16 = vld [vmem:[#allocation50_spill] sm:$0xff]  ;;  %v19625_v5 = vsub.f32 %v19036_v33, %v24146_v15  ;;  %v24150_v55 = vpack.c.bf16 %v24148_v61, %v24149_v44  ;;  %v19638_v33 = vand.u32 4294901760, %v6438_v46  ;;  %v24157_v61 = vld [vmem:[#allocation275_spill] sm:$0xff]  ;;  %v24158_v44 = vld [vmem:[#allocation276_spill] sm:$0xff]  ;;  %v19645_v12 = vand.u32 4294901760, %v6440_v51 }
 0x67b   : > { %12654 = vmatprep.subr.bf16.mxu0 %v12653_v11  ;;  %24140 = vst [vmem:[#allocation252_spill] sm:$0xff] %v19611_v28  ;;  %v24142_v11 = vld [vmem:[#allocation47_spill] sm:$0xff]  ;;  %v13257_v53 = vpack.c.bf16 %v24145_v63, %v24144_v16  ;;  %v6442_v16 = vmax.f32 %v24154_v3, 0.0  ;;  %v6448_v43 = vmax.f32 %v24158_v44, 0.0  ;;  %7105 = vmatmul.mubr.f32.gmra.mrb[104].mxu0 %v19210_v19  ;;  %v24160_v3 = vld [vmem:[#allocation72_spill] sm:$0xff]  ;;  %v24163_v49 = vld [vmem:[#allocation90_spill] sm:$0xff] }
 0x67c   : > { %v12657_v36 = vpack.c.bf16 %v24143_v62, %v24142_v11  ;;  %24147 = vst [vmem:[#allocation253_spill] sm:$0xff] %v19625_v5  ;;  %v24151_v62 = vld [vmem:[#allocation36_spill] sm:$0xff]  ;;  %24156 = vst [vmem:[#allocation265_spill] sm:$0xff] %v19638_v33  ;;  %9831 = vmatmul.mubr.f32.gmra.mrb[104].mxu1 %v19210_v19  ;;  %v24161_v0 = vld [vmem:[#allocation87_spill] sm:$0xff]  ;;  %7111 = vmatprep.mubr.f32.mxu0 %v19281_v37  ;;  %v24182_v19 = vand.u32 4294901760, %v19130_v23 }
 0x67d   : > { %v24152_v11 = vld [vmem:[#allocation20_spill] sm:$0xff]  ;;  %24159 = vst [vmem:[#allocation266_spill] sm:$0xff] %v19645_v12  ;;  %9837 = vmatprep.mubr.f32.mxu1 %v19281_v37  ;;  %v24166_v34 = vld [vmem:[#allocation43_spill] sm:$0xff]  ;;  %v19666_v37 = vand.u32 4294901760, %v6444_v21  ;;  %v24173_v44 = vld [vmem:[#allocation293_spill] sm:$0xff] }
 0x67e   : > { %12656 = vmatpush1.bf16.msra.mxu0 %v24150_v55  ;;  %v24153_v63 = vpack.c.bf16 %v24151_v62, %v24152_v11  ;;  %v6446_v55 = vmax.f32 %v24157_v61, 0.0  ;;  %v24164_v62 = vld [vmem:[#allocation292_spill] sm:$0xff]  ;;  %v24165_v11 = vld [vmem:[#allocation54_spill] sm:$0xff]  ;;  %v6452_v61 = vmax.f32 %v24173_v44, 0.0 }
 0x67f   : > { %12658 = vmatprep.subr.bf16.mxu0 %v12657_v36  ;;  %v12661_v36 = vpack.c.bf16 %v24161_v0, %v24160_v3  ;;  %v24167_v28 = vpack.c.bf16 %v24165_v11, %v24166_v34  ;;  %v24168_v0 = vld [vmem:[#allocation60_spill] sm:$0xff]  ;;  %v24169_v3 = vld [vmem:[#allocation46_spill] sm:$0xff]  ;;  %24172 = vst [vmem:[#allocation276_spill] sm:$0xff] %v19666_v37  ;;  %v19675_v11 = vand.u32 4294901760, %v6448_v43  ;;  %7113 = vmatmul.mubr.f32.gmra.mrb[106].mxu0 %v19283_v31 }
 0x680   : > { %13256 = vmatpush1.bf16.msra.mxu1 %v24153_v63  ;;  %v6450_v63 = vmax.f32 %v24164_v62, 0.0  ;;  %v24170_v60 = vpack.c.bf16 %v24168_v0, %v24169_v3  ;;  %v19670_v62 = vsub.f32 %v6438_v46, %v19638_v33  ;;  %v24180_v46 = vld [vmem:[#allocation103_spill] sm:$0xff]  ;;  %v24181_v0 = vld [vmem:[#allocation21_spill] sm:$0xff]  ;;  %7119 = vmatprep.mubr.f32.mxu0 %v19372_v30  ;;  %v19692_v34 = vsub.f32 %v19130_v23, %v24182_v19 }
 0x681   : > { %13258 = vmatprep.subr.bf16.mxu1 %v13257_v53  ;;  %v24162_v53 = vld [vmem:[#allocation73_spill] sm:$0xff]  ;;  %24176 = vst [vmem:[#allocation357_spill] sm:$0xff] %v19675_v11  ;;  %9839 = vmatmul.mubr.f32.gmra.mrb[106].mxu1 %v19283_v31  ;;  %v13265_v3 = vpack.c.bf16 %v24181_v0, %v24180_v46  ;;  %v24188_v0 = vld [vmem:[#allocation68_spill] sm:$0xff]  ;;  %v24193_v19 = vand.u32 4294901760, %v19138_v41  ;;  %v19717_v44 = vsub.f32 %v6444_v21, %v19666_v37 }
 0x682   : > { %v13261_v15 = vpack.c.bf16 %v24163_v49, %v24162_v53  ;;  %12660 = vmatpush1.bf16.msra.mxu0 %v24167_v28  ;;  %v19664_v53 = vand.u32 4294901760, %v6442_v16  ;;  %24174 = vst [vmem:[#allocation292_spill] sm:$0xff] %v19670_v62  ;;  %v19673_v28 = vand.u32 4294901760, %v6446_v55  ;;  %9845 = vmatprep.mubr.f32.mxu1 %v19372_v30  ;;  %24183 = vst [vmem:[#allocation359_spill] sm:$0xff] %v19692_v34  ;;  %v24191_v30 = vld [vmem:[#allocation70_spill] sm:$0xff]  ;;  %v24291_v34 = vld [vmem:[#allocation317_spill] sm:$0xff] }
 0x683   : > { %12662 = vmatprep.subr.bf16.mxu0 %v12661_v36  ;;  %v24178_v36 = vld [vmem:[#allocation97_spill] sm:$0xff]  ;;  %v19711_v23 = vsub.f32 %v19138_v41, %v24193_v19  ;;  %24196 = vst [vmem:[#allocation364_spill] sm:$0xff] %v19717_v44  ;;  %7121 = vmatmul.mubr.f32.gmra.mrb[108].mxu0 %v19376_v25  ;;  %v24206_v41 = vld [vmem:[#allocation31_spill] sm:$0xff]  ;;  %v24325_v44 = vld [vmem:[#allocation160_spill] sm:$0xff] }
 0x684   : > { %13260 = vmatpush1.bf16.msra.mxu1 %v24170_v60  ;;  %24171 = vst [vmem:[#allocation275_spill] sm:$0xff] %v19664_v53  ;;  %24175 = vst [vmem:[#allocation293_spill] sm:$0xff] %v19673_v28  ;;  %v19680_v60 = vsub.f32 %v6440_v51, %v19645_v12  ;;  %v24184_v51 = vand.u32 4294901760, %v19152_v26  ;;  %v24190_v12 = vld [vmem:[#allocation86_spill] sm:$0xff]  ;;  %v19728_v19 = vsub.f32 %v6446_v55, %v19673_v28  ;;  %v24207_v55 = vld [vmem:[#allocation48_spill] sm:$0xff]  ;;  %7127 = vmatprep.mubr.f32.mxu0 %v19443_v38 }
 0x685   : > { %13262 = vmatprep.subr.bf16.mxu1 %v13261_v15  ;;  %v24179_v15 = vld [vmem:[#allocation19_spill] sm:$0xff]  ;;  %v24192_v33 = vpack.c.bf16 %v24190_v12, %v24191_v30  ;;  %24194 = vst [vmem:[#allocation362_spill] sm:$0xff] %v19711_v23  ;;  %v24198_v12 = vand.u32 4294901760, %v19156_v10  ;;  %9847 = vmatmul.mubr.f32.gmra.mrb[108].mxu1 %v19376_v25  ;;  %v13269_v30 = vpack.c.bf16 %v24207_v55, %v24206_v41  ;;  %v24214_v55 = vld [vmem:[#allocation18_spill] sm:$0xff]  ;;  %v24215_v41 = vld [vmem:[#allocation93_spill] sm:$0xff] }
 0x686   : > { %24177 = vst [vmem:[#allocation358_spill] sm:$0xff] %v19680_v60  ;;  %v12665_v49 = vpack.c.bf16 %v24179_v15, %v24178_v36  ;;  %v19697_v31 = vsub.f32 %v19152_v26, %v24184_v51  ;;  %v19700_v15 = vand.u32 4294901760, %v6450_v63  ;;  %v24187_v36 = vld [vmem:[#allocation82_spill] sm:$0xff]  ;;  %v19714_v51 = vsub.f32 %v6442_v16, %v19664_v53  ;;  %24200 = vst [vmem:[#allocation367_spill] sm:$0xff] %v19728_v19  ;;  %v24242_v19 = vld [vmem:[#allocation132_spill] sm:$0xff] }
 0x687   : > { %v24189_v46 = vpack.c.bf16 %v24187_v36, %v24188_v0  ;;  %v19719_v26 = vand.u32 4294901760, %v6452_v61  ;;  %v19731_v16 = vsub.f32 %v6448_v43, %v19675_v11  ;;  %9853 = vmatprep.mubr.f32.mxu1 %v19443_v38  ;;  %v24208_v43 = vand.u32 4294901760, %v19300_v59  ;;  %7129 = vmatmul.mubr.f32.gmra.mrb[110].mxu0 %v19449_v27  ;;  %v24219_v38 = vld [vmem:[#allocation69_spill] sm:$0xff]  ;;  %v24328_v60 = vld [vmem:[#allocation295_spill] sm:$0xff] }
 0x688   : > { %24185 = vst [vmem:[#allocation360_spill] sm:$0xff] %v19697_v31  ;;  %24186 = vst [vmem:[#allocation361_spill] sm:$0xff] %v19700_v15  ;;  %13264 = vmatpush1.bf16.msra.mxu1 %v24192_v33  ;;  %v19725_v33 = vsub.f32 %v19156_v10, %v24198_v12  ;;  %v24205_v12 = vld [vmem:[#allocation45_spill] sm:$0xff]  ;;  %v24216_v0 = vpack.c.bf16 %v24214_v55, %v24215_v41  ;;  %v24282_v31 = vld [vmem:[#allocation279_spill] sm:$0xff]  ;;  %v24329_v62 = vand.u32 4294901760, %v24328_v60 }
 0x689   : > { %12664 = vmatpush1.bf16.msra.mxu0 %v24189_v46  ;;  %24195 = vst [vmem:[#allocation363_spill] sm:$0xff] %v19714_v51  ;;  %24197 = vst [vmem:[#allocation365_spill] sm:$0xff] %v19719_v26  ;;  %13266 = vmatprep.subr.bf16.mxu1 %v13265_v3  ;;  %v24204_v46 = vld [vmem:[#allocation29_spill] sm:$0xff]  ;;  %v19750_v25 = vsub.f32 %v19300_v59, %v24208_v43  ;;  %v19767_v21 = vsub.f32 %v6452_v61, %v19719_v26  ;;  %v24221_v59 = vld [vmem:[#allocation71_spill] sm:$0xff]  ;;  %v24326_v51 = vand.u32 4294901760, %v24325_v44 }
 0x68a   : > { %12666 = vmatprep.subr.bf16.mxu0 %v12665_v49  ;;  %24199 = vst [vmem:[#allocation366_spill] sm:$0xff] %v19725_v33  ;;  %24201 = vst [vmem:[#allocation368_spill] sm:$0xff] %v19731_v16  ;;  %v24202_v49 = vand.u32 4294901760, %v19294_v4  ;;  %v12669_v10 = vpack.c.bf16 %v24205_v12, %v24204_v46  ;;  %v24211_v12 = vld [vmem:[#allocation13_spill] sm:$0xff]  ;;  %v24212_v46 = vld [vmem:[#allocation92_spill] sm:$0xff]  ;;  %9855 = vmatmul.mubr.f32.gmra.mrb[110].mxu1 %v19449_v27 }
 0x68b   : > { %24209 = vst [vmem:[#allocation370_spill] sm:$0xff] %v19750_v25  ;;  %v24213_v36 = vpack.c.bf16 %v24211_v12, %v24212_v46  ;;  %24217 = vst [vmem:[#allocation372_spill] sm:$0xff] %v19767_v21  ;;  %v24218_v61 = vld [vmem:[#allocation53_spill] sm:$0xff]  ;;  %v24235_v25 = vld [vmem:[#allocation83_spill] sm:$0xff] }
 0x68c   : > { %v19739_v3 = vsub.f32 %v19294_v4, %v24202_v49  ;;  %v19755_v4 = vsub.f32 %v6450_v63, %v19700_v15  ;;  %13268 = vmatpush1.bf16.msra.mxu1 %v24216_v0  ;;  %v24222_v41 = vld [vmem:[#allocation297_spill] sm:$0xff]  ;;  %v24223_v49 = vand.u32 4294901760, %v19298_v56  ;;  %v24225_v0 = vand.u32 4294901760, %v19304_v50  ;;  %v24238_v27 = vld [vmem:[#allocation116_spill] sm:$0xff] }
 0x68d   : > { %12668 = vmatpush1.bf16.msra.mxu0 %v24213_v36  ;;  %13270 = vmatprep.subr.bf16.mxu1 %v13269_v30  ;;  %v24220_v30 = vld [vmem:[#allocation57_spill] sm:$0xff] }
 0x68e   : > { %24203 = vst [vmem:[#allocation369_spill] sm:$0xff] %v19739_v3  ;;  %24210 = vst [vmem:[#allocation371_spill] sm:$0xff] %v19755_v4  ;;  %12670 = vmatprep.subr.bf16.mxu0 %v12669_v10  ;;  %v12673_v10 = vpack.c.bf16 %v24219_v38, %v24218_v61  ;;  %v13273_v63 = vpack.c.bf16 %v24221_v59, %v24220_v30  ;;  %7329 = vmatprep.mubr.f32.mxu0 %v24222_v41  ;;  %v24227_v38 = vld [vmem:[#allocation39_spill] sm:$0xff]  ;;  %v24228_v59 = vld [vmem:[#allocation24_spill] sm:$0xff] }
 0x68f   : > { %10055 = vmatprep.mubr.f32.mxu1 %v24222_v41  ;;  %v19787_v36 = vsub.f32 %v19298_v56, %v24223_v49  ;;  %v19792_v43 = vsub.f32 %v19304_v50, %v24225_v0  ;;  %v24229_v30 = vpack.c.bf16 %v24227_v38, %v24228_v59  ;;  %v24230_v61 = vld [vmem:[#allocation44_spill] sm:$0xff]  ;;  %v24231_v41 = vld [vmem:[#allocation25_spill] sm:$0xff]  ;;  %v24234_v56 = vld [vmem:[#allocation99_spill] sm:$0xff] }
 0x690   : > { %v24232_v12 = vpack.c.bf16 %v24230_v61, %v24231_v41  ;;  %v24233_v49 = vld [vmem:[#allocation81_spill] sm:$0xff]  ;;  %v24236_v0 = vld [vmem:[#allocation102_spill] sm:$0xff]  ;;  %v24241_v59 = vld [vmem:[#allocation120_spill] sm:$0xff] }
 0x691   : > { %24224 = vst [vmem:[#allocation297_spill] sm:$0xff] %v19787_v36  ;;  %24226 = vst [vmem:[#allocation373_spill] sm:$0xff] %v19792_v43  ;;  %12672 = vmatpush1.bf16.msra.mxu0 %v24229_v30  ;;  %v12677_v46 = vpack.c.bf16 %v24234_v56, %v24233_v49  ;;  %v13277_v50 = vpack.c.bf16 %v24236_v0, %v24235_v25  ;;  %v24237_v3 = vld [vmem:[#allocation98_spill] sm:$0xff]  ;;  %v24239_v4 = vld [vmem:[#allocation101_spill] sm:$0xff]  ;;  %v12685_v61 = vpack.c.bf16 %v24242_v19, %v24241_v59 }
 0x692   : > { %13272 = vmatpush1.bf16.msra.mxu1 %v24232_v12  ;;  %12674 = vmatprep.subr.bf16.mxu0 %v12673_v10  ;;  %v12681_v16 = vpack.c.bf16 %v24238_v27, %v24237_v3  ;;  %v24240_v38 = vld [vmem:[#allocation117_spill] sm:$0xff]  ;;  %v24251_v3 = vld [vmem:[#allocation67_spill] sm:$0xff]  ;;  %v24256_v49 = vld [vmem:[#allocation244_spill] sm:$0xff] }
 0x693   : > { %13274 = vmatprep.subr.bf16.mxu1 %v13273_v63  ;;  %v13281_v30 = vpack.c.bf16 %v24240_v38, %v24239_v4  ;;  %v24243_v12 = vld [vmem:[#allocation121_spill] sm:$0xff]  ;;  %v24245_v38 = vand.u32 4294901760, %v18054_v7  ;;  %v24246_v4 = vand.u32 4294901760, %v23776_v6  ;;  %v24252_v10 = vld [vmem:[#allocation51_spill] sm:$0xff]  ;;  %v24257_v21 = vand.u32 4294901760, %v24256_v49  ;;  %v24266_v0 = vld [vmem:[#allocation254_spill] sm:$0xff] }
 0x694   : > { %v24244_v41 = vld [vmem:[#allocation133_spill] sm:$0xff]  ;;  %v24253_v25 = vpack.c.bf16 %v24251_v3, %v24252_v10  ;;  %v24254_v27 = vld [vmem:[#allocation227_spill] sm:$0xff]  ;;  %v24265_v3 = vld [vmem:[#allocation194_spill] sm:$0xff] }
 0x695   : > { %v13285_v55 = vpack.c.bf16 %v24244_v41, %v24243_v12  ;;  %v19826_v19 = vpack.c.bf16 %v24246_v4, %v24245_v38  ;;  %v24248_v12 = vld [vmem:[#allocation63_spill] sm:$0xff]  ;;  %v24249_v59 = vld [vmem:[#allocation49_spill] sm:$0xff]  ;;  %v24255_v56 = vand.u32 4294901760, %v24254_v27  ;;  %v24259_v4 = vld [vmem:[#allocation230_spill] sm:$0xff] }
 0x696   : > { %v24250_v63 = vpack.c.bf16 %v24248_v12, %v24249_v59  ;;  %13276 = vmatpush1.bf16.msra.mxu1 %v24253_v25  ;;  %v24260_v38 = vand.u32 4294901760, %v24259_v4  ;;  %v24261_v41 = vld [vmem:[#allocation245_spill] sm:$0xff]  ;;  %v24267_v12 = vand.u32 4294901760, %v24266_v0  ;;  %v24268_v59 = vld [vmem:[#allocation271_spill] sm:$0xff] }
 0x697   : > { %24247 = vst [vmem:[#allocation374_spill] sm:$0xff] %v19826_v19  ;;  %v19841_v26 = vpack.c.bf16 %v24257_v21, %v24255_v56  ;;  %v24262_v19 = vand.u32 4294901760, %v24261_v41  ;;  %13278 = vmatprep.subr.bf16.mxu1 %v13277_v50  ;;  %v24264_v25 = vld [vmem:[#allocation177_spill] sm:$0xff]  ;;  %v24269_v11 = vand.u32 4294901760, %v24268_v59  ;;  %v24271_v56 = vld [vmem:[#allocation255_spill] sm:$0xff]  ;;  %v24293_v50 = vld [vmem:[#allocation316_spill] sm:$0xff] }
 0x698   : > { %12676 = vmatpush1.bf16.msra.mxu0 %v24250_v63  ;;  %v24272_v21 = vand.u32 4294901760, %v24271_v56  ;;  %v24279_v10 = vld [vmem:[#allocation157_spill] sm:$0xff]  ;;  %v24290_v63 = vld [vmem:[#allocation259_spill] sm:$0xff] }
 0x699   : > { %24258 = vst [vmem:[#allocation227_spill] sm:$0xff] %v19841_v26  ;;  %v19847_v36 = vpack.c.bf16 %v24262_v19, %v24260_v38  ;;  %12678 = vmatprep.subr.bf16.mxu0 %v12677_v46  ;;  %v19856_v15 = vpack.c.bf16 %v24269_v11, %v24267_v12  ;;  %v24273_v26 = vld [vmem:[#allocation272_spill] sm:$0xff]  ;;  %v24278_v46 = vld [vmem:[#allocation234_spill] sm:$0xff]  ;;  %v24281_v43 = vld [vmem:[#allocation221_spill] sm:$0xff] }
 0x69a   : > { %v24274_v28 = vand.u32 4294901760, %v24273_v26  ;;  %v19874_v11 = vpack.c.bf16 %v24282_v31, %v24281_v43  ;;  %v24284_v12 = vld [vmem:[#allocation286_spill] sm:$0xff]  ;;  %v19886_v26 = vpack.c.bf16 %v24291_v34, %v24290_v63  ;;  %v24294_v56 = vld [vmem:[#allocation323_spill] sm:$0xff]  ;;  %v24298_v43 = vld [vmem:[#allocation76_spill] sm:$0xff] }
 0x69b   : > { %24263 = vst [vmem:[#allocation244_spill] sm:$0xff] %v19847_v36  ;;  %24270 = vst [vmem:[#allocation230_spill] sm:$0xff] %v19856_v15  ;;  %v19870_v36 = vpack.c.bf16 %v24279_v10, %v24278_v46  ;;  %v24285_v15 = vld [vmem:[#allocation313_spill] sm:$0xff]  ;;  %v19890_v10 = vpack.c.bf16 %v24294_v56, %v24293_v50  ;;  %v24296_v46 = vld [vmem:[#allocation300_spill] sm:$0xff] }
 0x69c   : > { %v19862_v33 = vpack.c.bf16 %v24274_v28, %v24272_v21  ;;  %24283 = vst [vmem:[#allocation157_spill] sm:$0xff] %v19874_v11  ;;  %v19878_v23 = vpack.c.bf16 %v24285_v15, %v24284_v12  ;;  %v24287_v28 = vld [vmem:[#allocation233_spill] sm:$0xff]  ;;  %v24288_v21 = vld [vmem:[#allocation314_spill] sm:$0xff]  ;;  %24292 = vst [vmem:[#allocation286_spill] sm:$0xff] %v19886_v26 }
 0x69d   : > { %24280 = vst [vmem:[#allocation234_spill] sm:$0xff] %v19870_v36  ;;  %24295 = vst [vmem:[#allocation313_spill] sm:$0xff] %v19890_v10  ;;  %v24297_v31 = vld [vmem:[#allocation91_spill] sm:$0xff]  ;;  %v24300_v15 = vld [vmem:[#allocation96_spill] sm:$0xff] }
 0x69e   : > { %24275 = vst [vmem:[#allocation375_spill] sm:$0xff] %v19862_v33  ;;  %24286 = vst [vmem:[#allocation221_spill] sm:$0xff] %v19878_v23  ;;  %v19882_v33 = vpack.c.bf16 %v24288_v21, %v24287_v28  ;;  %v24299_v11 = vpack.c.bf16 %v24297_v31, %v24298_v43  ;;  %v24301_v12 = vld [vmem:[#allocation77_spill] sm:$0xff]  ;;  %v24306_v34 = vld [vmem:[#allocation336_spill] sm:$0xff] }
 0x69f   : > { %v24302_v23 = vpack.c.bf16 %v24300_v15, %v24301_v12  ;;  %v24303_v28 = vld [vmem:[#allocation285_spill] sm:$0xff]  ;;  %v24307_v63 = vld [vmem:[#allocation342_spill] sm:$0xff] }
 0x6a0   : > { %24289 = vst [vmem:[#allocation279_spill] sm:$0xff] %v19882_v33  ;;  %12680 = vmatpush1.bf16.msra.mxu0 %v24299_v11  ;;  %v24304_v21 = vld [vmem:[#allocation209_spill] sm:$0xff]  ;;  %v19905_v26 = vpack.c.bf16 %v24307_v63, %v24306_v34  ;;  %v24309_v56 = vld [vmem:[#allocation222_spill] sm:$0xff]  ;;  %v24312_v11 = vld [vmem:[#allocation232_spill] sm:$0xff] }
 0x6a1   : > { %13280 = vmatpush1.bf16.msra.mxu1 %v24302_v23  ;;  %v19901_v33 = vpack.c.bf16 %v24304_v21, %v24303_v28  ;;  %v24310_v50 = vand.u32 4294901760, %v24309_v56  ;;  %v24311_v10 = vld [vmem:[#allocation301_spill] sm:$0xff]  ;;  %12682 = vmatprep.subr.bf16.mxu0 %v12681_v16  ;;  %v24313_v31 = vand.u32 4294901760, %v24312_v11  ;;  %v24314_v15 = vld [vmem:[#allocation262_spill] sm:$0xff]  ;;  %v24323_v16 = vld [vmem:[#allocation159_spill] sm:$0xff] }
 0x6a2   : > { %24308 = vst [vmem:[#allocation314_spill] sm:$0xff] %v19905_v26  ;;  %13282 = vmatprep.subr.bf16.mxu1 %v13281_v30  ;;  %v24315_v12 = vand.u32 4294901760, %v24314_v15  ;;  %v24316_v21 = vld [vmem:[#allocation290_spill] sm:$0xff]  ;;  %v24324_v30 = vand.u32 4294901760, %v24323_v16  ;;  %v24335_v16 = vld [vmem:[#allocation115_spill] sm:$0xff]  ;;  %v24342_v7 = vld [vmem:[#allocation173_spill] sm:$0xff] }
 0x6a3   : > { %24305 = vst [vmem:[#allocation233_spill] sm:$0xff] %v19901_v33  ;;  %v8219_v36 = vsub.f32 %v24309_v56, %v24310_v50  ;;  %v8231_v23 = vsub.f32 %v24312_v11, %v24313_v31  ;;  %v24317_v33 = vand.u32 4294901760, %v24316_v21  ;;  %v24318_v26 = vld [vmem:[#allocation270_spill] sm:$0xff]  ;;  %v24320_v50 = vld [vmem:[#allocation280_spill] sm:$0xff]  ;;  %v24343_v6 = vand.u32 4294901760, %v24342_v7  ;;  %v24354_v7 = vld [vmem:[#allocation315_spill] sm:$0xff] }
 0x6a4   : > { %v10945_v28 = vsub.f32 %v24314_v15, %v24315_v12  ;;  %v24319_v43 = vand.u32 4294901760, %v24318_v26  ;;  %v24321_v0 = vand.u32 4294901760, %v24320_v50  ;;  %v19930_v31 = vpack.c.bf16 %v24326_v51, %v24324_v30  ;;  %v24332_v50 = vld [vmem:[#allocation113_spill] sm:$0xff]  ;;  %v24338_v30 = vld [vmem:[#allocation174_spill] sm:$0xff] }
 0x6a5   : > { %v10957_v34 = vsub.f32 %v24316_v21, %v24317_v33  ;;  %v8220_v63 = vand.u32 4294901760, %v8219_v36  ;;  %v8243_v12 = vsub.f32 %v24328_v60, %v24329_v62  ;;  %v8232_v37 = vand.u32 4294901760, %v8231_v23  ;;  %v24330_v36 = vld [vmem:[#allocation248_spill] sm:$0xff]  ;;  %v24340_v23 = vld [vmem:[#allocation249_spill] sm:$0xff] }
 0x6a6   : > { %v19924_v59 = vpack.c.bf16 %v24321_v0, %v24319_v43  ;;  %24327 = vst [vmem:[#allocation317_spill] sm:$0xff] %v19930_v31  ;;  %v10946_v53 = vand.u32 4294901760, %v10945_v28  ;;  %v24331_v5 = vand.u32 4294901760, %v24330_v36  ;;  %v24333_v0 = vld [vmem:[#allocation106_spill] sm:$0xff]  ;;  %v24339_v31 = vand.u32 4294901760, %v24338_v30 }
 0x6a7   : > { %v10958_v33 = vand.u32 4294901760, %v10957_v34  ;;  %v24334_v43 = vpack.c.bf16 %v24332_v50, %v24333_v0  ;;  %v8244_v51 = vand.u32 4294901760, %v8243_v12  ;;  %v24341_v28 = vand.u32 4294901760, %v24340_v23 }
 0x6a8   : > { %24322 = vst [vmem:[#allocation259_spill] sm:$0xff] %v19924_v59  ;;  %v8255_v26 = vsub.f32 %v24330_v36, %v24331_v5  ;;  %v24336_v59 = vld [vmem:[#allocation112_spill] sm:$0xff]  ;;  %v10969_v62 = vsub.f32 %v24338_v30, %v24339_v31  ;;  %v24344_v5 = vld [vmem:[#allocation181_spill] sm:$0xff]  ;;  %v24355_v41 = vand.u32 4294901760, %v24354_v7 }
 0x6a9   : > { %12684 = vmatpush1.bf16.msra.mxu0 %v24334_v43  ;;  %v24337_v44 = vpack.c.bf16 %v24335_v16, %v24336_v59  ;;  %v10981_v34 = vsub.f32 %v24340_v23, %v24341_v28  ;;  %v24345_v19 = vand.u32 4294901760, %v24344_v5  ;;  %v19956_v43 = vpack.c.bf16 %v8232_v37, %v8220_v63  ;;  %v24349_v16 = vld [vmem:[#allocation312_spill] sm:$0xff] }
 0x6aa   : > { %12686 = vmatprep.subr.bf16.mxu0 %v12685_v61  ;;  %v8256_v12 = vand.u32 4294901760, %v8255_v26  ;;  %v24350_v59 = vand.u32 4294901760, %v24349_v16  ;;  %v24351_v31 = vld [vmem:[#allocation304_spill] sm:$0xff]  ;;  %v10970_v28 = vand.u32 4294901760, %v10969_v62 }
 0x6ab   : > { %13284 = vmatpush1.bf16.msra.mxu1 %v24337_v44  ;;  %v19954_v38 = vpack.c.bf16 %v24345_v19, %v24343_v6  ;;  %24347 = vst [vmem:[#allocation323_spill] sm:$0xff] %v19956_v43  ;;  %v19958_v44 = vpack.c.bf16 %v10958_v33, %v10946_v53  ;;  %v24352_v50 = vand.u32 4294901760, %v24351_v31  ;;  %v10982_v24 = vand.u32 4294901760, %v10981_v34  ;;  %v24356_v19 = vld [vmem:[#allocation321_spill] sm:$0xff]  ;;  %v24361_v26 = vld [vmem:[#allocation328_spill] sm:$0xff]  ;;  %v24365_v34 = vld [vmem:[#allocation327_spill] sm:$0xff] }
 0x6ac   : > { %13286 = vmatprep.subr.bf16.mxu1 %v13285_v55  ;;  %v8267_v6 = vsub.f32 %v24354_v7, %v24355_v41  ;;  %v24357_v61 = vand.u32 4294901760, %v24356_v19  ;;  %v19972_v55 = vpack.c.bf16 %v8256_v12, %v8244_v51  ;;  %v24359_v53 = vld [vmem:[#allocation189_spill] sm:$0xff]  ;;  %v24362_v16 = vand.u32 4294901760, %v24361_v26  ;;  %v24371_v51 = vld [vmem:[#allocation131_spill] sm:$0xff] }
 0x6ad   : > { %24346 = vst [vmem:[#allocation316_spill] sm:$0xff] %v19954_v38  ;;  %24348 = vst [vmem:[#allocation300_spill] sm:$0xff] %v19958_v44  ;;  %v19964_v0 = vpack.c.bf16 %v24352_v50, %v24350_v59  ;;  %v24360_v63 = vand.u32 4294901760, %v24359_v53  ;;  %v24363_v50 = vld [vmem:[#allocation318_spill] sm:$0xff]  ;;  %v24366_v5 = vand.u32 4294901760, %v24365_v34  ;;  %v24368_v41 = vld [vmem:[#allocation129_spill] sm:$0xff]  ;;  %v24377_v34 = vpack.c.bf16 %v23670_v54, %v23904_v22 }
 0x6ae   : > { %v8279_v37 = vsub.f32 %v24356_v19, %v24357_v61  ;;  %24358 = vst [vmem:[#allocation209_spill] sm:$0xff] %v19972_v55  ;;  %v11005_v59 = vsub.f32 %v24361_v26, %v24362_v16  ;;  %v24364_v62 = vand.u32 4294901760, %v24363_v50  ;;  %v24372_v12 = vld [vmem:[#allocation119_spill] sm:$0xff]  ;;  %v19998_v16 = vpack.c.bf16 %v19524_v52, %v19447_v18  ;;  %v24381_v55 = vld [vmem:[#allocation274_spill] sm:$0xff] }
 0x6af   : > { %24353 = vst [vmem:[#allocation285_spill] sm:$0xff] %v19964_v0  ;;  %v10993_v33 = vsub.f32 %v24359_v53, %v24360_v63  ;;  %v24369_v0 = vld [vmem:[#allocation118_spill] sm:$0xff]  ;;  %v24373_v61 = vpack.c.bf16 %v24371_v51, %v24372_v12  ;;  %v19994_v63 = vpack.c.bf16 %v19515_v35, %v19445_v14  ;;  %v20000_v50 = vpack.c.bf16 %v10982_v24, %v10970_v28  ;;  %v24379_v35 = vld [vmem:[#allocation319_spill] sm:$0xff] }
 0x6b0   : > { %v19984_v31 = vpack.c.bf16 %v24366_v5, %v24364_v62  ;;  %v24370_v38 = vpack.c.bf16 %v24368_v41, %v24369_v0  ;;  %24375 = vst [vmem:[#allocation301_spill] sm:$0xff] %v19998_v16  ;;  %v8268_v62 = vand.u32 4294901760, %v8267_v6  ;;  %v8280_v5 = vand.u32 4294901760, %v8279_v37  ;;  %v24384_v52 = vld [vmem:[#allocation338_spill] sm:$0xff]  ;;  %v24397_v16 = vld [vmem:[#allocation208_spill] sm:$0xff] }
 0x6b1   : > { %13288 = vmatpush1.bf16.msra.mxu1 %v24373_v61  ;;  %24374 = vst [vmem:[#allocation342_spill] sm:$0xff] %v19994_v63  ;;  %24376 = vst [vmem:[#allocation270_spill] sm:$0xff] %v20000_v50  ;;  %v10994_v61 = vand.u32 4294901760, %v10993_v33  ;;  %v24380_v14 = vand.u32 4294901760, %v24379_v35  ;;  %v24382_v44 = vand.u32 4294901760, %v24381_v55  ;;  %v24385_v24 = vand.u32 4294901760, %v24384_v52 }
 0x6b2   : > { %24367 = vst [vmem:[#allocation336_spill] sm:$0xff] %v19984_v31  ;;  %12688 = vmatpush1.bf16.msra.mxu0 %v24370_v38  ;;  %v24378_v38 = vpack.c.bf16 %v23675_v47, %v23911_v57  ;;  %v11006_v31 = vand.u32 4294901760, %v11005_v59  ;;  %v24386_v6 = vand.u32 4294901760, %v19398_v39  ;;  %v24387_v50 = vld [vmem:[#allocation176_spill] sm:$0xff]  ;;  %v24389_v33 = vand.u32 4294901760, %v19421_v8  ;;  %v24392_v55 = vld [vmem:[#allocation193_spill] sm:$0xff] }
 0x6b3   : > { %12690 = vmatprep.subr.bf16.mxu0 %v24377_v34  ;;  %v20012_v18 = vpack.c.bf16 %v24382_v44, %v24380_v14  ;;  %v8291_v28 = vsub.f32 %v24384_v52, %v24385_v24  ;;  %v24388_v43 = vand.u32 4294901760, %v24387_v50  ;;  %v24393_v35 = vand.u32 4294901760, %v24392_v55  ;;  %v24394_v14 = vld [vmem:[#allocation299_spill] sm:$0xff]  ;;  %v24399_v63 = vld [vmem:[#allocation349_spill] sm:$0xff]  ;;  %v24403_v54 = vld [vmem:[#allocation74_spill] sm:$0xff] }
 0x6b4   : > { %13290 = vmatprep.subr.bf16.mxu1 %v24378_v38  ;;  %v8303_v34 = vsub.f32 %v19398_v39, %v24386_v6  ;;  %v11029_v59 = vsub.f32 %v19421_v8, %v24389_v33  ;;  %v20026_v38 = vpack.c.bf16 %v8280_v5, %v8268_v62  ;;  %v20028_v44 = vpack.c.bf16 %v11006_v31, %v10994_v61  ;;  %v24405_v62 = vld [vmem:[#allocation144_spill] sm:$0xff] }
 0x6b5   : > { %24383 = vst [vmem:[#allocation280_spill] sm:$0xff] %v20012_v18  ;;  %v11017_v37 = vsub.f32 %v24387_v50, %v24388_v43  ;;  %v24395_v24 = vand.u32 4294901760, %v24394_v14  ;;  %v24398_v6 = vand.u32 4294901760, %v24397_v16  ;;  %v24400_v47 = vand.u32 4294901760, %v24399_v63  ;;  %v24402_v43 = vld [vmem:[#allocation141_spill] sm:$0xff]  ;;  %v24406_v5 = vld [vmem:[#allocation136_spill] sm:$0xff] }
 0x6b6   : > { %24390 = vst [vmem:[#allocation159_spill] sm:$0xff] %v20026_v38  ;;  %24391 = vst [vmem:[#allocation160_spill] sm:$0xff] %v20028_v44  ;;  %v24404_v22 = vpack.c.bf16 %v24402_v43, %v24403_v54  ;;  %v24407_v31 = vpack.c.bf16 %v24405_v62, %v24406_v5  ;;  %v8292_v61 = vand.u32 4294901760, %v8291_v28  ;;  %v8304_v33 = vand.u32 4294901760, %v8303_v34 }
 0x6b7   : > { %v20034_v18 = vpack.c.bf16 %v24395_v24, %v24393_v35  ;;  %v20040_v57 = vpack.c.bf16 %v24400_v47, %v24398_v6  ;;  %v11018_v55 = vand.u32 4294901760, %v11017_v37  ;;  %v11030_v14 = vand.u32 4294901760, %v11029_v59  ;;  %v24414_v37 = vld [vmem:[#allocation226_spill] sm:$0xff] }
 0x6b8   : > { %12692 = vmatpush1.bf16.msra.mxu0 %v24404_v22  ;;  %13292 = vmatpush1.bf16.msra.mxu1 %v24407_v31  ;;  %v24408_v35 = vmax.f32 %v24296_v46, 0.0  ;;  %v24409_v47 = vpack.c.bf16 %v23693_v32, %v23676_v20  ;;  %v24410_v63 = vpack.c.bf16 %v23702_v48, %v23681_v17  ;;  %v24411_v22 = vld [vmem:[#allocation350_spill] sm:$0xff]  ;;  %v24413_v28 = vand.u32 4294901760, %v19549_v45  ;;  %v24419_v48 = vld [vmem:[#allocation215_spill] sm:$0xff] }
 0x6b9   : > { %24396 = vst [vmem:[#allocation173_spill] sm:$0xff] %v20034_v18  ;;  %24401 = vst [vmem:[#allocation181_spill] sm:$0xff] %v20040_v57  ;;  %v24412_v16 = vand.u32 4294901760, %v24411_v22  ;;  %v24415_v59 = vand.u32 4294901760, %v24414_v37  ;;  %v20069_v57 = vpack.c.bf16 %v11030_v14, %v11018_v55  ;;  %v24421_v17 = vand.u32 4294901760, %v19546_v40  ;;  %v24426_v14 = vld [vmem:[#allocation165_spill] sm:$0xff] }
 0x6ba   : > { %v20050_v24 = vand.u32 4294901760, %v24408_v35  ;;  %12694 = vmatprep.subr.bf16.mxu0 %v24409_v47  ;;  %13294 = vmatprep.subr.bf16.mxu1 %v24410_v63  ;;  %v8327_v34 = vsub.f32 %v19549_v45, %v24413_v28  ;;  %v20067_v35 = vpack.c.bf16 %v8304_v33, %v8292_v61  ;;  %v24418_v47 = vand.u32 4294901760, %v19561_v58  ;;  %v24423_v61 = vld [vmem:[#allocation162_spill] sm:$0xff]  ;;  %v24432_v40 = vld [vmem:[#allocation152_spill] sm:$0xff] }
 0x6bb   : > { %v8315_v6 = vsub.f32 %v24411_v22, %v24412_v16  ;;  %v11041_v31 = vsub.f32 %v24414_v37, %v24415_v59  ;;  %24417 = vst [vmem:[#allocation304_spill] sm:$0xff] %v20069_v57  ;;  %v24420_v28 = vand.u32 4294901760, %v24419_v48  ;;  %v24424_v33 = vld [vmem:[#allocation150_spill] sm:$0xff]  ;;  %v24427_v59 = vld [vmem:[#allocation153_spill] sm:$0xff] }
 0x6bc   : > { %24416 = vst [vmem:[#allocation312_spill] sm:$0xff] %v20067_v35  ;;  %v11053_v63 = vsub.f32 %v19561_v58, %v24418_v47  ;;  %v8328_v44 = vand.u32 4294901760, %v8327_v34  ;;  %v24425_v55 = vpack.c.bf16 %v24423_v61, %v24424_v33  ;;  %v24428_v57 = vpack.c.bf16 %v24426_v14, %v24427_v59  ;;  %v24456_v35 = vld [vmem:[#allocation219_spill] sm:$0xff] }
 0x6bd   : > { %v8316_v16 = vand.u32 4294901760, %v8315_v6  ;;  %v11042_v38 = vand.u32 4294901760, %v11041_v31  ;;  %v20080_v32 = vpack.c.bf16 %v24421_v17, %v24420_v28  ;;  %v20090_v47 = vpack.c.bf16 %v19552_v29, %v19537_v9  ;;  %v24430_v6 = vld [vmem:[#allocation247_spill] sm:$0xff]  ;;  %v24434_v31 = vld [vmem:[#allocation237_spill] sm:$0xff] }
 0x6be   : > { %12696 = vmatpush1.bf16.msra.mxu0 %v24425_v55  ;;  %13296 = vmatpush1.bf16.msra.mxu1 %v24428_v57  ;;  %v20094_v34 = vpack.c.bf16 %v24430_v6, %v19539_v13  ;;  %v11054_v48 = vand.u32 4294901760, %v11053_v63  ;;  %v24433_v17 = vand.u32 4294901760, %v24432_v40  ;;  %v24435_v28 = vand.u32 4294901760, %v24434_v31  ;;  %v24442_v6 = vld [vmem:[#allocation353_spill] sm:$0xff] }
 0x6bf   : > { %24422 = vst [vmem:[#allocation318_spill] sm:$0xff] %v20080_v32  ;;  %24429 = vst [vmem:[#allocation327_spill] sm:$0xff] %v20090_v47  ;;  %v24437_v55 = vmax.f32 %v24311_v10, 0.0  ;;  %v24438_v57 = vpack.c.bf16 %v23732_v42, %v23727_v2  ;;  %v24439_v29 = vpack.c.bf16 %v24265_v3, %v24264_v25  ;;  %v20112_v9 = vpack.c.bf16 %v8328_v44, %v8316_v16 }
 0x6c0   : > { %24431 = vst [vmem:[#allocation129_spill] sm:$0xff] %v20094_v34  ;;  %v20100_v18 = vpack.c.bf16 %v24435_v28, %v24433_v17  ;;  %v24441_v13 = vand.u32 4294901760, %v19579_v1  ;;  %v24443_v40 = vand.u32 4294901760, %v24442_v6  ;;  %v20120_v31 = vpack.c.bf16 %v11054_v48, %v11042_v38  ;;  %v24446_v48 = vld [vmem:[#allocation184_spill] sm:$0xff]  ;;  %v24457_v34 = vld [vmem:[#allocation201_spill] sm:$0xff] }
 0x6c1   : > { %v20104_v32 = vand.u32 4294901760, %v24437_v55  ;;  %12698 = vmatprep.subr.bf16.mxu0 %v24438_v57  ;;  %13298 = vmatprep.subr.bf16.mxu1 %v24439_v29  ;;  %24440 = vst [vmem:[#allocation131_spill] sm:$0xff] %v20112_v9  ;;  %v12705_v16 = vpack.c.bf16 %v24256_v49, %v24254_v27  ;;  %v24445_v57 = vld [vmem:[#allocation245_spill] sm:$0xff]  ;;  %v24449_v55 = vld [vmem:[#allocation186_spill] sm:$0xff]  ;;  %v24452_v9 = vld [vmem:[#allocation355_spill] sm:$0xff]  ;;  %v24458_v47 = vpack.c.bf16 %v24456_v35, %v24457_v34 }
 0x6c2   : > { %24436 = vst [vmem:[#allocation118_spill] sm:$0xff] %v20100_v18  ;;  %v8339_v63 = vsub.f32 %v19579_v1, %v24441_v13  ;;  %v11065_v17 = vsub.f32 %v24442_v6, %v24443_v40  ;;  %24444 = vst [vmem:[#allocation119_spill] sm:$0xff] %v20120_v31  ;;  %v13305_v29 = vpack.c.bf16 %v24445_v57, %v24259_v4  ;;  %v24447_v40 = vld [vmem:[#allocation171_spill] sm:$0xff]  ;;  %v24450_v18 = vld [vmem:[#allocation172_spill] sm:$0xff]  ;;  %v24453_v27 = vand.u32 4294901760, %v24452_v9 }
 0x6c3   : > { %v24448_v28 = vpack.c.bf16 %v24446_v48, %v24447_v40  ;;  %v24451_v31 = vpack.c.bf16 %v24449_v55, %v24450_v18  ;;  %v24454_v4 = vld [vmem:[#allocation356_spill] sm:$0xff]  ;;  %v24460_v48 = vld [vmem:[#allocation202_spill] sm:$0xff] }
 0x6c4   : > { %v8340_v44 = vand.u32 4294901760, %v8339_v63  ;;  %v8351_v49 = vsub.f32 %v24452_v9, %v24453_v27  ;;  %v24455_v57 = vand.u32 4294901760, %v24454_v4  ;;  %v11066_v63 = vand.u32 4294901760, %v11065_v17  ;;  %v24464_v17 = vld [vmem:[#allocation252_spill] sm:$0xff]  ;;  %v24469_v27 = vld [vmem:[#allocation253_spill] sm:$0xff] }
 0x6c5   : > { %12700 = vmatpush1.bf16.msra.mxu0 %v24448_v28  ;;  %13300 = vmatpush1.bf16.msra.mxu1 %v24451_v31  ;;  %v24459_v28 = vld [vmem:[#allocation220_spill] sm:$0xff]  ;;  %v24467_v31 = vld [vmem:[#allocation354_spill] sm:$0xff]  ;;  %v24470_v3 = vand.u32 4294901760, %v24469_v27 }
 0x6c6   : > { %v11077_v13 = vsub.f32 %v24454_v4, %v24455_v57  ;;  %12702 = vmatprep.subr.bf16.mxu0 %v24458_v47  ;;  %v24461_v55 = vpack.c.bf16 %v24459_v28, %v24460_v48  ;;  %v8352_v18 = vand.u32 4294901760, %v8351_v49  ;;  %v24462_v48 = vld [vmem:[#allocation351_spill] sm:$0xff]  ;;  %v24465_v28 = vand.u32 4294901760, %v24464_v17 }
 0x6c7   : > { %v24468_v40 = vand.u32 4294901760, %v24467_v31  ;;  %v24473_v49 = vand.u32 4294901760, %v24312_v11  ;;  %v24475_v47 = vand.u32 4294901760, %v24314_v15  ;;  %v24480_v31 = vld [vmem:[#allocation197_spill] sm:$0xff]  ;;  %v24486_v11 = vld [vmem:[#allocation275_spill] sm:$0xff] }
 0x6c8   : > { %13302 = vmatprep.subr.bf16.mxu1 %v24461_v55  ;;  %v11078_v38 = vand.u32 4294901760, %v11077_v13  ;;  %v24463_v55 = vand.u32 4294901760, %v24462_v48  ;;  %v24472_v13 = vand.u32 4294901760, %v24309_v56  ;;  %v24476_v48 = vand.u32 4294901760, %v24316_v21  ;;  %v24485_v56 = vld [vmem:[#allocation265_spill] sm:$0xff]  ;;  %v24495_v21 = vld [vmem:[#allocation307_spill] sm:$0xff] }
 0x6c9   : > { %v20176_v25 = vpack.c.bf16 %v24470_v3, %v24468_v40  ;;  %v24482_v3 = vld [vmem:[#allocation214_spill] sm:$0xff]  ;;  %v24501_v17 = vld [vmem:[#allocation363_spill] sm:$0xff] }
 0x6ca   : > { %v20170_v34 = vpack.c.bf16 %v24465_v28, %v24463_v55  ;;  %v20182_v35 = vpack.c.bf16 %v24473_v49, %v24472_v13  ;;  %v20188_v57 = vpack.c.bf16 %v24476_v48, %v24475_v47  ;;  %v24478_v55 = vld [vmem:[#allocation306_spill] sm:$0xff]  ;;  %v24479_v28 = vld [vmem:[#allocation211_spill] sm:$0xff]  ;;  %v20199_v13 = vpack.c.bf16 %v24486_v11, %v24485_v56  ;;  %v24492_v48 = vld [vmem:[#allocation229_spill] sm:$0xff] }
 0x6cb   : > { %24471 = vst [vmem:[#allocation274_spill] sm:$0xff] %v20176_v25  ;;  %v24483_v40 = vld [vmem:[#allocation198_spill] sm:$0xff]  ;;  %v20205_v47 = vpack.c.bf16 %v8352_v18, %v8340_v44  ;;  %v6458_v25 = vmax.f32 %v24495_v21, 0.0  ;;  %v24497_v56 = vld [vmem:[#allocation292_spill] sm:$0xff]  ;;  %v24504_v21 = vld [vmem:[#allocation271_spill] sm:$0xff] }
 0x6cc   : > { %24466 = vst [vmem:[#allocation319_spill] sm:$0xff] %v20170_v34  ;;  %24474 = vst [vmem:[#allocation193_spill] sm:$0xff] %v20182_v35  ;;  %v24481_v34 = vpack.c.bf16 %v24479_v28, %v24480_v31  ;;  %v24484_v27 = vpack.c.bf16 %v24482_v3, %v24483_v40  ;;  %v24488_v49 = vld [vmem:[#allocation266_spill] sm:$0xff]  ;;  %v24489_v35 = vld [vmem:[#allocation276_spill] sm:$0xff]  ;;  %v24498_v11 = vand.u32 4294901760, %v24497_v56  ;;  %v24511_v3 = vand.u32 4294901760, %v24340_v23 }
 0x6cd   : > { %24477 = vst [vmem:[#allocation299_spill] sm:$0xff] %v20188_v57  ;;  %24487 = vst [vmem:[#allocation208_spill] sm:$0xff] %v20199_v13  ;;  %v20203_v15 = vpack.c.bf16 %v24489_v35, %v24488_v49  ;;  %v24493_v57 = vmax.f32 %v24296_v46, 0.0  ;;  %v24499_v49 = vld [vmem:[#allocation358_spill] sm:$0xff]  ;;  %v24502_v46 = vld [vmem:[#allocation364_spill] sm:$0xff]  ;;  %v24529_v23 = vand.u32 4294901760, %v24361_v26 }
 0x6ce   : > { %12704 = vmatpush1.bf16.msra.mxu0 %v24481_v34  ;;  %13304 = vmatpush1.bf16.msra.mxu1 %v24484_v27  ;;  %24491 = vst [vmem:[#allocation141_spill] sm:$0xff] %v20205_v47  ;;  %v20214_v27 = vpack.c.bf16 %v11078_v38, %v11066_v63  ;;  %v8363_v35 = vsub.f32 %v24497_v56, %v24498_v11  ;;  %v24500_v18 = vand.u32 4294901760, %v24499_v49  ;;  %v24506_v38 = vld [vmem:[#allocation272_spill] sm:$0xff]  ;;  %v24508_v11 = vand.u32 4294901760, %v24330_v36  ;;  %v24519_v36 = vld [vmem:[#allocation241_spill] sm:$0xff] }
 0x6cf   : > { %24490 = vst [vmem:[#allocation349_spill] sm:$0xff] %v20203_v15  ;;  %v20211_v34 = vsub.f32 %v24493_v57, %v20050_v24  ;;  %12706 = vmatprep.subr.bf16.mxu0 %v12705_v16  ;;  %13306 = vmatprep.subr.bf16.mxu1 %v13305_v29  ;;  %v24503_v15 = vld [vmem:[#allocation254_spill] sm:$0xff]  ;;  %v24505_v29 = vld [vmem:[#allocation255_spill] sm:$0xff]  ;;  %v24513_v57 = vmax.f32 %v24311_v10, 0.0  ;;  %v24571_v26 = vld [vmem:[#allocation372_spill] sm:$0xff] }
 0x6d0   : > { %24496 = vst [vmem:[#allocation144_spill] sm:$0xff] %v20214_v27  ;;  %v11089_v44 = vsub.f32 %v24499_v49, %v24500_v18  ;;  %v12709_v16 = vpack.c.bf16 %v24504_v21, %v24503_v15  ;;  %v13309_v63 = vpack.c.bf16 %v24506_v38, %v24505_v29  ;;  %v24507_v27 = vand.u32 4294901760, %v24328_v60  ;;  %v24515_v15 = vld [vmem:[#allocation308_spill] sm:$0xff]  ;;  %v24516_v29 = vld [vmem:[#allocation239_spill] sm:$0xff] }
 0x6d1   : > { %24494 = vst [vmem:[#allocation74_spill] sm:$0xff] %v20211_v34  ;;  %v24510_v18 = vand.u32 4294901760, %v24338_v30  ;;  %v20245_v40 = vsub.f32 %v24513_v57, %v20104_v32  ;;  %v6460_v21 = vmax.f32 %v24515_v15, 0.0  ;;  %v24517_v38 = vld [vmem:[#allocation223_spill] sm:$0xff]  ;;  %v24524_v57 = vand.u32 4294901760, %v24478_v55 }
 0x6d2   : > { %v20234_v13 = vpack.c.bf16 %v24508_v11, %v24507_v27  ;;  %v24518_v60 = vpack.c.bf16 %v24516_v29, %v24517_v38  ;;  %v24520_v27 = vld [vmem:[#allocation224_spill] sm:$0xff]  ;;  %v11090_v29 = vand.u32 4294901760, %v11089_v44  ;;  %v24544_v44 = vand.u32 4294901760, %v24387_v50 }
 0x6d3   : > { %v20240_v47 = vpack.c.bf16 %v24511_v3, %v24510_v18  ;;  %24514 = vst [vmem:[#allocation162_spill] sm:$0xff] %v20245_v40  ;;  %v24521_v11 = vpack.c.bf16 %v24519_v36, %v24520_v27  ;;  %v24523_v18 = vand.u32 4294901760, %v24502_v46  ;;  %v20263_v15 = vsub.f32 %v24478_v55, %v24524_v57  ;;  %v24531_v55 = vld [vmem:[#allocation359_spill] sm:$0xff] }
 0x6d4   : > { %24509 = vst [vmem:[#allocation136_spill] sm:$0xff] %v20234_v13  ;;  %12708 = vmatpush1.bf16.msra.mxu0 %v24518_v60  ;;  %v24522_v13 = vand.u32 4294901760, %v24501_v17  ;;  %v24525_v60 = vand.u32 4294901760, %v24354_v7  ;;  %v24532_v38 = vand.u32 4294901760, %v24531_v55  ;;  %v24536_v7 = vld [vmem:[#allocation360_spill] sm:$0xff]  ;;  %v24545_v55 = vand.u32 4294901760, %v19421_v8 }
 0x6d5   : > { %24512 = vst [vmem:[#allocation215_spill] sm:$0xff] %v20240_v47  ;;  %13308 = vmatpush1.bf16.msra.mxu1 %v24521_v11  ;;  %v11101_v10 = vsub.f32 %v24502_v46, %v24523_v18  ;;  %v8101_v47 = vand.u32 4294901760, %v6458_v25  ;;  %12710 = vmatprep.subr.bf16.mxu0 %v12709_v16  ;;  %v24526_v11 = vand.u32 4294901760, %v24356_v19  ;;  %v8364_v18 = vand.u32 4294901760, %v8363_v35  ;;  %v24533_v16 = vld [vmem:[#allocation362_spill] sm:$0xff] }
 0x6d6   : > { %v8375_v3 = vsub.f32 %v24501_v17, %v24522_v13  ;;  %13310 = vmatprep.subr.bf16.mxu1 %v13309_v63  ;;  %v24528_v13 = vand.u32 4294901760, %v24359_v53  ;;  %v24534_v63 = vand.u32 4294901760, %v24533_v16  ;;  %v24537_v19 = vand.u32 4294901760, %v24536_v7  ;;  %v24550_v16 = vld [vmem:[#allocation268_spill] sm:$0xff] }
 0x6d7   : > { %v20269_v30 = vpack.c.bf16 %v24526_v11, %v24525_v60  ;;  %v11102_v57 = vand.u32 4294901760, %v11101_v10  ;;  %v24538_v60 = vld [vmem:[#allocation366_spill] sm:$0xff]  ;;  %v24541_v53 = vand.u32 4294901760, %v24384_v52  ;;  %v24547_v10 = vld [vmem:[#allocation264_spill] sm:$0xff]  ;;  %v20323_v8 = vsub.f32 %v6458_v25, %v8101_v47  ;;  %v24587_v25 = vld [vmem:[#allocation61_spill] sm:$0xff] }
 0x6d8   : > { %v20275_v36 = vpack.c.bf16 %v24529_v23, %v24528_v13  ;;  %v8376_v27 = vand.u32 4294901760, %v8375_v3  ;;  %v20281_v28 = vpack.c.bf16 %v24534_v63, %v24532_v38  ;;  %v24539_v11 = vand.u32 4294901760, %v24538_v60  ;;  %v24548_v13 = vld [vmem:[#allocation250_spill] sm:$0xff]  ;;  %v24553_v60 = vld [vmem:[#allocation293_spill] sm:$0xff] }
 0x6d9   : > { %24527 = vst [vmem:[#allocation150_spill] sm:$0xff] %v20269_v30  ;;  %v24542_v23 = vand.u32 4294901760, %v19398_v39  ;;  %v20299_v3 = vpack.c.bf16 %v24545_v55, %v24544_v44  ;;  %v10827_v38 = vand.u32 4294901760, %v6460_v21  ;;  %v24549_v7 = vpack.c.bf16 %v24547_v10, %v24548_v13  ;;  %24562 = vst [vmem:[#allocation351_spill] sm:$0xff] %v20323_v8  ;;  %v24564_v52 = vld [vmem:[#allocation38_spill] sm:$0xff]  ;;  %v24569_v39 = vld [vmem:[#allocation371_spill] sm:$0xff] }
 0x6da   : > { %24530 = vst [vmem:[#allocation165_spill] sm:$0xff] %v20275_v36  ;;  %24535 = vst [vmem:[#allocation153_spill] sm:$0xff] %v20281_v28  ;;  %v20287_v30 = vpack.c.bf16 %v24539_v11, %v24537_v19  ;;  %v24551_v19 = vld [vmem:[#allocation251_spill] sm:$0xff]  ;;  %v24554_v11 = vld [vmem:[#allocation361_spill] sm:$0xff]  ;;  %v20315_v50 = vpack.c.bf16 %v8376_v27, %v8364_v18  ;;  %v24560_v44 = vand.u32 4294901760, %v24492_v48 }
 0x6db   : > { %v20293_v35 = vpack.c.bf16 %v24542_v23, %v24541_v53  ;;  %24546 = vst [vmem:[#allocation237_spill] sm:$0xff] %v20299_v3  ;;  %12712 = vmatpush1.bf16.msra.mxu0 %v24549_v7  ;;  %v24552_v63 = vpack.c.bf16 %v24550_v16, %v24551_v19  ;;  %v20309_v36 = vpack.c.bf16 %v24554_v11, %v24553_v60  ;;  %v24556_v53 = vld [vmem:[#allocation357_spill] sm:$0xff]  ;;  %v24561_v7 = vld [vmem:[#allocation344_spill] sm:$0xff]  ;;  %v24566_v11 = vld [vmem:[#allocation346_spill] sm:$0xff]  ;;  %v24578_v3 = vand.u32 4294901760, %v19561_v58 }
 0x6dc   : > { %24540 = vst [vmem:[#allocation247_spill] sm:$0xff] %v20287_v30  ;;  %v24557_v23 = vld [vmem:[#allocation365_spill] sm:$0xff]  ;;  %24559 = vst [vmem:[#allocation202_spill] sm:$0xff] %v20315_v50  ;;  %v20320_v55 = vsub.f32 %v24492_v48, %v24560_v44  ;;  %v20327_v60 = vpack.c.bf16 %v11102_v57, %v11090_v29  ;;  %v24570_v48 = vld [vmem:[#allocation368_spill] sm:$0xff]  ;;  %v24577_v44 = vand.u32 4294901760, %v24414_v37  ;;  %v20356_v50 = vsub.f32 %v6460_v21, %v10827_v38 }
 0x6dd   : > { %24543 = vst [vmem:[#allocation152_spill] sm:$0xff] %v20293_v35  ;;  %13312 = vmatpush1.bf16.msra.mxu1 %v24552_v63  ;;  %24555 = vst [vmem:[#allocation245_spill] sm:$0xff] %v20309_v36  ;;  %v20313_v35 = vpack.c.bf16 %v24557_v23, %v24556_v53  ;;  %v24563_v63 = vld [vmem:[#allocation23_spill] sm:$0xff]  ;;  %v24572_v30 = vld [vmem:[#allocation124_spill] sm:$0xff]  ;;  %v24573_v29 = vand.u32 4294901760, %v24570_v48  ;;  %v24574_v53 = vand.u32 4294901760, %v24411_v22 }
 0x6de   : > { %12714 = vmatprep.subr.bf16.mxu0 %v24563_v63  ;;  %13314 = vmatprep.subr.bf16.mxu1 %v24564_v52  ;;  %24565 = vst [vmem:[#allocation252_spill] sm:$0xff] %v20327_v60  ;;  %v24567_v23 = vld [vmem:[#allocation367_spill] sm:$0xff]  ;;  %v20353_v60 = vpack.c.bf16 %v24578_v3, %v24577_v44  ;;  %24580 = vst [vmem:[#allocation197_spill] sm:$0xff] %v20356_v50  ;;  %v8422_v44 = vand.u32 4294901760, %v20323_v8  ;;  %v24586_v21 = vld [vmem:[#allocation56_spill] sm:$0xff]  ;;  %v24589_v37 = vand.u32 4294901760, %v24452_v9 }
 0x6df   : > { %24558 = vst [vmem:[#allocation220_spill] sm:$0xff] %v20313_v35  ;;  %v24568_v27 = vand.u32 4294901760, %v24567_v23  ;;  %7332 = vmatmul.mubr.f32.vlgmr.msra.gmra.mrb[102].mxu0 %v24572_v30  ;;  %v11113_v57 = vsub.f32 %v24570_v48, %v24573_v29  ;;  %v24582_v35 = vld [vmem:[#allocation9_spill] sm:$0xff]  ;;  %v24583_v29 = vand.u32 4294901760, %v24569_v39  ;;  %v24595_v36 = vld [vmem:[#allocation324_spill] sm:$0xff] }
 0x6e0   : > { %10058 = vmatmul.mubr.f32.vlgmr.msra.gmra.mrb[102].mxu1 %v24572_v30  ;;  %24579 = vst [vmem:[#allocation253_spill] sm:$0xff] %v20353_v60  ;;  %v24581_v30 = vld [vmem:[#allocation28_spill] sm:$0xff]  ;;  %v24588_v60 = vand.u32 4294901760, %v19579_v1  ;;  %7339 = vmatprep.mubr.f32.mxu0 %v24595_v36  ;;  %v24596_v9 = vld [vmem:[#allocation325_spill] sm:$0xff] }
 0x6e1   : > { %v8387_v18 = vsub.f32 %v24567_v23, %v24568_v27  ;;  %v24575_v27 = vand.u32 4294901760, %v19549_v45  ;;  %12716 = vmatpush1.bf16.msra.mxu0 %v24581_v30  ;;  %13316 = vmatpush1.bf16.msra.mxu1 %v24582_v35  ;;  %v8399_v22 = vsub.f32 %v24569_v39, %v24583_v29  ;;  %v24591_v29 = vand.u32 4294901760, %v24442_v6  ;;  %v24602_v6 = vld [vmem:[#allocation370_spill] sm:$0xff] }
 0x6e2   : > { %12718 = vmatprep.subr.bf16.mxu0 %v24586_v21  ;;  %13318 = vmatprep.subr.bf16.mxu1 %v24587_v25  ;;  %v20376_v58 = vpack.c.bf16 %v24589_v37, %v24588_v60  ;;  %v11114_v37 = vand.u32 4294901760, %v11113_v57  ;;  %v24597_v60 = vld [vmem:[#allocation369_spill] sm:$0xff]  ;;  %v24610_v57 = vld [vmem:[#allocation27_spill] sm:$0xff] }
 0x6e3   : > { %v20347_v28 = vpack.c.bf16 %v24575_v27, %v24574_v53  ;;  %v24584_v53 = vand.u32 4294901760, %v24571_v26  ;;  %10065 = vmatprep.mubr.f32.mxu1 %v24595_v36  ;;  %v8388_v25 = vand.u32 4294901760, %v8387_v18  ;;  %v8400_v1 = vand.u32 4294901760, %v8399_v22  ;;  %7342 = vmatmul.mubr.f32.gmra.mrb[104].mxu0 %v24596_v9 }
 0x6e4   : > { %24590 = vst [vmem:[#allocation265_spill] sm:$0xff] %v20376_v58  ;;  %10068 = vmatmul.mubr.f32.gmra.mrb[104].mxu1 %v24596_v9  ;;  %v24598_v58 = vand.u32 4294901760, %v24597_v60  ;;  %v24607_v36 = vand.u32 4294901760, %v24497_v56  ;;  %v24608_v22 = vand.u32 4294901760, %v24501_v17  ;;  %v11148_v9 = vand.u32 4294901760, %v20356_v50  ;;  %v24616_v60 = vld [vmem:[#allocation78_spill] sm:$0xff] }
 0x6e5   : > { %24576 = vst [vmem:[#allocation354_spill] sm:$0xff] %v20347_v28  ;;  %v11125_v27 = vsub.f32 %v24571_v26, %v24584_v53  ;;  %v24585_v28 = vand.u32 4294901760, %v24561_v7  ;;  %v24592_v53 = vand.u32 4294901760, %v24454_v4  ;;  %12720 = vmatpush1.bf16.msra.mxu0 %v24610_v57  ;;  %v24669_v56 = vld [vmem:[#allocation114_spill] sm:$0xff] }
 0x6e6   : > { %v20407_v18 = vpack.c.bf16 %v24608_v22, %v24607_v36  ;;  %v24619_v36 = vand.u32 4294901760, %v20245_v40  ;;  %v24670_v17 = vld [vmem:[#allocation138_spill] sm:$0xff] }
 0x6e7   : > { %v8429_v3 = vsub.f32 %v24561_v7, %v24585_v28  ;;  %v20382_v45 = vpack.c.bf16 %v24592_v53, %v24591_v29  ;;  %v24594_v28 = vand.u32 4294901760, %v24566_v11  ;;  %v11126_v21 = vand.u32 4294901760, %v11125_v27  ;;  %v24599_v29 = vld [vmem:[#allocation297_spill] sm:$0xff]  ;;  %v24611_v27 = vld [vmem:[#allocation34_spill] sm:$0xff] }
 0x6e8   : > { %v24600_v53 = vand.u32 4294901760, %v24599_v29  ;;  %24609 = vst [vmem:[#allocation307_spill] sm:$0xff] %v20407_v18  ;;  %13320 = vmatpush1.bf16.msra.mxu1 %v24611_v27  ;;  %v24627_v18 = vand.u32 4294901760, %v24567_v23  ;;  %v24636_v23 = vld [vmem:[#allocation195_spill] sm:$0xff] }
 0x6e9   : > { %24593 = vst [vmem:[#allocation275_spill] sm:$0xff] %v20382_v45  ;;  %v11155_v7 = vsub.f32 %v24566_v11, %v24594_v28  ;;  %v24603_v28 = vand.u32 4294901760, %v24602_v6  ;;  %v24604_v11 = vld [vmem:[#allocation373_spill] sm:$0xff]  ;;  %v20416_v6 = vpack.c.bf16 %v10827_v38, %v20104_v32  ;;  %13322 = vmatprep.subr.bf16.mxu1 %v24616_v60  ;;  %v20422_v29 = vpack.c.bf16 %v11126_v21, %v11114_v37 }
 0x6ea   : > { %v20395_v45 = vpack.c.bf16 %v24600_v53, %v24598_v58  ;;  %v24605_v4 = vand.u32 4294901760, %v24604_v11  ;;  %v20413_v58 = vpack.c.bf16 %v8101_v47, %v20050_v24  ;;  %v24615_v11 = vld [vmem:[#allocation75_spill] sm:$0xff]  ;;  %v24618_v53 = vand.u32 4294901760, %v20211_v34 }
 0x6eb   : > { %24613 = vst [vmem:[#allocation271_spill] sm:$0xff] %v20416_v6  ;;  %12722 = vmatprep.subr.bf16.mxu0 %v24615_v11  ;;  %24617 = vst [vmem:[#allocation272_spill] sm:$0xff] %v20422_v29  ;;  %v11137_v24 = vsub.f32 %v20245_v40, %v24619_v36  ;;  %v24620_v47 = vld [vmem:[#allocation291_spill] sm:$0xff]  ;;  %v24621_v38 = vand.u32 4294901760, %v24499_v49  ;;  %v8430_v37 = vand.u32 4294901760, %v8429_v3  ;;  %v11156_v22 = vand.u32 4294901760, %v11155_v7 }
 0x6ec   : > { %24601 = vst [vmem:[#allocation266_spill] sm:$0xff] %v20395_v45  ;;  %v20401_v35 = vpack.c.bf16 %v24605_v4, %v24603_v28  ;;  %24612 = vst [vmem:[#allocation254_spill] sm:$0xff] %v20413_v58  ;;  %v20418_v4 = vpack.c.bf16 %v8400_v1, %v8388_v25  ;;  %v8411_v28 = vsub.f32 %v20211_v34, %v24618_v53  ;;  %7349 = vmatprep.mubr.f32.mxu0 %v24620_v47  ;;  %v24624_v53 = vld [vmem:[#allocation337_spill] sm:$0xff]  ;;  %v24625_v36 = vld [vmem:[#allocation52_spill] sm:$0xff] }
 0x6ed   : > { %10075 = vmatprep.mubr.f32.mxu1 %v24620_v47  ;;  %v24622_v25 = vand.u32 4294901760, %v24502_v46  ;;  %7352 = vmatmul.mubr.f32.gmra.mrb[106].mxu0 %v24624_v53  ;;  %v24626_v47 = vld [vmem:[#allocation58_spill] sm:$0xff]  ;;  %v8423_v32 = vsub.f32 %v20323_v8, %v8422_v44  ;;  %v11149_v1 = vsub.f32 %v20356_v50, %v11148_v9  ;;  %v24628_v49 = vand.u32 4294901760, %v24569_v39  ;;  %v24635_v50 = vld [vmem:[#allocation343_spill] sm:$0xff]  ;;  %v24676_v45 = vld [vmem:[#allocation80_spill] sm:$0xff] }
 0x6ee   : > { %24606 = vst [vmem:[#allocation276_spill] sm:$0xff] %v20401_v35  ;;  %24614 = vst [vmem:[#allocation255_spill] sm:$0xff] %v20418_v4  ;;  %10078 = vmatmul.mubr.f32.gmra.mrb[106].mxu1 %v24624_v53  ;;  %12724 = vmatpush1.bf16.msra.mxu0 %v24625_v36  ;;  %v8418_v7 = vand.u32 4294901760, %v20263_v15  ;;  %v11144_v3 = vand.u32 4294901760, %v20320_v55  ;;  %v24631_v53 = vld [vmem:[#allocation10_spill] sm:$0xff]  ;;  %v24633_v8 = vand.u32 4294901760, %v24571_v26 }
 0x6ef   : > { %v20440_v21 = vpack.c.bf16 %v24622_v25, %v24621_v38  ;;  %13324 = vmatpush1.bf16.msra.mxu1 %v24626_v47  ;;  %v20452_v38 = vpack.c.bf16 %v24628_v49, %v24627_v18  ;;  %v24630_v25 = vld [vmem:[#allocation100_spill] sm:$0xff]  ;;  %7359 = vmatprep.mubr.f32.mxu0 %v24635_v50  ;;  %v8412_v49 = vand.u32 4294901760, %v8411_v28  ;;  %v8424_v18 = vand.u32 4294901760, %v8423_v32  ;;  %v24646_v32 = vld [vmem:[#allocation35_spill] sm:$0xff]  ;;  %v24675_v35 = vld [vmem:[#allocation158_spill] sm:$0xff] }
 0x6f0   : > { %12726 = vmatprep.subr.bf16.mxu0 %v24630_v25  ;;  %13326 = vmatprep.subr.bf16.mxu1 %v24631_v53  ;;  %v11150_v15 = vand.u32 4294901760, %v11149_v1  ;;  %v20468_v55 = vpack.c.bf16 %v8430_v37, %v8418_v7  ;;  %v20470_v39 = vpack.c.bf16 %v11156_v22, %v11144_v3  ;;  %v24649_v37 = vld [vmem:[#allocation127_spill] sm:$0xff]  ;;  %v24677_v29 = vld [vmem:[#allocation142_spill] sm:$0xff]  ;;  %v24679_v6 = vld [vmem:[#allocation180_spill] sm:$0xff] }
 0x6f1   : > { %24623 = vst [vmem:[#allocation308_spill] sm:$0xff] %v20440_v21  ;;  %24629 = vst [vmem:[#allocation359_spill] sm:$0xff] %v20452_v38  ;;  %v24632_v21 = vand.u32 4294901760, %v24570_v48  ;;  %10085 = vmatprep.mubr.f32.mxu1 %v24635_v50  ;;  %v11138_v38 = vand.u32 4294901760, %v11137_v24  ;;  %7362 = vmatmul.mubr.f32.gmra.mrb[108].mxu0 %v24636_v23  ;;  %v24639_v48 = vand.u32 4294901760, %v20211_v34  ;;  %v20478_v50 = vpack.c.bf16 %v8424_v18, %v8412_v49  ;;  %v24645_v24 = vld [vmem:[#allocation33_spill] sm:$0xff] }
 0x6f2   : > { %10088 = vmatmul.mubr.f32.gmra.mrb[108].mxu1 %v24636_v23  ;;  %24637 = vst [vmem:[#allocation360_spill] sm:$0xff] %v20468_v55  ;;  %24638 = vst [vmem:[#allocation366_spill] sm:$0xff] %v20470_v39  ;;  %v24647_v23 = vand.u32 4294901760, %v20245_v40  ;;  %7369 = vmatprep.mubr.f32.mxu0 %v24649_v37  ;;  %v24652_v22 = vld [vmem:[#allocation15_spill] sm:$0xff]  ;;  %v24657_v49 = vld [vmem:[#allocation42_spill] sm:$0xff] }
 0x6f3   : > { %v20462_v46 = vpack.c.bf16 %v24633_v8, %v24632_v21  ;;  %v20474_v8 = vpack.c.bf16 %v8422_v44, %v24639_v48  ;;  %v24641_v21 = vld [vmem:[#allocation79_spill] sm:$0xff]  ;;  %24643 = vst [vmem:[#allocation250_spill] sm:$0xff] %v20478_v50  ;;  %v20480_v28 = vpack.c.bf16 %v11150_v15, %v11138_v38  ;;  %10095 = vmatprep.mubr.f32.mxu1 %v24649_v37  ;;  %v24650_v48 = vld [vmem:[#allocation348_spill] sm:$0xff]  ;;  %v24658_v18 = vld [vmem:[#allocation85_spill] sm:$0xff] }
 0x6f4   : > { %12728 = vmatpush1.bf16.msra.mxu0 %v24641_v21  ;;  %v20486_v1 = vpack.c.bf16 %v11148_v9, %v24647_v23  ;;  %v24651_v44 = vld [vmem:[#allocation12_spill] sm:$0xff]  ;;  %v24653_v38 = vld [vmem:[#allocation55_spill] sm:$0xff]  ;;  %v24656_v9 = vld [vmem:[#allocation37_spill] sm:$0xff] }
 0x6f5   : > { %24634 = vst [vmem:[#allocation362_spill] sm:$0xff] %v20462_v46  ;;  %24640 = vst [vmem:[#allocation264_spill] sm:$0xff] %v20474_v8  ;;  %v24642_v46 = vld [vmem:[#allocation84_spill] sm:$0xff]  ;;  %12730 = vmatprep.subr.bf16.mxu0 %v24645_v24  ;;  %7372 = vmatmul.mubr.f32.gmra.mrb[110].mxu0 %v24650_v48  ;;  %v24654_v7 = vld [vmem:[#allocation59_spill] sm:$0xff] }
 0x6f6   : > { %13328 = vmatpush1.bf16.msra.mxu1 %v24642_v46  ;;  %24644 = vst [vmem:[#allocation268_spill] sm:$0xff] %v20480_v28  ;;  %24648 = vst [vmem:[#allocation251_spill] sm:$0xff] %v20486_v1  ;;  %v24655_v3 = vld [vmem:[#allocation107_spill] sm:$0xff]  ;;  %v24659_v15 = vld [vmem:[#allocation88_spill] sm:$0xff] }
 0x6f7   : > { %13330 = vmatprep.subr.bf16.mxu1 %v24646_v32  ;;  %10098 = vmatmul.mubr.f32.gmra.mrb[110].mxu1 %v24650_v48  ;;  %v24660_v23 = vld [vmem:[#allocation62_spill] sm:$0xff]  ;;  %v24662_v48 = vld [vmem:[#allocation104_spill] sm:$0xff]  ;;  %v24663_v1 = vld [vmem:[#allocation105_spill] sm:$0xff] }
 0x6f8   : > { %12732 = vmatpush1.bf16.msra.mxu0 %v24651_v44  ;;  %7509 = vmatprep.mubr.f32.mxu0 %v24655_v3  ;;  %v24661_v37 = vld [vmem:[#allocation66_spill] sm:$0xff]  ;;  %v24664_v8 = vld [vmem:[#allocation89_spill] sm:$0xff]  ;;  %v24667_v34 = vld [vmem:[#allocation123_spill] sm:$0xff] }
 0x6f9   : > { %12734 = vmatprep.subr.bf16.mxu0 %v24653_v38  ;;  %10235 = vmatprep.mubr.f32.mxu1 %v24655_v3  ;;  %v24665_v40 = vld [vmem:[#allocation94_spill] sm:$0xff]  ;;  %v24668_v26 = vld [vmem:[#allocation111_spill] sm:$0xff]  ;;  %v24671_v39 = vld [vmem:[#allocation140_spill] sm:$0xff] }
 0x6fa   : > { %13332 = vmatpush1.bf16.msra.mxu1 %v24652_v22  ;;  %v24666_v3 = vld [vmem:[#allocation122_spill] sm:$0xff]  ;;  %v24672_v55 = vld [vmem:[#allocation128_spill] sm:$0xff]  ;;  %v24680_v58 = vld [vmem:[#allocation161_spill] sm:$0xff] }
 0x6fb   : > { %13334 = vmatprep.subr.bf16.mxu1 %v24654_v7  ;;  %v24673_v28 = vld [vmem:[#allocation130_spill] sm:$0xff]  ;;  %v24674_v50 = vld [vmem:[#allocation156_spill] sm:$0xff] }
 0x6fc   : > { %12736 = vmatpush1.bf16.msra.mxu0 %v24656_v9  ;;  %v24678_v4 = vld [vmem:[#allocation178_spill] sm:$0xff] }
 0x6fd   : > { %12738 = vmatprep.subr.bf16.mxu0 %v24658_v18 }
 0x6fe   : > { %13336 = vmatpush1.bf16.msra.mxu1 %v24657_v49 }
 0x6ff   : > { %13338 = vmatprep.subr.bf16.mxu1 %v24659_v15 }
 0x700   : > { %12740 = vmatpush1.bf16.msra.mxu0 %v24660_v23 }
 0x701   : > { %12742 = vmatprep.subr.bf16.mxu0 %v24662_v48 }
 0x702   : > { %13340 = vmatpush1.bf16.msra.mxu1 %v24661_v37 }
 0x703   : > { %13342 = vmatprep.subr.bf16.mxu1 %v24663_v1 }
 0x704   : > { %12744 = vmatpush1.bf16.msra.mxu0 %v24664_v8 }
 0x705   : > { %12746 = vmatprep.subr.bf16.mxu0 %v24666_v3 }
 0x706   : > { %13344 = vmatpush1.bf16.msra.mxu1 %v24665_v40  ;;  %v24704_v40 = vld [vmem:[#allocation263_spill] sm:$0xff] }
 0x707   : > { %13346 = vmatprep.subr.bf16.mxu1 %v24667_v34 }
 0x708   : > { %12748 = vmatpush1.bf16.msra.mxu0 %v24668_v26 }
 0x709   : > { %12750 = vmatprep.subr.bf16.mxu0 %v24670_v17  ;;  %v24681_v17 = vld [vmem:[#allocation163_spill] sm:$0xff] }
 0x70a   : > { %13348 = vmatpush1.bf16.msra.mxu1 %v24669_v56  ;;  %v24698_v56 = vld [vmem:[#allocation14_spill] sm:$0xff] }
 0x70b   : > { %13350 = vmatprep.subr.bf16.mxu1 %v24671_v39  ;;  %v24682_v39 = vld [vmem:[#allocation203_spill] sm:$0xff] }
 0x70c   : > { %12752 = vmatpush1.bf16.msra.mxu0 %v24672_v55  ;;  %v24683_v55 = vld [vmem:[#allocation204_spill] sm:$0xff] }
 0x70d   : > { %12754 = vmatprep.subr.bf16.mxu0 %v24674_v50  ;;  %v24685_v50 = vld [vmem:[#allocation185_spill] sm:$0xff] }
 0x70e   : > { %13352 = vmatpush1.bf16.msra.mxu1 %v24673_v28  ;;  %v24684_v28 = vld [vmem:[#allocation183_spill] sm:$0xff] }
 0x70f   : > { %13354 = vmatprep.subr.bf16.mxu1 %v24675_v35  ;;  %v24686_v35 = vld [vmem:[#allocation228_spill] sm:$0xff] }
 0x710   : > { %12756 = vmatpush1.bf16.msra.mxu0 %v24676_v45  ;;  %v24687_v45 = vld [vmem:[#allocation231_spill] sm:$0xff] }
 0x711   : > { %12758 = vmatprep.subr.bf16.mxu0 %v24678_v4  ;;  %v24689_v4 = vld [vmem:[#allocation213_spill] sm:$0xff] }
 0x712   : > { %13356 = vmatpush1.bf16.msra.mxu1 %v24677_v29  ;;  %v24688_v29 = vld [vmem:[#allocation210_spill] sm:$0xff] }
 0x713   : > { %13358 = vmatprep.subr.bf16.mxu1 %v24679_v6  ;;  %v24690_v6 = vld [vmem:[#allocation256_spill] sm:$0xff] }
 0x714   : > { %12760 = vmatpush1.bf16.msra.mxu0 %v24680_v58  ;;  %v24691_v58 = vld [vmem:[#allocation257_spill] sm:$0xff] }
 0x715   : > { %12762 = vmatprep.subr.bf16.mxu0 %v24682_v39  ;;  %v24693_v39 = vld [vmem:[#allocation240_spill] sm:$0xff] }
 0x716   : > { %13360 = vmatpush1.bf16.msra.mxu1 %v24681_v17  ;;  %v24692_v17 = vld [vmem:[#allocation238_spill] sm:$0xff] }
 0x717   : > { %13362 = vmatprep.subr.bf16.mxu1 %v24683_v55  ;;  %v24694_v55 = vld [vmem:[#allocation277_spill] sm:$0xff] }
 0x718   : > { %12764 = vmatpush1.bf16.msra.mxu0 %v24684_v28  ;;  %v24695_v28 = vld [vmem:[#allocation278_spill] sm:$0xff] }
 0x719   : > { %12766 = vmatprep.subr.bf16.mxu0 %v24686_v35 }
 0x71a   : > { %13364 = vmatpush1.bf16.msra.mxu1 %v24685_v50  ;;  %v24696_v50 = vld [vmem:[#allocation6_spill] sm:$0xff] }
 0x71b   : > { %13366 = vmatprep.subr.bf16.mxu1 %v24687_v45  ;;  %v24697_v35 = vand.u32 4294901760, %v24696_v50  ;;  %v24699_v45 = vand.u32 4294901760, %v24698_v56  ;;  %v24710_v50 = vld [vmem:[#allocation8_spill] sm:$0xff]  ;;  %v24712_v56 = vld [vmem:[#allocation11_spill] sm:$0xff] }
 0x71c   : > { %12768 = vmatpush1.bf16.msra.mxu0 %v24688_v29  ;;  %v24700_v29 = vld [vmem:[#allocation7_spill] sm:$0xff]  ;;  %v24711_v1 = vand.u32 4294901760, %v24710_v50 }
 0x71d   : > { %12770 = vmatprep.subr.bf16.mxu0 %v24690_v6  ;;  %v12777_v26 = vpack.c.bf16 %v24699_v45, %v24697_v35  ;;  %v24701_v34 = vand.u32 4294901760, %v24700_v29  ;;  %v24713_v45 = vand.u32 4294901760, %v24712_v56  ;;  %v24714_v29 = vld [vmem:[#allocation109_spill] sm:$0xff] }
 0x71e   : > { %13368 = vmatpush1.bf16.msra.mxu1 %v24689_v4  ;;  %v24702_v4 = vld [vmem:[#allocation16_spill] sm:$0xff] }
 0x71f   : > { %13370 = vmatprep.subr.bf16.mxu1 %v24691_v58  ;;  %v24703_v3 = vand.u32 4294901760, %v24702_v4  ;;  %v24705_v58 = vld [vmem:[#allocation267_spill] sm:$0xff]  ;;  %v13379_v35 = vpack.c.bf16 %v24713_v45, %v24711_v1  ;;  %v24725_v1 = vld [vmem:[#allocation32_spill] sm:$0xff] }
 0x720   : > { %12772 = vmatpush1.bf16.msra.mxu0 %v24692_v17  ;;  %v24708_v17 = vld [vmem:[#allocation30_spill] sm:$0xff]  ;;  %v24726_v50 = vand.u32 4294901760, %v24725_v1  ;;  %v24727_v45 = vld [vmem:[#allocation20_spill] sm:$0xff] }
 0x721   : > { %12774 = vmatprep.subr.bf16.mxu0 %v24694_v55  ;;  %v13377_v6 = vpack.c.bf16 %v24703_v3, %v24701_v34  ;;  %v24715_v34 = vld [vmem:[#allocation22_spill] sm:$0xff]  ;;  %v24717_v3 = vld [vmem:[#allocation40_spill] sm:$0xff] }
 0x722   : > { %13372 = vmatpush1.bf16.msra.mxu1 %v24693_v39  ;;  %v24706_v39 = vld [vmem:[#allocation95_spill] sm:$0xff]  ;;  %v24716_v4 = vand.u32 4294901760, %v24715_v34  ;;  %v24729_v34 = vld [vmem:[#allocation36_spill] sm:$0xff] }
 0x723   : > { %13374 = vmatprep.subr.bf16.mxu1 %v24695_v28  ;;  %v24707_v55 = vand.u32 4294901760, %v24706_v39  ;;  %v24709_v28 = vand.u32 4294901760, %v24708_v17  ;;  %v24721_v39 = vld [vmem:[#allocation41_spill] sm:$0xff]  ;;  %v24730_v37 = vand.u32 4294901760, %v24729_v34  ;;  %v24745_v34 = vld [vmem:[#allocation46_spill] sm:$0xff] }
 0x724   : > { %12776 = vmatpush1.bf16.msra.mxu0 %v24704_v40  ;;  %v24722_v48 = vand.u32 4294901760, %v24721_v39  ;;  %v24738_v39 = vld [vmem:[#allocation65_spill] sm:$0xff] }
 0x725   : > { %12778 = vmatprep.subr.bf16.mxu0 %v12777_v26  ;;  %v12779_v8 = vpack.c.bf16 %v24709_v28, %v24707_v55  ;;  %v24723_v55 = vld [vmem:[#allocation17_spill] sm:$0xff] }
 0x726   : > { %13376 = vmatpush1.bf16.msra.mxu1 %v24705_v58  ;;  %v24718_v58 = vand.u32 4294901760, %v24717_v3  ;;  %v24724_v28 = vand.u32 4294901760, %v24723_v55 }
 0x727   : > { %13378 = vmatprep.subr.bf16.mxu1 %v13377_v6  ;;  %7513 = vmatmul.mubr.f32.vlgmr.msra.gmra.mrb[102].mxu0 %v24714_v29  ;;  %v24719_v6 = vld [vmem:[#allocation26_spill] sm:$0xff] }
 0x728   : > { %v12781_v26 = vpack.c.bf16 %v24718_v58, %v24716_v4  ;;  %v24720_v40 = vand.u32 4294901760, %v24719_v6  ;;  %12780 = vmatpush1.bf16.msra.mxu0 %v12779_v8  ;;  %v12783_v56 = vpack.c.bf16 %v24726_v50, %v24724_v28  ;;  %v24731_v58 = vld [vmem:[#allocation326_spill] sm:$0xff]  ;;  %v24732_v4 = vld [vmem:[#allocation47_spill] sm:$0xff]  ;;  %v24734_v8 = vld [vmem:[#allocation64_spill] sm:$0xff] }
 0x729   : > { %10239 = vmatmul.mubr.f32.vlgmr.msra.gmra.mrb[102].mxu1 %v24714_v29  ;;  %v24728_v29 = vand.u32 4294901760, %v24727_v45  ;;  %7521 = vmatprep.mubr.f32.mxu0 %v24731_v58  ;;  %v24740_v28 = vld [vmem:[#allocation273_spill] sm:$0xff]  ;;  %v24743_v50 = vld [vmem:[#allocation54_spill] sm:$0xff] }
 0x72a   : > { %v13381_v17 = vpack.c.bf16 %v24722_v48, %v24720_v40  ;;  %13380 = vmatpush1.bf16.msra.mxu1 %v13379_v35  ;;  %12782 = vmatprep.subr.bf16.mxu0 %v12781_v26  ;;  %v24733_v40 = vand.u32 4294901760, %v24732_v4  ;;  %v24735_v48 = vand.u32 4294901760, %v24734_v8  ;;  %v24736_v26 = vld [vmem:[#allocation50_spill] sm:$0xff]  ;;  %v24744_v45 = vand.u32 4294901760, %v24743_v50  ;;  %v24747_v4 = vld [vmem:[#allocation60_spill] sm:$0xff] }
 0x72b   : > { %v13383_v3 = vpack.c.bf16 %v24730_v37, %v24728_v29  ;;  %10247 = vmatprep.mubr.f32.mxu1 %v24731_v58  ;;  %v24737_v6 = vand.u32 4294901760, %v24736_v26  ;;  %7525 = vmatmul.mubr.f32.gmra.mrb[104].mxu0 %v24740_v28  ;;  %v24741_v37 = vld [vmem:[#allocation43_spill] sm:$0xff]  ;;  %v24746_v58 = vand.u32 4294901760, %v24745_v34  ;;  %v24750_v26 = vld [vmem:[#allocation72_spill] sm:$0xff]  ;;  %v24761_v34 = vld [vmem:[#allocation82_spill] sm:$0xff] }
 0x72c   : > { %13382 = vmatprep.subr.bf16.mxu1 %v13381_v17  ;;  %v12785_v35 = vpack.c.bf16 %v24735_v48, %v24733_v40  ;;  %v24739_v17 = vand.u32 4294901760, %v24738_v39  ;;  %12784 = vmatpush1.bf16.msra.mxu0 %v12783_v56  ;;  %v24742_v1 = vand.u32 4294901760, %v24741_v37  ;;  %v24748_v40 = vand.u32 4294901760, %v24747_v4  ;;  %v24749_v48 = vld [vmem:[#allocation335_spill] sm:$0xff]  ;;  %v24754_v39 = vld [vmem:[#allocation73_spill] sm:$0xff]  ;;  %v24759_v50 = vld [vmem:[#allocation68_spill] sm:$0xff] }
 0x72d   : > { %10251 = vmatmul.mubr.f32.gmra.mrb[104].mxu1 %v24740_v28  ;;  %7533 = vmatprep.mubr.f32.mxu0 %v24749_v48  ;;  %v24752_v56 = vld [vmem:[#allocation87_spill] sm:$0xff] }
 0x72e   : > { %v13385_v55 = vpack.c.bf16 %v24739_v17, %v24737_v6  ;;  %13384 = vmatpush1.bf16.msra.mxu1 %v13383_v3  ;;  %12786 = vmatprep.subr.bf16.mxu0 %v12785_v35  ;;  %v12787_v29 = vpack.c.bf16 %v24744_v45, %v24742_v1  ;;  %v13387_v8 = vpack.c.bf16 %v24748_v40, %v24746_v58  ;;  %v24751_v6 = vand.u32 4294901760, %v24750_v26  ;;  %v24758_v1 = vld [vmem:[#allocation339_spill] sm:$0xff]  ;;  %v24763_v40 = vld [vmem:[#allocation70_spill] sm:$0xff] }
 0x72f   : > { %10259 = vmatprep.mubr.f32.mxu1 %v24749_v48  ;;  %v24753_v3 = vand.u32 4294901760, %v24752_v56  ;;  %v24755_v17 = vand.u32 4294901760, %v24754_v39  ;;  %7537 = vmatmul.mubr.f32.gmra.mrb[106].mxu0 %v24758_v1  ;;  %v24760_v45 = vand.u32 4294901760, %v24759_v50  ;;  %v24762_v58 = vand.u32 4294901760, %v24761_v34  ;;  %v24765_v26 = vld [vmem:[#allocation86_spill] sm:$0xff]  ;;  %v24768_v39 = vld [vmem:[#allocation97_spill] sm:$0xff] }
 0x730   : > { %13386 = vmatprep.subr.bf16.mxu1 %v13385_v55  ;;  %v24756_v55 = vld [vmem:[#allocation90_spill] sm:$0xff]  ;;  %12788 = vmatpush1.bf16.msra.mxu0 %v12787_v29  ;;  %v24764_v48 = vand.u32 4294901760, %v24763_v40  ;;  %v24770_v29 = vld [vmem:[#allocation19_spill] sm:$0xff]  ;;  %v24777_v34 = vld [vmem:[#allocation92_spill] sm:$0xff] }
 0x731   : > { %v12789_v35 = vpack.c.bf16 %v24753_v3, %v24751_v6  ;;  %v24757_v28 = vand.u32 4294901760, %v24756_v55  ;;  %10263 = vmatmul.mubr.f32.gmra.mrb[106].mxu1 %v24758_v1  ;;  %v12791_v4 = vpack.c.bf16 %v24762_v58, %v24760_v45  ;;  %v24766_v6 = vand.u32 4294901760, %v24765_v26  ;;  %v24767_v3 = vld [vmem:[#allocation179_spill] sm:$0xff]  ;;  %v24776_v45 = vld [vmem:[#allocation212_spill] sm:$0xff]  ;;  %v24779_v40 = vld [vmem:[#allocation13_spill] sm:$0xff] }
 0x732   : > { %13388 = vmatpush1.bf16.msra.mxu1 %v13387_v8  ;;  %7545 = vmatprep.mubr.f32.mxu0 %v24767_v3  ;;  %v24771_v8 = vand.u32 4294901760, %v24770_v29  ;;  %v24772_v55 = vld [vmem:[#allocation103_spill] sm:$0xff]  ;;  %v24778_v58 = vand.u32 4294901760, %v24777_v34 }
 0x733   : > { %v13389_v37 = vpack.c.bf16 %v24757_v28, %v24755_v17  ;;  %12790 = vmatprep.subr.bf16.mxu0 %v12789_v35  ;;  %v13391_v56 = vpack.c.bf16 %v24766_v6, %v24764_v48  ;;  %10271 = vmatprep.mubr.f32.mxu1 %v24767_v3  ;;  %v24769_v17 = vand.u32 4294901760, %v24768_v39  ;;  %v24773_v28 = vand.u32 4294901760, %v24772_v55  ;;  %v24781_v6 = vld [vmem:[#allocation93_spill] sm:$0xff]  ;;  %v24783_v39 = vld [vmem:[#allocation18_spill] sm:$0xff] }
 0x734   : > { %7549 = vmatmul.mubr.f32.gmra.mrb[108].mxu0 %v24776_v45  ;;  %v24780_v48 = vand.u32 4294901760, %v24779_v40  ;;  %v24782_v3 = vand.u32 4294901760, %v24781_v6  ;;  %v24786_v55 = vld [vmem:[#allocation29_spill] sm:$0xff]  ;;  %v24795_v40 = vld [vmem:[#allocation24_spill] sm:$0xff]  ;;  %v24797_v6 = vld [vmem:[#allocation39_spill] sm:$0xff] }
 0x735   : > { %13390 = vmatprep.subr.bf16.mxu1 %v13389_v37  ;;  %v12793_v35 = vpack.c.bf16 %v24771_v8, %v24769_v17  ;;  %v24774_v37 = vld [vmem:[#allocation21_spill] sm:$0xff]  ;;  %10275 = vmatmul.mubr.f32.gmra.mrb[108].mxu1 %v24776_v45  ;;  %v24784_v17 = vand.u32 4294901760, %v24783_v39  ;;  %v24785_v8 = vld [vmem:[#allocation347_spill] sm:$0xff] }
 0x736   : > { %v24775_v1 = vand.u32 4294901760, %v24774_v37  ;;  %12792 = vmatpush1.bf16.msra.mxu0 %v12791_v4  ;;  %13392 = vmatpush1.bf16.msra.mxu1 %v13391_v56  ;;  %v12795_v26 = vpack.c.bf16 %v24780_v48, %v24778_v58  ;;  %v24788_v4 = vld [vmem:[#allocation45_spill] sm:$0xff]  ;;  %v24790_v37 = vld [vmem:[#allocation31_spill] sm:$0xff]  ;;  %v24796_v48 = vand.u32 4294901760, %v24795_v40 }
 0x737   : > { %12794 = vmatprep.subr.bf16.mxu0 %v12793_v35  ;;  %v13395_v29 = vpack.c.bf16 %v24784_v17, %v24782_v3  ;;  %7557 = vmatprep.mubr.f32.mxu0 %v24785_v8  ;;  %v24789_v56 = vand.u32 4294901760, %v24788_v4  ;;  %v24794_v58 = vld [vmem:[#allocation225_spill] sm:$0xff]  ;;  %v24798_v3 = vand.u32 4294901760, %v24797_v6 }
 0x738   : > { %v13393_v50 = vpack.c.bf16 %v24775_v1, %v24773_v28  ;;  %10283 = vmatprep.mubr.f32.mxu1 %v24785_v8  ;;  %v24787_v28 = vand.u32 4294901760, %v24786_v55  ;;  %v24791_v1 = vand.u32 4294901760, %v24790_v37  ;;  %7561 = vmatmul.mubr.f32.gmra.mrb[110].mxu0 %v24794_v58  ;;  %v24799_v17 = vld [vmem:[#allocation25_spill] sm:$0xff]  ;;  %v24801_v55 = vld [vmem:[#allocation44_spill] sm:$0xff] }
 0x739   : > { %10287 = vmatmul.mubr.f32.gmra.mrb[110].mxu1 %v24794_v58  ;;  %v12799_v39 = vpack.c.bf16 %v24798_v3, %v24796_v48  ;;  %v24800_v8 = vand.u32 4294901760, %v24799_v17  ;;  %v24804_v37 = vld [vmem:[#allocation53_spill] sm:$0xff]  ;;  %v24814_v3 = vld [vmem:[#allocation63_spill] sm:$0xff] }
 0x73a   : > { %13394 = vmatprep.subr.bf16.mxu1 %v13393_v50  ;;  %v12797_v35 = vpack.c.bf16 %v24789_v56, %v24787_v28  ;;  %v24792_v50 = vld [vmem:[#allocation48_spill] sm:$0xff]  ;;  %12796 = vmatpush1.bf16.msra.mxu0 %v12795_v26  ;;  %v24802_v28 = vand.u32 4294901760, %v24801_v55  ;;  %v24806_v26 = vld [vmem:[#allocation69_spill] sm:$0xff]  ;;  %v24815_v17 = vand.u32 4294901760, %v24814_v3  ;;  %v24816_v55 = vld [vmem:[#allocation51_spill] sm:$0xff] }
 0x73b   : > { %v24793_v45 = vand.u32 4294901760, %v24792_v50  ;;  %13396 = vmatpush1.bf16.msra.mxu1 %v13395_v29  ;;  %v24803_v56 = vld [vmem:[#allocation296_spill] sm:$0xff]  ;;  %v24807_v29 = vand.u32 4294901760, %v24806_v26  ;;  %v24808_v50 = vld [vmem:[#allocation57_spill] sm:$0xff] }
 0x73c   : > { %12798 = vmatprep.subr.bf16.mxu0 %v12797_v35  ;;  %v13399_v4 = vpack.c.bf16 %v24802_v28, %v24800_v8  ;;  %7824 = vmatprep.mubr.f32.mxu0 %v24803_v56  ;;  %v24812_v48 = vld [vmem:[#allocation49_spill] sm:$0xff]  ;;  %v24817_v28 = vand.u32 4294901760, %v24816_v55 }
 0x73d   : > { %v13397_v34 = vpack.c.bf16 %v24793_v45, %v24791_v1  ;;  %10550 = vmatprep.mubr.f32.mxu1 %v24803_v56  ;;  %v24805_v1 = vand.u32 4294901760, %v24804_v37  ;;  %v24809_v45 = vand.u32 4294901760, %v24808_v50  ;;  %v24813_v6 = vand.u32 4294901760, %v24812_v48  ;;  %v24818_v37 = vld [vmem:[#allocation67_spill] sm:$0xff] }
 0x73e   : > { %12800 = vmatpush1.bf16.msra.mxu0 %v12799_v39  ;;  %v24819_v23 = vand.u32 4294901760, %v24818_v37  ;;  %v24822_v50 = vld [vmem:[#allocation99_spill] sm:$0xff] }
 0x73f   : > { %13398 = vmatprep.subr.bf16.mxu1 %v13397_v34  ;;  %v12801_v35 = vpack.c.bf16 %v24807_v29, %v24805_v1  ;;  %v24810_v34 = vld [vmem:[#allocation71_spill] sm:$0xff]  ;;  %v12803_v8 = vpack.c.bf16 %v24815_v17, %v24813_v6  ;;  %v24820_v1 = vld [vmem:[#allocation81_spill] sm:$0xff]  ;;  %v24823_v15 = vand.u32 4294901760, %v24822_v50  ;;  %v24838_v50 = vld [vmem:[#allocation116_spill] sm:$0xff] }
 0x740   : > { %v24811_v58 = vand.u32 4294901760, %v24810_v34  ;;  %13400 = vmatpush1.bf16.msra.mxu1 %v13399_v4  ;;  %v13403_v26 = vpack.c.bf16 %v24819_v23, %v24817_v28  ;;  %v24821_v29 = vand.u32 4294901760, %v24820_v1  ;;  %v24826_v4 = vld [vmem:[#allocation102_spill] sm:$0xff]  ;;  %v24830_v6 = vld [vmem:[#allocation91_spill] sm:$0xff]  ;;  %v24832_v23 = vld [vmem:[#allocation77_spill] sm:$0xff] }
 0x741   : > { %12802 = vmatprep.subr.bf16.mxu0 %v12801_v35  ;;  %v24827_v35 = vand.u32 4294901760, %v24826_v4  ;;  %v24831_v3 = vand.u32 4294901760, %v24830_v6  ;;  %v24833_v55 = vand.u32 4294901760, %v24832_v23  ;;  %v24834_v28 = vld [vmem:[#allocation96_spill] sm:$0xff] }
 0x742   : > { %v13401_v40 = vpack.c.bf16 %v24811_v58, %v24809_v45  ;;  %v12805_v34 = vpack.c.bf16 %v24823_v15, %v24821_v29  ;;  %v24824_v45 = vld [vmem:[#allocation83_spill] sm:$0xff]  ;;  %12804 = vmatpush1.bf16.msra.mxu0 %v12803_v8  ;;  %v24835_v37 = vand.u32 4294901760, %v24834_v28  ;;  %v24836_v15 = vld [vmem:[#allocation98_spill] sm:$0xff]  ;;  %v24848_v23 = vld [vmem:[#allocation112_spill] sm:$0xff] }
 0x743   : > { %v24825_v39 = vand.u32 4294901760, %v24824_v45  ;;  %v24837_v29 = vand.u32 4294901760, %v24836_v15  ;;  %v24839_v45 = vand.u32 4294901760, %v24838_v50  ;;  %v24850_v28 = vld [vmem:[#allocation115_spill] sm:$0xff] }
 0x744   : > { %13402 = vmatprep.subr.bf16.mxu1 %v13401_v40  ;;  %12806 = vmatprep.subr.bf16.mxu0 %v12805_v34  ;;  %v24828_v40 = vld [vmem:[#allocation76_spill] sm:$0xff]  ;;  %v13407_v1 = vpack.c.bf16 %v24835_v37, %v24833_v55  ;;  %v24849_v55 = vand.u32 4294901760, %v24848_v23  ;;  %v24851_v37 = vand.u32 4294901760, %v24850_v28 }
 0x745   : > { %v13405_v58 = vpack.c.bf16 %v24827_v35, %v24825_v39  ;;  %13404 = vmatpush1.bf16.msra.mxu1 %v13403_v26  ;;  %v24829_v48 = vand.u32 4294901760, %v24828_v40  ;;  %v12809_v4 = vpack.c.bf16 %v24839_v45, %v24837_v29  ;;  %v24840_v39 = vld [vmem:[#allocation101_spill] sm:$0xff]  ;;  %v24852_v29 = vld [vmem:[#allocation120_spill] sm:$0xff] }
 0x746   : > { %v24841_v8 = vand.u32 4294901760, %v24840_v39  ;;  %v24842_v26 = vld [vmem:[#allocation117_spill] sm:$0xff]  ;;  %v13411_v15 = vpack.c.bf16 %v24851_v37, %v24849_v55  ;;  %v24853_v50 = vand.u32 4294901760, %v24852_v29  ;;  %v24854_v45 = vld [vmem:[#allocation132_spill] sm:$0xff]  ;;  %v24866_v37 = vld [vmem:[#allocation147_spill] sm:$0xff] }
 0x747   : > { %13406 = vmatprep.subr.bf16.mxu1 %v13405_v58  ;;  %v12807_v17 = vpack.c.bf16 %v24831_v3, %v24829_v48  ;;  %v24843_v34 = vand.u32 4294901760, %v24842_v26  ;;  %v24844_v58 = vld [vmem:[#allocation106_spill] sm:$0xff]  ;;  %v24846_v48 = vld [vmem:[#allocation113_spill] sm:$0xff]  ;;  %v24855_v39 = vand.u32 4294901760, %v24854_v45  ;;  %v24867_v29 = vand.u32 4294901760, %v24866_v37  ;;  %v24868_v45 = vld [vmem:[#allocation139_spill] sm:$0xff] }
 0x748   : > { %v24845_v40 = vand.u32 4294901760, %v24844_v58  ;;  %v24847_v6 = vand.u32 4294901760, %v24846_v48  ;;  %v24861_v58 = vand.u32 4294901760, %v24368_v41  ;;  %v24862_v48 = vand.u32 4294901760, %v24372_v12  ;;  %v24864_v55 = vld [vmem:[#allocation137_spill] sm:$0xff] }
 0x749   : > { %v13409_v35 = vpack.c.bf16 %v24843_v34, %v24841_v8  ;;  %12808 = vmatpush1.bf16.msra.mxu0 %v12807_v17  ;;  %13408 = vmatpush1.bf16.msra.mxu1 %v13407_v1  ;;  %v12813_v26 = vpack.c.bf16 %v24855_v39, %v24853_v50  ;;  %v24856_v8 = vld [vmem:[#allocation121_spill] sm:$0xff]  ;;  %v24865_v28 = vand.u32 4294901760, %v24864_v55  ;;  %v24873_v41 = vand.u32 4294901760, %v24402_v43 }
 0x74a   : > { %12810 = vmatprep.subr.bf16.mxu0 %v12809_v4  ;;  %v12811_v3 = vpack.c.bf16 %v24847_v6, %v24845_v40  ;;  %v24857_v17 = vand.u32 4294901760, %v24856_v8  ;;  %v24858_v1 = vld [vmem:[#allocation133_spill] sm:$0xff]  ;;  %v24863_v6 = vand.u32 4294901760, %v24371_v51  ;;  %v24874_v12 = vand.u32 4294901760, %v24406_v5 }
 0x74b   : > { %13410 = vmatprep.subr.bf16.mxu1 %v13409_v35  ;;  %v24859_v4 = vand.u32 4294901760, %v24858_v1  ;;  %v24860_v35 = vand.u32 4294901760, %v24369_v0  ;;  %v12817_v50 = vpack.c.bf16 %v24867_v29, %v24865_v28  ;;  %v24872_v0 = vand.u32 4294901760, %v24403_v54 }
 0x74c   : > { %v13415_v23 = vpack.c.bf16 %v24863_v6, %v24862_v48  ;;  %v24875_v8 = vand.u32 4294901760, %v24405_v62  ;;  %v24876_v1 = vand.u32 4294901760, %v23676_v20  ;;  %v24881_v48 = vld [vmem:[#allocation170_spill] sm:$0xff]  ;;  %v24883_v54 = vand.u32 4294901760, %v24424_v33 }
 0x74d   : > { %v13413_v34 = vpack.c.bf16 %v24859_v4, %v24857_v17  ;;  %12812 = vmatpush1.bf16.msra.mxu0 %v12811_v3  ;;  %13412 = vmatpush1.bf16.msra.mxu1 %v13411_v15  ;;  %v12815_v40 = vpack.c.bf16 %v24861_v58, %v24860_v35  ;;  %v24869_v3 = vand.u32 4294901760, %v24868_v45  ;;  %v24870_v15 = vld [vmem:[#allocation149_spill] sm:$0xff]  ;;  %v12819_v51 = vpack.c.bf16 %v24873_v41, %v24872_v0  ;;  %v24877_v4 = vld [vmem:[#allocation167_spill] sm:$0xff]  ;;  %v24897_v0 = vld [vmem:[#allocation172_spill] sm:$0xff] }
 0x74e   : > { %12814 = vmatprep.subr.bf16.mxu0 %v12813_v26  ;;  %v24871_v39 = vand.u32 4294901760, %v24870_v15  ;;  %v13419_v17 = vpack.c.bf16 %v24875_v8, %v24874_v12  ;;  %v24879_v58 = vld [vmem:[#allocation155_spill] sm:$0xff]  ;;  %v24882_v6 = vand.u32 4294901760, %v24881_v48  ;;  %v24884_v43 = vand.u32 4294901760, %v24423_v61  ;;  %v24901_v12 = vld [vmem:[#allocation201_spill] sm:$0xff] }
 0x74f   : > { %13414 = vmatprep.subr.bf16.mxu1 %v13413_v34  ;;  %v24878_v34 = vand.u32 4294901760, %v24877_v4  ;;  %v24885_v5 = vand.u32 4294901760, %v24427_v59  ;;  %v24886_v20 = vand.u32 4294901760, %v24426_v14  ;;  %v24887_v28 = vand.u32 4294901760, %v23727_v2  ;;  %v24893_v61 = vld [vmem:[#allocation171_spill] sm:$0xff]  ;;  %v24895_v59 = vld [vmem:[#allocation184_spill] sm:$0xff] }
 0x750   : > { %v13417_v26 = vpack.c.bf16 %v24871_v39, %v24869_v3  ;;  %v12823_v62 = vpack.c.bf16 %v24884_v43, %v24883_v54  ;;  %v24888_v37 = vand.u32 4294901760, %v23732_v42  ;;  %v24891_v3 = vld [vmem:[#allocation194_spill] sm:$0xff]  ;;  %v24894_v33 = vand.u32 4294901760, %v24893_v61 }
 0x751   : > { %12816 = vmatpush1.bf16.msra.mxu0 %v12815_v40  ;;  %13416 = vmatpush1.bf16.msra.mxu1 %v13415_v23  ;;  %v12821_v35 = vpack.c.bf16 %v24878_v34, %v24876_v1  ;;  %v24880_v40 = vand.u32 4294901760, %v24879_v58  ;;  %v13423_v55 = vpack.c.bf16 %v24886_v20, %v24885_v5  ;;  %v24892_v15 = vand.u32 4294901760, %v24891_v3  ;;  %v24899_v2 = vld [vmem:[#allocation186_spill] sm:$0xff]  ;;  %v24907_v58 = vld [vmem:[#allocation211_spill] sm:$0xff]  ;;  %v24914_v20 = vld [vmem:[#allocation244_spill] sm:$0xff] }
 0x752   : > { %12818 = vmatprep.subr.bf16.mxu0 %v12817_v50  ;;  %13418 = vmatprep.subr.bf16.mxu1 %v13417_v26  ;;  %v12825_v29 = vpack.c.bf16 %v24888_v37, %v24887_v28  ;;  %v24889_v50 = vld [vmem:[#allocation177_spill] sm:$0xff]  ;;  %v24896_v26 = vand.u32 4294901760, %v24895_v59  ;;  %v24898_v41 = vand.u32 4294901760, %v24897_v0  ;;  %v24902_v8 = vand.u32 4294901760, %v24901_v12  ;;  %v24905_v34 = vld [vmem:[#allocation374_spill] sm:$0xff]  ;;  %v24913_v5 = vld [vmem:[#allocation227_spill] sm:$0xff] }
 0x753   : > { %v13421_v23 = vpack.c.bf16 %v24882_v6, %v24880_v40  ;;  %v24890_v45 = vand.u32 4294901760, %v24889_v50  ;;  %v24908_v40 = vand.u32 4294901760, %v24907_v58  ;;  %v24909_v6 = vld [vmem:[#allocation198_spill] sm:$0xff]  ;;  %v24917_v37 = vld [vmem:[#allocation239_spill] sm:$0xff]  ;;  %v24921_v3 = vld [vmem:[#allocation241_spill] sm:$0xff]  ;;  %v24925_v59 = vand.u32 4294901760, %v24548_v13 }
 0x754   : > { %v12827_v14 = vpack.c.bf16 %v24896_v26, %v24894_v33  ;;  %v24911_v54 = vld [vmem:[#allocation214_spill] sm:$0xff]  ;;  %v24924_v33 = vld [vmem:[#allocation375_spill] sm:$0xff]  ;;  %v24926_v26 = vand.u32 4294901760, %v24547_v10  ;;  %v24927_v0 = vand.u32 4294901760, %v24551_v19  ;;  %v24930_v13 = vld [vmem:[#allocation9_spill] sm:$0xff] }
 0x755   : > { %12820 = vmatpush1.bf16.msra.mxu0 %v12819_v51  ;;  %13420 = vmatpush1.bf16.msra.mxu1 %v13419_v17  ;;  %v13425_v39 = vpack.c.bf16 %v24892_v15, %v24890_v45  ;;  %v24900_v51 = vand.u32 4294901760, %v24899_v2  ;;  %v24903_v17 = vld [vmem:[#allocation219_spill] sm:$0xff]  ;;  %v24912_v43 = vand.u32 4294901760, %v24911_v54  ;;  %v24922_v15 = vand.u32 4294901760, %v24921_v3  ;;  %v24923_v61 = vld [vmem:[#allocation230_spill] sm:$0xff]  ;;  %v24931_v10 = vld [vmem:[#allocation56_spill] sm:$0xff] }
 0x756   : > { %12822 = vmatprep.subr.bf16.mxu0 %v12821_v35  ;;  %13422 = vmatprep.subr.bf16.mxu1 %v13421_v23  ;;  %v24904_v1 = vand.u32 4294901760, %v24903_v17  ;;  %v24906_v35 = vand.u32 4294901760, %v24480_v31  ;;  %v24910_v23 = vand.u32 4294901760, %v24909_v6  ;;  %v24919_v31 = vld [vmem:[#allocation224_spill] sm:$0xff]  ;;  %v24932_v19 = vld [vmem:[#allocation61_spill] sm:$0xff]  ;;  %v24960_v17 = vld [vmem:[#allocation178_spill] sm:$0xff] }
 0x757   : > { %v13427_v42 = vpack.c.bf16 %v24900_v51, %v24898_v41  ;;  %v24920_v45 = vand.u32 4294901760, %v24919_v31  ;;  %v24928_v41 = vand.u32 4294901760, %v24550_v16  ;;  %v24929_v51 = vld [vmem:[#allocation298_spill] sm:$0xff]  ;;  %v24933_v16 = vld [vmem:[#allocation320_spill] sm:$0xff]  ;;  %v24978_v31 = vld [vmem:[#allocation263_spill] sm:$0xff] }
 0x758   : > { %v12829_v4 = vpack.c.bf16 %v24904_v1, %v24902_v8  ;;  %v12831_v48 = vpack.c.bf16 %v24908_v40, %v24906_v35  ;;  %v24958_v12 = vld [vmem:[#allocation80_spill] sm:$0xff]  ;;  %v24959_v8 = vld [vmem:[#allocation142_spill] sm:$0xff]  ;;  %v24964_v35 = vld [vmem:[#allocation203_spill] sm:$0xff] }
 0x759   : > { %12824 = vmatpush1.bf16.msra.mxu0 %v12823_v62  ;;  %13424 = vmatpush1.bf16.msra.mxu1 %v13423_v55  ;;  %v13431_v62 = vpack.c.bf16 %v24912_v43, %v24910_v23  ;;  %v24915_v55 = vld [vmem:[#allocation223_spill] sm:$0xff]  ;;  %v13439_v2 = vpack.c.bf16 %v24928_v41, %v24927_v0  ;;  %v24961_v1 = vld [vmem:[#allocation180_spill] sm:$0xff]  ;;  %v24970_v54 = vld [vmem:[#allocation210_spill] sm:$0xff] }
 0x75a   : > { %12826 = vmatprep.subr.bf16.mxu0 %v12825_v29  ;;  %13426 = vmatprep.subr.bf16.mxu1 %v13425_v39  ;;  %v24916_v28 = vand.u32 4294901760, %v24915_v55  ;;  %v24918_v29 = vand.u32 4294901760, %v24917_v37  ;;  %v13435_v39 = vpack.c.bf16 %v24922_v15, %v24920_v45  ;;  %v24965_v58 = vld [vmem:[#allocation204_spill] sm:$0xff]  ;;  %v24966_v40 = vld [vmem:[#allocation183_spill] sm:$0xff]  ;;  %v24971_v43 = vld [vmem:[#allocation213_spill] sm:$0xff] }
 0x75b   : > { %v24968_v6 = vld [vmem:[#allocation228_spill] sm:$0xff]  ;;  %v24969_v23 = vld [vmem:[#allocation231_spill] sm:$0xff]  ;;  %v24976_v37 = vld [vmem:[#allocation277_spill] sm:$0xff] }
 0x75c   : > { %v12835_v50 = vpack.c.bf16 %v24918_v29, %v24916_v28  ;;  %v24975_v55 = vld [vmem:[#allocation240_spill] sm:$0xff]  ;;  %v24977_v29 = vld [vmem:[#allocation278_spill] sm:$0xff]  ;;  %v24979_v45 = vld [vmem:[#allocation267_spill] sm:$0xff] }
 0x75d   : > { %12828 = vmatpush1.bf16.msra.mxu0 %v12827_v14  ;;  %13428 = vmatpush1.bf16.msra.mxu1 %v13427_v42  ;;  %v12839_v14 = vpack.c.bf16 %v24926_v26, %v24925_v59  ;;  %v24934_v42 = vld [vmem:[#allocation322_spill] sm:$0xff]  ;;  %v6468_v28 = vld [vmem:[%s21873_s2 + $0x18] sm:$0xff]  ;;  %v24981_v15 = vld [vmem:[#allocation157_spill] sm:$0xff] }
 0x75e   : > { %12830 = vmatprep.subr.bf16.mxu0 %v12829_v4  ;;  %13430 = vmatprep.subr.bf16.mxu1 %v24905_v34  ;;  %v24962_v4 = vld [vmem:[#allocation161_spill] sm:$0xff]  ;;  %v24963_v34 = vld [vmem:[#allocation163_spill] sm:$0xff]  ;;  %v24980_v3 = vld [vmem:[#allocation234_spill] sm:$0xff] }
 0x75f   : > { %v24985_v59 = vld [vmem:[#allocation221_spill] sm:$0xff]  ;;  %v24986_v26 = vld [vmem:[#allocation279_spill] sm:$0xff]  ;;  %v24987_v0 = vld [vmem:[#allocation126_spill] sm:$0xff] }
 0x760   : > { %v24988_v41 = vld [vmem:[#allocation302_spill] sm:$0xff] }
 0x761   : > { %12832 = vmatpush1.bf16.msra.mxu0 %v12831_v48  ;;  %13432 = vmatpush1.bf16.msra.mxu1 %v13431_v62  ;;  %v24967_v48 = vld [vmem:[#allocation185_spill] sm:$0xff]  ;;  %v24972_v62 = vld [vmem:[#allocation256_spill] sm:$0xff] }
 0x762   : > { %12834 = vmatprep.subr.bf16.mxu0 %v24913_v5  ;;  %13434 = vmatprep.subr.bf16.mxu1 %v24914_v20  ;;  %v24973_v5 = vld [vmem:[#allocation257_spill] sm:$0xff]  ;;  %v24974_v20 = vld [vmem:[#allocation238_spill] sm:$0xff] }
 0x765   : > { %12836 = vmatpush1.bf16.msra.mxu0 %v12835_v50  ;;  %13436 = vmatpush1.bf16.msra.mxu1 %v13435_v39  ;;  %v6487_v50 = vsel %vm6485_vm2, %v6468_v28, 0  ;;  %v6484_v28 = vld [vmem:[%s21873_s2 + $0x98] sm:$0xff] }
 0x766   : > { %12838 = vmatprep.subr.bf16.mxu0 %v24923_v61  ;;  %13438 = vmatprep.subr.bf16.mxu1 %v24924_v33  ;;  %v20891_v39 = vand.u32 4294901760, %v6487_v50  ;;  %v24983_v61 = vld [vmem:[#allocation282_spill] sm:$0xff]  ;;  %v24984_v33 = vld [vmem:[#allocation284_spill] sm:$0xff] }
 0x768   : > { %24982 = vst [vmem:[#allocation293_spill] sm:$0xff] %v20891_v39 }
 0x769   : > { %12840 = vmatpush1.bf16.msra.mxu0 %v12839_v14  ;;  %13440 = vmatpush1.bf16.msra.mxu1 %v13439_v2  ;;  %v20902_v14 = vsub.f32 %v6487_v50, %v20891_v39  ;;  %v24989_v2 = vld [vmem:[#allocation286_spill] sm:$0xff] }
 0x76a   : > { %12842 = vmatprep.subr.bf16.mxu0 %v24563_v63  ;;  %13442 = vmatprep.subr.bf16.mxu1 %v24564_v52  ;;  %v24935_v52 = vld [vmem:[#allocation199_spill] sm:$0xff]  ;;  %v24936_v63 = vld [vmem:[#allocation200_spill] sm:$0xff]  ;;  %v25021_v50 = vld [vmem:[#allocation146_spill] sm:$0xff] }
 0x76c   : > { %7826 = vmatmul.mubr.f32.vlgmr.msra.gmra.mrb[102].mxu0 %v24929_v51  ;;  %10552 = vmatmul.mubr.f32.vlgmr.msra.gmra.mrb[102].mxu1 %v24929_v51 }
 0x76d   : > { %12844 = vmatpush1.bf16.msra.mxu0 %v24581_v30  ;;  %13444 = vmatpush1.bf16.msra.mxu1 %v24930_v13  ;;  %v24937_v30 = vld [vmem:[#allocation340_spill] sm:$0xff]  ;;  %v20913_v13 = vand.u32 4294901760, %v20902_v14 }
 0x76e   : > { %12846 = vmatprep.subr.bf16.mxu0 %v24931_v10  ;;  %13446 = vmatprep.subr.bf16.mxu1 %v24932_v19  ;;  %v24992_v10 = vld [vmem:[#allocation164_spill] sm:$0xff]  ;;  %v24993_v19 = vld [vmem:[#allocation175_spill] sm:$0xff] }
 0x76f   : > { %7832 = vmatprep.mubr.f32.mxu0 %v24933_v16  ;;  %10558 = vmatprep.mubr.f32.mxu1 %v24933_v16  ;;  %24991 = vst [vmem:[#allocation361_spill] sm:$0xff] %v20913_v13 }
 0x770   : > { %7834 = vmatmul.mubr.f32.gmra.mrb[104].mxu0 %v24934_v42  ;;  %10560 = vmatmul.mubr.f32.gmra.mrb[104].mxu1 %v24934_v42 }
 0x771   : > { %12848 = vmatpush1.bf16.msra.mxu0 %v24610_v57  ;;  %13448 = vmatpush1.bf16.msra.mxu1 %v24611_v27  ;;  %v24938_v57 = vld [vmem:[#allocation341_spill] sm:$0xff] }
 0x772   : > { %12850 = vmatprep.subr.bf16.mxu0 %v24615_v11  ;;  %13450 = vmatprep.subr.bf16.mxu1 %v24616_v60  ;;  %v24939_v27 = vld [vmem:[#allocation217_spill] sm:$0xff]  ;;  %v24940_v11 = vld [vmem:[#allocation218_spill] sm:$0xff] }
 0x773   : > { %7840 = vmatprep.mubr.f32.mxu0 %v24935_v52  ;;  %10566 = vmatprep.mubr.f32.mxu1 %v24935_v52  ;;  %v24942_v60 = vld [vmem:[#allocation62_spill] sm:$0xff] }
 0x774   : > { %7842 = vmatmul.mubr.f32.gmra.mrb[106].mxu0 %v24936_v63  ;;  %10568 = vmatmul.mubr.f32.gmra.mrb[106].mxu1 %v24936_v63 }
 0x775   : > { %12852 = vmatpush1.bf16.msra.mxu0 %v24625_v36  ;;  %13452 = vmatpush1.bf16.msra.mxu1 %v24626_v47  ;;  %v24943_v36 = vld [vmem:[#allocation66_spill] sm:$0xff]  ;;  %v24944_v47 = vld [vmem:[#allocation104_spill] sm:$0xff] }
 0x776   : > { %12854 = vmatprep.subr.bf16.mxu0 %v24630_v25  ;;  %13454 = vmatprep.subr.bf16.mxu1 %v24631_v53  ;;  %v24945_v25 = vld [vmem:[#allocation105_spill] sm:$0xff] }
 0x777   : > { %7848 = vmatprep.mubr.f32.mxu0 %v24937_v30  ;;  %10574 = vmatprep.mubr.f32.mxu1 %v24937_v30  ;;  %v24946_v53 = vld [vmem:[#allocation89_spill] sm:$0xff] }
 0x778   : > { %7850 = vmatmul.mubr.f32.gmra.mrb[108].mxu0 %v24938_v57  ;;  %10576 = vmatmul.mubr.f32.gmra.mrb[108].mxu1 %v24938_v57 }
 0x779   : > { %12856 = vmatpush1.bf16.msra.mxu0 %v24641_v21  ;;  %13456 = vmatpush1.bf16.msra.mxu1 %v24642_v46  ;;  %v24941_v46 = vld [vmem:[#allocation88_spill] sm:$0xff]  ;;  %v24947_v21 = vld [vmem:[#allocation94_spill] sm:$0xff] }
 0x77a   : > { %12858 = vmatprep.subr.bf16.mxu0 %v24645_v24  ;;  %13458 = vmatprep.subr.bf16.mxu1 %v24646_v32  ;;  %v24948_v24 = vld [vmem:[#allocation122_spill] sm:$0xff]  ;;  %v24949_v32 = vld [vmem:[#allocation123_spill] sm:$0xff] }
 0x77b   : > { %7856 = vmatprep.mubr.f32.mxu0 %v24939_v27  ;;  %10582 = vmatprep.mubr.f32.mxu1 %v24939_v27 }
 0x77c   : > { %7858 = vmatmul.mubr.f32.gmra.mrb[110].mxu0 %v24940_v11  ;;  %10584 = vmatmul.mubr.f32.gmra.mrb[110].mxu1 %v24940_v11 }
 0x77d   : > { %12860 = vmatpush1.bf16.msra.mxu0 %v24651_v44  ;;  %13460 = vmatpush1.bf16.msra.mxu1 %v24652_v22  ;;  %v24950_v44 = vld [vmem:[#allocation111_spill] sm:$0xff]  ;;  %v24951_v22 = vld [vmem:[#allocation114_spill] sm:$0xff] }
 0x77e   : > { %12862 = vmatprep.subr.bf16.mxu0 %v24653_v38  ;;  %13462 = vmatprep.subr.bf16.mxu1 %v24654_v7  ;;  %v24952_v38 = vld [vmem:[#allocation138_spill] sm:$0xff]  ;;  %v24953_v7 = vld [vmem:[#allocation140_spill] sm:$0xff] }
 0x77f   : > { %7993 = vmatprep.mubr.f32.mxu0 %v24803_v56  ;;  %10719 = vmatprep.mubr.f32.mxu1 %v24803_v56  ;;  %v24957_v56 = vld [vmem:[#allocation158_spill] sm:$0xff] }
 0x781   : > { %12864 = vmatpush1.bf16.msra.mxu0 %v24656_v9  ;;  %13464 = vmatpush1.bf16.msra.mxu1 %v24657_v49  ;;  %v24954_v9 = vld [vmem:[#allocation128_spill] sm:$0xff]  ;;  %v24955_v49 = vld [vmem:[#allocation130_spill] sm:$0xff] }
 0x782   : > { %12866 = vmatprep.subr.bf16.mxu0 %v24658_v18  ;;  %13466 = vmatprep.subr.bf16.mxu1 %v24941_v46  ;;  %v24956_v18 = vld [vmem:[#allocation156_spill] sm:$0xff]  ;;  %v24997_v46 = vld [vmem:[#allocation205_spill] sm:$0xff] }
 0x785   : > { %12868 = vmatpush1.bf16.msra.mxu0 %v24942_v60  ;;  %13468 = vmatpush1.bf16.msra.mxu1 %v24943_v36  ;;  %v24998_v60 = vld [vmem:[#allocation342_spill] sm:$0xff]  ;;  %v24999_v36 = vld [vmem:[#allocation301_spill] sm:$0xff] }
 0x786   : > { %12870 = vmatprep.subr.bf16.mxu0 %v24944_v47  ;;  %13470 = vmatprep.subr.bf16.mxu1 %v24945_v25  ;;  %v6467_v47 = vld [vmem:[%s21873_s2 + $0x10] sm:$0xff]  ;;  %v25000_v25 = vld [vmem:[#allocation258_spill] sm:$0xff] }
 0x789   : > { %12872 = vmatpush1.bf16.msra.mxu0 %v24946_v53  ;;  %13472 = vmatpush1.bf16.msra.mxu1 %v24947_v21  ;;  %v25001_v53 = vld [vmem:[#allocation269_spill] sm:$0xff]  ;;  %v20943_v21 = vand.u32 4294901760, %v6467_v47 }
 0x78a   : > { %12874 = vmatprep.subr.bf16.mxu0 %v24948_v24  ;;  %13474 = vmatprep.subr.bf16.mxu1 %v24949_v32  ;;  %v25003_v24 = vld [vmem:[#allocation327_spill] sm:$0xff]  ;;  %v25004_v32 = vld [vmem:[#allocation129_spill] sm:$0xff] }
 0x78b   : > { %25002 = vst [vmem:[#allocation357_spill] sm:$0xff] %v20943_v21 }
 0x78d   : > { %12876 = vmatpush1.bf16.msra.mxu0 %v24950_v44  ;;  %13476 = vmatpush1.bf16.msra.mxu1 %v24951_v22  ;;  %v6476_v44 = vld [vmem:[%s21873_s2 + $0x58] sm:$0xff]  ;;  %v25005_v22 = vld [vmem:[#allocation110_spill] sm:$0xff] }
 0x78e   : > { %12878 = vmatprep.subr.bf16.mxu0 %v24952_v38  ;;  %13478 = vmatprep.subr.bf16.mxu1 %v24953_v7  ;;  %v25006_v38 = vld [vmem:[#allocation289_spill] sm:$0xff]  ;;  %v20957_v7 = vsub.f32 %v6467_v47, %v20943_v21 }
 0x791   : > { %12880 = vmatpush1.bf16.msra.mxu0 %v24954_v9  ;;  %13480 = vmatpush1.bf16.msra.mxu1 %v24955_v49  ;;  %v25007_v9 = vld [vmem:[#allocation208_spill] sm:$0xff]  ;;  %v25008_v49 = vld [vmem:[#allocation349_spill] sm:$0xff] }
 0x792   : > { %12882 = vmatprep.subr.bf16.mxu0 %v24956_v18  ;;  %13482 = vmatprep.subr.bf16.mxu1 %v24957_v56 }
 0x795   : > { %12884 = vmatpush1.bf16.msra.mxu0 %v24958_v12  ;;  %13484 = vmatpush1.bf16.msra.mxu1 %v24959_v8  ;;  %v6493_v12 = vsel %vm6485_vm2, %v6476_v44, 0  ;;  %v6475_v8 = vld [vmem:[%s21873_s2 + $0x50] sm:$0xff] }
 0x796   : > { %12886 = vmatprep.subr.bf16.mxu0 %v24960_v17  ;;  %13486 = vmatprep.subr.bf16.mxu1 %v24961_v1  ;;  %v6480_v17 = vld [vmem:[%s21873_s2 + $0x78] sm:$0xff]  ;;  %v25011_v1 = vld [vmem:[#allocation182_spill] sm:$0xff] }
 0x799   : > { %12888 = vmatpush1.bf16.msra.mxu0 %v24962_v4  ;;  %13488 = vmatpush1.bf16.msra.mxu1 %v24963_v34  ;;  %v25012_v4 = vld [vmem:[#allocation305_spill] sm:$0xff]  ;;  %v20975_v34 = vand.u32 4294901760, %v20957_v7 }
 0x79a   : > { %12890 = vmatprep.subr.bf16.mxu0 %v24964_v35  ;;  %13490 = vmatprep.subr.bf16.mxu1 %v24965_v58  ;;  %v25014_v35 = vld [vmem:[#allocation245_spill] sm:$0xff]  ;;  %v25015_v58 = vld [vmem:[#allocation220_spill] sm:$0xff] }
 0x79b   : > { %25013 = vst [vmem:[#allocation38_spill] sm:$0xff] %v20975_v34  ;;  %v8144_v47 = vsub.f32 %v20957_v7, %v20975_v34 }
 0x79d   : > { %12892 = vmatpush1.bf16.msra.mxu0 %v24966_v40  ;;  %13492 = vmatpush1.bf16.msra.mxu1 %v24967_v48  ;;  %v20982_v48 = vand.u32 4294901760, %v6493_v12 }
 0x79e   : > { %12894 = vmatprep.subr.bf16.mxu0 %v24968_v6  ;;  %13494 = vmatprep.subr.bf16.mxu1 %v24969_v23  ;;  %v20987_v23 = vand.u32 4294901760, %v6475_v8 }
 0x79f   : > { %25016 = vst [vmem:[#allocation124_spill] sm:$0xff] %v20982_v48 }
 0x7a0   : > { %25017 = vst [vmem:[#allocation28_spill] sm:$0xff] %v20987_v23 }
 0x7a1   : > { %12896 = vmatpush1.bf16.msra.mxu0 %v24970_v54  ;;  %13496 = vmatpush1.bf16.msra.mxu1 %v24971_v43  ;;  %v6496_v54 = vsel %vm6485_vm2, %v6480_v17, 0  ;;  %v25018_v43 = vld [vmem:[#allocation145_spill] sm:$0xff] }
 0x7a2   : > { %12898 = vmatprep.subr.bf16.mxu0 %v24972_v62  ;;  %13498 = vmatprep.subr.bf16.mxu1 %v24973_v5  ;;  %v22922_v62 = vmax.f32 %v25018_v43, 0.0  ;;  %v25019_v5 = vld [vmem:[#allocation148_spill] sm:$0xff]  ;;  %v21012_v44 = vand.u32 4294901760, %v6496_v54 }
 0x7a4   : > { %25027 = vst [vmem:[#allocation325_spill] sm:$0xff] %v21012_v44  ;;  %v21025_v34 = vand.u32 4294901760, %v22922_v62  ;;  %v25036_v62 = vld [vmem:[#allocation345_spill] sm:$0xff] }
 0x7a5   : > { %12900 = vmatpush1.bf16.msra.mxu0 %v24974_v20  ;;  %13500 = vmatpush1.bf16.msra.mxu1 %v24975_v55  ;;  %v6479_v55 = vld [vmem:[%s21873_s2 + $0x70] sm:$0xff]  ;;  %v6499_v20 = vsel %vm6485_vm2, %v6484_v28, 0  ;;  %v25035_v28 = vld [vmem:[#allocation216_spill] sm:$0xff] }
 0x7a6   : > { %12902 = vmatprep.subr.bf16.mxu0 %v24976_v37  ;;  %13502 = vmatprep.subr.bf16.mxu1 %v24977_v29  ;;  %v25020_v37 = vld [vmem:[#allocation143_spill] sm:$0xff]  ;;  %v21020_v29 = vand.u32 4294901760, %v6479_v55  ;;  %25030 = vst [vmem:[#allocation370_spill] sm:$0xff] %v21025_v34 }
 0x7a8   : > { %25029 = vst [vmem:[#allocation297_spill] sm:$0xff] %v21020_v29 }
 0x7a9   : > { %12904 = vmatpush1.bf16.msra.mxu0 %v24978_v31  ;;  %13504 = vmatpush1.bf16.msra.mxu1 %v24979_v45  ;;  %v25022_v45 = vld [vmem:[#allocation330_spill] sm:$0xff]  ;;  %v21018_v31 = vsub.f32 %v6475_v8, %v20987_v23 }
 0x7aa   : > { %12906 = vmatprep.subr.bf16.mxu0 %v24980_v3  ;;  %13506 = vmatprep.subr.bf16.mxu1 %v24981_v15 }
 0x7ac   : > { %7995 = vmatmul.mubr.f32.vlgmr.msra.gmra.mrb[102].mxu0 %v24929_v51  ;;  %10721 = vmatmul.mubr.f32.vlgmr.msra.gmra.mrb[102].mxu1 %v24929_v51  ;;  %v24990_v51 = vld [vmem:[#allocation313_spill] sm:$0xff] }
 0x7ad   : > { %12908 = vmatpush1.bf16.msra.mxu0 %v24983_v61  ;;  %13508 = vmatpush1.bf16.msra.mxu1 %v24984_v33 }
 0x7ae   : > { %12910 = vmatprep.subr.bf16.mxu0 %v24985_v59  ;;  %13510 = vmatprep.subr.bf16.mxu1 %v24986_v26 }
 0x7af   : > { %8001 = vmatprep.mubr.f32.mxu0 %v24933_v16  ;;  %10727 = vmatprep.mubr.f32.mxu1 %v24933_v16  ;;  %v24994_v16 = vld [vmem:[#allocation233_spill] sm:$0xff] }
 0x7b0   : > { %8003 = vmatmul.mubr.f32.gmra.mrb[104].mxu0 %v24934_v42  ;;  %10729 = vmatmul.mubr.f32.gmra.mrb[104].mxu1 %v24934_v42  ;;  %v24995_v42 = vld [vmem:[#allocation314_spill] sm:$0xff] }
 0x7b1   : > { %12912 = vmatpush1.bf16.msra.mxu0 %v24987_v0  ;;  %13512 = vmatpush1.bf16.msra.mxu1 %v24988_v41 }
 0x7b2   : > { %12914 = vmatprep.subr.bf16.mxu0 %v24989_v2  ;;  %13514 = vmatprep.subr.bf16.mxu1 %v24990_v51 }
 0x7b3   : > { %8009 = vmatprep.mubr.f32.mxu0 %v24935_v52  ;;  %10735 = vmatprep.mubr.f32.mxu1 %v24935_v52  ;;  %v8138_v52 = vsub.f32 %v20902_v14, %v20913_v13  ;;  %v25047_v13 = vld [vmem:[#allocation209_spill] sm:$0xff] }
 0x7b4   : > { %8011 = vmatmul.mubr.f32.gmra.mrb[106].mxu0 %v24936_v63  ;;  %10737 = vmatmul.mubr.f32.gmra.mrb[106].mxu1 %v24936_v63  ;;  %v24996_v63 = vld [vmem:[#allocation192_spill] sm:$0xff] }
 0x7b5   : > { %12916 = vmatpush1.bf16.msra.mxu0 %v24992_v10  ;;  %13516 = vmatpush1.bf16.msra.mxu1 %v24993_v19 }
 0x7b6   : > { %12918 = vmatprep.subr.bf16.mxu0 %v24994_v16  ;;  %13518 = vmatprep.subr.bf16.mxu1 %v24995_v42 }
 0x7b7   : > { %8017 = vmatprep.mubr.f32.mxu0 %v24937_v30  ;;  %10743 = vmatprep.mubr.f32.mxu1 %v24937_v30  ;;  %v8139_v30 = vand.u32 4294901760, %v8138_v52  ;;  %v25023_v52 = vld [vmem:[#allocation333_spill] sm:$0xff] }
 0x7b8   : > { %8019 = vmatmul.mubr.f32.gmra.mrb[108].mxu0 %v24938_v57  ;;  %10745 = vmatmul.mubr.f32.gmra.mrb[108].mxu1 %v24938_v57  ;;  %v6472_v57 = vld [vmem:[%s21873_s2 + $0x38] sm:$0xff] }
 0x7b9   : > { %12920 = vmatpush1.bf16.msra.mxu0 %v24996_v63  ;;  %13520 = vmatpush1.bf16.msra.mxu1 %v24997_v46 }
 0x7ba   : > { %12922 = vmatprep.subr.bf16.mxu0 %v24998_v60  ;;  %13522 = vmatprep.subr.bf16.mxu1 %v24999_v36 }
 0x7bb   : > { %8025 = vmatprep.mubr.f32.mxu0 %v24939_v27  ;;  %10751 = vmatprep.mubr.f32.mxu1 %v24939_v27  ;;  %v6490_v27 = vsel %vm6485_vm2, %v6472_v57, 0  ;;  %v25025_v57 = vld [vmem:[#allocation271_spill] sm:$0xff] }
 0x7bc   : > { %8027 = vmatmul.mubr.f32.gmra.mrb[110].mxu0 %v24940_v11  ;;  %10753 = vmatmul.mubr.f32.gmra.mrb[110].mxu1 %v24940_v11  ;;  %v6471_v11 = vld [vmem:[%s21873_s2 + $0x30] sm:$0xff]  ;;  %v20961_v18 = vand.u32 4294901760, %v6490_v27 }
 0x7bd   : > { %12924 = vmatpush1.bf16.msra.mxu0 %v25000_v25  ;;  %13524 = vmatpush1.bf16.msra.mxu1 %v25001_v53  ;;  %v20963_v56 = vand.u32 4294901760, %v6471_v11 }
 0x7be   : > { %12926 = vmatprep.subr.bf16.mxu0 %v25003_v24  ;;  %13526 = vmatprep.subr.bf16.mxu1 %v25004_v32  ;;  %25009 = vst [vmem:[#allocation365_spill] sm:$0xff] %v20961_v18  ;;  %v20980_v40 = vsub.f32 %v6490_v27, %v20961_v18  ;;  %v25055_v32 = vld [vmem:[#allocation336_spill] sm:$0xff] }
 0x7bf   : > { %8140 = vmatprep.mubr.f32.mxu0 %v8139_v30  ;;  %10866 = vmatprep.mubr.f32.mxu1 %v8139_v30  ;;  %25010 = vst [vmem:[#allocation23_spill] sm:$0xff] %v20963_v56  ;;  %v20985_v6 = vsub.f32 %v6471_v11, %v20963_v56  ;;  %v25024_v30 = vld [vmem:[#allocation254_spill] sm:$0xff]  ;;  %v21010_v11 = vsub.f32 %v6493_v12, %v20982_v48 }
 0x7c0   : > { %v21007_v27 = vand.u32 4294901760, %v20980_v40 }
 0x7c1   : > { %12928 = vmatpush1.bf16.msra.mxu0 %v25005_v22  ;;  %13528 = vmatpush1.bf16.msra.mxu1 %v25006_v38  ;;  %v21015_v17 = vand.u32 4294901760, %v20985_v6 }
 0x7c2   : > { %12930 = vmatprep.subr.bf16.mxu0 %v25007_v9  ;;  %13530 = vmatprep.subr.bf16.mxu1 %v25008_v49  ;;  %25026 = vst [vmem:[#allocation324_spill] sm:$0xff] %v21007_v27 }
 0x7c3   : > { %25028 = vst [vmem:[#allocation369_spill] sm:$0xff] %v21015_v17 }
 0x7c5   : > { %12932 = vmatpush1.bf16.msra.mxu0 %v25011_v1  ;;  %13532 = vmatpush1.bf16.msra.mxu1 %v25012_v4  ;;  %v21049_v4 = vand.u32 4294901760, %v21010_v11 }
 0x7c6   : > { %12934 = vmatprep.subr.bf16.mxu0 %v25014_v35  ;;  %13534 = vmatprep.subr.bf16.mxu1 %v25015_v58  ;;  %v8145_v35 = vand.u32 4294901760, %v8144_v47  ;;  %v21059_v47 = vand.u32 4294901760, %v21018_v31 }
 0x7c7   : > { %25037 = vst [vmem:[#allocation27_spill] sm:$0xff] %v21049_v4 }
 0x7c8   : > { %25039 = vst [vmem:[#allocation75_spill] sm:$0xff] %v21059_v47  ;;  %v8176_v22 = vsub.f32 %v21018_v31, %v21059_v47 }
 0x7c9   : > { %12936 = vmatpush1.bf16.msra.mxu0 %v25022_v45  ;;  %13536 = vmatpush1.bf16.msra.mxu1 %v25023_v52  ;;  %v25032_v52 = vmax.f32 %v25020_v37, 0.0  ;;  %v25033_v45 = vmax.f32 %v25021_v50, 0.0 }
 0x7ca   : > { %12938 = vmatprep.subr.bf16.mxu0 %v25024_v30  ;;  %13538 = vmatprep.subr.bf16.mxu1 %v25025_v57  ;;  %v25031_v57 = vmax.f32 %v25019_v5, 0.0  ;;  %v6483_v30 = vld [vmem:[%s21873_s2 + $0x90] sm:$0xff] }
 0x7cb   : > { %v21036_v8 = vand.u32 4294901760, %v25032_v52  ;;  %v21040_v58 = vand.u32 4294901760, %v25033_v45  ;;  %v21052_v52 = vsub.f32 %v6496_v54, %v21012_v44  ;;  %v21054_v45 = vand.u32 4294901760, %v6499_v20  ;;  %v25042_v54 = vld [vmem:[#allocation300_spill] sm:$0xff] }
 0x7cc   : > { %v21029_v12 = vand.u32 4294901760, %v25031_v57  ;;  %v8154_v57 = vsub.f32 %v20980_v40, %v21007_v27  ;;  %v21064_v1 = vand.u32 4294901760, %v6483_v30  ;;  %v25041_v27 = vld [vmem:[#allocation323_spill] sm:$0xff] }
 0x7cd   : > { %25034 = vst [vmem:[#allocation373_spill] sm:$0xff] %v21040_v58  ;;  %12940 = vmatpush1.bf16.msra.mxu0 %v25035_v28  ;;  %13540 = vmatpush1.bf16.msra.mxu1 %v25036_v62  ;;  %25038 = vst [vmem:[#allocation34_spill] sm:$0xff] %v21054_v45  ;;  %v8160_v28 = vsub.f32 %v20985_v6, %v21015_v17  ;;  %v21062_v62 = vsub.f32 %v6479_v55, %v21020_v29  ;;  %v21073_v9 = vand.u32 4294901760, %v21052_v52 }
 0x7ce   : > { %8106 = vmatprep.subr.mxu0 %v21025_v34  ;;  %10832 = vmatprep.subr.mxu1 %v21029_v12  ;;  %25040 = vst [vmem:[#allocation78_spill] sm:$0xff] %v21064_v1  ;;  %v8155_v49 = vand.u32 4294901760, %v8154_v57  ;;  %v8170_v17 = vsub.f32 %v21010_v11, %v21049_v4  ;;  %v21076_v55 = vsub.f32 %v6499_v20, %v21054_v45  ;;  %v25046_v4 = vld [vmem:[#allocation317_spill] sm:$0xff]  ;;  %v25048_v20 = vld [vmem:[#allocation270_spill] sm:$0xff] }
 0x7cf   : > { %25043 = vst [vmem:[#allocation291_spill] sm:$0xff] %v21073_v9  ;;  %v8161_v38 = vand.u32 4294901760, %v8160_v28  ;;  %v21084_v57 = vsub.f32 %v6483_v30, %v21064_v1  ;;  %v8186_v28 = vsub.f32 %v21052_v52, %v21073_v9  ;;  %v8177_v30 = vand.u32 4294901760, %v8176_v22 }
 0x7d0   : > { %v21093_v47 = vand.u32 4294901760, %v21076_v55 }
 0x7d1   : > { %8108 = vmatpush1.msra.mxu0 %v21036_v8  ;;  %10834 = vmatpush1.msra.mxu1 %v21040_v58  ;;  %v8187_v9 = vand.u32 4294901760, %v8186_v28 }
 0x7d2   : > { %12942 = vmatprep.subr.bf16.mxu0 %v25041_v27  ;;  %13542 = vmatprep.subr.bf16.mxu1 %v25042_v54  ;;  %v21081_v27 = vand.u32 4294901760, %v21062_v62  ;;  %v25045_v54 = vld [vmem:[#allocation259_spill] sm:$0xff]  ;;  %25049 = vst [vmem:[#allocation52_spill] sm:$0xff] %v21093_v47  ;;  %v8202_v22 = vsub.f32 %v21076_v55, %v21093_v47  ;;  %v25089_v47 = vld [vmem:[#allocation262_spill] sm:$0xff] }
 0x7d3   : > { %8146 = vmatmul.mubr.f32.vlgmr.msra.gmra.mrb[102].mxu0 %v8145_v35  ;;  %10872 = vmatmul.mubr.f32.vlgmr.msra.gmra.mrb[102].mxu1 %v8145_v35  ;;  %v8171_v35 = vand.u32 4294901760, %v8170_v17  ;;  %v25054_v17 = vld [vmem:[#allocation160_spill] sm:$0xff] }
 0x7d4   : > { %25044 = vst [vmem:[#allocation337_spill] sm:$0xff] %v21081_v27  ;;  %12944 = vmatpush1.bf16.msra.mxu0 %v25045_v54  ;;  %13544 = vmatpush1.bf16.msra.mxu1 %v25046_v4  ;;  %v8192_v54 = vsub.f32 %v21062_v62, %v21081_v27  ;;  %v21098_v4 = vand.u32 4294901760, %v21084_v57 }
 0x7d5   : > { %12946 = vmatprep.subr.bf16.mxu0 %v25047_v13  ;;  %13546 = vmatprep.subr.bf16.mxu1 %v25048_v20  ;;  %v25051_v13 = vld [vmem:[#allocation316_spill] sm:$0xff]  ;;  %v25052_v20 = vld [vmem:[#allocation285_spill] sm:$0xff] }
 0x7d6   : > { %8156 = vmatprep.mubr.f32.mxu0 %v8155_v49  ;;  %10882 = vmatprep.mubr.f32.mxu1 %v8155_v49  ;;  %25050 = vst [vmem:[#allocation58_spill] sm:$0xff] %v21098_v4  ;;  %v25053_v49 = vld [vmem:[#allocation159_spill] sm:$0xff]  ;;  %v8208_v27 = vsub.f32 %v21084_v57, %v21098_v4 }
 0x7d7   : > { %8162 = vmatmul.mubr.f32.gmra.mrb[104].mxu0 %v8161_v38  ;;  %10888 = vmatmul.mubr.f32.gmra.mrb[104].mxu1 %v8161_v38  ;;  %v8193_v38 = vand.u32 4294901760, %v8192_v54  ;;  %v25061_v54 = vld [vmem:[#allocation131_spill] sm:$0xff] }
 0x7d8   : > { %12948 = vmatpush1.bf16.msra.mxu0 %v25051_v13  ;;  %13548 = vmatpush1.bf16.msra.mxu1 %v25052_v20  ;;  %v25056_v13 = vld [vmem:[#allocation280_spill] sm:$0xff]  ;;  %v8209_v28 = vand.u32 4294901760, %v8208_v27  ;;  %v25062_v4 = vld [vmem:[#allocation119_spill] sm:$0xff]  ;;  %v25067_v27 = vmax.f32 %v25018_v43, 0.0  ;;  %v25074_v43 = vmax.f32 %v25021_v50, 0.0 }
 0x7d9   : > { %12950 = vmatprep.subr.bf16.mxu0 %v25053_v49  ;;  %13550 = vmatprep.subr.bf16.mxu1 %v25054_v17  ;;  %v25057_v20 = vld [vmem:[#allocation312_spill] sm:$0xff]  ;;  %v25059_v17 = vld [vmem:[#allocation173_spill] sm:$0xff] }
 0x7da   : > { %8172 = vmatprep.mubr.f32.mxu0 %v8171_v35  ;;  %10898 = vmatprep.mubr.f32.mxu1 %v8171_v35  ;;  %v25058_v49 = vld [vmem:[#allocation304_spill] sm:$0xff]  ;;  %v8203_v35 = vand.u32 4294901760, %v8202_v22 }
 0x7db   : > { %8178 = vmatmul.mubr.f32.gmra.mrb[106].mxu0 %v8177_v30  ;;  %10904 = vmatmul.mubr.f32.gmra.mrb[106].mxu1 %v8177_v30  ;;  %v25060_v30 = vld [vmem:[#allocation181_spill] sm:$0xff]  ;;  %v25066_v22 = vld [vmem:[#allocation144_spill] sm:$0xff] }
 0x7dc   : > { %12952 = vmatpush1.bf16.msra.mxu0 %v25055_v32  ;;  %13552 = vmatpush1.bf16.msra.mxu1 %v25056_v13  ;;  %v25063_v32 = vld [vmem:[#allocation318_spill] sm:$0xff] }
 0x7dd   : > { %12954 = vmatprep.subr.bf16.mxu0 %v25057_v20  ;;  %13554 = vmatprep.subr.bf16.mxu1 %v25058_v49  ;;  %v25064_v13 = vld [vmem:[#allocation118_spill] sm:$0xff]  ;;  %v25069_v49 = vld [vmem:[#allocation319_spill] sm:$0xff] }
 0x7de   : > { %8188 = vmatprep.mubr.f32.mxu0 %v8187_v9  ;;  %10914 = vmatprep.mubr.f32.mxu1 %v8187_v9  ;;  %v25065_v9 = vld [vmem:[#allocation141_spill] sm:$0xff] }
 0x7df   : > { %8194 = vmatmul.mubr.f32.gmra.mrb[108].mxu0 %v8193_v38  ;;  %10920 = vmatmul.mubr.f32.gmra.mrb[108].mxu1 %v8193_v38  ;;  %v25068_v38 = vmax.f32 %v25019_v5, 0.0 }
 0x7e0   : > { %12956 = vmatpush1.bf16.msra.mxu0 %v25059_v17  ;;  %13556 = vmatpush1.bf16.msra.mxu1 %v25060_v30  ;;  %v25072_v17 = vld [vmem:[#allocation252_spill] sm:$0xff]  ;;  %v25073_v30 = vmax.f32 %v25020_v37, 0.0 }
 0x7e1   : > { %12958 = vmatprep.subr.bf16.mxu0 %v25061_v54  ;;  %13558 = vmatprep.subr.bf16.mxu1 %v25062_v4  ;;  %v21125_v4 = vsub.f32 %v25067_v27, %v21025_v34  ;;  %v21130_v20 = vsub.f32 %v25068_v38, %v21029_v12  ;;  %v25077_v27 = vld [vmem:[#allocation255_spill] sm:$0xff]  ;;  %v25078_v38 = vld [vmem:[#allocation272_spill] sm:$0xff] }
 0x7e2   : > { %8204 = vmatprep.mubr.f32.mxu0 %v8203_v35  ;;  %10930 = vmatprep.mubr.f32.mxu1 %v8203_v35  ;;  %v25070_v35 = vld [vmem:[#allocation274_spill] sm:$0xff]  ;;  %v21139_v54 = vsub.f32 %v25073_v30, %v21036_v8 }
 0x7e3   : > { %8210 = vmatmul.mubr.f32.gmra.mrb[110].mxu0 %v8209_v28  ;;  %10936 = vmatmul.mubr.f32.gmra.mrb[110].mxu1 %v8209_v28  ;;  %v25071_v28 = vld [vmem:[#allocation202_spill] sm:$0xff]  ;;  %v22939_v5 = vand.u32 4294901760, %v21125_v4 }
 0x7e4   : > { %12960 = vmatpush1.bf16.msra.mxu0 %v25063_v32  ;;  %13560 = vmatpush1.bf16.msra.mxu1 %v25064_v13  ;;  %v21144_v32 = vsub.f32 %v25074_v43, %v21040_v58  ;;  %v22940_v13 = vand.u32 4294901760, %v21130_v20  ;;  %v22943_v37 = vand.u32 4294901760, %v21139_v54  ;;  %v25081_v30 = vld [vmem:[#allocation250_spill] sm:$0xff]  ;;  %v25082_v43 = vld [vmem:[#allocation268_spill] sm:$0xff] }
 0x7e5   : > { %12962 = vmatprep.subr.bf16.mxu0 %v25065_v9  ;;  %13562 = vmatprep.subr.bf16.mxu1 %v25066_v22  ;;  %v25075_v9 = vld [vmem:[#allocation153_spill] sm:$0xff]  ;;  %v25076_v22 = vld [vmem:[#allocation247_spill] sm:$0xff]  ;;  %v8435_v50 = vsub.f32 %v21125_v4, %v22939_v5  ;;  %v25083_v5 = vld [vmem:[#allocation360_spill] sm:$0xff] }
 0x7e6   : > { %8471 = vmatprep.mubr.f32.mxu0 %v20891_v39  ;;  %11197 = vmatprep.mubr.f32.mxu1 %v20891_v39 }
 0x7e8   : > { %12964 = vmatpush1.bf16.msra.mxu0 %v25069_v49  ;;  %13564 = vmatpush1.bf16.msra.mxu1 %v25070_v35  ;;  %v22948_v49 = vand.u32 4294901760, %v21144_v32  ;;  %v11161_v35 = vsub.f32 %v21130_v20, %v22940_v13  ;;  %v25084_v13 = vld [vmem:[#allocation366_spill] sm:$0xff] }
 0x7e9   : > { %12966 = vmatprep.subr.bf16.mxu0 %v25071_v28  ;;  %13566 = vmatprep.subr.bf16.mxu1 %v25072_v17  ;;  %v25079_v28 = vld [vmem:[#allocation266_spill] sm:$0xff]  ;;  %v25080_v17 = vld [vmem:[#allocation276_spill] sm:$0xff] }
 0x7ec   : > { %12968 = vmatpush1.bf16.msra.mxu0 %v25075_v9  ;;  %13568 = vmatpush1.bf16.msra.mxu1 %v25076_v22  ;;  %v8441_v9 = vsub.f32 %v21139_v54, %v22943_v37  ;;  %v11167_v22 = vsub.f32 %v21144_v32, %v22948_v49  ;;  %v25088_v37 = vld [vmem:[#allocation290_spill] sm:$0xff]  ;;  %v25116_v49 = vld [vmem:[#allocation187_spill] sm:$0xff] }
 0x7ed   : > { %12970 = vmatprep.subr.bf16.mxu0 %v25077_v27  ;;  %13570 = vmatprep.subr.bf16.mxu1 %v25078_v38  ;;  %v8436_v27 = vand.u32 4294901760, %v8435_v50  ;;  %v11162_v38 = vand.u32 4294901760, %v11161_v35  ;;  %v25090_v58 = vpack.c.bf16 %v25088_v37, %v25089_v47  ;;  %v25094_v35 = vld [vmem:[#allocation288_spill] sm:$0xff]  ;;  %v25104_v37 = vld [vmem:[#allocation169_spill] sm:$0xff] }
 0x7f0   : > { %12972 = vmatpush1.bf16.msra.mxu0 %v25079_v28  ;;  %13572 = vmatpush1.bf16.msra.mxu1 %v25080_v17  ;;  %v8442_v28 = vand.u32 4294901760, %v8441_v9  ;;  %v11168_v17 = vand.u32 4294901760, %v11167_v22  ;;  %v25095_v9 = vld [vmem:[#allocation287_spill] sm:$0xff] }
 0x7f1   : > { %12974 = vmatprep.subr.bf16.mxu0 %v25081_v30  ;;  %13574 = vmatprep.subr.bf16.mxu1 %v25082_v43  ;;  %v25085_v30 = vld [vmem:[#allocation232_spill] sm:$0xff]  ;;  %v25086_v43 = vld [vmem:[#allocation222_spill] sm:$0xff]  ;;  %v25096_v22 = vpack.c.bf16 %v25094_v35, %v25095_v9 }
 0x7f2   : > { %v25087_v39 = vpack.c.bf16 %v25085_v30, %v25086_v43  ;;  %v25106_v43 = vld [vmem:[#allocation303_spill] sm:$0xff] }
 0x7f4   : > { %12976 = vmatpush1.bf16.msra.mxu0 %v25083_v5  ;;  %13576 = vmatpush1.bf16.msra.mxu1 %v25084_v13  ;;  %v25091_v5 = vld [vmem:[#allocation283_spill] sm:$0xff]  ;;  %v25092_v13 = vld [vmem:[#allocation281_spill] sm:$0xff] }
 0x7f5   : > { %8437 = vmatprep.subr.mxu0 %v8436_v27  ;;  %11163 = vmatprep.subr.mxu1 %v11162_v38  ;;  %v25093_v50 = vpack.c.bf16 %v25091_v5, %v25092_v13  ;;  %v25097_v27 = vld [vmem:[#allocation248_spill] sm:$0xff]  ;;  %v25098_v38 = vld [vmem:[#allocation295_spill] sm:$0xff] }
 0x7f8   : > { %8443 = vmatpush1.msra.mxu0 %v8442_v28  ;;  %11169 = vmatpush1.msra.mxu1 %v11168_v17  ;;  %v25099_v28 = vpack.c.bf16 %v25097_v27, %v25098_v38  ;;  %v25101_v17 = vld [vmem:[#allocation174_spill] sm:$0xff]  ;;  %v25109_v27 = vld [vmem:[#allocation321_spill] sm:$0xff]  ;;  %v25110_v38 = vld [vmem:[#allocation315_spill] sm:$0xff] }
 0x7f9   : > { %12978 = vmatprep.subr.bf16.mxu0 %v25087_v39  ;;  %13578 = vmatprep.subr.bf16.mxu1 %v25090_v58  ;;  %v25100_v39 = vld [vmem:[#allocation249_spill] sm:$0xff]  ;;  %v25103_v58 = vld [vmem:[#allocation134_spill] sm:$0xff] }
 0x7fa   : > { %8473 = vmatmul.mubr.f32.vlgmr.msra.gmra.mrb[102].mxu0 %v20943_v21  ;;  %11199 = vmatmul.mubr.f32.vlgmr.msra.gmra.mrb[102].mxu1 %v20943_v21  ;;  %v25102_v47 = vpack.c.bf16 %v25100_v39, %v25101_v17  ;;  %v25105_v30 = vpack.c.bf16 %v25103_v58, %v25104_v37  ;;  %v25112_v39 = vld [vmem:[#allocation328_spill] sm:$0xff]  ;;  %v25113_v17 = vld [vmem:[#allocation189_spill] sm:$0xff] }
 0x7fb   : > { %12980 = vmatpush1.bf16.msra.mxu0 %v25093_v50  ;;  %13580 = vmatpush1.bf16.msra.mxu1 %v25096_v22  ;;  %v25107_v50 = vld [vmem:[#allocation135_spill] sm:$0xff] }
 0x7fc   : > { %12982 = vmatprep.subr.bf16.mxu0 %v25099_v28  ;;  %13582 = vmatprep.subr.bf16.mxu1 %v25102_v47  ;;  %v25108_v22 = vpack.c.bf16 %v25106_v43, %v25107_v50  ;;  %v25111_v28 = vpack.c.bf16 %v25109_v27, %v25110_v38  ;;  %v25114_v47 = vpack.c.bf16 %v25112_v39, %v25113_v17  ;;  %v25121_v38 = vld [vmem:[#allocation207_spill] sm:$0xff]  ;;  %v25124_v17 = vld [vmem:[#allocation125_spill] sm:$0xff] }
 0x7fd   : > { %8479 = vmatprep.mubr.f32.mxu0 %v20961_v18  ;;  %11205 = vmatprep.mubr.f32.mxu1 %v20961_v18  ;;  %v25119_v18 = vld [vmem:[#allocation166_spill] sm:$0xff] }
 0x7fe   : > { %8481 = vmatmul.mubr.f32.gmra.mrb[104].mxu0 %v20963_v56  ;;  %11207 = vmatmul.mubr.f32.gmra.mrb[104].mxu1 %v20963_v56 }
 0x7ff   : > { %12984 = vmatpush1.bf16.msra.mxu0 %v25105_v30  ;;  %13584 = vmatpush1.bf16.msra.mxu1 %v25108_v22  ;;  %v25115_v30 = vld [vmem:[#allocation168_spill] sm:$0xff]  ;;  %v25118_v22 = vld [vmem:[#allocation310_spill] sm:$0xff] }
 0x800   : > { %12986 = vmatprep.subr.bf16.mxu0 %v25111_v28  ;;  %13586 = vmatprep.subr.bf16.mxu1 %v25114_v47  ;;  %v25117_v56 = vpack.c.bf16 %v25115_v30, %v25116_v49  ;;  %v25120_v27 = vpack.c.bf16 %v25118_v22, %v25119_v18  ;;  %v25122_v28 = vld [vmem:[#allocation338_spill] sm:$0xff]  ;;  %v25125_v47 = vld [vmem:[#allocation176_spill] sm:$0xff] }
 0x801   : > { %8487 = vmatprep.mubr.f32.mxu0 %v20982_v48  ;;  %11213 = vmatprep.mubr.f32.mxu1 %v20982_v48  ;;  %v25123_v39 = vpack.c.bf16 %v25121_v38, %v25122_v28  ;;  %v25126_v21 = vpack.c.bf16 %v25124_v17, %v25125_v47  ;;  %v25131_v22 = vld [vmem:[#allocation190_spill] sm:$0xff]  ;;  %v25133_v28 = vld [vmem:[#allocation236_spill] sm:$0xff] }
 0x802   : > { %8489 = vmatmul.mubr.f32.gmra.mrb[106].mxu0 %v20987_v23  ;;  %11215 = vmatmul.mubr.f32.gmra.mrb[106].mxu1 %v20987_v23  ;;  %v25128_v23 = vld [vmem:[#allocation191_spill] sm:$0xff]  ;;  %v25137_v47 = vld [vmem:[#allocation226_spill] sm:$0xff] }
 0x803   : > { %12988 = vmatpush1.bf16.msra.mxu0 %v25117_v56  ;;  %13588 = vmatpush1.bf16.msra.mxu1 %v25120_v27  ;;  %v25127_v56 = vld [vmem:[#allocation196_spill] sm:$0xff]  ;;  %v25130_v27 = vld [vmem:[#allocation206_spill] sm:$0xff] }
 0x804   : > { %12990 = vmatprep.subr.bf16.mxu0 %v25123_v39  ;;  %13590 = vmatprep.subr.bf16.mxu1 %v25126_v21  ;;  %v25129_v48 = vpack.c.bf16 %v25127_v56, %v25128_v23  ;;  %v25132_v38 = vpack.c.bf16 %v25130_v27, %v25131_v22  ;;  %v25134_v39 = vld [vmem:[#allocation350_spill] sm:$0xff]  ;;  %v25143_v27 = vld [vmem:[#allocation261_spill] sm:$0xff] }
 0x805   : > { %8495 = vmatprep.mubr.f32.mxu0 %v21012_v44  ;;  %11221 = vmatprep.mubr.f32.mxu1 %v21012_v44  ;;  %v25135_v17 = vpack.c.bf16 %v25133_v28, %v25134_v39  ;;  %v25136_v21 = vld [vmem:[#allocation246_spill] sm:$0xff]  ;;  %v25145_v39 = vld [vmem:[#allocation355_spill] sm:$0xff] }
 0x806   : > { %8497 = vmatmul.mubr.f32.gmra.mrb[108].mxu0 %v21020_v29  ;;  %11223 = vmatmul.mubr.f32.gmra.mrb[108].mxu1 %v21020_v29  ;;  %v25138_v18 = vpack.c.bf16 %v25136_v21, %v25137_v47  ;;  %v25140_v29 = vld [vmem:[#allocation235_spill] sm:$0xff]  ;;  %v25149_v47 = vld [vmem:[#allocation353_spill] sm:$0xff]  ;;  %v25167_v23 = vld [vmem:[#allocation154_spill] sm:$0xff] }
 0x807   : > { %12992 = vmatpush1.bf16.msra.mxu0 %v25129_v48  ;;  %13592 = vmatpush1.bf16.msra.mxu1 %v25132_v38  ;;  %v25139_v48 = vld [vmem:[#allocation151_spill] sm:$0xff] }
 0x808   : > { %12994 = vmatprep.subr.bf16.mxu0 %v25135_v17  ;;  %13594 = vmatprep.subr.bf16.mxu1 %v25138_v18  ;;  %v25141_v44 = vpack.c.bf16 %v25139_v48, %v25140_v29  ;;  %v25142_v38 = vld [vmem:[#allocation311_spill] sm:$0xff]  ;;  %v25146_v17 = vld [vmem:[#allocation352_spill] sm:$0xff] }
 0x809   : > { %8503 = vmatprep.mubr.f32.mxu0 %v21054_v45  ;;  %11229 = vmatprep.mubr.f32.mxu1 %v21054_v45  ;;  %v25144_v28 = vpack.c.bf16 %v25142_v38, %v25143_v27  ;;  %v25147_v21 = vpack.c.bf16 %v25145_v39, %v25146_v17  ;;  %v25148_v18 = vld [vmem:[#allocation356_spill] sm:$0xff]  ;;  %v25155_v29 = vld [vmem:[#allocation243_spill] sm:$0xff] }
 0x80a   : > { %8505 = vmatmul.mubr.f32.gmra.mrb[110].mxu0 %v21064_v1  ;;  %11231 = vmatmul.mubr.f32.gmra.mrb[110].mxu1 %v21064_v1  ;;  %v25150_v22 = vpack.c.bf16 %v25148_v18, %v25149_v47  ;;  %v25151_v1 = vld [vmem:[#allocation242_spill] sm:$0xff]  ;;  %v25152_v45 = vld [vmem:[#allocation108_spill] sm:$0xff] }
 0x80b   : > { %12996 = vmatpush1.bf16.msra.mxu0 %v25141_v44  ;;  %13596 = vmatpush1.bf16.msra.mxu1 %v25144_v28  ;;  %v25153_v48 = vpack.c.bf16 %v25151_v1, %v25152_v45  ;;  %v25154_v44 = vld [vmem:[#allocation294_spill] sm:$0xff]  ;;  %v25157_v28 = vld [vmem:[#allocation363_spill] sm:$0xff]  ;;  %v25158_v27 = vld [vmem:[#allocation292_spill] sm:$0xff] }
 0x80c   : > { %12998 = vmatprep.subr.bf16.mxu0 %v25147_v21  ;;  %13598 = vmatprep.subr.bf16.mxu1 %v25150_v22  ;;  %v25156_v38 = vpack.c.bf16 %v25154_v44, %v25155_v29  ;;  %v25159_v39 = vpack.c.bf16 %v25157_v28, %v25158_v27  ;;  %v25160_v17 = vld [vmem:[#allocation364_spill] sm:$0xff]  ;;  %v25161_v21 = vld [vmem:[#allocation358_spill] sm:$0xff]  ;;  %v25170_v45 = vld [vmem:[#allocation367_spill] sm:$0xff] }
 0x80d   : > { %8653 = vmatprep.mubr.f32.mxu0 %v20902_v14  ;;  %11379 = vmatprep.mubr.f32.mxu1 %v20902_v14  ;;  %v25162_v18 = vpack.c.bf16 %v25160_v17, %v25161_v21  ;;  %v25163_v22 = vld [vmem:[#allocation188_spill] sm:$0xff]  ;;  %v25166_v14 = vld [vmem:[#allocation309_spill] sm:$0xff]  ;;  %v25175_v28 = vld [vmem:[#allocation331_spill] sm:$0xff] }
 0x80e   : > { %v25164_v47 = vld [vmem:[#allocation260_spill] sm:$0xff]  ;;  %v25168_v1 = vpack.c.bf16 %v25166_v14, %v25167_v23  ;;  %v25178_v21 = vld [vmem:[#allocation334_spill] sm:$0xff] }
 0x80f   : > { %13000 = vmatpush1.bf16.msra.mxu0 %v25153_v48  ;;  %13600 = vmatpush1.bf16.msra.mxu1 %v25156_v38  ;;  %v25165_v56 = vpack.c.bf16 %v25163_v22, %v25164_v47  ;;  %v25169_v48 = vld [vmem:[#allocation371_spill] sm:$0xff]  ;;  %v25172_v38 = vld [vmem:[#allocation372_spill] sm:$0xff]  ;;  %v25182_v47 = vld [vmem:[#allocation74_spill] sm:$0xff] }
 0x810   : > { %13002 = vmatprep.subr.bf16.mxu0 %v25159_v39  ;;  %13602 = vmatprep.subr.bf16.mxu1 %v25162_v18  ;;  %v25171_v44 = vpack.c.bf16 %v25169_v48, %v25170_v45  ;;  %v25173_v29 = vld [vmem:[#allocation368_spill] sm:$0xff]  ;;  %v25176_v39 = vld [vmem:[#allocation329_spill] sm:$0xff]  ;;  %v25185_v23 = vld [vmem:[#allocation162_spill] sm:$0xff] }
 0x811   : > { %v25174_v27 = vpack.c.bf16 %v25172_v38, %v25173_v29  ;;  %v25177_v17 = vpack.c.bf16 %v25175_v28, %v25176_v39  ;;  %v25179_v18 = vld [vmem:[#allocation332_spill] sm:$0xff]  ;;  %v25188_v48 = vld [vmem:[#allocation306_spill] sm:$0xff] }
 0x812   : > { %v25180_v22 = vpack.c.bf16 %v25178_v21, %v25179_v18  ;;  %v25190_v38 = vld [vmem:[#allocation346_spill] sm:$0xff] }
 0x813   : > { %13004 = vmatpush1.bf16.msra.mxu0 %v25165_v56  ;;  %13604 = vmatpush1.bf16.msra.mxu1 %v25168_v1  ;;  %v25181_v56 = vld [vmem:[#allocation351_spill] sm:$0xff]  ;;  %v25184_v1 = vld [vmem:[#allocation197_spill] sm:$0xff] }
 0x814   : > { %13006 = vmatprep.subr.bf16.mxu0 %v25171_v44  ;;  %13606 = vmatprep.subr.bf16.mxu1 %v25174_v27  ;;  %v25183_v14 = vpack.c.bf16 %v25181_v56, %v25182_v47  ;;  %v25186_v45 = vpack.c.bf16 %v25184_v1, %v25185_v23  ;;  %v25187_v44 = vld [vmem:[#allocation344_spill] sm:$0xff]  ;;  %v25191_v27 = vld [vmem:[#allocation229_spill] sm:$0xff] }
 0x815   : > { %v25189_v29 = vpack.c.bf16 %v25187_v44, %v25188_v48  ;;  %v25192_v28 = vpack.c.bf16 %v25190_v38, %v25191_v27  ;;  %v25196_v23 = vld [vmem:[#allocation289_spill] sm:$0xff] }
 0x816   : > { %v25204_v47 = vld [vmem:[#allocation333_spill] sm:$0xff] }
 0x817   : > { %13008 = vmatpush1.bf16.msra.mxu0 %v25177_v17  ;;  %13608 = vmatpush1.bf16.msra.mxu1 %v25180_v22  ;;  %v25203_v22 = vld [vmem:[#allocation330_spill] sm:$0xff]  ;;  %v25207_v17 = vld [vmem:[#allocation216_spill] sm:$0xff]  ;;  %v25208_v56 = vld [vmem:[#allocation345_spill] sm:$0xff] }
 0x818   : > { %13010 = vmatprep.subr.bf16.mxu0 %v25183_v14  ;;  %13610 = vmatprep.subr.bf16.mxu1 %v25186_v45  ;;  %v25205_v14 = vld [vmem:[#allocation254_spill] sm:$0xff]  ;;  %v25209_v1 = vld [vmem:[#allocation373_spill] sm:$0xff] }
 0x819   : > { %v25210_v45 = vld [vmem:[#allocation193_spill] sm:$0xff] }
 0x81b   : > { %13012 = vmatpush1.bf16.msra.mxu0 %v25189_v29  ;;  %13612 = vmatpush1.bf16.msra.mxu1 %v25192_v28  ;;  %v25206_v28 = vld [vmem:[#allocation271_spill] sm:$0xff] }
 0x81c   : > { %8621 = vmatprep.subr.mxu0 %v21125_v4  ;;  %11347 = vmatprep.subr.mxu1 %v21130_v20  ;;  %v25211_v29 = vld [vmem:[#allocation299_spill] sm:$0xff] }
 0x81f   : > { %8624 = vmatpush1.msra.mxu0 %v21139_v54  ;;  %11350 = vmatpush1.msra.mxu1 %v21144_v32 }
 0x820   : > { %13014 = vmatprep.subr.bf16.mxu0 %v24980_v3  ;;  %13614 = vmatprep.subr.bf16.mxu1 %v24981_v15 }
 0x821   : > { %8656 = vmatmul.mubr.f32.vlgmr.msra.gmra.mrb[102].mxu0 %v20957_v7  ;;  %11382 = vmatmul.mubr.f32.vlgmr.msra.gmra.mrb[102].mxu1 %v20957_v7  ;;  %v25193_v7 = vld [vmem:[#allocation129_spill] sm:$0xff] }
 0x822   : > { %13016 = vmatpush1.bf16.msra.mxu0 %v24983_v61  ;;  %13616 = vmatpush1.bf16.msra.mxu1 %v24984_v33 }
 0x823   : > { %13018 = vmatprep.subr.bf16.mxu0 %v24985_v59  ;;  %13618 = vmatprep.subr.bf16.mxu1 %v24986_v26 }
 0x824   : > { %8663 = vmatprep.mubr.f32.mxu0 %v20980_v40  ;;  %11389 = vmatprep.mubr.f32.mxu1 %v20980_v40  ;;  %v25194_v40 = vld [vmem:[#allocation361_spill] sm:$0xff] }
 0x825   : > { %8666 = vmatmul.mubr.f32.gmra.mrb[104].mxu0 %v20985_v6  ;;  %11392 = vmatmul.mubr.f32.gmra.mrb[104].mxu1 %v20985_v6  ;;  %v25195_v6 = vld [vmem:[#allocation110_spill] sm:$0xff] }
 0x826   : > { %13020 = vmatpush1.bf16.msra.mxu0 %v24987_v0  ;;  %13620 = vmatpush1.bf16.msra.mxu1 %v24988_v41 }
 0x827   : > { %13022 = vmatprep.subr.bf16.mxu0 %v24989_v2  ;;  %13622 = vmatprep.subr.bf16.mxu1 %v24990_v51 }
 0x828   : > { %8673 = vmatprep.mubr.f32.mxu0 %v21010_v11  ;;  %11399 = vmatprep.mubr.f32.mxu1 %v21010_v11  ;;  %v25199_v11 = vld [vmem:[#allocation182_spill] sm:$0xff] }
 0x829   : > { %8676 = vmatmul.mubr.f32.gmra.mrb[106].mxu0 %v21018_v31  ;;  %11402 = vmatmul.mubr.f32.gmra.mrb[106].mxu1 %v21018_v31  ;;  %v25198_v31 = vld [vmem:[#allocation349_spill] sm:$0xff] }
 0x82a   : > { %13024 = vmatpush1.bf16.msra.mxu0 %v24992_v10  ;;  %13624 = vmatpush1.bf16.msra.mxu1 %v24993_v19 }
 0x82b   : > { %13026 = vmatprep.subr.bf16.mxu0 %v24994_v16  ;;  %13626 = vmatprep.subr.bf16.mxu1 %v24995_v42 }
 0x82c   : > { %8683 = vmatprep.mubr.f32.mxu0 %v21052_v52  ;;  %11409 = vmatprep.mubr.f32.mxu1 %v21052_v52  ;;  %v25200_v52 = vld [vmem:[#allocation305_spill] sm:$0xff] }
 0x82d   : > { %8686 = vmatmul.mubr.f32.gmra.mrb[108].mxu0 %v21062_v62  ;;  %11412 = vmatmul.mubr.f32.gmra.mrb[108].mxu1 %v21062_v62  ;;  %v25197_v62 = vld [vmem:[#allocation208_spill] sm:$0xff] }
 0x82e   : > { %13028 = vmatpush1.bf16.msra.mxu0 %v24996_v63  ;;  %13628 = vmatpush1.bf16.msra.mxu1 %v24997_v46 }
 0x82f   : > { %13030 = vmatprep.subr.bf16.mxu0 %v24998_v60  ;;  %13630 = vmatprep.subr.bf16.mxu1 %v24999_v36 }
 0x830   : > { %8693 = vmatprep.mubr.f32.mxu0 %v21076_v55  ;;  %11419 = vmatprep.mubr.f32.mxu1 %v21076_v55  ;;  %v25201_v55 = vld [vmem:[#allocation245_spill] sm:$0xff] }
 0x831   : > { %8696 = vmatmul.mubr.f32.gmra.mrb[110].mxu0 %v21084_v57  ;;  %11422 = vmatmul.mubr.f32.gmra.mrb[110].mxu1 %v21084_v57  ;;  %v25202_v57 = vld [vmem:[#allocation220_spill] sm:$0xff] }
 0x832   : > { %13032 = vmatpush1.bf16.msra.mxu0 %v25000_v25  ;;  %13632 = vmatpush1.bf16.msra.mxu1 %v25001_v53 }
 0x833   : > { %13034 = vmatprep.subr.bf16.mxu0 %v25003_v24  ;;  %13634 = vmatprep.subr.bf16.mxu1 %v25193_v7 }
 0x834   : > { %8807 = vmatprep.mubr.f32.mxu0 %v25194_v40  ;;  %11533 = vmatprep.mubr.f32.mxu1 %v25194_v40  ;;  %v25212_v40 = vand.u32 4294901760, %v25092_v13  ;;  %v25219_v13 = vand.u32 4294901760, %v25104_v37  ;;  %v25226_v37 = vld [vmem:[#allocation165_spill] sm:$0xff] }
 0x836   : > { %13036 = vmatpush1.bf16.msra.mxu0 %v25195_v6  ;;  %13636 = vmatpush1.bf16.msra.mxu1 %v25196_v23 }
 0x837   : > { %13038 = vmatprep.subr.bf16.mxu0 %v25197_v62  ;;  %13638 = vmatprep.subr.bf16.mxu1 %v25198_v31 }
 0x83a   : > { %13040 = vmatpush1.bf16.msra.mxu0 %v25199_v11  ;;  %13640 = vmatpush1.bf16.msra.mxu1 %v25200_v52 }
 0x83b   : > { %13042 = vmatprep.subr.bf16.mxu0 %v25201_v55  ;;  %13642 = vmatprep.subr.bf16.mxu1 %v25202_v57 }
 0x83e   : > { %13044 = vmatpush1.bf16.msra.mxu0 %v25203_v22  ;;  %13644 = vmatpush1.bf16.msra.mxu1 %v25204_v47  ;;  %v25216_v47 = vld [vmem:[#allocation38_spill] sm:$0xff] }
 0x83f   : > { %13046 = vmatprep.subr.bf16.mxu0 %v25205_v14  ;;  %13646 = vmatprep.subr.bf16.mxu1 %v25206_v28  ;;  %v25213_v28 = vand.u32 4294901760, %v25091_v5  ;;  %v25220_v5 = vand.u32 4294901760, %v25103_v58  ;;  %v25227_v58 = vand.u32 4294901760, %v25116_v49  ;;  %v25236_v49 = vld [vmem:[#allocation237_spill] sm:$0xff] }
 0x841   : > { %v13051_v14 = vpack.c.bf16 %v25213_v28, %v25212_v40  ;;  %v13055_v28 = vpack.c.bf16 %v25220_v5, %v25219_v13  ;;  %v25233_v13 = vld [vmem:[#allocation27_spill] sm:$0xff] }
 0x842   : > { %13048 = vmatpush1.bf16.msra.mxu0 %v25207_v17  ;;  %13648 = vmatpush1.bf16.msra.mxu1 %v25208_v56  ;;  %v25214_v17 = vand.u32 4294901760, %v25095_v9  ;;  %v25215_v56 = vand.u32 4294901760, %v25094_v35  ;;  %v25221_v9 = vand.u32 4294901760, %v25107_v50  ;;  %v25222_v35 = vand.u32 4294901760, %v25106_v43  ;;  %v25234_v5 = vld [vmem:[#allocation75_spill] sm:$0xff] }
 0x843   : > { %8775 = vmatprep.subr.mxu0 %v21025_v34  ;;  %11501 = vmatprep.subr.mxu1 %v21029_v12  ;;  %v25228_v50 = vand.u32 4294901760, %v25115_v30  ;;  %v25237_v30 = vld [vmem:[#allocation191_spill] sm:$0xff] }
 0x844   : > { %v13651_v34 = vpack.c.bf16 %v25215_v56, %v25214_v17  ;;  %v13655_v17 = vpack.c.bf16 %v25222_v35, %v25221_v9  ;;  %v25223_v56 = vld [vmem:[#allocation324_spill] sm:$0xff]  ;;  %v25238_v9 = vand.u32 4294901760, %v25237_v30 }
 0x845   : > { %v13059_v43 = vpack.c.bf16 %v25228_v50, %v25227_v58  ;;  %v25239_v35 = vld [vmem:[#allocation196_spill] sm:$0xff] }
 0x846   : > { %8777 = vmatpush1.msra.mxu0 %v21036_v8  ;;  %11503 = vmatpush1.msra.mxu1 %v25209_v1  ;;  %v25217_v1 = vld [vmem:[#allocation136_spill] sm:$0xff] }
 0x847   : > { %13050 = vmatprep.subr.bf16.mxu0 %v25210_v45  ;;  %13650 = vmatprep.subr.bf16.mxu1 %v25211_v29  ;;  %v25218_v45 = vld [vmem:[#allocation215_spill] sm:$0xff]  ;;  %v25231_v29 = vld [vmem:[#allocation310_spill] sm:$0xff] }
 0x848   : > { %8811 = vmatmul.mubr.f32.vlgmr.msra.gmra.mrb[102].mxu0 %v25216_v47  ;;  %11537 = vmatmul.mubr.f32.vlgmr.msra.gmra.mrb[102].mxu1 %v25216_v47  ;;  %v25224_v47 = vld [vmem:[#allocation369_spill] sm:$0xff]  ;;  %v25232_v40 = vand.u32 4294901760, %v25231_v29 }
 0x849   : > { %13052 = vmatpush1.bf16.msra.mxu0 %v13051_v14  ;;  %13652 = vmatpush1.bf16.msra.mxu1 %v13651_v34  ;;  %v25225_v34 = vld [vmem:[#allocation150_spill] sm:$0xff]  ;;  %v25248_v29 = vld [vmem:[#allocation253_spill] sm:$0xff] }
 0x84a   : > { %13054 = vmatprep.subr.bf16.mxu0 %v25217_v1  ;;  %13654 = vmatprep.subr.bf16.mxu1 %v25218_v45  ;;  %v25229_v14 = vld [vmem:[#allocation166_spill] sm:$0xff] }
 0x84b   : > { %8819 = vmatprep.mubr.f32.mxu0 %v25223_v56  ;;  %11545 = vmatprep.mubr.f32.mxu1 %v25223_v56  ;;  %v25230_v1 = vand.u32 4294901760, %v25229_v14  ;;  %v25245_v14 = vld [vmem:[#allocation291_spill] sm:$0xff] }
 0x84c   : > { %8823 = vmatmul.mubr.f32.gmra.mrb[104].mxu0 %v25224_v47  ;;  %11549 = vmatmul.mubr.f32.gmra.mrb[104].mxu1 %v25224_v47  ;;  %v25241_v47 = vld [vmem:[#allocation190_spill] sm:$0xff] }
 0x84d   : > { %13056 = vmatpush1.bf16.msra.mxu0 %v13055_v28  ;;  %13656 = vmatpush1.bf16.msra.mxu1 %v13655_v17  ;;  %v13659_v45 = vpack.c.bf16 %v25232_v40, %v25230_v1  ;;  %v25235_v28 = vld [vmem:[#allocation152_spill] sm:$0xff]  ;;  %v25240_v17 = vand.u32 4294901760, %v25239_v35  ;;  %v25247_v1 = vld [vmem:[#allocation354_spill] sm:$0xff]  ;;  %v25249_v40 = vld [vmem:[#allocation235_spill] sm:$0xff] }
 0x84e   : > { %13058 = vmatprep.subr.bf16.mxu0 %v25225_v34  ;;  %13658 = vmatprep.subr.bf16.mxu1 %v25226_v37  ;;  %v25242_v34 = vand.u32 4294901760, %v25241_v47  ;;  %v25243_v37 = vld [vmem:[#allocation206_spill] sm:$0xff]  ;;  %v25257_v47 = vld [vmem:[#allocation52_spill] sm:$0xff] }
 0x84f   : > { %8831 = vmatprep.mubr.f32.mxu0 %v25233_v13  ;;  %11557 = vmatprep.mubr.f32.mxu1 %v25233_v13  ;;  %v13063_v56 = vpack.c.bf16 %v25240_v17, %v25238_v9  ;;  %v25244_v58 = vand.u32 4294901760, %v25243_v37  ;;  %v25251_v13 = vld [vmem:[#allocation151_spill] sm:$0xff] }
 0x850   : > { %8835 = vmatmul.mubr.f32.gmra.mrb[106].mxu0 %v25234_v5  ;;  %11561 = vmatmul.mubr.f32.gmra.mrb[106].mxu1 %v25234_v5  ;;  %v25252_v5 = vand.u32 4294901760, %v25251_v13  ;;  %v25255_v9 = vld [vmem:[#allocation311_spill] sm:$0xff] }
 0x851   : > { %13060 = vmatpush1.bf16.msra.mxu0 %v13059_v43  ;;  %13660 = vmatpush1.bf16.msra.mxu1 %v13659_v45  ;;  %v13663_v50 = vpack.c.bf16 %v25244_v58, %v25242_v34  ;;  %v25246_v43 = vld [vmem:[#allocation337_spill] sm:$0xff]  ;;  %v25250_v45 = vand.u32 4294901760, %v25249_v40  ;;  %v25256_v35 = vand.u32 4294901760, %v25255_v9  ;;  %v25260_v37 = vld [vmem:[#allocation275_spill] sm:$0xff]  ;;  %v25261_v58 = vld [vmem:[#allocation108_spill] sm:$0xff] }
 0x852   : > { %13062 = vmatprep.subr.bf16.mxu0 %v25235_v28  ;;  %13662 = vmatprep.subr.bf16.mxu1 %v25236_v49  ;;  %v25253_v49 = vld [vmem:[#allocation261_spill] sm:$0xff]  ;;  %v25272_v9 = vld [vmem:[#allocation260_spill] sm:$0xff] }
 0x853   : > { %8843 = vmatprep.mubr.f32.mxu0 %v25245_v14  ;;  %11569 = vmatprep.mubr.f32.mxu1 %v25245_v14  ;;  %v13067_v28 = vpack.c.bf16 %v25252_v5, %v25250_v45  ;;  %v25254_v30 = vand.u32 4294901760, %v25253_v49  ;;  %v25259_v34 = vld [vmem:[#allocation265_spill] sm:$0xff]  ;;  %v25263_v14 = vld [vmem:[#allocation242_spill] sm:$0xff] }
 0x854   : > { %8847 = vmatmul.mubr.f32.gmra.mrb[108].mxu0 %v25246_v43  ;;  %11573 = vmatmul.mubr.f32.gmra.mrb[108].mxu1 %v25246_v43  ;;  %v25264_v43 = vand.u32 4294901760, %v25263_v14  ;;  %v25267_v45 = vld [vmem:[#allocation294_spill] sm:$0xff]  ;;  %v25269_v49 = vld [vmem:[#allocation293_spill] sm:$0xff] }
 0x855   : > { %13064 = vmatpush1.bf16.msra.mxu0 %v13063_v56  ;;  %13664 = vmatpush1.bf16.msra.mxu1 %v13663_v50  ;;  %v13667_v17 = vpack.c.bf16 %v25256_v35, %v25254_v30  ;;  %v25258_v56 = vld [vmem:[#allocation58_spill] sm:$0xff]  ;;  %v25262_v50 = vand.u32 4294901760, %v25261_v58  ;;  %v25268_v13 = vand.u32 4294901760, %v25267_v45  ;;  %v25271_v30 = vld [vmem:[#allocation308_spill] sm:$0xff]  ;;  %v25273_v35 = vand.u32 4294901760, %v25272_v9  ;;  %v25278_v58 = vld [vmem:[#allocation309_spill] sm:$0xff] }
 0x856   : > { %13066 = vmatprep.subr.bf16.mxu0 %v25247_v1  ;;  %13666 = vmatprep.subr.bf16.mxu1 %v25248_v29  ;;  %v25265_v29 = vld [vmem:[#allocation243_spill] sm:$0xff]  ;;  %v25287_v9 = vld [vmem:[#allocation264_spill] sm:$0xff] }
 0x857   : > { %8855 = vmatprep.mubr.f32.mxu0 %v25257_v47  ;;  %11581 = vmatprep.mubr.f32.mxu1 %v25257_v47  ;;  %v13071_v1 = vpack.c.bf16 %v25264_v43, %v25262_v50  ;;  %v25266_v40 = vand.u32 4294901760, %v25265_v29  ;;  %v25279_v50 = vand.u32 4294901760, %v25278_v58  ;;  %v25280_v43 = vld [vmem:[#allocation359_spill] sm:$0xff]  ;;  %v25282_v29 = vand.u32 4294901760, %v25176_v39 }
 0x858   : > { %8859 = vmatmul.mubr.f32.gmra.mrb[110].mxu0 %v25258_v56  ;;  %11585 = vmatmul.mubr.f32.gmra.mrb[110].mxu1 %v25258_v56  ;;  %v25291_v39 = vand.u32 4294901760, %v25191_v27  ;;  %v25295_v58 = vand.u32 4294901760, %v21139_v54 }
 0x859   : > { %13068 = vmatpush1.bf16.msra.mxu0 %v13067_v28  ;;  %13668 = vmatpush1.bf16.msra.mxu1 %v13667_v17  ;;  %v13671_v5 = vpack.c.bf16 %v25268_v13, %v25266_v40  ;;  %v25270_v28 = vld [vmem:[#allocation307_spill] sm:$0xff]  ;;  %v25274_v17 = vld [vmem:[#allocation188_spill] sm:$0xff] }
 0x85a   : > { %13070 = vmatprep.subr.bf16.mxu0 %v25259_v34  ;;  %13670 = vmatprep.subr.bf16.mxu1 %v25260_v37  ;;  %v25275_v47 = vand.u32 4294901760, %v25274_v17  ;;  %v25276_v34 = vld [vmem:[#allocation154_spill] sm:$0xff]  ;;  %v25283_v40 = vld [vmem:[#allocation331_spill] sm:$0xff]  ;;  %v25289_v17 = vand.u32 4294901760, %v25188_v48  ;;  %v25296_v48 = vand.u32 4294901760, %v21144_v32 }
 0x85b   : > { %9044 = vmatprep.mubr.f32.mxu0 %v25269_v49  ;;  %11770 = vmatprep.mubr.f32.mxu1 %v25269_v49  ;;  %v25277_v37 = vand.u32 4294901760, %v25276_v34  ;;  %v25284_v45 = vand.u32 4294901760, %v25283_v40  ;;  %v25292_v34 = vand.u32 4294901760, %v25190_v38 }
 0x85c   : > { %v13075_v56 = vpack.c.bf16 %v25275_v47, %v25273_v35  ;;  %v25288_v35 = vld [vmem:[#allocation251_spill] sm:$0xff]  ;;  %v25290_v47 = vand.u32 4294901760, %v25187_v44  ;;  %v25297_v44 = vld [vmem:[#allocation357_spill] sm:$0xff] }
 0x85d   : > { %13072 = vmatpush1.bf16.msra.mxu0 %v13071_v1  ;;  %13672 = vmatpush1.bf16.msra.mxu1 %v13671_v5  ;;  %v13675_v14 = vpack.c.bf16 %v25279_v50, %v25277_v37  ;;  %v25281_v1 = vld [vmem:[#allocation362_spill] sm:$0xff]  ;;  %v13079_v13 = vpack.c.bf16 %v25284_v45, %v25282_v29  ;;  %v25285_v5 = vand.u32 4294901760, %v25179_v18  ;;  %v13683_v37 = vpack.c.bf16 %v25292_v34, %v25291_v39 }
 0x85e   : > { %13074 = vmatprep.subr.bf16.mxu0 %v25270_v28  ;;  %13674 = vmatprep.subr.bf16.mxu1 %v25271_v30  ;;  %v25286_v28 = vand.u32 4294901760, %v25178_v21  ;;  %v25293_v21 = vand.u32 4294901760, %v21125_v4  ;;  %v25294_v18 = vand.u32 4294901760, %v21130_v20  ;;  %v25298_v4 = vld [vmem:[#allocation365_spill] sm:$0xff]  ;;  %v25299_v20 = vld [vmem:[#allocation23_spill] sm:$0xff] }
 0x860   : > { %v13679_v30 = vpack.c.bf16 %v25286_v28, %v25285_v5 }
 0x861   : > { %13076 = vmatpush1.bf16.msra.mxu0 %v13075_v56  ;;  %13676 = vmatpush1.bf16.msra.mxu1 %v13675_v14  ;;  %v13083_v56 = vpack.c.bf16 %v25290_v47, %v25289_v17 }
 0x862   : > { %13078 = vmatprep.subr.bf16.mxu0 %v25280_v43  ;;  %13678 = vmatprep.subr.bf16.mxu1 %v25281_v1 }
 0x865   : > { %13080 = vmatpush1.bf16.msra.mxu0 %v13079_v13  ;;  %13680 = vmatpush1.bf16.msra.mxu1 %v13679_v30 }
 0x866   : > { %13082 = vmatprep.subr.bf16.mxu0 %v25287_v9  ;;  %13682 = vmatprep.subr.bf16.mxu1 %v25288_v35 }
 0x869   : > { %13084 = vmatpush1.bf16.msra.mxu0 %v13083_v56  ;;  %13684 = vmatpush1.bf16.msra.mxu1 %v13683_v37 }
 0x86a   : > { %9012 = vmatprep.subr.mxu0 %v25293_v21  ;;  %11738 = vmatprep.subr.mxu1 %v25294_v18 }
 0x86d   : > { %9016 = vmatpush1.msra.mxu0 %v25295_v58  ;;  %11742 = vmatpush1.msra.mxu1 %v25296_v48 }
 0x86e   : > { %13086 = vmatprep.subr.bf16.mxu0 %v24980_v3  ;;  %13686 = vmatprep.subr.bf16.mxu1 %v24981_v15  ;;  %v25300_v3 = vld [vmem:[#allocation124_spill] sm:$0xff] }
 0x86f   : > { %9046 = vmatmul.mubr.f32.vlgmr.msra.gmra.mrb[102].mxu0 %v25297_v44  ;;  %11772 = vmatmul.mubr.f32.vlgmr.msra.gmra.mrb[102].mxu1 %v25297_v44  ;;  %v25301_v15 = vld [vmem:[#allocation28_spill] sm:$0xff] }
 0x870   : > { %13088 = vmatpush1.bf16.msra.mxu0 %v24983_v61  ;;  %13688 = vmatpush1.bf16.msra.mxu1 %v24984_v33  ;;  %v25302_v61 = vld [vmem:[#allocation325_spill] sm:$0xff] }
 0x871   : > { %13090 = vmatprep.subr.bf16.mxu0 %v24985_v59  ;;  %13690 = vmatprep.subr.bf16.mxu1 %v24986_v26  ;;  %v25303_v33 = vld [vmem:[#allocation297_spill] sm:$0xff]  ;;  %v25304_v59 = vld [vmem:[#allocation34_spill] sm:$0xff] }
 0x872   : > { %9052 = vmatprep.mubr.f32.mxu0 %v25298_v4  ;;  %11778 = vmatprep.mubr.f32.mxu1 %v25298_v4  ;;  %v25305_v26 = vld [vmem:[#allocation78_spill] sm:$0xff] }
 0x873   : > { %9054 = vmatmul.mubr.f32.gmra.mrb[104].mxu0 %v25299_v20  ;;  %11780 = vmatmul.mubr.f32.gmra.mrb[104].mxu1 %v25299_v20 }
 0x874   : > { %13092 = vmatpush1.bf16.msra.mxu0 %v24987_v0  ;;  %13692 = vmatpush1.bf16.msra.mxu1 %v24988_v41  ;;  %v25306_v0 = vld [vmem:[#allocation333_spill] sm:$0xff]  ;;  %v25307_v41 = vld [vmem:[#allocation254_spill] sm:$0xff] }
 0x875   : > { %13094 = vmatprep.subr.bf16.mxu0 %v24989_v2  ;;  %13694 = vmatprep.subr.bf16.mxu1 %v24990_v51  ;;  %v25308_v2 = vld [vmem:[#allocation271_spill] sm:$0xff]  ;;  %v25309_v51 = vld [vmem:[#allocation216_spill] sm:$0xff] }
 0x876   : > { %9060 = vmatprep.mubr.f32.mxu0 %v25300_v3  ;;  %11786 = vmatprep.mubr.f32.mxu1 %v25300_v3 }
 0x877   : > { %9062 = vmatmul.mubr.f32.gmra.mrb[106].mxu0 %v25301_v15  ;;  %11788 = vmatmul.mubr.f32.gmra.mrb[106].mxu1 %v25301_v15 }
 0x878   : > { %13096 = vmatpush1.bf16.msra.mxu0 %v24992_v10  ;;  %13696 = vmatpush1.bf16.msra.mxu1 %v24993_v19  ;;  %v25310_v10 = vld [vmem:[#allocation345_spill] sm:$0xff]  ;;  %v25311_v19 = vld [vmem:[#allocation370_spill] sm:$0xff] }
 0x879   : > { %13098 = vmatprep.subr.bf16.mxu0 %v24994_v16  ;;  %13698 = vmatprep.subr.bf16.mxu1 %v24995_v42  ;;  %v25312_v16 = vld [vmem:[#allocation373_spill] sm:$0xff] }
 0x87a   : > { %9068 = vmatprep.mubr.f32.mxu0 %v25302_v61  ;;  %11794 = vmatprep.mubr.f32.mxu1 %v25302_v61  ;;  %v21561_v42 = vld [vmem:[%s15193_s20] sm:$0xff] }
 0x87b   : > { %9070 = vmatmul.mubr.f32.gmra.mrb[108].mxu0 %v25303_v33  ;;  %11796 = vmatmul.mubr.f32.gmra.mrb[108].mxu1 %v25303_v33 }
 0x87c   : > { %13100 = vmatpush1.bf16.msra.mxu0 %v24996_v63  ;;  %13700 = vmatpush1.bf16.msra.mxu1 %v24997_v46  ;;  %v12278_v63 = vmul.f32 %v21561_v42, %v21561_v42  ;;  %v21566_v46 = vld [vmem:[%s15193_s20 + $0x8] sm:$0xff] }
 0x87d   : > { %13102 = vmatprep.subr.bf16.mxu0 %v24998_v60  ;;  %13702 = vmatprep.subr.bf16.mxu1 %v24999_v36  ;;  %v12279_v60 = vmul.f32 %v21566_v46, %v21566_v46 }
 0x87e   : > { %9076 = vmatprep.mubr.f32.mxu0 %v25304_v59  ;;  %11802 = vmatprep.mubr.f32.mxu1 %v25304_v59  ;;  %v12282_v36 = vsel %vm12209_vm3, %v12278_v63, 0.0 }
 0x87f   : > { %9078 = vmatmul.mubr.f32.gmra.mrb[110].mxu0 %v25305_v26  ;;  %11804 = vmatmul.mubr.f32.gmra.mrb[110].mxu1 %v25305_v26 }
 0x880   : > { %13104 = vmatpush1.bf16.msra.mxu0 %v25000_v25  ;;  %13704 = vmatpush1.bf16.msra.mxu1 %v25001_v53  ;;  %v12289_v25 = vsel %vm12209_vm3, %v12279_v60, 0.0  ;;  %v21573_v53 = vld [vmem:[%s15193_s20 + $0x18] sm:$0xff] }
 0x881   : > { %13106 = vmatprep.subr.bf16.mxu0 %v25003_v24  ;;  %13706 = vmatprep.subr.bf16.mxu1 %v25193_v7  ;;  %v12281_v24 = vmul.f32 %v21573_v53, %v21573_v53  ;;  %v12290_v32 = vrot.slane %v12289_v25, 4 }
 0x882   : > { %9187 = vmatprep.mubr.f32.mxu0 %v25269_v49  ;;  %11913 = vmatprep.mubr.f32.mxu1 %v25269_v49 }
 0x883   : > { %v12303_v38 = vsel %vm12209_vm3, %v12281_v24, 0.0 }
 0x884   : > { %13108 = vmatpush1.bf16.msra.mxu0 %v25195_v6  ;;  %13708 = vmatpush1.bf16.msra.mxu1 %v25196_v23 }
 0x885   : > { %13110 = vmatprep.subr.bf16.mxu0 %v25197_v62  ;;  %13710 = vmatprep.subr.bf16.mxu1 %v25198_v31 }
 0x888   : > { %13112 = vmatpush1.bf16.msra.mxu0 %v25199_v11  ;;  %13712 = vmatpush1.bf16.msra.mxu1 %v25200_v52  ;;  %v12291_v11 = vadd.f32 %v12290_v32, %v12289_v25  ;;  %v12304_v52 = vrot.slane %v12303_v38, 4 }
 0x889   : > { %13114 = vmatprep.subr.bf16.mxu0 %v25201_v55  ;;  %13714 = vmatprep.subr.bf16.mxu1 %v25202_v57 }
 0x88a   : > { %v12292_v43 = vrot.slane %v12291_v11, 2  ;;  %v21600_v1 = vadd.f32 %v12304_v52, %v12303_v38 }
 0x88c   : > { %13116 = vmatpush1.bf16.msra.mxu0 %v25203_v22  ;;  %13716 = vmatpush1.bf16.msra.mxu1 %v25306_v0  ;;  %v21616_v35 = vadd.f32 %v12292_v43, %v12291_v11 }
 0x88d   : > { %13118 = vmatprep.subr.bf16.mxu0 %v25307_v41  ;;  %13718 = vmatprep.subr.bf16.mxu1 %v25308_v2 }
 0x890   : > { %13120 = vmatpush1.bf16.msra.mxu0 %v25309_v51  ;;  %13720 = vmatpush1.bf16.msra.mxu1 %v25310_v10 }
 0x891   : > { %9157 = vmatprep.subr.mxu0 %v25311_v19  ;;  %11883 = vmatprep.subr.mxu1 %v21029_v12  ;;  %v12283_v12 = vrot.slane %v12282_v36, 4 }
 0x893   : > { %v12284_v27 = vadd.f32 %v12283_v12, %v12282_v36 }
 0x894   : > { %9159 = vmatpush1.msra.mxu0 %v21036_v8  ;;  %11885 = vmatpush1.msra.mxu1 %v25312_v16  ;;  %v21578_v8 = vld [vmem:[%s15193_s20 + $0x10] sm:$0xff] }
 0x895   : > { %9189 = vmatmul.mubr.f32.vlgmr.msra.gmra.mrb[102].mxu0 %v25297_v44  ;;  %11915 = vmatmul.mubr.f32.vlgmr.msra.gmra.mrb[102].mxu1 %v25297_v44  ;;  %v12280_v54 = vmul.f32 %v21578_v8, %v21578_v8  ;;  %v12285_v55 = vrot.slane %v12284_v27, 2 }
 0x896   : > { %9195 = vmatprep.mubr.f32.mxu0 %v25298_v4  ;;  %11921 = vmatprep.mubr.f32.mxu1 %v25298_v4 }
 0x897   : > { %v12296_v7 = vsel %vm12209_vm3, %v12280_v54, 0.0  ;;  %v21602_v29 = vadd.f32 %v12285_v55, %v12284_v27 }
 0x898   : > { %v12297_v57 = vrot.slane %v12296_v7, 4 }
 0x899   : > { %9197 = vmatmul.mubr.f32.gmra.mrb[104].mxu0 %v25299_v20  ;;  %11923 = vmatmul.mubr.f32.gmra.mrb[104].mxu1 %v25299_v20 }
 0x89a   : > { %9203 = vmatprep.mubr.f32.mxu0 %v25300_v3  ;;  %11929 = vmatprep.mubr.f32.mxu1 %v25300_v3  ;;  %v21604_v40 = vadd.f32 %v12297_v57, %v12296_v7 }
 0x89d   : > { %9205 = vmatmul.mubr.f32.gmra.mrb[106].mxu0 %v25301_v15  ;;  %11931 = vmatmul.mubr.f32.gmra.mrb[106].mxu1 %v25301_v15 }
 0x89e   : > { %9211 = vmatprep.mubr.f32.mxu0 %v25302_v61  ;;  %11937 = vmatprep.mubr.f32.mxu1 %v25302_v61 }
 0x8a1   : > { %9213 = vmatmul.mubr.f32.gmra.mrb[108].mxu0 %v25303_v33  ;;  %11939 = vmatmul.mubr.f32.gmra.mrb[108].mxu1 %v25303_v33 }
 0x8a2   : > { %9219 = vmatprep.mubr.f32.mxu0 %v25304_v59  ;;  %11945 = vmatprep.mubr.f32.mxu1 %v25304_v59 }
 0x8a5   : > { %9221 = vmatmul.mubr.f32.gmra.mrb[110].mxu0 %v25305_v26  ;;  %11947 = vmatmul.mubr.f32.gmra.mrb[110].mxu1 %v25305_v26 }
 0x968   : > { %v21584_v6 = vpop.f32.mrb[102].mxu0  ;;  %v21586_v23 = vpop.f32.mrb[102].mxu1 }
 0x969   : > { %v21588_v62 = vpop.f32.mrb[103].mxu0  ;;  %v21590_v31 = vpop.f32.mrb[103].mxu1  ;;  %v12129_v18 = vrot.slane %v21584_v6, 7  ;;  %v12161_v58 = vrot.slane %v21584_v6, 3  ;;  %v12131_v48 = vrot.slane %v21586_v23, 7 }
 0x96a   : > { %v12130_v15 = vrot.slane %v21588_v62, 7 }
 0x96c   : > { %v21592_v22 = vpop.f32.mrb[104].mxu0  ;;  %v21594_v49 = vpop.f32.mrb[104].mxu1 }
 0x96d   : > { %v21596_v50 = vpop.f32.mrb[105].mxu0  ;;  %v21598_v14 = vpop.f32.mrb[105].mxu1  ;;  %v12057_v2 = vrot.slane %v21592_v22, 7  ;;  %v12089_v10 = vrot.slane %v21592_v22, 3  ;;  %v12059_v19 = vrot.slane %v21594_v49, 7 }
 0x970   : > { %v21606_v45 = vpop.f32.mrb[106].mxu0  ;;  %v21608_v13 = vpop.f32.mrb[106].mxu1 }
 0x971   : > { %v11953_v5 = vmax.f32 %v21606_v45, -5.0  ;;  %v11955_v28 = vmax.f32 %v21608_v13, -5.0  ;;  %v21612_v30 = vpop.f32.mrb[107].mxu0  ;;  %v21614_v9 = vpop.f32.mrb[107].mxu1  ;;  %v12017_v16 = vrot.slane %v21606_v45, 3 }
 0x972   : > { %v11954_v47 = vmax.f32 %v21612_v30, -5.0  ;;  %v11956_v56 = vmax.f32 %v21614_v9, -5.0 }
 0x973   : > { %v11965_v37 = vmin.f32 %v11953_v5, 3.0  ;;  %v11967_v21 = vmin.f32 %v11955_v28, 3.0 }
 0x974   : > { %v11966_v44 = vmin.f32 %v11954_v47, 3.0  ;;  %v9214_v4 = vpop.f32.mrb[108].mxu0  ;;  %v11940_v20 = vpop.f32.mrb[108].mxu1  ;;  %v11968_v51 = vmin.f32 %v11956_v56, 3.0 }
 0x975   : > { %v11977_v33 = vsub.f32 0.0, %v11965_v37  ;;  %v9216_v59 = vpop.f32.mrb[109].mxu0  ;;  %v11942_v26 = vpop.f32.mrb[109].mxu1  ;;  %v11979_v63 = vsub.f32 0.0, %v11967_v21  ;;  %v12210_v36 = vrot.slane %v11965_v37, 4  ;;  %v11957_v24 = vmax.f32 %v9214_v4, -5.0 }
 0x976   : > { %v11978_v25 = vsub.f32 0.0, %v11966_v44  ;;  %v12216_v54 = vrot.slane %v11967_v21, 4  ;;  %v11959_v32 = vmax.f32 %v11940_v20, -5.0  ;;  %v11958_v38 = vmax.f32 %v9216_v59, -5.0 }
 0x977   : > { %v11989_v60 = vmul.f32 1.442695, %v11977_v33  ;;  %v11960_v27 = vmax.f32 %v11942_v26, -5.0  ;;  %v12213_v52 = vrot.slane %v11966_v44, 4  ;;  %v11980_v55 = vsub.f32 0.0, %v11968_v51 }
 0x978   : > { %v9222_v12 = vpop.f32.mrb[110].mxu0  ;;  %v11948_v7 = vpop.f32.mrb[110].mxu1  ;;  %v11969_v57 = vmin.f32 %v11957_v24, 3.0  ;;  %v11993_v28 = vmul.f32 1.442695, %v11979_v63  ;;  %v11971_v47 = vmin.f32 %v11959_v32, 3.0 }
 0x979   : > { %v9224_v11 = vpop.f32.mrb[111].mxu0  ;;  %v11961_v43 = vmax.f32 %v9222_v12, -5.0  ;;  %v11950_v5 = vpop.f32.mrb[111].mxu1  ;;  %v11970_v56 = vmin.f32 %v11958_v38, 3.0  ;;  %v21635_v17 = vmin.f32 %v11960_v27, 3.0  ;;  %15002 = vpow2.f32 %v11989_v60 }
 0x97a   : > { %v11991_v37 = vmul.f32 1.442695, %v11978_v25  ;;  %v11981_v33 = vsub.f32 0.0, %v11969_v57  ;;  %v12211_v4 = vrot.slane %v11969_v57, 4  ;;  %v12219_v21 = vrot.slane %v11968_v51, 4 }
 0x97b   : > { %v11973_v39 = vmin.f32 %v11961_v43, 3.0  ;;  %v12217_v20 = vrot.slane %v11971_v47, 4  ;;  %v12214_v59 = vrot.slane %v11970_v56, 4  ;;  %v11995_v26 = vmul.f32 1.442695, %v11980_v55 }
 0x97c   : > { %v12212_v44 = vsel %vm12209_vm3, %v12210_v36, %v12211_v4  ;;  %v11983_v34 = vsub.f32 0.0, %v11971_v47  ;;  %v12220_v24 = vrot.slane %v21635_v17, 4  ;;  %v11997_v12 = vmul.f32 1.442695, %v11981_v33 }
 0x97d   : > { %v12218_v63 = vsel %vm12209_vm3, %v12216_v54, %v12217_v20  ;;  %v11982_v32 = vsub.f32 0.0, %v11970_v56  ;;  %v12215_v38 = vsel %vm12209_vm3, %v12213_v52, %v12214_v59  ;;  %15004 = vpow2.f32 %v11993_v28 }
 0x97e   : > { %v11984_v25 = vsub.f32 0.0, %v21635_v17  ;;  %v21645_v51 = vsel %vm12209_vm3, %v12219_v21, %v12220_v24  ;;  %v11985_v60 = vsub.f32 0.0, %v11973_v39  ;;  %15006 = vpow2.f32 %v11991_v37 }
 0x97f   : > { %v12222_v36 = vrot.slane %v11973_v39, 4  ;;  %v11963_v27 = vmax.f32 %v11948_v7, -5.0  ;;  %v11962_v55 = vmax.f32 %v9224_v11, -5.0  ;;  %15008 = vpow2.f32 %v11995_v26 }
 0x980   : > { %v12001_v57 = vmul.f32 1.442695, %v11983_v34  ;;  %v12005_v43 = vmul.f32 1.442695, %v11985_v60  ;;  %v11964_v54 = vmax.f32 %v11950_v5, -5.0  ;;  %15010 = vpow2.f32 %v11997_v12 }
 0x981   : > { %v11999_v47 = vmul.f32 1.442695, %v11982_v32  ;;  %v12223_v52 = vsel %vm12209_vm3, %v12211_v4, %v12222_v36  ;;  %v11975_v28 = vmin.f32 %v11963_v27, 3.0  ;;  %v12003_v56 = vmul.f32 1.442695, %v11984_v25 }
 0x982   : > { %15012 = vpow2.f32 %v12005_v43  ;;  %v12242_v33 = vadd.f32 %v12223_v52, %v12212_v44  ;;  %v11974_v41 = vmin.f32 %v11962_v55, 3.0  ;;  %v12243_v21 = vsel %vm12209_vm3, %v12222_v36, 0.0  ;;  %v209_v55 = vld [vmem:[%s15193_s20 + $0x20] sm:$0x1] }
 0x983   : > { %v11987_v0 = vsub.f32 0.0, %v11975_v28  ;;  %v12226_v37 = vrot.slane %v11975_v28, 4  ;;  %v11976_v39 = vmin.f32 %v11964_v54, 3.0  ;;  %15014 = vpow2.f32 %v12001_v57  ;;  %v21649_v5 = vpop.eup %15002 }
 0x984   : > { %v12244_v7 = vadd.f32 %v12243_v21, %v12242_v33  ;;  %v11986_v11 = vsub.f32 0.0, %v11974_v41  ;;  %v12224_v34 = vrot.slane %v11974_v41, 4  ;;  %v12019_v26 = vrot.slane %v21608_v13, 3  ;;  %v210_v33 = vld [vmem:[%s15193_s20 + $0x28] sm:$0x1] }
 0x985   : > { %15016 = vpow2.f32 %v11999_v47  ;;  %v12009_v4 = vmul.f32 1.442695, %v11987_v0  ;;  %v12227_v12 = vsel %vm12209_vm3, %v12217_v20, %v12226_v37  ;;  %v12261_v60 = vsel %vm12209_vm3, %v12226_v37, 0.0 }
 0x986   : > { %15018 = vpow2.f32 %v12003_v56  ;;  %v12260_v44 = vadd.f32 %v12227_v12, %v12218_v63  ;;  %v12007_v32 = vmul.f32 1.442695, %v11986_v11  ;;  %v12225_v25 = vsel %vm12209_vm3, %v12214_v59, %v12224_v34  ;;  %v211_v59 = vld [vmem:[%s15193_s20 + $0x30] sm:$0x1]  ;;  %v212_v11 = vld [vmem:[%s15193_s20 + $0x38] sm:$0x1] }
 0x987   : > { %15020 = vpow2.f32 %v12009_v4  ;;  %v12251_v36 = vadd.f32 %v12225_v25, %v12215_v38  ;;  %v11988_v27 = vsub.f32 0.0, %v11976_v39  ;;  %v21655_v41 = vpop.eup %15004  ;;  %v12018_v13 = vrot.slane %v21612_v30, 3  ;;  %s12509_s20 = sshll.u32 %s15174_s4, 2 }
 0x988   : > { %v21659_v0 = vadd.f32 %v12261_v60, %v12260_v44  ;;  %15022 = vpow2.f32 %v12007_v32  ;;  %v12252_v20 = vsel %vm12209_vm3, %v12224_v34, 0.0  ;;  %v21662_v63 = vpop.eup %15006  ;;  %v12020_v57 = vrot.slane %v21614_v9, 3  ;;  %s202_s5 = scalar_lea.vmem [#allocation3], %s12509_s20 }
 0x989   : > { %v21666_v43 = vadd.f32 %v12252_v20, %v12251_v36  ;;  %v12011_v38 = vmul.f32 1.442695, %v11988_v27  ;;  %v12228_v54 = vrot.slane %v11976_v39, 4  ;;  %v21668_v47 = vpop.eup %15008  ;;  %v12091_v52 = vrot.slane %v21594_v49, 3  ;;  %s12436_s6 = sshll.u32 %s202_s5, 4  ;;  %s21829_s6 = int_to_ptr.vmem [resolvable:$true] %s12436_s6 }
 0x98a   : > { %v12058_v30 = vrot.slane %v21596_v50, 7  ;;  %v12090_v28 = vrot.slane %v21596_v50, 3  ;;  %v12060_v56 = vrot.slane %v21598_v14, 7  ;;  %v21675_v21 = vpop.eup %15010  ;;  %v12092_v37 = vrot.slane %v21598_v14, 3  ;;  %s15030_s11 = scalar_lea.vmem %s21829_s6, 64  ;;  %p15037_p2 = scmp.lt.s32.totalorder %s21829_s6, %s15035_s17 }
 0x98b   : > { %v12025_v9 = vsub.f32 %v21561_v42, %v12017_v16  ;;  %v12029_v39 = vsub.f32 %v209_v55, %v12017_v16  ;;  %15024 = vpow2.f32 %v12011_v38  ;;  %v12027_v4 = vsub.f32 %v21578_v8, %v12019_v26  ;;  %p15031_p13 = scmp.ne.s32.totalorder %s21829_s6, %s15030_s11  ;;  %p15038_p3 = scmp.lt.s32.totalorder %s15036_s19, %s15030_s11 }
 0x98c   : > { %v15013_v34 = vpop.eup %15012  ;;  %v12031_v12 = vsub.f32 %v211_v59, %v12019_v26  ;;  %v12026_v44 = vsub.f32 %v21566_v46, %v12018_v13  ;;  %v12245_v32 = vrot.slane %v12244_v7, 4  ;;  %v12030_v25 = vsub.f32 %v210_v33, %v12018_v13 }
 0x98d   : > { %v12028_v60 = vsub.f32 %v21573_v53, %v12020_v57  ;;  %v12037_v36 = vrot.slane %v15013_v34, 7  ;;  %v12229_v42 = vsel %vm12209_vm3, %v12220_v24, %v12228_v54  ;;  %v21690_v27 = vpop.eup %15014  ;;  %v12181_v45 = vrot.slane %v21649_v5, 7  ;;  %p15032_p0 = pnand %p15031_p13, %p15155_p6  ;;  %p15039_p4 = por %p15038_p3, %p15037_p2 }
 0x98e   : > { %v12032_v55 = vsub.f32 %v212_v11, %v12020_v57  ;;  %v12269_v8 = vadd.f32 %v12229_v42, %v21645_v51  ;;  %v12270_v20 = vsel %vm12209_vm3, %v12228_v54, 0.0  ;;  %v12109_v59 = vrot.slane %v21675_v21, 7 }
 0x98f   : > { %v21695_v26 = vpop.eup %15016  ;;  %v12045_v13 = vmul.f32 %v12037_v36, %v12025_v9  ;;  %v12049_v53 = vmul.f32 %v12037_v36, %v12029_v39  ;;  %v21703_v38 = vadd.f32 %v12245_v32, %v12244_v7  ;;  %v12145_v51 = vrot.slane %v21675_v21, 3  ;;  %p15033_p1 = pneg %p15032_p0 }
 0x990   : > { %v21699_v17 = vpop.eup %15018  ;;  %v21705_v33 = vadd.f32 %v12270_v20, %v12269_v8  ;;  %v12073_v54 = vrot.slane %v15013_v34, 3  ;;  %v12111_v36 = vrot.slane %v21690_v27, 7  ;;  %v12147_v42 = vrot.slane %v21690_v27, 3 }
 0x991   : > { %v15021_v57 = vpop.eup %15020  ;;  %v12065_v11 = vsub.f32 %v12045_v13, %v12057_v2  ;;  %v12069_v9 = vsub.f32 %v12049_v53, %v12057_v2  ;;  %v12110_v7 = vrot.slane %v21695_v26, 7  ;;  %v12146_v8 = vrot.slane %v21695_v26, 3  ;;  %p15040_p5 = pnand %p15039_p4, %p15033_p1 }
 0x992   : > { %v15023_v39 = vpop.eup %15022  ;;  %v12039_v32 = vrot.slane %v15021_v57, 7  ;;  %v12112_v46 = vrot.slane %v21699_v17, 7  ;;  %v12075_v61 = vrot.slane %v15021_v57, 3  ;;  %v25313_v5 = vrot.slane %v21586_v23, 3 }
 0x993   : > { %v12081_v20 = vmul.f32 %v12073_v54, %v12065_v11  ;;  %v12085_v24 = vmul.f32 %v12073_v54, %v12069_v9  ;;  %v12038_v21 = vrot.slane %v15023_v39, 7  ;;  %v12074_v9 = vrot.slane %v15023_v39, 3 }
 0x994   : > { %v12047_v13 = vmul.f32 %v12039_v32, %v12027_v4  ;;  %v12051_v16 = vmul.f32 %v12039_v32, %v12031_v12 }
 0x995   : > { %v15025_v2 = vpop.eup %15024  ;;  %v12097_v34 = vsub.f32 %v12081_v20, %v12089_v10  ;;  %v12101_v27 = vsub.f32 %v12085_v24, %v12089_v10  ;;  %v12046_v53 = vmul.f32 %v12038_v21, %v12026_v44  ;;  %v12050_v3 = vmul.f32 %v12038_v21, %v12030_v25 }
 0x996   : > { %v12067_v26 = vsub.f32 %v12047_v13, %v12059_v19  ;;  %v12071_v11 = vsub.f32 %v12051_v16, %v12059_v19  ;;  %v12040_v54 = vrot.slane %v15025_v2, 7  ;;  %v12148_v21 = vrot.slane %v21699_v17, 3 }
 0x997   : > { %v12117_v4 = vmul.f32 %v12109_v59, %v12097_v34  ;;  %v12121_v12 = vmul.f32 %v12109_v59, %v12101_v27  ;;  %v12066_v57 = vsub.f32 %v12046_v53, %v12058_v30  ;;  %v12070_v32 = vsub.f32 %v12050_v3, %v12058_v30 }
 0x998   : > { %v12083_v22 = vmul.f32 %v12075_v61, %v12067_v26  ;;  %v12087_v10 = vmul.f32 %v12075_v61, %v12071_v11  ;;  %v12048_v44 = vmul.f32 %v12040_v54, %v12028_v60  ;;  %v12052_v25 = vmul.f32 %v12040_v54, %v12032_v55 }
 0x999   : > { %v12137_v24 = vsub.f32 %v12117_v4, %v12129_v18  ;;  %v12141_v19 = vsub.f32 %v12121_v12, %v12129_v18  ;;  %v12082_v16 = vmul.f32 %v12074_v9, %v12066_v57  ;;  %v12086_v39 = vmul.f32 %v12074_v9, %v12070_v32 }
 0x99a   : > { %v12099_v59 = vsub.f32 %v12083_v22, %v12091_v52  ;;  %v12103_v20 = vsub.f32 %v12087_v10, %v12091_v52  ;;  %v12068_v3 = vsub.f32 %v12048_v44, %v12060_v56  ;;  %v12072_v61 = vsub.f32 %v12052_v25, %v12060_v56 }
 0x99b   : > { %v12153_v30 = vmul.f32 %v12145_v51, %v12137_v24  ;;  %v12157_v60 = vmul.f32 %v12145_v51, %v12141_v19  ;;  %v12098_v18 = vsub.f32 %v12082_v16, %v12090_v28  ;;  %v12102_v55 = vsub.f32 %v12086_v39, %v12090_v28 }
 0x99c   : > { %v12119_v13 = vmul.f32 %v12111_v36, %v12099_v59  ;;  %v12123_v34 = vmul.f32 %v12111_v36, %v12103_v20  ;;  %v12076_v49 = vrot.slane %v15025_v2, 3  ;;  %v25314_v57 = vmov %v25313_v5 }
 0x99d   : > { %v12169_v52 = vsub.f32 %v12153_v30, %v12161_v58  ;;  %v12173_v27 = vsub.f32 %v12157_v60, %v12161_v58  ;;  %v12118_v56 = vmul.f32 %v12110_v7, %v12098_v18  ;;  %v12122_v53 = vmul.f32 %v12110_v7, %v12102_v55 }
 0x99e   : > { %v12139_v51 = vsub.f32 %v12119_v13, %v12131_v48  ;;  %v12143_v50 = vsub.f32 %v12123_v34, %v12131_v48  ;;  %v12084_v28 = vmul.f32 %v12076_v49, %v12068_v3  ;;  %v12088_v26 = vmul.f32 %v12076_v49, %v12072_v61 }
 0x99f   : > { %v12189_v17 = vmul.f32 %v12181_v45, %v12169_v52  ;;  %v12193_v36 = vmul.f32 %v12181_v45, %v12173_v27  ;;  %v12138_v6 = vsub.f32 %v12118_v56, %v12130_v15  ;;  %v12142_v58 = vsub.f32 %v12122_v53, %v12130_v15 }
 0x9a0   : > { %v12155_v7 = vmul.f32 %v12147_v42, %v12139_v51  ;;  %v12159_v2 = vmul.f32 %v12147_v42, %v12143_v50  ;;  %v12100_v11 = vsub.f32 %v12084_v28, %v12092_v37  ;;  %v12104_v48 = vsub.f32 %v12088_v26, %v12092_v37 }
 0x9a1   : > { %v12310_v9 = vmul.f32 %v12189_v17, %v12189_v17  ;;  %v12314_v54 = vmul.f32 %v12193_v36, %v12193_v36  ;;  %v12154_v4 = vmul.f32 %v12146_v8, %v12138_v6  ;;  %v12158_v12 = vmul.f32 %v12146_v8, %v12142_v58 }
 0x9a2   : > { %v12171_v45 = vsub.f32 %v12155_v7, %v25313_v5  ;;  %v12175_v32 = vsub.f32 %v12159_v2, %v25314_v57  ;;  %v12120_v22 = vmul.f32 %v12112_v46, %v12100_v11  ;;  %v12124_v15 = vmul.f32 %v12112_v46, %v12104_v48 }
 0x9a3   : > { %v12327_v10 = vrot.slane %v12310_v9, 5  ;;  %v12328_v42 = vrot.slane %v12314_v54, 5  ;;  %v25315_v44 = vrot.slane %v21588_v62, 3  ;;  %v25317_v24 = vrot.slane %v21655_v41, 7 }
 0x9a4   : > { %v25319_v39 = vrot.slane %v21590_v31, 7  ;;  %v12263_v3 = vrot.slane %v21659_v0, 4  ;;  %v25321_v61 = vrot.slane %v21662_v63, 7  ;;  %v12254_v51 = vrot.slane %v21666_v43, 4 }
 0x9a5   : > { %v12170_v25 = vsub.f32 %v12154_v4, %v25315_v44  ;;  %v25316_v14 = vmov %v25315_v44  ;;  %v12191_v19 = vmul.f32 %v25317_v24, %v12171_v45  ;;  %v25318_v8 = vmov %v25317_v24 }
 0x9a6   : > { %v12174_v37 = vsub.f32 %v12158_v12, %v25316_v14  ;;  %v12195_v16 = vmul.f32 %v25318_v8, %v12175_v32  ;;  %v12140_v23 = vsub.f32 %v12120_v22, %v25319_v39  ;;  %v25320_v59 = vmov %v25319_v39 }
 0x9a7   : > { %v12144_v46 = vsub.f32 %v12124_v15, %v25320_v59  ;;  %v12329_v20 = vsel %vm12326_vm4, %v12327_v10, %v12328_v42  ;;  %v12190_v62 = vmul.f32 %v25321_v61, %v12170_v25  ;;  %v25322_v30 = vmov %v25321_v61 }
 0x9a8   : > { %v12194_v60 = vmul.f32 %v25322_v30, %v12174_v37  ;;  %v12343_v18 = vsel %vm12209_vm3, %v12329_v20, 0.0  ;;  %v12312_v41 = vmul.f32 %v12191_v19, %v12191_v19  ;;  %v12316_v55 = vmul.f32 %v12195_v16, %v12195_v16 }
 0x9a9   : > { %v12156_v13 = vmul.f32 %v12148_v21, %v12140_v23  ;;  %v12344_v34 = vrot.slane %v12343_v18, 4  ;;  %v12311_v49 = vmul.f32 %v12190_v62, %v12190_v62  ;;  %v12160_v27 = vmul.f32 %v12148_v21, %v12144_v46 }
 0x9aa   : > { %v12315_v52 = vmul.f32 %v12194_v60, %v12194_v60  ;;  %v12333_v56 = vrot.slane %v12312_v41, 5  ;;  %v12334_v53 = vrot.slane %v12316_v55, 5  ;;  %v25323_v50 = vrot.slane %v21590_v31, 3 }
 0x9ab   : > { %v12345_v26 = vadd.f32 %v12344_v34, %v12343_v18  ;;  %v12330_v17 = vrot.slane %v12311_v49, 5  ;;  %v25325_v58 = vrot.slane %v21604_v40, 2  ;;  %v12247_v2 = vrot.slane %v21703_v38, 2 }
 0x9ac   : > { %v12172_v28 = vsub.f32 %v12156_v13, %v25323_v50  ;;  %v12331_v63 = vrot.slane %v12315_v52, 5  ;;  %v25324_v36 = vmov %v25323_v50  ;;  %v12335_v21 = vsel %vm12326_vm4, %v12333_v56, %v12334_v53 }
 0x9ad   : > { %v12176_v6 = vsub.f32 %v12160_v27, %v25324_v36  ;;  %v12300_v7 = vadd.f32 %v25325_v58, %v21604_v40  ;;  %v25326_v11 = vrot.slane %v21668_v47, 7  ;;  %v12346_v9 = vrot.slane %v12345_v26, 2 }
 0x9ae   : > { %v12357_v54 = vsel %vm12209_vm3, %v12335_v21, 0.0  ;;  %v12332_v4 = vsel %vm12326_vm4, %v12330_v17, %v12331_v63  ;;  %v12264_v5 = vadd.f32 %v12263_v3, %v21659_v0  ;;  %v12255_v22 = vadd.f32 %v12254_v51, %v21666_v43 }
 0x9af   : > { %v12192_v48 = vmul.f32 %v25326_v11, %v12172_v28  ;;  %v25327_v12 = vmov %v25326_v11  ;;  %v12358_v45 = vrot.slane %v12357_v54, 4  ;;  %v12350_v40 = vsel %vm12209_vm3, %v12332_v4, 0.0 }
 0x9b0   : > { %v12196_v31 = vmul.f32 %v25327_v12, %v12176_v6  ;;  %v12347_v32 = vadd.f32 %v12346_v9, %v12345_v26  ;;  %v12351_v15 = vrot.slane %v12350_v40, 4  ;;  %v12248_v42 = vadd.f32 %v12247_v2, %v21703_v38 }
 0x9b1   : > { %v12313_v57 = vmul.f32 %v12192_v48, %v12192_v48  ;;  %v25328_v44 = vrot.slane %v21602_v29, 1  ;;  %v12359_v14 = vadd.f32 %v12358_v45, %v12357_v54  ;;  %v12272_v0 = vrot.slane %v21705_v33, 4 }
 0x9b2   : > { %v12317_v10 = vmul.f32 %v12196_v31, %v12196_v31  ;;  %v12348_v37 = vrot.slane %v12347_v32, 1  ;;  %v12352_v24 = vadd.f32 %v12351_v15, %v12350_v40  ;;  %v12294_v8 = vrot.slane %v21616_v35, 1 }
 0x9b3   : > { %v12288_v25 = vadd.f32 %v25328_v44, %v21602_v29  ;;  %v12336_v47 = vrot.slane %v12313_v57, 5  ;;  %v12301_v16 = vrot.slane %v12300_v7, 1  ;;  %v12265_v39 = vrot.slane %v12264_v5, 2 }
 0x9b4   : > { %v12337_v19 = vrot.slane %v12317_v10, 5  ;;  %v12360_v43 = vrot.slane %v12359_v14, 2  ;;  %v12349_v23 = vadd.f32 %v12348_v37, %v12347_v32  ;;  %v12256_v59 = vrot.slane %v12255_v22, 2 }
 0x9b5   : > { %v12353_v46 = vrot.slane %v12352_v24, 2  ;;  %v25329_v29 = vrot.slane %v21600_v1, 2  ;;  %v12249_v3 = vrot.slane %v12248_v42, 1  ;;  %v12273_v18 = vadd.f32 %v12272_v0, %v21705_v33 }
 0x9b6   : > { %v12338_v38 = vsel %vm12326_vm4, %v12336_v47, %v12337_v19  ;;  %v12361_v61 = vadd.f32 %v12360_v43, %v12359_v14  ;;  %v12371_v30 = vadd.f32 %v12349_v23, %v12288_v25  ;;  %v12266_v55 = vadd.f32 %v12265_v39, %v12264_v5 }
 0x9b7   : > { %v12307_v20 = vadd.f32 %v25329_v29, %v21600_v1  ;;  %v12364_v62 = vsel %vm12209_vm3, %v12338_v38, 0.0  ;;  %v12354_v60 = vadd.f32 %v12353_v46, %v12352_v24  ;;  %v12302_v13 = vadd.f32 %v12301_v16, %v12300_v7 }
 0x9b8   : > { %v12365_v41 = vrot.slane %v12364_v62, 4  ;;  %v12362_v34 = vrot.slane %v12361_v61, 1  ;;  %v12295_v49 = vadd.f32 %v12294_v8, %v21616_v35  ;;  %v12375_v52 = vmul.f32 -0.5, %v12371_v30 }
 0x9b9   : > { %v12257_v27 = vadd.f32 %v12256_v59, %v12255_v22  ;;  %v12355_v56 = vrot.slane %v12354_v60, 1  ;;  %v12308_v51 = vrot.slane %v12307_v20, 1  ;;  %v12250_v1 = vadd.f32 %v12249_v3, %v12248_v42 }
 0x9ba   : > { %v12366_v53 = vadd.f32 %v12365_v41, %v12364_v62  ;;  %v12363_v50 = vadd.f32 %v12362_v34, %v12361_v61  ;;  %v12510_v28 = vadd.f32 -7.351508, %v12375_v52  ;;  %v12274_v17 = vrot.slane %v12273_v18, 2 }
 0x9bb   : > { %v12356_v26 = vadd.f32 %v12355_v56, %v12354_v60  ;;  %v12267_v36 = vrot.slane %v12266_v55, 1  ;;  %v12258_v58 = vrot.slane %v12257_v27, 1  ;;  %v12309_v11 = vadd.f32 %v12308_v51, %v12307_v20 }
 0x9bc   : > { %v12367_v63 = vrot.slane %v12366_v53, 2  ;;  %v12373_v6 = vadd.f32 %v12363_v50, %v12302_v13  ;;  %v12383_v33 = vsub.f32 %v12510_v28, %v12250_v1  ;;  %v12396_v35 = vlaneseq }
 0x9bd   : > { %v12372_v2 = vadd.f32 %v12356_v26, %v12295_v49  ;;  %v12275_v9 = vadd.f32 %v12274_v17, %v12273_v18  ;;  %v15095_v4 = vmov 1966171168   ;;  %v12268_v31 = vadd.f32 %v12267_v36, %v12266_v55 }
 0x9be   : > { %v12368_v7 = vadd.f32 %v12367_v63, %v12366_v53  ;;  %v12377_v21 = vmul.f32 -0.5, %v12373_v6  ;;  %v12394_v12 = vunpack.c.l.s4 %v15095_v4  ;;  %v12259_v45 = vadd.f32 %v12258_v58, %v12257_v27 }
 0x9bf   : > { %v12376_v48 = vmul.f32 -0.5, %v12372_v2  ;;  %v12397_v22 = vshrl.u32 %v12396_v35, 7  ;;  %v12276_v10 = vrot.slane %v12275_v9, 1  ;;  %vm12418_vm5 = vcmp.lt.s32.totalorder %v12396_v35, 512 }
 0x9c0   : > { %v12369_v54 = vrot.slane %v12368_v7, 1  ;;  %v12512_v5 = vadd.f32 -7.351508, %v12377_v21  ;;  %v12395_v44 = vunpack.c.0.s8 %v12394_v12 }
 0x9c1   : > { %v12511_v40 = vadd.f32 -7.351508, %v12376_v48  ;;  %v12277_v47 = vadd.f32 %v12276_v10, %v12275_v9 }
 0x9c2   : > { %v12370_v57 = vadd.f32 %v12369_v54, %v12368_v7  ;;  %v12385_v32 = vsub.f32 %v12512_v5, %v12268_v31  ;;  %v12398_v24 = vsub.s32 %v12395_v44, %v12397_v22 }
 0x9c3   : > { %v12384_v15 = vsub.f32 %v12511_v40, %v12259_v45 }
 0x9c4   : > { %v12374_v42 = vadd.f32 %v12370_v57, %v12309_v11 }
 0x9c5   : > { %v12391_v14 = vcombine.low %v12383_v33, %v12384_v15 }
 0x9c6   : > { %v12378_v25 = vmul.f32 -0.5, %v12374_v42 }
 0x9c7   : > { %v12399_v8 = vrot.slane %v12391_v14, %v12398_v24 }
 0x9c8   : > { %v12513_v37 = vadd.f32 -7.351508, %v12378_v25 }
 0x9ca   : > { %v12386_v0 = vsub.f32 %v12513_v37, %v12277_v47 }
 0x9cc   : > { %v12392_v19 = vcombine.low %v12385_v32, %v12386_v0 }
 0x9ce   : > { %v12406_v16 = vrot.slane %v12392_v19, %v12398_v24 }
 0x9d0   : > { %v12407_v39 = vcombine.low %v12399_v8, %v12406_v16 }
 0x9d2   : > { %v12414_v43 = vrot.slane %v12407_v39, %v12398_v24 }
 0x9d4   : > { %12420 = vst.msk [vmem:[%s202_s5] sm:$0xf] %vm12418_vm5, %v12414_v43 }
 0x9d5   : > { %15043 = shalt.err (!%p15040_p5)
}
 0x9d6   : > { %s15044_s4 = scalar_lea.hbm %s21827_s9, 64  ;;  %s15048_s26 = scalar_lea.hbm %s21874_s3, 128 }
 0x9d7   : > { %p15045_p7 = scmp.ne.s32.totalorder %s21827_s9, %s15044_s4  ;;  %p15049_p12 = scmp.lt.u32.totalorder %s21827_s9, %s21874_s3 }
 0x9d8   : > { %p15050_p13 = scmp.lt.u32.totalorder %s15048_s26, %s15044_s4  ;;  %p15052_p1 = scmp.lt.u32.totalorder %s15044_s4, %s21827_s9 }
 0x9d9   : > { %p15046_p10 = pnand %p15045_p7, %p15155_p6 }
 0x9da   : > { %p15051_p0 = por %p15050_p13, %p15049_p12 }
 0x9db   : > { %p15047_p11 = pneg %p15046_p10 }
 0x9dc   : > { %p15053_p2 = por %p15052_p1, %p15051_p0 }
 0x9de   : > { %p15054_p3 = pnand %p15053_p2, %p15047_p11 }
 0x9e0   : > { %15057 = shalt.err (!%p15054_p3)
}
 0x9e1   : > { %14961 = dma.vmem_to_hbm [thread:$0]  (%p15155_p6), %s21829_s6, 64, %s21827_s9, %s12422_s10  }
 0x9e2 PF: > { %s12448_s29 = sand.u32 1, %s15080_s12   ;;  %p14964_p4 = pnand %p12503_p9, %p15159_p8 }
 0x9e3   : > { %s12449_s20 = scalar_lea.sflag [#allocation4], %s12448_s29 }
 0x9e4   : > { %15075 = dma.done.wait (!%p14964_p4), %s12449_s20, 64  }
 0x9e5   : > { %15077 = vsyncadd (!%p14964_p4), %s12449_s20, 4294967232  ;;  %p13_p5 = scmp.ge.s32.totalorder %s15140_s18, 4   ;;  %s25330_s12 = smov %s15084_s13 }
 0x9e6   : > { %s25331_s13 = smov %s15088_s14  ;;  %s25332_s14 = smov %s15153_s21 }
 0x9e7   : > { %s25333_s15 = smov %s15140_s18  ;;  %15 = sbr.rel (!%p13_p5) target bundleno = 3 (0x3), region = 95 }
 0x9ee   :  { %12454 = vsyncpa [#allocation4], 1 }
 0x9ef   :  { %12456 = vsyncpa [#allocation4 + $0x1], 1 }

</bundles_post_ra>
